<compile_context>
chip_gen: v7x
topology: tpu7x:2x2x1
jax: 0.10.0
libtpu: 0.0.40
codegen_flags: <defaults>
</compile_context>

<pallas_src>
import functools

import numpy as np
import jax
import jax.numpy as jnp
from jax import lax
from jax.experimental import pallas as pl
from jax.experimental.pallas import tpu as pltpu


# --------------------------------------------------------------------------- config

# (Cin, Cout, Hin) -- encoder block: conv 3x3, stride 2, pad 1 -> BatchNorm(train) -> ReLU
ENC_CFG = [
    (1, 16, 28),
    (16, 16, 14),
    (16, 8, 7),
    (8, 8, 4),
]
# (Cin, Cout, Hin, resize) -- decoder block: nearest resize -> conv 3x3 pad 1 -> ReLU (last: sigmoid)
DEC_CFG = [
    (8, 16, 2, "x2"),
    (16, 16, 4, "x2"),
    (16, 8, 8, "x2"),
    (8, 3, 16, "x2"),
    (3, 1, 32, (28, 28)),
]
NUM_EMB = 1024
EMB_DIM = 8
VQ_BETA = 0.25
BN_EPS = 1e-5
LANE_PAD = 128          # lane-dense width of the final decoder output block
OUT_HW = 28


# ------------------------------------------------------------------------ kernel helpers

def _bmm(a, b, n):
    """Batched matmul over batch n; a and/or b may be 2-D (broadcast across the batch).

    Computes a[n, m, k] @ b[n, k, c] -> (n, m, c) with f32 MXU accumulation.
    Operands must share a dtype (bf16 for conv/one-hot paths, f32 for distances/stats).
    """
    if a.ndim == 2:
        a = jnp.broadcast_to(a, (n,) + a.shape)
    if b.ndim == 2:
        b = jnp.broadcast_to(b, (n,) + b.shape)
    return lax.dot_general(a, b, (((2,), (1,)), ((0,), (0,))),
                           preferred_element_type=jnp.float32)


def _conv(y, s_ref, b_ref, hout, n):
    """Conv (+ resize/pad/stride folded in) as sum_di (S_di @ X) @ B_di, batched over N.

    S is the stacked row-tap matrix (3*row_block, Hin) with each tap block starting at
    an 8-aligned sublane offset; B holds the column taps / weights per tap.
    """
    row_block = s_ref.shape[0] // 3
    t = _bmm(s_ref[...], y.astype(jnp.bfloat16), n)        # one taller stacked matmul
    acc = None
    for di in range(3):
        td = t[:, di * row_block:di * row_block + hout, :].astype(jnp.bfloat16)
        c = _bmm(td, b_ref[di], n)                          # (N, Hout, Wout*Cout) f32
        acc = c if acc is None else acc + c
    return acc


# ------------------------------------------------------------------------ fused kernel

def _fused_vqvae_kernel(*refs, n, enc_houts, dec_houts, beta, eps, kcodes):
    """Encoder -> VQ -> Decoder, every activation VMEM-resident (layout (N, H, W*C))."""
    out_ref, loss_ref = refs[-2], refs[-1]
    y = refs[0][...]                                        # (N, 28, 28) f32 input
    pos = 1

    # ---- encoder: 4 x [conv(s=2, p=1) -> BatchNorm(training stats) -> ReLU]
    for hout in enc_houts:
        s_ref, b_ref, p_ref, g_ref, bt_ref = refs[pos:pos + 5]
        pos += 5
        acc = _conv(y, s_ref, b_ref, hout, n)               # (N, Hout, Wout*Cout) f32
        # single-pass BN stats: [colsum; sqsum] reduced by ONE f32 matmul against P
        colsum = jnp.sum(jnp.sum(acc, axis=0), axis=0, keepdims=True)
        sqsum = jnp.sum(jnp.sum(acc * acc, axis=0), axis=0, keepdims=True)
        stats = jnp.concatenate([colsum, sqsum], axis=0)    # (2, W*C)
        stats_c = jnp.dot(stats, p_ref[...], preferred_element_type=jnp.float32)
        mean_c = stats_c[0:1, :]                            # per-channel mean, tiled over w
        var_c = stats_c[1:2, :] - mean_c * mean_c           # biased variance (train-mode BN)
        scale = lax.rsqrt(var_c + eps) * g_ref[...]
        shift = bt_ref[...] - mean_c * scale
        y = jnp.maximum(acc * scale + shift, 0.0)

    # ---- vector quantizer (1024 codes, dim 8, beta)
    et2_ref, e2_ref, eg_ref = refs[pos:pos + 3]
    pos += 3
    ze = y                                                  # (N, 2, 2*8) f32
    xe = _bmm(ze, et2_ref[...], n)                          # (N, 2, 2*K) f32 distances term
    dist = e2_ref[...] - 2.0 * xe                           # x^2 dropped (argmin-invariant)
    n_pos = e2_ref.shape[1] // kcodes                       # latent w positions (=2)
    onehots = []
    for w in range(n_pos):
        d = dist[:, :, w * kcodes:(w + 1) * kcodes]         # lane-aligned slice
        minv = jnp.min(d, axis=-1, keepdims=True)
        iota = lax.broadcasted_iota(jnp.int32, d.shape, 2)
        # first index attaining the minimum (matches torch.argmin tie-breaking)
        idx = jnp.min(jnp.where(d == minv, iota, kcodes), axis=-1, keepdims=True)
        onehots.append((iota == idx).astype(jnp.bfloat16))  # exact 0/1 in bf16
    onehot = jnp.concatenate(onehots, axis=-1)              # (N, 2, 2*K) bf16
    q = _bmm(onehot, eg_ref[...], n)                        # (N, 2, 2*8) f32 gather
    diff = q - ze
    sq = jnp.sum(jnp.sum(diff * diff, axis=0), axis=0, keepdims=True)   # (1, 16)
    lsum = jnp.sum(sq, axis=1, keepdims=True)                            # (1, 1)
    # loss = beta*mse(q.detach(), x) + mse(q, x.detach()) -> (1+beta)*mse value-wise
    loss_ref[...] = lsum * ((1.0 + beta) / float(n * ze.shape[1] * ze.shape[2]))
    y = q   # straight-through forward value == quantized vectors
    # TODO(synk): gradients (straight-through / detach semantics) need a custom VJP.

    # ---- decoder: 4 x [nearest x2 -> conv -> ReLU] + resize(28) -> conv -> sigmoid
    n_dec = len(dec_houts)
    for l, hout in enumerate(dec_houts):
        s_ref, b_ref, bias_ref = refs[pos:pos + 3]
        pos += 3
        acc = _conv(y, s_ref, b_ref, hout, n) + bias_ref[...]
        if l < n_dec - 1:
            y = jnp.maximum(acc, 0.0)
        else:
            y = 0.5 * (jnp.tanh(0.5 * acc) + 1.0)           # stable sigmoid on the EUP
    out_ref[...] = y                                        # (N, 28, 128) lane-dense


# ---------------------------------------------------------- host-side constant builders
# Conv (+ optional nearest resize, zero padding, stride) is factored per sample as
#   out = sum_{di=0..2} (S_di @ X) @ B_di     with X laid out as (H, W*C).
# S_di[i, h] = 1 iff (s*i + di - 1) in [0, Hup) and h == rmap[s*i + di - 1]
# B_di[w*Cin+ci, j*Cout+co] = sum over dj with (s*j+dj-1) in [0, Wup), wmap[s*j+dj-1]==w
#                             of W[di, dj, ci, co]
# (out-of-range taps drop -> zero padding; rmap/wmap encode nearest resize / identity).

def _build_S(hin, hout, rmap, stride, row_block):
    """Stacked row-tap matrix (3*row_block, Hin); tap di occupies rows [di*row_block, di*row_block+hout)."""
    hup = len(rmap)
    s = np.zeros((3, row_block, hin), np.float32)
    for di in range(3):
        for i in range(hout):
            p = stride * i + di - 1
            if 0 <= p < hup:
                s[di, i, int(rmap[p])] = 1.0
    return s.reshape(3 * row_block, hin)


def _build_B(w, win, wout, wmap, stride):
    """Per-tap column/weight matrices (3, Win*Cin, Wout*Cout)."""
    cin, cout = w.shape[2], w.shape[3]
    wup = len(wmap)
    b = np.zeros((3, win * cin, wout * cout), np.float32)
    for di in range(3):
        for j in range(wout):
            for dj in range(3):
                p = stride * j + dj - 1
                if 0 <= p < wup:
                    src = int(wmap[p])
                    b[di, src * cin:(src + 1) * cin, j * cout:(j + 1) * cout] += w[di, dj]
    return b


def _round8(x):
    return -(-x // 8) * 8


# ----------------------------------------------------------------------------- params

def _init_conv(key, cin, cout, k=3):
    """Deterministic synthetic params (PyTorch-like uniform bounds); W is (kh, kw, Cin, Cout)."""
    k1, k2 = jax.random.split(key)
    bound = 1.0 / float(np.sqrt(cin * k * k))
    w = jax.random.uniform(k1, (k, k, cin, cout), jnp.float32, -bound, bound)
    b = jax.random.uniform(k2, (cout,), jnp.float32, -bound, bound)
    return w, b


def init_params(key):
    keys = jax.random.split(key, len(ENC_CFG) + len(DEC_CFG) + 1)
    ki = 0
    enc = []
    for (cin, cout, _) in ENC_CFG:
        w, b = _init_conv(keys[ki], cin, cout)
        ki += 1
        enc.append((w, b, jnp.ones((cout,), jnp.float32), jnp.zeros((cout,), jnp.float32)))
    dec = []
    for (cin, cout, _, _) in DEC_CFG:
        dec.append(_init_conv(keys[ki], cin, cout))
        ki += 1
    emb = jax.random.uniform(keys[ki], (NUM_EMB, EMB_DIM), jnp.float32,
                             -1.0 / NUM_EMB, 1.0 / NUM_EMB)
    return {"enc": enc, "dec": dec, "emb": emb}


def pack_params(params, batch):
    """One-time repacking of weights into the kernel's matmul-factorized constants.

    Note: 1/count for the BN statistics is folded into P, so `packed` is specific
    to the given batch size.
    """
    n = batch
    enc_p = []
    for (w, _b_unused, gamma, beta), (cin, cout, hin) in zip(params["enc"], ENC_CFG):
        # encoder conv bias is exactly cancelled by the training-mode BatchNorm -> dropped
        rmap = np.arange(hin)
        hout = (hin - 1) // 2 + 1
        wnp = np.asarray(w, np.float32)
        count = float(n * hout * hout)
        enc_p.append(dict(
            S=jnp.asarray(_build_S(hin, hout, rmap, 2, _round8(hout)), jnp.bfloat16),
            B=jnp.asarray(_build_B(wnp, hin, hout, rmap, 2), jnp.bfloat16),
            # channel-reduce + re-broadcast projection with 1/count folded in (f32: BN-stats path)
            P=jnp.asarray(np.kron(np.ones((hout, hout), np.float32),
                                  np.eye(cout, dtype=np.float32)) / count),
            g=jnp.asarray(np.tile(np.asarray(gamma, np.float32), hout)[None, :]),
            bt=jnp.asarray(np.tile(np.asarray(beta, np.float32), hout)[None, :]),
        ))

    dec_p = []
    n_dec = len(DEC_CFG)
    for li, ((w, b), (cin, cout, hin, resize)) in enumerate(zip(params["dec"], DEC_CFG)):
        if resize == "x2":
            rmap = np.repeat(np.arange(hin), 2)                     # nearest 2x upsample
        else:
            rmap = (np.arange(resize[0]) * hin) // resize[0]        # nearest resize (32 -> 28)
        hout = len(rmap)
        wnp = np.asarray(w, np.float32)
        bmat = _build_B(wnp, hin, hout, rmap, 1)
        bias_cols = np.tile(np.asarray(b, np.float32), hout)[None, :]
        if li == n_dec - 1:
            # pad the final layer to a lane-dense (..., 128) output; padding sliced off outside
            bpad = np.zeros((3, bmat.shape[1], LANE_PAD), np.float32)
            bpad[:, :, :bmat.shape[2]] = bmat
            bmat = bpad
            biaspad = np.zeros((1, LANE_PAD), np.float32)
            biaspad[:, :bias_cols.shape[1]] = bias_cols
            bias_cols = biaspad
        dec_p.append(dict(
            S=jnp.asarray(_build_S(hin, hout, rmap, 1, _round8(hout)), jnp.bfloat16),
            B=jnp.asarray(bmat, jnp.bfloat16),
            bias=jnp.asarray(bias_cols),
        ))

    emb = np.asarray(params["emb"], np.float32)                     # (K, D)
    k, d = emb.shape
    lw = 2                                                          # latent spatial width (2x2 map)
    et2 = np.zeros((lw * d, lw * k), np.float32)                    # block-diag [[E^T,0],[0,E^T]]
    eg = np.zeros((lw * k, lw * d), np.float32)                     # block-diag [[E,0],[0,E]]
    for t in range(lw):
        et2[t * d:(t + 1) * d, t * k:(t + 1) * k] = emb.T
        eg[t * k:(t + 1) * k, t * d:(t + 1) * d] = emb
    e2 = np.tile(np.sum(emb * emb, axis=1), lw)[None, :]            # (1, lw*K) squared norms
    return {
        "enc": enc_p,
        "dec": dec_p,
        "vq": dict(et2=jnp.asarray(et2),                            # f32: exact distances
                   e2=jnp.asarray(e2),
                   eg=jnp.asarray(eg, jnp.bfloat16)),               # bf16 gather matmul
    }


# --------------------------------------------------------------------------- forward

def _vmem_spec():
    return pl.BlockSpec(memory_space=pltpu.MemorySpace.VMEM)


def vqvae_forward(packed, x_nchw):
    n, _, h, w = x_nchw.shape
    x3 = x_nchw.astype(jnp.float32).reshape(n, h, w)                # C=1: NCHW -> (N, H, W*C)

    flat = [x3]
    for layer in packed["enc"]:
        flat += [layer["S"], layer["B"], layer["P"], layer["g"], layer["bt"]]
    flat += [packed["vq"]["et2"], packed["vq"]["e2"], packed["vq"]["eg"]]
    for layer in packed["dec"]:
        flat += [layer["S"], layer["B"], layer["bias"]]

    enc_houts = tuple((hin - 1) // 2 + 1 for (_, _, hin) in ENC_CFG)
    dec_houts = tuple(2 * hin if resize == "x2" else resize[0]
                      for (_, _, hin, resize) in DEC_CFG)

    kernel = functools.partial(
        _fused_vqvae_kernel, n=n, enc_houts=enc_houts, dec_houts=dec_houts,
        beta=VQ_BETA, eps=BN_EPS, kcodes=NUM_EMB)

    out_pad, loss = pl.pallas_call(
        kernel,
        out_shape=(jax.ShapeDtypeStruct((n, OUT_HW, LANE_PAD), jnp.float32),
                   jax.ShapeDtypeStruct((1, 1), jnp.float32)),
        in_specs=[_vmem_spec() for _ in flat],
        out_specs=(_vmem_spec(), _vmem_spec()),
        # Whole problem (weights + activations) is ~2 MiB, well inside the conservative
        # 32 MiB scoped-VMEM budget on every generation (v7x physical VMEM = 64 MiB).
        compiler_params=pltpu.CompilerParams(vmem_limit_bytes=32 * 1024 * 1024),
    )(*flat)

    out = out_pad[:, :, :OUT_HW].reshape(n, 1, OUT_HW, OUT_HW)      # drop lane padding; C=1
    return out, loss[0, 0]


# -------------------------------------------------------------------------------- main

if __name__ == "__main__":
    key = jax.random.PRNGKey(0)
    pkey, xkey = jax.random.split(key)

    params = init_params(pkey)
    packed = pack_params(params, batch=2)

    # MNIST-like input implied by the module: (batch, 1, 28, 28)
    x = jax.random.uniform(xkey, (2, 1, 28, 28), jnp.float32)

    out, loss = jax.jit(vqvae_forward)(packed, x)
    jax.block_until_ready((out, loss))

    assert out.shape == (2, 1, 28, 28) and out.dtype == jnp.float32
    assert loss.shape == () and bool(jnp.isfinite(loss))
    assert bool(jnp.all((out >= 0.0) & (out <= 1.0)))  # sigmoid output range
    print("KERNEL_OK")
</pallas_src>

<mosaic_0001>
module attributes {stable_mosaic.version = 11 : i64} {
  func.func @_fused_vqvae_kernel(%arg0: memref<2x28x28xf32, #tpu.memory_space<vmem>>, %arg1: memref<48x28xbf16, #tpu.memory_space<vmem>>, %arg2: memref<3x28x224xbf16, #tpu.memory_space<vmem>>, %arg3: memref<224x224xf32, #tpu.memory_space<vmem>>, %arg4: memref<1x224xf32, #tpu.memory_space<vmem>>, %arg5: memref<1x224xf32, #tpu.memory_space<vmem>>, %arg6: memref<24x14xbf16, #tpu.memory_space<vmem>>, %arg7: memref<3x224x112xbf16, #tpu.memory_space<vmem>>, %arg8: memref<112x112xf32, #tpu.memory_space<vmem>>, %arg9: memref<1x112xf32, #tpu.memory_space<vmem>>, %arg10: memref<1x112xf32, #tpu.memory_space<vmem>>, %arg11: memref<24x7xbf16, #tpu.memory_space<vmem>>, %arg12: memref<3x112x32xbf16, #tpu.memory_space<vmem>>, %arg13: memref<32x32xf32, #tpu.memory_space<vmem>>, %arg14: memref<1x32xf32, #tpu.memory_space<vmem>>, %arg15: memref<1x32xf32, #tpu.memory_space<vmem>>, %arg16: memref<24x4xbf16, #tpu.memory_space<vmem>>, %arg17: memref<3x32x16xbf16, #tpu.memory_space<vmem>>, %arg18: memref<16x16xf32, #tpu.memory_space<vmem>>, %arg19: memref<1x16xf32, #tpu.memory_space<vmem>>, %arg20: memref<1x16xf32, #tpu.memory_space<vmem>>, %arg21: memref<16x2048xf32, #tpu.memory_space<vmem>>, %arg22: memref<1x2048xf32, #tpu.memory_space<vmem>>, %arg23: memref<2048x16xbf16, #tpu.memory_space<vmem>>, %arg24: memref<24x2xbf16, #tpu.memory_space<vmem>>, %arg25: memref<3x16x64xbf16, #tpu.memory_space<vmem>>, %arg26: memref<1x64xf32, #tpu.memory_space<vmem>>, %arg27: memref<24x4xbf16, #tpu.memory_space<vmem>>, %arg28: memref<3x64x128xbf16, #tpu.memory_space<vmem>>, %arg29: memref<1x128xf32, #tpu.memory_space<vmem>>, %arg30: memref<48x8xbf16, #tpu.memory_space<vmem>>, %arg31: memref<3x128x128xbf16, #tpu.memory_space<vmem>>, %arg32: memref<1x128xf32, #tpu.memory_space<vmem>>, %arg33: memref<96x16xbf16, #tpu.memory_space<vmem>>, %arg34: memref<3x128x96xbf16, #tpu.memory_space<vmem>>, %arg35: memref<1x96xf32, #tpu.memory_space<vmem>>, %arg36: memref<96x32xbf16, #tpu.memory_space<vmem>>, %arg37: memref<3x96x128xbf16, #tpu.memory_space<vmem>>, %arg38: memref<1x128xf32, #tpu.memory_space<vmem>>, %arg39: memref<2x28x128xf32, #tpu.memory_space<vmem>>, %arg40: memref<1x1xf32, #tpu.memory_space<vmem>>) attributes {dimension_semantics = [], scalar_prefetch = 0 : i64, scratch_operands = 0 : i64, tpu.core_type = #tpu.core_type<tc>} {
    %c0 = arith.constant 0 : index
    %c0_0 = arith.constant 0 : index
    %c0_1 = arith.constant 0 : index
    %0 = vector.load %arg0[%c0, %c0_0, %c0_1] : memref<2x28x28xf32, #tpu.memory_space<vmem>>, vector<2x28x28xf32>
    %c0_2 = arith.constant 0 : index
    %c0_3 = arith.constant 0 : index
    %1 = vector.load %arg1[%c0_2, %c0_3] : memref<48x28xbf16, #tpu.memory_space<vmem>>, vector<48x28xbf16>
    %2 = arith.truncf %0 : vector<2x28x28xf32> to vector<2x28x28xbf16>
    %3 = vector.shape_cast %1 : vector<48x28xbf16> to vector<1x48x28xbf16>
    %4 = vector.broadcast %3 : vector<1x48x28xbf16> to vector<2x48x28xbf16>
    %cst = arith.constant dense<0.000000e+00> : vector<2x48x28xf32>
    %5 = tpu.matmul %4, %2, %cst {dimension_numbers = #tpu.dot_dimension_numbers<[2], [1], [1], [2], [0, 0, 0, 1, 1, 2], [0], [0]>} : vector<2x48x28xbf16>, vector<2x28x28xbf16>, vector<2x48x28xf32> -> vector<2x48x28xf32>
    %6 = vector.extract_strided_slice %5 {offsets = [0, 0, 0], sizes = [2, 14, 28], strides = [1, 1, 1]} : vector<2x48x28xf32> to vector<2x14x28xf32>
    %7 = arith.truncf %6 : vector<2x14x28xf32> to vector<2x14x28xbf16>
    %c0_4 = arith.constant 0 : index
    %c0_5 = arith.constant 0 : index
    %c0_6 = arith.constant 0 : index
    %8 = vector.load %arg2[%c0_4, %c0_5, %c0_6] : memref<3x28x224xbf16, #tpu.memory_space<vmem>>, vector<1x28x224xbf16>
    %9 = vector.shape_cast %8 : vector<1x28x224xbf16> to vector<28x224xbf16>
    %10 = vector.shape_cast %9 : vector<28x224xbf16> to vector<1x28x224xbf16>
    %11 = vector.broadcast %10 : vector<1x28x224xbf16> to vector<2x28x224xbf16>
    %cst_7 = arith.constant dense<0.000000e+00> : vector<2x14x224xf32>
    %12 = tpu.matmul %7, %11, %cst_7 {dimension_numbers = #tpu.dot_dimension_numbers<[2], [1], [1], [2], [0, 0, 0, 1, 1, 2], [0], [0]>} : vector<2x14x28xbf16>, vector<2x28x224xbf16>, vector<2x14x224xf32> -> vector<2x14x224xf32>
    %13 = vector.extract_strided_slice %5 {offsets = [0, 16, 0], sizes = [2, 14, 28], strides = [1, 1, 1]} : vector<2x48x28xf32> to vector<2x14x28xf32>
    %14 = arith.truncf %13 : vector<2x14x28xf32> to vector<2x14x28xbf16>
    %c1 = arith.constant 1 : index
    %c0_8 = arith.constant 0 : index
    %c0_9 = arith.constant 0 : index
    %15 = vector.load %arg2[%c1, %c0_8, %c0_9] : memref<3x28x224xbf16, #tpu.memory_space<vmem>>, vector<1x28x224xbf16>
    %16 = vector.shape_cast %15 : vector<1x28x224xbf16> to vector<28x224xbf16>
    %17 = vector.shape_cast %16 : vector<28x224xbf16> to vector<1x28x224xbf16>
    %18 = vector.broadcast %17 : vector<1x28x224xbf16> to vector<2x28x224xbf16>
    %cst_10 = arith.constant dense<0.000000e+00> : vector<2x14x224xf32>
    %19 = tpu.matmul %14, %18, %cst_10 {dimension_numbers = #tpu.dot_dimension_numbers<[2], [1], [1], [2], [0, 0, 0, 1, 1, 2], [0], [0]>} : vector<2x14x28xbf16>, vector<2x28x224xbf16>, vector<2x14x224xf32> -> vector<2x14x224xf32>
    %20 = arith.addf %12, %19 : vector<2x14x224xf32>
    %21 = vector.extract_strided_slice %5 {offsets = [0, 32, 0], sizes = [2, 14, 28], strides = [1, 1, 1]} : vector<2x48x28xf32> to vector<2x14x28xf32>
    %22 = arith.truncf %21 : vector<2x14x28xf32> to vector<2x14x28xbf16>
    %c2 = arith.constant 2 : index
    %c0_11 = arith.constant 0 : index
    %c0_12 = arith.constant 0 : index
    %23 = vector.load %arg2[%c2, %c0_11, %c0_12] : memref<3x28x224xbf16, #tpu.memory_space<vmem>>, vector<1x28x224xbf16>
    %24 = vector.shape_cast %23 : vector<1x28x224xbf16> to vector<28x224xbf16>
    %25 = vector.shape_cast %24 : vector<28x224xbf16> to vector<1x28x224xbf16>
    %26 = vector.broadcast %25 : vector<1x28x224xbf16> to vector<2x28x224xbf16>
    %cst_13 = arith.constant dense<0.000000e+00> : vector<2x14x224xf32>
    %27 = tpu.matmul %22, %26, %cst_13 {dimension_numbers = #tpu.dot_dimension_numbers<[2], [1], [1], [2], [0, 0, 0, 1, 1, 2], [0], [0]>} : vector<2x14x28xbf16>, vector<2x28x224xbf16>, vector<2x14x224xf32> -> vector<2x14x224xf32>
    %28 = arith.addf %20, %27 : vector<2x14x224xf32>
    %cst_14 = arith.constant dense<0.000000e+00> : vector<14x224xf32>
    %29 = vector.multi_reduction <add>, %28, %cst_14 [0] : vector<2x14x224xf32> to vector<14x224xf32>
    %cst_15 = arith.constant dense<0.000000e+00> : vector<224xf32>
    %30 = vector.multi_reduction <add>, %29, %cst_15 [0] : vector<14x224xf32> to vector<224xf32>
    %31 = vector.shape_cast %30 : vector<224xf32> to vector<1x224xf32>
    %32 = arith.mulf %28, %28 : vector<2x14x224xf32>
    %cst_16 = arith.constant dense<0.000000e+00> : vector<14x224xf32>
    %33 = vector.multi_reduction <add>, %32, %cst_16 [0] : vector<2x14x224xf32> to vector<14x224xf32>
    %cst_17 = arith.constant dense<0.000000e+00> : vector<224xf32>
    %34 = vector.multi_reduction <add>, %33, %cst_17 [0] : vector<14x224xf32> to vector<224xf32>
    %35 = vector.shape_cast %34 : vector<224xf32> to vector<1x224xf32>
    %36 = tpu.concatenate %31, %35 in 0 : vector<1x224xf32>, vector<1x224xf32> -> vector<2x224xf32>
    %c0_18 = arith.constant 0 : index
    %c0_19 = arith.constant 0 : index
    %37 = vector.load %arg3[%c0_18, %c0_19] : memref<224x224xf32, #tpu.memory_space<vmem>>, vector<224x224xf32>
    %cst_20 = arith.constant dense<0.000000e+00> : vector<2x224xf32>
    %38 = tpu.matmul %36, %37, %cst_20 {dimension_numbers = #tpu.dot_dimension_numbers<[1], [0], [0], [1], [0, 0, 1, 1], [], []>} : vector<2x224xf32>, vector<224x224xf32>, vector<2x224xf32> -> vector<2x224xf32>
    %39 = vector.extract_strided_slice %38 {offsets = [0, 0], sizes = [1, 224], strides = [1, 1]} : vector<2x224xf32> to vector<1x224xf32>
    %40 = vector.extract_strided_slice %38 {offsets = [1, 0], sizes = [1, 224], strides = [1, 1]} : vector<2x224xf32> to vector<1x224xf32>
    %41 = arith.mulf %39, %39 : vector<1x224xf32>
    %42 = arith.subf %40, %41 : vector<1x224xf32>
    %cst_21 = arith.constant 9.99999974E-6 : f32
    %43 = vector.broadcast %cst_21 : f32 to vector<1x224xf32>
    %44 = arith.addf %42, %43 : vector<1x224xf32>
    %45 = math.rsqrt %44 : vector<1x224xf32>
    %c0_22 = arith.constant 0 : index
    %c0_23 = arith.constant 0 : index
    %46 = vector.load %arg4[%c0_22, %c0_23] : memref<1x224xf32, #tpu.memory_space<vmem>>, vector<1x224xf32>
    %47 = arith.mulf %45, %46 : vector<1x224xf32>
    %c0_24 = arith.constant 0 : index
    %c0_25 = arith.constant 0 : index
    %48 = vector.load %arg5[%c0_24, %c0_25] : memref<1x224xf32, #tpu.memory_space<vmem>>, vector<1x224xf32>
    %49 = arith.mulf %39, %47 : vector<1x224xf32>
    %50 = arith.subf %48, %49 : vector<1x224xf32>
    %51 = vector.shape_cast %47 : vector<1x224xf32> to vector<1x1x224xf32>
    %52 = vector.broadcast %51 : vector<1x1x224xf32> to vector<2x14x224xf32>
    %53 = arith.mulf %28, %52 : vector<2x14x224xf32>
    %54 = vector.shape_cast %50 : vector<1x224xf32> to vector<1x1x224xf32>
    %55 = vector.broadcast %54 : vector<1x1x224xf32> to vector<2x14x224xf32>
    %56 = arith.addf %53, %55 : vector<2x14x224xf32>
    %cst_26 = arith.constant 0.000000e+00 : f32
    %57 = vector.broadcast %cst_26 : f32 to vector<2x14x224xf32>
    %58 = arith.maximumf %56, %57 : vector<2x14x224xf32>
    %c0_27 = arith.constant 0 : index
    %c0_28 = arith.constant 0 : index
    %59 = vector.load %arg6[%c0_27, %c0_28] : memref<24x14xbf16, #tpu.memory_space<vmem>>, vector<24x14xbf16>
    %60 = arith.truncf %58 : vector<2x14x224xf32> to vector<2x14x224xbf16>
    %61 = vector.shape_cast %59 : vector<24x14xbf16> to vector<1x24x14xbf16>
    %62 = vector.broadcast %61 : vector<1x24x14xbf16> to vector<2x24x14xbf16>
    %cst_29 = arith.constant dense<0.000000e+00> : vector<2x24x224xf32>
    %63 = tpu.matmul %62, %60, %cst_29 {dimension_numbers = #tpu.dot_dimension_numbers<[2], [1], [1], [2], [0, 0, 0, 1, 1, 2], [0], [0]>} : vector<2x24x14xbf16>, vector<2x14x224xbf16>, vector<2x24x224xf32> -> vector<2x24x224xf32>
    %64 = vector.extract_strided_slice %63 {offsets = [0, 0, 0], sizes = [2, 7, 224], strides = [1, 1, 1]} : vector<2x24x224xf32> to vector<2x7x224xf32>
    %65 = arith.truncf %64 : vector<2x7x224xf32> to vector<2x7x224xbf16>
    %c0_30 = arith.constant 0 : index
    %c0_31 = arith.constant 0 : index
    %c0_32 = arith.constant 0 : index
    %66 = vector.load %arg7[%c0_30, %c0_31, %c0_32] : memref<3x224x112xbf16, #tpu.memory_space<vmem>>, vector<1x224x112xbf16>
    %67 = vector.shape_cast %66 : vector<1x224x112xbf16> to vector<224x112xbf16>
    %68 = vector.shape_cast %67 : vector<224x112xbf16> to vector<1x224x112xbf16>
    %69 = vector.broadcast %68 : vector<1x224x112xbf16> to vector<2x224x112xbf16>
    %cst_33 = arith.constant dense<0.000000e+00> : vector<2x7x112xf32>
    %70 = tpu.matmul %65, %69, %cst_33 {dimension_numbers = #tpu.dot_dimension_numbers<[2], [1], [1], [2], [0, 0, 0, 1, 1, 2], [0], [0]>} : vector<2x7x224xbf16>, vector<2x224x112xbf16>, vector<2x7x112xf32> -> vector<2x7x112xf32>
    %71 = vector.extract_strided_slice %63 {offsets = [0, 8, 0], sizes = [2, 7, 224], strides = [1, 1, 1]} : vector<2x24x224xf32> to vector<2x7x224xf32>
    %72 = arith.truncf %71 : vector<2x7x224xf32> to vector<2x7x224xbf16>
    %c1_34 = arith.constant 1 : index
    %c0_35 = arith.constant 0 : index
    %c0_36 = arith.constant 0 : index
    %73 = vector.load %arg7[%c1_34, %c0_35, %c0_36] : memref<3x224x112xbf16, #tpu.memory_space<vmem>>, vector<1x224x112xbf16>
    %74 = vector.shape_cast %73 : vector<1x224x112xbf16> to vector<224x112xbf16>
    %75 = vector.shape_cast %74 : vector<224x112xbf16> to vector<1x224x112xbf16>
    %76 = vector.broadcast %75 : vector<1x224x112xbf16> to vector<2x224x112xbf16>
    %cst_37 = arith.constant dense<0.000000e+00> : vector<2x7x112xf32>
    %77 = tpu.matmul %72, %76, %cst_37 {dimension_numbers = #tpu.dot_dimension_numbers<[2], [1], [1], [2], [0, 0, 0, 1, 1, 2], [0], [0]>} : vector<2x7x224xbf16>, vector<2x224x112xbf16>, vector<2x7x112xf32> -> vector<2x7x112xf32>
    %78 = arith.addf %70, %77 : vector<2x7x112xf32>
    %79 = vector.extract_strided_slice %63 {offsets = [0, 16, 0], sizes = [2, 7, 224], strides = [1, 1, 1]} : vector<2x24x224xf32> to vector<2x7x224xf32>
    %80 = arith.truncf %79 : vector<2x7x224xf32> to vector<2x7x224xbf16>
    %c2_38 = arith.constant 2 : index
    %c0_39 = arith.constant 0 : index
    %c0_40 = arith.constant 0 : index
    %81 = vector.load %arg7[%c2_38, %c0_39, %c0_40] : memref<3x224x112xbf16, #tpu.memory_space<vmem>>, vector<1x224x112xbf16>
    %82 = vector.shape_cast %81 : vector<1x224x112xbf16> to vector<224x112xbf16>
    %83 = vector.shape_cast %82 : vector<224x112xbf16> to vector<1x224x112xbf16>
    %84 = vector.broadcast %83 : vector<1x224x112xbf16> to vector<2x224x112xbf16>
    %cst_41 = arith.constant dense<0.000000e+00> : vector<2x7x112xf32>
    %85 = tpu.matmul %80, %84, %cst_41 {dimension_numbers = #tpu.dot_dimension_numbers<[2], [1], [1], [2], [0, 0, 0, 1, 1, 2], [0], [0]>} : vector<2x7x224xbf16>, vector<2x224x112xbf16>, vector<2x7x112xf32> -> vector<2x7x112xf32>
    %86 = arith.addf %78, %85 : vector<2x7x112xf32>
    %cst_42 = arith.constant dense<0.000000e+00> : vector<7x112xf32>
    %87 = vector.multi_reduction <add>, %86, %cst_42 [0] : vector<2x7x112xf32> to vector<7x112xf32>
    %cst_43 = arith.constant dense<0.000000e+00> : vector<112xf32>
    %88 = vector.multi_reduction <add>, %87, %cst_43 [0] : vector<7x112xf32> to vector<112xf32>
    %89 = vector.shape_cast %88 : vector<112xf32> to vector<1x112xf32>
    %90 = arith.mulf %86, %86 : vector<2x7x112xf32>
    %cst_44 = arith.constant dense<0.000000e+00> : vector<7x112xf32>
    %91 = vector.multi_reduction <add>, %90, %cst_44 [0] : vector<2x7x112xf32> to vector<7x112xf32>
    %cst_45 = arith.constant dense<0.000000e+00> : vector<112xf32>
    %92 = vector.multi_reduction <add>, %91, %cst_45 [0] : vector<7x112xf32> to vector<112xf32>
    %93 = vector.shape_cast %92 : vector<112xf32> to vector<1x112xf32>
    %94 = tpu.concatenate %89, %93 in 0 : vector<1x112xf32>, vector<1x112xf32> -> vector<2x112xf32>
    %c0_46 = arith.constant 0 : index
    %c0_47 = arith.constant 0 : index
    %95 = vector.load %arg8[%c0_46, %c0_47] : memref<112x112xf32, #tpu.memory_space<vmem>>, vector<112x112xf32>
    %cst_48 = arith.constant dense<0.000000e+00> : vector<2x112xf32>
    %96 = tpu.matmul %94, %95, %cst_48 {dimension_numbers = #tpu.dot_dimension_numbers<[1], [0], [0], [1], [0, 0, 1, 1], [], []>} : vector<2x112xf32>, vector<112x112xf32>, vector<2x112xf32> -> vector<2x112xf32>
    %97 = vector.extract_strided_slice %96 {offsets = [0, 0], sizes = [1, 112], strides = [1, 1]} : vector<2x112xf32> to vector<1x112xf32>
    %98 = vector.extract_strided_slice %96 {offsets = [1, 0], sizes = [1, 112], strides = [1, 1]} : vector<2x112xf32> to vector<1x112xf32>
    %99 = arith.mulf %97, %97 : vector<1x112xf32>
    %100 = arith.subf %98, %99 : vector<1x112xf32>
    %cst_49 = arith.constant 9.99999974E-6 : f32
    %101 = vector.broadcast %cst_49 : f32 to vector<1x112xf32>
    %102 = arith.addf %100, %101 : vector<1x112xf32>
    %103 = math.rsqrt %102 : vector<1x112xf32>
    %c0_50 = arith.constant 0 : index
    %c0_51 = arith.constant 0 : index
    %104 = vector.load %arg9[%c0_50, %c0_51] : memref<1x112xf32, #tpu.memory_space<vmem>>, vector<1x112xf32>
    %105 = arith.mulf %103, %104 : vector<1x112xf32>
    %c0_52 = arith.constant 0 : index
    %c0_53 = arith.constant 0 : index
    %106 = vector.load %arg10[%c0_52, %c0_53] : memref<1x112xf32, #tpu.memory_space<vmem>>, vector<1x112xf32>
    %107 = arith.mulf %97, %105 : vector<1x112xf32>
    %108 = arith.subf %106, %107 : vector<1x112xf32>
    %109 = vector.shape_cast %105 : vector<1x112xf32> to vector<1x1x112xf32>
    %110 = vector.broadcast %109 : vector<1x1x112xf32> to vector<2x7x112xf32>
    %111 = arith.mulf %86, %110 : vector<2x7x112xf32>
    %112 = vector.shape_cast %108 : vector<1x112xf32> to vector<1x1x112xf32>
    %113 = vector.broadcast %112 : vector<1x1x112xf32> to vector<2x7x112xf32>
    %114 = arith.addf %111, %113 : vector<2x7x112xf32>
    %cst_54 = arith.constant 0.000000e+00 : f32
    %115 = vector.broadcast %cst_54 : f32 to vector<2x7x112xf32>
    %116 = arith.maximumf %114, %115 : vector<2x7x112xf32>
    %c0_55 = arith.constant 0 : index
    %c0_56 = arith.constant 0 : index
    %117 = vector.load %arg11[%c0_55, %c0_56] : memref<24x7xbf16, #tpu.memory_space<vmem>>, vector<24x7xbf16>
    %118 = arith.truncf %116 : vector<2x7x112xf32> to vector<2x7x112xbf16>
    %119 = vector.shape_cast %117 : vector<24x7xbf16> to vector<1x24x7xbf16>
    %120 = vector.broadcast %119 : vector<1x24x7xbf16> to vector<2x24x7xbf16>
    %cst_57 = arith.constant dense<0.000000e+00> : vector<2x24x112xf32>
    %121 = tpu.matmul %120, %118, %cst_57 {dimension_numbers = #tpu.dot_dimension_numbers<[2], [1], [1], [2], [0, 0, 0, 1, 1, 2], [0], [0]>} : vector<2x24x7xbf16>, vector<2x7x112xbf16>, vector<2x24x112xf32> -> vector<2x24x112xf32>
    %122 = vector.extract_strided_slice %121 {offsets = [0, 0, 0], sizes = [2, 4, 112], strides = [1, 1, 1]} : vector<2x24x112xf32> to vector<2x4x112xf32>
    %123 = arith.truncf %122 : vector<2x4x112xf32> to vector<2x4x112xbf16>
    %c0_58 = arith.constant 0 : index
    %c0_59 = arith.constant 0 : index
    %c0_60 = arith.constant 0 : index
    %124 = vector.load %arg12[%c0_58, %c0_59, %c0_60] : memref<3x112x32xbf16, #tpu.memory_space<vmem>>, vector<1x112x32xbf16>
    %125 = vector.shape_cast %124 : vector<1x112x32xbf16> to vector<112x32xbf16>
    %126 = vector.shape_cast %125 : vector<112x32xbf16> to vector<1x112x32xbf16>
    %127 = vector.broadcast %126 : vector<1x112x32xbf16> to vector<2x112x32xbf16>
    %cst_61 = arith.constant dense<0.000000e+00> : vector<2x4x32xf32>
    %128 = tpu.matmul %123, %127, %cst_61 {dimension_numbers = #tpu.dot_dimension_numbers<[2], [1], [1], [2], [0, 0, 0, 1, 1, 2], [0], [0]>} : vector<2x4x112xbf16>, vector<2x112x32xbf16>, vector<2x4x32xf32> -> vector<2x4x32xf32>
    %129 = vector.extract_strided_slice %121 {offsets = [0, 8, 0], sizes = [2, 4, 112], strides = [1, 1, 1]} : vector<2x24x112xf32> to vector<2x4x112xf32>
    %130 = arith.truncf %129 : vector<2x4x112xf32> to vector<2x4x112xbf16>
    %c1_62 = arith.constant 1 : index
    %c0_63 = arith.constant 0 : index
    %c0_64 = arith.constant 0 : index
    %131 = vector.load %arg12[%c1_62, %c0_63, %c0_64] : memref<3x112x32xbf16, #tpu.memory_space<vmem>>, vector<1x112x32xbf16>
    %132 = vector.shape_cast %131 : vector<1x112x32xbf16> to vector<112x32xbf16>
    %133 = vector.shape_cast %132 : vector<112x32xbf16> to vector<1x112x32xbf16>
    %134 = vector.broadcast %133 : vector<1x112x32xbf16> to vector<2x112x32xbf16>
    %cst_65 = arith.constant dense<0.000000e+00> : vector<2x4x32xf32>
    %135 = tpu.matmul %130, %134, %cst_65 {dimension_numbers = #tpu.dot_dimension_numbers<[2], [1], [1], [2], [0, 0, 0, 1, 1, 2], [0], [0]>} : vector<2x4x112xbf16>, vector<2x112x32xbf16>, vector<2x4x32xf32> -> vector<2x4x32xf32>
    %136 = arith.addf %128, %135 : vector<2x4x32xf32>
    %137 = vector.extract_strided_slice %121 {offsets = [0, 16, 0], sizes = [2, 4, 112], strides = [1, 1, 1]} : vector<2x24x112xf32> to vector<2x4x112xf32>
    %138 = arith.truncf %137 : vector<2x4x112xf32> to vector<2x4x112xbf16>
    %c2_66 = arith.constant 2 : index
    %c0_67 = arith.constant 0 : index
    %c0_68 = arith.constant 0 : index
    %139 = vector.load %arg12[%c2_66, %c0_67, %c0_68] : memref<3x112x32xbf16, #tpu.memory_space<vmem>>, vector<1x112x32xbf16>
    %140 = vector.shape_cast %139 : vector<1x112x32xbf16> to vector<112x32xbf16>
    %141 = vector.shape_cast %140 : vector<112x32xbf16> to vector<1x112x32xbf16>
    %142 = vector.broadcast %141 : vector<1x112x32xbf16> to vector<2x112x32xbf16>
    %cst_69 = arith.constant dense<0.000000e+00> : vector<2x4x32xf32>
    %143 = tpu.matmul %138, %142, %cst_69 {dimension_numbers = #tpu.dot_dimension_numbers<[2], [1], [1], [2], [0, 0, 0, 1, 1, 2], [0], [0]>} : vector<2x4x112xbf16>, vector<2x112x32xbf16>, vector<2x4x32xf32> -> vector<2x4x32xf32>
    %144 = arith.addf %136, %143 : vector<2x4x32xf32>
    %cst_70 = arith.constant dense<0.000000e+00> : vector<4x32xf32>
    %145 = vector.multi_reduction <add>, %144, %cst_70 [0] : vector<2x4x32xf32> to vector<4x32xf32>
    %cst_71 = arith.constant dense<0.000000e+00> : vector<32xf32>
    %146 = vector.multi_reduction <add>, %145, %cst_71 [0] : vector<4x32xf32> to vector<32xf32>
    %147 = vector.shape_cast %146 : vector<32xf32> to vector<1x32xf32>
    %148 = arith.mulf %144, %144 : vector<2x4x32xf32>
    %cst_72 = arith.constant dense<0.000000e+00> : vector<4x32xf32>
    %149 = vector.multi_reduction <add>, %148, %cst_72 [0] : vector<2x4x32xf32> to vector<4x32xf32>
    %cst_73 = arith.constant dense<0.000000e+00> : vector<32xf32>
    %150 = vector.multi_reduction <add>, %149, %cst_73 [0] : vector<4x32xf32> to vector<32xf32>
    %151 = vector.shape_cast %150 : vector<32xf32> to vector<1x32xf32>
    %152 = tpu.concatenate %147, %151 in 0 : vector<1x32xf32>, vector<1x32xf32> -> vector<2x32xf32>
    %c0_74 = arith.constant 0 : index
    %c0_75 = arith.constant 0 : index
    %153 = vector.load %arg13[%c0_74, %c0_75] : memref<32x32xf32, #tpu.memory_space<vmem>>, vector<32x32xf32>
    %cst_76 = arith.constant dense<0.000000e+00> : vector<2x32xf32>
    %154 = tpu.matmul %152, %153, %cst_76 {dimension_numbers = #tpu.dot_dimension_numbers<[1], [0], [0], [1], [0, 0, 1, 1], [], []>} : vector<2x32xf32>, vector<32x32xf32>, vector<2x32xf32> -> vector<2x32xf32>
    %155 = vector.extract_strided_slice %154 {offsets = [0, 0], sizes = [1, 32], strides = [1, 1]} : vector<2x32xf32> to vector<1x32xf32>
    %156 = vector.extract_strided_slice %154 {offsets = [1, 0], sizes = [1, 32], strides = [1, 1]} : vector<2x32xf32> to vector<1x32xf32>
    %157 = arith.mulf %155, %155 : vector<1x32xf32>
    %158 = arith.subf %156, %157 : vector<1x32xf32>
    %cst_77 = arith.constant 9.99999974E-6 : f32
    %159 = vector.broadcast %cst_77 : f32 to vector<1x32xf32>
    %160 = arith.addf %158, %159 : vector<1x32xf32>
    %161 = math.rsqrt %160 : vector<1x32xf32>
    %c0_78 = arith.constant 0 : index
    %c0_79 = arith.constant 0 : index
    %162 = vector.load %arg14[%c0_78, %c0_79] : memref<1x32xf32, #tpu.memory_space<vmem>>, vector<1x32xf32>
    %163 = arith.mulf %161, %162 : vector<1x32xf32>
    %c0_80 = arith.constant 0 : index
    %c0_81 = arith.constant 0 : index
    %164 = vector.load %arg15[%c0_80, %c0_81] : memref<1x32xf32, #tpu.memory_space<vmem>>, vector<1x32xf32>
    %165 = arith.mulf %155, %163 : vector<1x32xf32>
    %166 = arith.subf %164, %165 : vector<1x32xf32>
    %167 = vector.shape_cast %163 : vector<1x32xf32> to vector<1x1x32xf32>
    %168 = vector.broadcast %167 : vector<1x1x32xf32> to vector<2x4x32xf32>
    %169 = arith.mulf %144, %168 : vector<2x4x32xf32>
    %170 = vector.shape_cast %166 : vector<1x32xf32> to vector<1x1x32xf32>
    %171 = vector.broadcast %170 : vector<1x1x32xf32> to vector<2x4x32xf32>
    %172 = arith.addf %169, %171 : vector<2x4x32xf32>
    %cst_82 = arith.constant 0.000000e+00 : f32
    %173 = vector.broadcast %cst_82 : f32 to vector<2x4x32xf32>
    %174 = arith.maximumf %172, %173 : vector<2x4x32xf32>
    %c0_83 = arith.constant 0 : index
    %c0_84 = arith.constant 0 : index
    %175 = vector.load %arg16[%c0_83, %c0_84] : memref<24x4xbf16, #tpu.memory_space<vmem>>, vector<24x4xbf16>
    %176 = arith.truncf %174 : vector<2x4x32xf32> to vector<2x4x32xbf16>
    %177 = vector.shape_cast %175 : vector<24x4xbf16> to vector<1x24x4xbf16>
    %178 = vector.broadcast %177 : vector<1x24x4xbf16> to vector<2x24x4xbf16>
    %cst_85 = arith.constant dense<0.000000e+00> : vector<2x24x32xf32>
    %179 = tpu.matmul %178, %176, %cst_85 {dimension_numbers = #tpu.dot_dimension_numbers<[2], [1], [1], [2], [0, 0, 0, 1, 1, 2], [0], [0]>} : vector<2x24x4xbf16>, vector<2x4x32xbf16>, vector<2x24x32xf32> -> vector<2x24x32xf32>
    %180 = vector.extract_strided_slice %179 {offsets = [0, 0, 0], sizes = [2, 2, 32], strides = [1, 1, 1]} : vector<2x24x32xf32> to vector<2x2x32xf32>
    %181 = arith.truncf %180 : vector<2x2x32xf32> to vector<2x2x32xbf16>
    %c0_86 = arith.constant 0 : index
    %c0_87 = arith.constant 0 : index
    %c0_88 = arith.constant 0 : index
    %182 = vector.load %arg17[%c0_86, %c0_87, %c0_88] : memref<3x32x16xbf16, #tpu.memory_space<vmem>>, vector<1x32x16xbf16>
    %183 = vector.shape_cast %182 : vector<1x32x16xbf16> to vector<32x16xbf16>
    %184 = vector.shape_cast %183 : vector<32x16xbf16> to vector<1x32x16xbf16>
    %185 = vector.broadcast %184 : vector<1x32x16xbf16> to vector<2x32x16xbf16>
    %cst_89 = arith.constant dense<0.000000e+00> : vector<2x2x16xf32>
    %186 = tpu.matmul %181, %185, %cst_89 {dimension_numbers = #tpu.dot_dimension_numbers<[2], [1], [1], [2], [0, 0, 0, 1, 1, 2], [0], [0]>} : vector<2x2x32xbf16>, vector<2x32x16xbf16>, vector<2x2x16xf32> -> vector<2x2x16xf32>
    %187 = vector.extract_strided_slice %179 {offsets = [0, 8, 0], sizes = [2, 2, 32], strides = [1, 1, 1]} : vector<2x24x32xf32> to vector<2x2x32xf32>
    %188 = arith.truncf %187 : vector<2x2x32xf32> to vector<2x2x32xbf16>
    %c1_90 = arith.constant 1 : index
    %c0_91 = arith.constant 0 : index
    %c0_92 = arith.constant 0 : index
    %189 = vector.load %arg17[%c1_90, %c0_91, %c0_92] : memref<3x32x16xbf16, #tpu.memory_space<vmem>>, vector<1x32x16xbf16>
    %190 = vector.shape_cast %189 : vector<1x32x16xbf16> to vector<32x16xbf16>
    %191 = vector.shape_cast %190 : vector<32x16xbf16> to vector<1x32x16xbf16>
    %192 = vector.broadcast %191 : vector<1x32x16xbf16> to vector<2x32x16xbf16>
    %cst_93 = arith.constant dense<0.000000e+00> : vector<2x2x16xf32>
    %193 = tpu.matmul %188, %192, %cst_93 {dimension_numbers = #tpu.dot_dimension_numbers<[2], [1], [1], [2], [0, 0, 0, 1, 1, 2], [0], [0]>} : vector<2x2x32xbf16>, vector<2x32x16xbf16>, vector<2x2x16xf32> -> vector<2x2x16xf32>
    %194 = arith.addf %186, %193 : vector<2x2x16xf32>
    %195 = vector.extract_strided_slice %179 {offsets = [0, 16, 0], sizes = [2, 2, 32], strides = [1, 1, 1]} : vector<2x24x32xf32> to vector<2x2x32xf32>
    %196 = arith.truncf %195 : vector<2x2x32xf32> to vector<2x2x32xbf16>
    %c2_94 = arith.constant 2 : index
    %c0_95 = arith.constant 0 : index
    %c0_96 = arith.constant 0 : index
    %197 = vector.load %arg17[%c2_94, %c0_95, %c0_96] : memref<3x32x16xbf16, #tpu.memory_space<vmem>>, vector<1x32x16xbf16>
    %198 = vector.shape_cast %197 : vector<1x32x16xbf16> to vector<32x16xbf16>
    %199 = vector.shape_cast %198 : vector<32x16xbf16> to vector<1x32x16xbf16>
    %200 = vector.broadcast %199 : vector<1x32x16xbf16> to vector<2x32x16xbf16>
    %cst_97 = arith.constant dense<0.000000e+00> : vector<2x2x16xf32>
    %201 = tpu.matmul %196, %200, %cst_97 {dimension_numbers = #tpu.dot_dimension_numbers<[2], [1], [1], [2], [0, 0, 0, 1, 1, 2], [0], [0]>} : vector<2x2x32xbf16>, vector<2x32x16xbf16>, vector<2x2x16xf32> -> vector<2x2x16xf32>
    %202 = arith.addf %194, %201 : vector<2x2x16xf32>
    %cst_98 = arith.constant dense<0.000000e+00> : vector<2x16xf32>
    %203 = vector.multi_reduction <add>, %202, %cst_98 [0] : vector<2x2x16xf32> to vector<2x16xf32>
    %cst_99 = arith.constant dense<0.000000e+00> : vector<16xf32>
    %204 = vector.multi_reduction <add>, %203, %cst_99 [0] : vector<2x16xf32> to vector<16xf32>
    %205 = vector.shape_cast %204 : vector<16xf32> to vector<1x16xf32>
    %206 = arith.mulf %202, %202 : vector<2x2x16xf32>
    %cst_100 = arith.constant dense<0.000000e+00> : vector<2x16xf32>
    %207 = vector.multi_reduction <add>, %206, %cst_100 [0] : vector<2x2x16xf32> to vector<2x16xf32>
    %cst_101 = arith.constant dense<0.000000e+00> : vector<16xf32>
    %208 = vector.multi_reduction <add>, %207, %cst_101 [0] : vector<2x16xf32> to vector<16xf32>
    %209 = vector.shape_cast %208 : vector<16xf32> to vector<1x16xf32>
    %210 = tpu.concatenate %205, %209 in 0 : vector<1x16xf32>, vector<1x16xf32> -> vector<2x16xf32>
    %c0_102 = arith.constant 0 : index
    %c0_103 = arith.constant 0 : index
    %211 = vector.load %arg18[%c0_102, %c0_103] : memref<16x16xf32, #tpu.memory_space<vmem>>, vector<16x16xf32>
    %cst_104 = arith.constant dense<0.000000e+00> : vector<2x16xf32>
    %212 = tpu.matmul %210, %211, %cst_104 {dimension_numbers = #tpu.dot_dimension_numbers<[1], [0], [0], [1], [0, 0, 1, 1], [], []>} : vector<2x16xf32>, vector<16x16xf32>, vector<2x16xf32> -> vector<2x16xf32>
    %213 = vector.extract_strided_slice %212 {offsets = [0, 0], sizes = [1, 16], strides = [1, 1]} : vector<2x16xf32> to vector<1x16xf32>
    %214 = vector.extract_strided_slice %212 {offsets = [1, 0], sizes = [1, 16], strides = [1, 1]} : vector<2x16xf32> to vector<1x16xf32>
    %215 = arith.mulf %213, %213 : vector<1x16xf32>
    %216 = arith.subf %214, %215 : vector<1x16xf32>
    %cst_105 = arith.constant 9.99999974E-6 : f32
    %217 = vector.broadcast %cst_105 : f32 to vector<1x16xf32>
    %218 = arith.addf %216, %217 : vector<1x16xf32>
    %219 = math.rsqrt %218 : vector<1x16xf32>
    %c0_106 = arith.constant 0 : index
    %c0_107 = arith.constant 0 : index
    %220 = vector.load %arg19[%c0_106, %c0_107] : memref<1x16xf32, #tpu.memory_space<vmem>>, vector<1x16xf32>
    %221 = arith.mulf %219, %220 : vector<1x16xf32>
    %c0_108 = arith.constant 0 : index
    %c0_109 = arith.constant 0 : index
    %222 = vector.load %arg20[%c0_108, %c0_109] : memref<1x16xf32, #tpu.memory_space<vmem>>, vector<1x16xf32>
    %223 = arith.mulf %213, %221 : vector<1x16xf32>
    %224 = arith.subf %222, %223 : vector<1x16xf32>
    %225 = vector.shape_cast %221 : vector<1x16xf32> to vector<1x1x16xf32>
    %226 = vector.broadcast %225 : vector<1x1x16xf32> to vector<2x2x16xf32>
    %227 = arith.mulf %202, %226 : vector<2x2x16xf32>
    %228 = vector.shape_cast %224 : vector<1x16xf32> to vector<1x1x16xf32>
    %229 = vector.broadcast %228 : vector<1x1x16xf32> to vector<2x2x16xf32>
    %230 = arith.addf %227, %229 : vector<2x2x16xf32>
    %cst_110 = arith.constant 0.000000e+00 : f32
    %231 = vector.broadcast %cst_110 : f32 to vector<2x2x16xf32>
    %232 = arith.maximumf %230, %231 : vector<2x2x16xf32>
    %c0_111 = arith.constant 0 : index
    %c0_112 = arith.constant 0 : index
    %233 = vector.load %arg21[%c0_111, %c0_112] : memref<16x2048xf32, #tpu.memory_space<vmem>>, vector<16x2048xf32>
    %234 = vector.shape_cast %233 : vector<16x2048xf32> to vector<1x16x2048xf32>
    %235 = vector.broadcast %234 : vector<1x16x2048xf32> to vector<2x16x2048xf32>
    %cst_113 = arith.constant dense<0.000000e+00> : vector<2x2x2048xf32>
    %236 = tpu.matmul %232, %235, %cst_113 {dimension_numbers = #tpu.dot_dimension_numbers<[2], [1], [1], [2], [0, 0, 0, 1, 1, 2], [0], [0]>} : vector<2x2x16xf32>, vector<2x16x2048xf32>, vector<2x2x2048xf32> -> vector<2x2x2048xf32>
    %c0_114 = arith.constant 0 : index
    %c0_115 = arith.constant 0 : index
    %237 = vector.load %arg22[%c0_114, %c0_115] : memref<1x2048xf32, #tpu.memory_space<vmem>>, vector<1x2048xf32>
    %cst_116 = arith.constant 2.000000e+00 : f32
    %238 = vector.broadcast %cst_116 : f32 to vector<2x2x2048xf32>
    %239 = arith.mulf %238, %236 : vector<2x2x2048xf32>
    %240 = vector.shape_cast %237 : vector<1x2048xf32> to vector<1x1x2048xf32>
    %241 = vector.broadcast %240 : vector<1x1x2048xf32> to vector<2x2x2048xf32>
    %242 = arith.subf %241, %239 : vector<2x2x2048xf32>
    %243 = vector.extract_strided_slice %242 {offsets = [0, 0, 0], sizes = [2, 2, 1024], strides = [1, 1, 1]} : vector<2x2x2048xf32> to vector<2x2x1024xf32>
    %cst_117 = arith.constant dense<0x7F800000> : vector<2x2xf32>
    %244 = vector.multi_reduction <minimumf>, %243, %cst_117 [2] : vector<2x2x1024xf32> to vector<2x2xf32>
    %245 = vector.shape_cast %244 : vector<2x2xf32> to vector<2x2x1xf32>
    %246 = tpu.iota {dimensions = array<i32: 2>} : vector<2x2x1024xi32>
    %247 = vector.broadcast %245 : vector<2x2x1xf32> to vector<2x2x1024xf32>
    %248 = arith.cmpf oeq, %243, %247 : vector<2x2x1024xf32>
    %c1024_i32 = arith.constant 1024 : i32
    %249 = vector.broadcast %c1024_i32 : i32 to vector<2x2x1024xi32>
    %250 = arith.select %248, %246, %249 : vector<2x2x1024xi1>, vector<2x2x1024xi32>
    %cst_118 = arith.constant dense<2147483647> : vector<2x2xi32>
    %251 = vector.multi_reduction <minsi>, %250, %cst_118 [2] : vector<2x2x1024xi32> to vector<2x2xi32>
    %252 = vector.shape_cast %251 : vector<2x2xi32> to vector<2x2x1xi32>
    %253 = vector.broadcast %252 : vector<2x2x1xi32> to vector<2x2x1024xi32>
    %254 = arith.cmpi eq, %246, %253 : vector<2x2x1024xi32>
    %255 = arith.extui %254 : vector<2x2x1024xi1> to vector<2x2x1024xi32>
    %256 = arith.sitofp %255 : vector<2x2x1024xi32> to vector<2x2x1024xf32>
    %257 = arith.truncf %256 : vector<2x2x1024xf32> to vector<2x2x1024xbf16>
    %258 = vector.extract_strided_slice %242 {offsets = [0, 0, 1024], sizes = [2, 2, 1024], strides = [1, 1, 1]} : vector<2x2x2048xf32> to vector<2x2x1024xf32>
    %cst_119 = arith.constant dense<0x7F800000> : vector<2x2xf32>
    %259 = vector.multi_reduction <minimumf>, %258, %cst_119 [2] : vector<2x2x1024xf32> to vector<2x2xf32>
    %260 = vector.shape_cast %259 : vector<2x2xf32> to vector<2x2x1xf32>
    %261 = tpu.iota {dimensions = array<i32: 2>} : vector<2x2x1024xi32>
    %262 = vector.broadcast %260 : vector<2x2x1xf32> to vector<2x2x1024xf32>
    %263 = arith.cmpf oeq, %258, %262 : vector<2x2x1024xf32>
    %c1024_i32_120 = arith.constant 1024 : i32
    %264 = vector.broadcast %c1024_i32_120 : i32 to vector<2x2x1024xi32>
    %265 = arith.select %263, %261, %264 : vector<2x2x1024xi1>, vector<2x2x1024xi32>
    %cst_121 = arith.constant dense<2147483647> : vector<2x2xi32>
    %266 = vector.multi_reduction <minsi>, %265, %cst_121 [2] : vector<2x2x1024xi32> to vector<2x2xi32>
    %267 = vector.shape_cast %266 : vector<2x2xi32> to vector<2x2x1xi32>
    %268 = vector.broadcast %267 : vector<2x2x1xi32> to vector<2x2x1024xi32>
    %269 = arith.cmpi eq, %261, %268 : vector<2x2x1024xi32>
    %270 = arith.extui %269 : vector<2x2x1024xi1> to vector<2x2x1024xi32>
    %271 = arith.sitofp %270 : vector<2x2x1024xi32> to vector<2x2x1024xf32>
    %272 = arith.truncf %271 : vector<2x2x1024xf32> to vector<2x2x1024xbf16>
    %273 = tpu.concatenate %257, %272 in 2 : vector<2x2x1024xbf16>, vector<2x2x1024xbf16> -> vector<2x2x2048xbf16>
    %c0_122 = arith.constant 0 : index
    %c0_123 = arith.constant 0 : index
    %274 = vector.load %arg23[%c0_122, %c0_123] : memref<2048x16xbf16, #tpu.memory_space<vmem>>, vector<2048x16xbf16>
    %275 = vector.shape_cast %274 : vector<2048x16xbf16> to vector<1x2048x16xbf16>
    %276 = vector.broadcast %275 : vector<1x2048x16xbf16> to vector<2x2048x16xbf16>
    %cst_124 = arith.constant dense<0.000000e+00> : vector<2x2x16xf32>
    %277 = tpu.matmul %273, %276, %cst_124 {dimension_numbers = #tpu.dot_dimension_numbers<[2], [1], [1], [2], [0, 0, 0, 1, 1, 2], [0], [0]>} : vector<2x2x2048xbf16>, vector<2x2048x16xbf16>, vector<2x2x16xf32> -> vector<2x2x16xf32>
    %278 = arith.subf %277, %232 : vector<2x2x16xf32>
    %279 = arith.mulf %278, %278 : vector<2x2x16xf32>
    %cst_125 = arith.constant dense<0.000000e+00> : vector<2x16xf32>
    %280 = vector.multi_reduction <add>, %279, %cst_125 [0] : vector<2x2x16xf32> to vector<2x16xf32>
    %cst_126 = arith.constant dense<0.000000e+00> : vector<16xf32>
    %281 = vector.multi_reduction <add>, %280, %cst_126 [0] : vector<2x16xf32> to vector<16xf32>
    %282 = vector.shape_cast %281 : vector<16xf32> to vector<1x16xf32>
    %cst_127 = arith.constant dense<0.000000e+00> : vector<1xf32>
    %283 = vector.multi_reduction <add>, %282, %cst_127 [1] : vector<1x16xf32> to vector<1xf32>
    %284 = vector.shape_cast %283 : vector<1xf32> to vector<1x1xf32>
    %cst_128 = arith.constant 0.01953125 : f32
    %285 = vector.broadcast %cst_128 : f32 to vector<1x1xf32>
    %286 = arith.mulf %284, %285 : vector<1x1xf32>
    %c0_129 = arith.constant 0 : index
    %c0_130 = arith.constant 0 : index
    %287 = vector.load %arg40[%c0_129, %c0_130] : memref<1x1xf32, #tpu.memory_space<vmem>>, vector<1x1xf32>
    tpu.vector_store %arg40[%c0_129, %c0_130], %286 {strides = array<i32>} : memref<1x1xf32, #tpu.memory_space<vmem>>, vector<1x1xf32>,
    %c0_131 = arith.constant 0 : index
    %c0_132 = arith.constant 0 : index
    %288 = vector.load %arg24[%c0_131, %c0_132] : memref<24x2xbf16, #tpu.memory_space<vmem>>, vector<24x2xbf16>
    %289 = arith.truncf %277 : vector<2x2x16xf32> to vector<2x2x16xbf16>
    %290 = vector.shape_cast %288 : vector<24x2xbf16> to vector<1x24x2xbf16>
    %291 = vector.broadcast %290 : vector<1x24x2xbf16> to vector<2x24x2xbf16>
    %cst_133 = arith.constant dense<0.000000e+00> : vector<2x24x16xf32>
    %292 = tpu.matmul %291, %289, %cst_133 {dimension_numbers = #tpu.dot_dimension_numbers<[2], [1], [1], [2], [0, 0, 0, 1, 1, 2], [0], [0]>} : vector<2x24x2xbf16>, vector<2x2x16xbf16>, vector<2x24x16xf32> -> vector<2x24x16xf32>
    %293 = vector.extract_strided_slice %292 {offsets = [0, 0, 0], sizes = [2, 4, 16], strides = [1, 1, 1]} : vector<2x24x16xf32> to vector<2x4x16xf32>
    %294 = arith.truncf %293 : vector<2x4x16xf32> to vector<2x4x16xbf16>
    %c0_134 = arith.constant 0 : index
    %c0_135 = arith.constant 0 : index
    %c0_136 = arith.constant 0 : index
    %295 = vector.load %arg25[%c0_134, %c0_135, %c0_136] : memref<3x16x64xbf16, #tpu.memory_space<vmem>>, vector<1x16x64xbf16>
    %296 = vector.shape_cast %295 : vector<1x16x64xbf16> to vector<16x64xbf16>
    %297 = vector.shape_cast %296 : vector<16x64xbf16> to vector<1x16x64xbf16>
    %298 = vector.broadcast %297 : vector<1x16x64xbf16> to vector<2x16x64xbf16>
    %cst_137 = arith.constant dense<0.000000e+00> : vector<2x4x64xf32>
    %299 = tpu.matmul %294, %298, %cst_137 {dimension_numbers = #tpu.dot_dimension_numbers<[2], [1], [1], [2], [0, 0, 0, 1, 1, 2], [0], [0]>} : vector<2x4x16xbf16>, vector<2x16x64xbf16>, vector<2x4x64xf32> -> vector<2x4x64xf32>
    %300 = vector.extract_strided_slice %292 {offsets = [0, 8, 0], sizes = [2, 4, 16], strides = [1, 1, 1]} : vector<2x24x16xf32> to vector<2x4x16xf32>
    %301 = arith.truncf %300 : vector<2x4x16xf32> to vector<2x4x16xbf16>
    %c1_138 = arith.constant 1 : index
    %c0_139 = arith.constant 0 : index
    %c0_140 = arith.constant 0 : index
    %302 = vector.load %arg25[%c1_138, %c0_139, %c0_140] : memref<3x16x64xbf16, #tpu.memory_space<vmem>>, vector<1x16x64xbf16>
    %303 = vector.shape_cast %302 : vector<1x16x64xbf16> to vector<16x64xbf16>
    %304 = vector.shape_cast %303 : vector<16x64xbf16> to vector<1x16x64xbf16>
    %305 = vector.broadcast %304 : vector<1x16x64xbf16> to vector<2x16x64xbf16>
    %cst_141 = arith.constant dense<0.000000e+00> : vector<2x4x64xf32>
    %306 = tpu.matmul %301, %305, %cst_141 {dimension_numbers = #tpu.dot_dimension_numbers<[2], [1], [1], [2], [0, 0, 0, 1, 1, 2], [0], [0]>} : vector<2x4x16xbf16>, vector<2x16x64xbf16>, vector<2x4x64xf32> -> vector<2x4x64xf32>
    %307 = arith.addf %299, %306 : vector<2x4x64xf32>
    %308 = vector.extract_strided_slice %292 {offsets = [0, 16, 0], sizes = [2, 4, 16], strides = [1, 1, 1]} : vector<2x24x16xf32> to vector<2x4x16xf32>
    %309 = arith.truncf %308 : vector<2x4x16xf32> to vector<2x4x16xbf16>
    %c2_142 = arith.constant 2 : index
    %c0_143 = arith.constant 0 : index
    %c0_144 = arith.constant 0 : index
    %310 = vector.load %arg25[%c2_142, %c0_143, %c0_144] : memref<3x16x64xbf16, #tpu.memory_space<vmem>>, vector<1x16x64xbf16>
    %311 = vector.shape_cast %310 : vector<1x16x64xbf16> to vector<16x64xbf16>
    %312 = vector.shape_cast %311 : vector<16x64xbf16> to vector<1x16x64xbf16>
    %313 = vector.broadcast %312 : vector<1x16x64xbf16> to vector<2x16x64xbf16>
    %cst_145 = arith.constant dense<0.000000e+00> : vector<2x4x64xf32>
    %314 = tpu.matmul %309, %313, %cst_145 {dimension_numbers = #tpu.dot_dimension_numbers<[2], [1], [1], [2], [0, 0, 0, 1, 1, 2], [0], [0]>} : vector<2x4x16xbf16>, vector<2x16x64xbf16>, vector<2x4x64xf32> -> vector<2x4x64xf32>
    %315 = arith.addf %307, %314 : vector<2x4x64xf32>
    %c0_146 = arith.constant 0 : index
    %c0_147 = arith.constant 0 : index
    %316 = vector.load %arg26[%c0_146, %c0_147] : memref<1x64xf32, #tpu.memory_space<vmem>>, vector<1x64xf32>
    %317 = vector.shape_cast %316 : vector<1x64xf32> to vector<1x1x64xf32>
    %318 = vector.broadcast %317 : vector<1x1x64xf32> to vector<2x4x64xf32>
    %319 = arith.addf %315, %318 : vector<2x4x64xf32>
    %cst_148 = arith.constant 0.000000e+00 : f32
    %320 = vector.broadcast %cst_148 : f32 to vector<2x4x64xf32>
    %321 = arith.maximumf %319, %320 : vector<2x4x64xf32>
    %c0_149 = arith.constant 0 : index
    %c0_150 = arith.constant 0 : index
    %322 = vector.load %arg27[%c0_149, %c0_150] : memref<24x4xbf16, #tpu.memory_space<vmem>>, vector<24x4xbf16>
    %323 = arith.truncf %321 : vector<2x4x64xf32> to vector<2x4x64xbf16>
    %324 = vector.shape_cast %322 : vector<24x4xbf16> to vector<1x24x4xbf16>
    %325 = vector.broadcast %324 : vector<1x24x4xbf16> to vector<2x24x4xbf16>
    %cst_151 = arith.constant dense<0.000000e+00> : vector<2x24x64xf32>
    %326 = tpu.matmul %325, %323, %cst_151 {dimension_numbers = #tpu.dot_dimension_numbers<[2], [1], [1], [2], [0, 0, 0, 1, 1, 2], [0], [0]>} : vector<2x24x4xbf16>, vector<2x4x64xbf16>, vector<2x24x64xf32> -> vector<2x24x64xf32>
    %327 = vector.extract_strided_slice %326 {offsets = [0, 0, 0], sizes = [2, 8, 64], strides = [1, 1, 1]} : vector<2x24x64xf32> to vector<2x8x64xf32>
    %328 = arith.truncf %327 : vector<2x8x64xf32> to vector<2x8x64xbf16>
    %c0_152 = arith.constant 0 : index
    %c0_153 = arith.constant 0 : index
    %c0_154 = arith.constant 0 : index
    %329 = vector.load %arg28[%c0_152, %c0_153, %c0_154] : memref<3x64x128xbf16, #tpu.memory_space<vmem>>, vector<1x64x128xbf16>
    %330 = vector.shape_cast %329 : vector<1x64x128xbf16> to vector<64x128xbf16>
    %331 = vector.shape_cast %330 : vector<64x128xbf16> to vector<1x64x128xbf16>
    %332 = vector.broadcast %331 : vector<1x64x128xbf16> to vector<2x64x128xbf16>
    %cst_155 = arith.constant dense<0.000000e+00> : vector<2x8x128xf32>
    %333 = tpu.matmul %328, %332, %cst_155 {dimension_numbers = #tpu.dot_dimension_numbers<[2], [1], [1], [2], [0, 0, 0, 1, 1, 2], [0], [0]>} : vector<2x8x64xbf16>, vector<2x64x128xbf16>, vector<2x8x128xf32> -> vector<2x8x128xf32>
    %334 = vector.extract_strided_slice %326 {offsets = [0, 8, 0], sizes = [2, 8, 64], strides = [1, 1, 1]} : vector<2x24x64xf32> to vector<2x8x64xf32>
    %335 = arith.truncf %334 : vector<2x8x64xf32> to vector<2x8x64xbf16>
    %c1_156 = arith.constant 1 : index
    %c0_157 = arith.constant 0 : index
    %c0_158 = arith.constant 0 : index
    %336 = vector.load %arg28[%c1_156, %c0_157, %c0_158] : memref<3x64x128xbf16, #tpu.memory_space<vmem>>, vector<1x64x128xbf16>
    %337 = vector.shape_cast %336 : vector<1x64x128xbf16> to vector<64x128xbf16>
    %338 = vector.shape_cast %337 : vector<64x128xbf16> to vector<1x64x128xbf16>
    %339 = vector.broadcast %338 : vector<1x64x128xbf16> to vector<2x64x128xbf16>
    %cst_159 = arith.constant dense<0.000000e+00> : vector<2x8x128xf32>
    %340 = tpu.matmul %335, %339, %cst_159 {dimension_numbers = #tpu.dot_dimension_numbers<[2], [1], [1], [2], [0, 0, 0, 1, 1, 2], [0], [0]>} : vector<2x8x64xbf16>, vector<2x64x128xbf16>, vector<2x8x128xf32> -> vector<2x8x128xf32>
    %341 = arith.addf %333, %340 : vector<2x8x128xf32>
    %342 = vector.extract_strided_slice %326 {offsets = [0, 16, 0], sizes = [2, 8, 64], strides = [1, 1, 1]} : vector<2x24x64xf32> to vector<2x8x64xf32>
    %343 = arith.truncf %342 : vector<2x8x64xf32> to vector<2x8x64xbf16>
    %c2_160 = arith.constant 2 : index
    %c0_161 = arith.constant 0 : index
    %c0_162 = arith.constant 0 : index
    %344 = vector.load %arg28[%c2_160, %c0_161, %c0_162] : memref<3x64x128xbf16, #tpu.memory_space<vmem>>, vector<1x64x128xbf16>
    %345 = vector.shape_cast %344 : vector<1x64x128xbf16> to vector<64x128xbf16>
    %346 = vector.shape_cast %345 : vector<64x128xbf16> to vector<1x64x128xbf16>
    %347 = vector.broadcast %346 : vector<1x64x128xbf16> to vector<2x64x128xbf16>
    %cst_163 = arith.constant dense<0.000000e+00> : vector<2x8x128xf32>
    %348 = tpu.matmul %343, %347, %cst_163 {dimension_numbers = #tpu.dot_dimension_numbers<[2], [1], [1], [2], [0, 0, 0, 1, 1, 2], [0], [0]>} : vector<2x8x64xbf16>, vector<2x64x128xbf16>, vector<2x8x128xf32> -> vector<2x8x128xf32>
    %349 = arith.addf %341, %348 : vector<2x8x128xf32>
    %c0_164 = arith.constant 0 : index
    %c0_165 = arith.constant 0 : index
    %350 = vector.load %arg29[%c0_164, %c0_165] : memref<1x128xf32, #tpu.memory_space<vmem>>, vector<1x128xf32>
    %351 = vector.shape_cast %350 : vector<1x128xf32> to vector<1x1x128xf32>
    %352 = vector.broadcast %351 : vector<1x1x128xf32> to vector<2x8x128xf32>
    %353 = arith.addf %349, %352 : vector<2x8x128xf32>
    %cst_166 = arith.constant 0.000000e+00 : f32
    %354 = vector.broadcast %cst_166 : f32 to vector<2x8x128xf32>
    %355 = arith.maximumf %353, %354 : vector<2x8x128xf32>
    %c0_167 = arith.constant 0 : index
    %c0_168 = arith.constant 0 : index
    %356 = vector.load %arg30[%c0_167, %c0_168] : memref<48x8xbf16, #tpu.memory_space<vmem>>, vector<48x8xbf16>
    %357 = arith.truncf %355 : vector<2x8x128xf32> to vector<2x8x128xbf16>
    %358 = vector.shape_cast %356 : vector<48x8xbf16> to vector<1x48x8xbf16>
    %359 = vector.broadcast %358 : vector<1x48x8xbf16> to vector<2x48x8xbf16>
    %cst_169 = arith.constant dense<0.000000e+00> : vector<2x48x128xf32>
    %360 = tpu.matmul %359, %357, %cst_169 {dimension_numbers = #tpu.dot_dimension_numbers<[2], [1], [1], [2], [0, 0, 0, 1, 1, 2], [0], [0]>} : vector<2x48x8xbf16>, vector<2x8x128xbf16>, vector<2x48x128xf32> -> vector<2x48x128xf32>
    %361 = vector.extract_strided_slice %360 {offsets = [0, 0, 0], sizes = [2, 16, 128], strides = [1, 1, 1]} : vector<2x48x128xf32> to vector<2x16x128xf32>
    %362 = arith.truncf %361 : vector<2x16x128xf32> to vector<2x16x128xbf16>
    %c0_170 = arith.constant 0 : index
    %c0_171 = arith.constant 0 : index
    %c0_172 = arith.constant 0 : index
    %363 = vector.load %arg31[%c0_170, %c0_171, %c0_172] : memref<3x128x128xbf16, #tpu.memory_space<vmem>>, vector<1x128x128xbf16>
    %364 = vector.shape_cast %363 : vector<1x128x128xbf16> to vector<128x128xbf16>
    %365 = vector.shape_cast %364 : vector<128x128xbf16> to vector<1x128x128xbf16>
    %366 = vector.broadcast %365 : vector<1x128x128xbf16> to vector<2x128x128xbf16>
    %cst_173 = arith.constant dense<0.000000e+00> : vector<2x16x128xf32>
    %367 = tpu.matmul %362, %366, %cst_173 {dimension_numbers = #tpu.dot_dimension_numbers<[2], [1], [1], [2], [0, 0, 0, 1, 1, 2], [0], [0]>} : vector<2x16x128xbf16>, vector<2x128x128xbf16>, vector<2x16x128xf32> -> vector<2x16x128xf32>
    %368 = vector.extract_strided_slice %360 {offsets = [0, 16, 0], sizes = [2, 16, 128], strides = [1, 1, 1]} : vector<2x48x128xf32> to vector<2x16x128xf32>
    %369 = arith.truncf %368 : vector<2x16x128xf32> to vector<2x16x128xbf16>
    %c1_174 = arith.constant 1 : index
    %c0_175 = arith.constant 0 : index
    %c0_176 = arith.constant 0 : index
    %370 = vector.load %arg31[%c1_174, %c0_175, %c0_176] : memref<3x128x128xbf16, #tpu.memory_space<vmem>>, vector<1x128x128xbf16>
    %371 = vector.shape_cast %370 : vector<1x128x128xbf16> to vector<128x128xbf16>
    %372 = vector.shape_cast %371 : vector<128x128xbf16> to vector<1x128x128xbf16>
    %373 = vector.broadcast %372 : vector<1x128x128xbf16> to vector<2x128x128xbf16>
    %cst_177 = arith.constant dense<0.000000e+00> : vector<2x16x128xf32>
    %374 = tpu.matmul %369, %373, %cst_177 {dimension_numbers = #tpu.dot_dimension_numbers<[2], [1], [1], [2], [0, 0, 0, 1, 1, 2], [0], [0]>} : vector<2x16x128xbf16>, vector<2x128x128xbf16>, vector<2x16x128xf32> -> vector<2x16x128xf32>
    %375 = arith.addf %367, %374 : vector<2x16x128xf32>
    %376 = vector.extract_strided_slice %360 {offsets = [0, 32, 0], sizes = [2, 16, 128], strides = [1, 1, 1]} : vector<2x48x128xf32> to vector<2x16x128xf32>
    %377 = arith.truncf %376 : vector<2x16x128xf32> to vector<2x16x128xbf16>
    %c2_178 = arith.constant 2 : index
    %c0_179 = arith.constant 0 : index
    %c0_180 = arith.constant 0 : index
    %378 = vector.load %arg31[%c2_178, %c0_179, %c0_180] : memref<3x128x128xbf16, #tpu.memory_space<vmem>>, vector<1x128x128xbf16>
    %379 = vector.shape_cast %378 : vector<1x128x128xbf16> to vector<128x128xbf16>
    %380 = vector.shape_cast %379 : vector<128x128xbf16> to vector<1x128x128xbf16>
    %381 = vector.broadcast %380 : vector<1x128x128xbf16> to vector<2x128x128xbf16>
    %cst_181 = arith.constant dense<0.000000e+00> : vector<2x16x128xf32>
    %382 = tpu.matmul %377, %381, %cst_181 {dimension_numbers = #tpu.dot_dimension_numbers<[2], [1], [1], [2], [0, 0, 0, 1, 1, 2], [0], [0]>} : vector<2x16x128xbf16>, vector<2x128x128xbf16>, vector<2x16x128xf32> -> vector<2x16x128xf32>
    %383 = arith.addf %375, %382 : vector<2x16x128xf32>
    %c0_182 = arith.constant 0 : index
    %c0_183 = arith.constant 0 : index
    %384 = vector.load %arg32[%c0_182, %c0_183] : memref<1x128xf32, #tpu.memory_space<vmem>>, vector<1x128xf32>
    %385 = vector.shape_cast %384 : vector<1x128xf32> to vector<1x1x128xf32>
    %386 = vector.broadcast %385 : vector<1x1x128xf32> to vector<2x16x128xf32>
    %387 = arith.addf %383, %386 : vector<2x16x128xf32>
    %cst_184 = arith.constant 0.000000e+00 : f32
    %388 = vector.broadcast %cst_184 : f32 to vector<2x16x128xf32>
    %389 = arith.maximumf %387, %388 : vector<2x16x128xf32>
    %c0_185 = arith.constant 0 : index
    %c0_186 = arith.constant 0 : index
    %390 = vector.load %arg33[%c0_185, %c0_186] : memref<96x16xbf16, #tpu.memory_space<vmem>>, vector<96x16xbf16>
    %391 = arith.truncf %389 : vector<2x16x128xf32> to vector<2x16x128xbf16>
    %392 = vector.shape_cast %390 : vector<96x16xbf16> to vector<1x96x16xbf16>
    %393 = vector.broadcast %392 : vector<1x96x16xbf16> to vector<2x96x16xbf16>
    %cst_187 = arith.constant dense<0.000000e+00> : vector<2x96x128xf32>
    %394 = tpu.matmul %393, %391, %cst_187 {dimension_numbers = #tpu.dot_dimension_numbers<[2], [1], [1], [2], [0, 0, 0, 1, 1, 2], [0], [0]>} : vector<2x96x16xbf16>, vector<2x16x128xbf16>, vector<2x96x128xf32> -> vector<2x96x128xf32>
    %395 = vector.extract_strided_slice %394 {offsets = [0, 0, 0], sizes = [2, 32, 128], strides = [1, 1, 1]} : vector<2x96x128xf32> to vector<2x32x128xf32>
    %396 = arith.truncf %395 : vector<2x32x128xf32> to vector<2x32x128xbf16>
    %c0_188 = arith.constant 0 : index
    %c0_189 = arith.constant 0 : index
    %c0_190 = arith.constant 0 : index
    %397 = vector.load %arg34[%c0_188, %c0_189, %c0_190] : memref<3x128x96xbf16, #tpu.memory_space<vmem>>, vector<1x128x96xbf16>
    %398 = vector.shape_cast %397 : vector<1x128x96xbf16> to vector<128x96xbf16>
    %399 = vector.shape_cast %398 : vector<128x96xbf16> to vector<1x128x96xbf16>
    %400 = vector.broadcast %399 : vector<1x128x96xbf16> to vector<2x128x96xbf16>
    %cst_191 = arith.constant dense<0.000000e+00> : vector<2x32x96xf32>
    %401 = tpu.matmul %396, %400, %cst_191 {dimension_numbers = #tpu.dot_dimension_numbers<[2], [1], [1], [2], [0, 0, 0, 1, 1, 2], [0], [0]>} : vector<2x32x128xbf16>, vector<2x128x96xbf16>, vector<2x32x96xf32> -> vector<2x32x96xf32>
    %402 = vector.extract_strided_slice %394 {offsets = [0, 32, 0], sizes = [2, 32, 128], strides = [1, 1, 1]} : vector<2x96x128xf32> to vector<2x32x128xf32>
    %403 = arith.truncf %402 : vector<2x32x128xf32> to vector<2x32x128xbf16>
    %c1_192 = arith.constant 1 : index
    %c0_193 = arith.constant 0 : index
    %c0_194 = arith.constant 0 : index
    %404 = vector.load %arg34[%c1_192, %c0_193, %c0_194] : memref<3x128x96xbf16, #tpu.memory_space<vmem>>, vector<1x128x96xbf16>
    %405 = vector.shape_cast %404 : vector<1x128x96xbf16> to vector<128x96xbf16>
    %406 = vector.shape_cast %405 : vector<128x96xbf16> to vector<1x128x96xbf16>
    %407 = vector.broadcast %406 : vector<1x128x96xbf16> to vector<2x128x96xbf16>
    %cst_195 = arith.constant dense<0.000000e+00> : vector<2x32x96xf32>
    %408 = tpu.matmul %403, %407, %cst_195 {dimension_numbers = #tpu.dot_dimension_numbers<[2], [1], [1], [2], [0, 0, 0, 1, 1, 2], [0], [0]>} : vector<2x32x128xbf16>, vector<2x128x96xbf16>, vector<2x32x96xf32> -> vector<2x32x96xf32>
    %409 = arith.addf %401, %408 : vector<2x32x96xf32>
    %410 = vector.extract_strided_slice %394 {offsets = [0, 64, 0], sizes = [2, 32, 128], strides = [1, 1, 1]} : vector<2x96x128xf32> to vector<2x32x128xf32>
    %411 = arith.truncf %410 : vector<2x32x128xf32> to vector<2x32x128xbf16>
    %c2_196 = arith.constant 2 : index
    %c0_197 = arith.constant 0 : index
    %c0_198 = arith.constant 0 : index
    %412 = vector.load %arg34[%c2_196, %c0_197, %c0_198] : memref<3x128x96xbf16, #tpu.memory_space<vmem>>, vector<1x128x96xbf16>
    %413 = vector.shape_cast %412 : vector<1x128x96xbf16> to vector<128x96xbf16>
    %414 = vector.shape_cast %413 : vector<128x96xbf16> to vector<1x128x96xbf16>
    %415 = vector.broadcast %414 : vector<1x128x96xbf16> to vector<2x128x96xbf16>
    %cst_199 = arith.constant dense<0.000000e+00> : vector<2x32x96xf32>
    %416 = tpu.matmul %411, %415, %cst_199 {dimension_numbers = #tpu.dot_dimension_numbers<[2], [1], [1], [2], [0, 0, 0, 1, 1, 2], [0], [0]>} : vector<2x32x128xbf16>, vector<2x128x96xbf16>, vector<2x32x96xf32> -> vector<2x32x96xf32>
    %417 = arith.addf %409, %416 : vector<2x32x96xf32>
    %c0_200 = arith.constant 0 : index
    %c0_201 = arith.constant 0 : index
    %418 = vector.load %arg35[%c0_200, %c0_201] : memref<1x96xf32, #tpu.memory_space<vmem>>, vector<1x96xf32>
    %419 = vector.shape_cast %418 : vector<1x96xf32> to vector<1x1x96xf32>
    %420 = vector.broadcast %419 : vector<1x1x96xf32> to vector<2x32x96xf32>
    %421 = arith.addf %417, %420 : vector<2x32x96xf32>
    %cst_202 = arith.constant 0.000000e+00 : f32
    %422 = vector.broadcast %cst_202 : f32 to vector<2x32x96xf32>
    %423 = arith.maximumf %421, %422 : vector<2x32x96xf32>
    %c0_203 = arith.constant 0 : index
    %c0_204 = arith.constant 0 : index
    %424 = vector.load %arg36[%c0_203, %c0_204] : memref<96x32xbf16, #tpu.memory_space<vmem>>, vector<96x32xbf16>
    %425 = arith.truncf %423 : vector<2x32x96xf32> to vector<2x32x96xbf16>
    %426 = vector.shape_cast %424 : vector<96x32xbf16> to vector<1x96x32xbf16>
    %427 = vector.broadcast %426 : vector<1x96x32xbf16> to vector<2x96x32xbf16>
    %cst_205 = arith.constant dense<0.000000e+00> : vector<2x96x96xf32>
    %428 = tpu.matmul %427, %425, %cst_205 {dimension_numbers = #tpu.dot_dimension_numbers<[2], [1], [1], [2], [0, 0, 0, 1, 1, 2], [0], [0]>} : vector<2x96x32xbf16>, vector<2x32x96xbf16>, vector<2x96x96xf32> -> vector<2x96x96xf32>
    %429 = vector.extract_strided_slice %428 {offsets = [0, 0, 0], sizes = [2, 28, 96], strides = [1, 1, 1]} : vector<2x96x96xf32> to vector<2x28x96xf32>
    %430 = arith.truncf %429 : vector<2x28x96xf32> to vector<2x28x96xbf16>
    %c0_206 = arith.constant 0 : index
    %c0_207 = arith.constant 0 : index
    %c0_208 = arith.constant 0 : index
    %431 = vector.load %arg37[%c0_206, %c0_207, %c0_208] : memref<3x96x128xbf16, #tpu.memory_space<vmem>>, vector<1x96x128xbf16>
    %432 = vector.shape_cast %431 : vector<1x96x128xbf16> to vector<96x128xbf16>
    %433 = vector.shape_cast %432 : vector<96x128xbf16> to vector<1x96x128xbf16>
    %434 = vector.broadcast %433 : vector<1x96x128xbf16> to vector<2x96x128xbf16>
    %cst_209 = arith.constant dense<0.000000e+00> : vector<2x28x128xf32>
    %435 = tpu.matmul %430, %434, %cst_209 {dimension_numbers = #tpu.dot_dimension_numbers<[2], [1], [1], [2], [0, 0, 0, 1, 1, 2], [0], [0]>} : vector<2x28x96xbf16>, vector<2x96x128xbf16>, vector<2x28x128xf32> -> vector<2x28x128xf32>
    %436 = vector.extract_strided_slice %428 {offsets = [0, 32, 0], sizes = [2, 28, 96], strides = [1, 1, 1]} : vector<2x96x96xf32> to vector<2x28x96xf32>
    %437 = arith.truncf %436 : vector<2x28x96xf32> to vector<2x28x96xbf16>
    %c1_210 = arith.constant 1 : index
    %c0_211 = arith.constant 0 : index
    %c0_212 = arith.constant 0 : index
    %438 = vector.load %arg37[%c1_210, %c0_211, %c0_212] : memref<3x96x128xbf16, #tpu.memory_space<vmem>>, vector<1x96x128xbf16>
    %439 = vector.shape_cast %438 : vector<1x96x128xbf16> to vector<96x128xbf16>
    %440 = vector.shape_cast %439 : vector<96x128xbf16> to vector<1x96x128xbf16>
    %441 = vector.broadcast %440 : vector<1x96x128xbf16> to vector<2x96x128xbf16>
    %cst_213 = arith.constant dense<0.000000e+00> : vector<2x28x128xf32>
    %442 = tpu.matmul %437, %441, %cst_213 {dimension_numbers = #tpu.dot_dimension_numbers<[2], [1], [1], [2], [0, 0, 0, 1, 1, 2], [0], [0]>} : vector<2x28x96xbf16>, vector<2x96x128xbf16>, vector<2x28x128xf32> -> vector<2x28x128xf32>
    %443 = arith.addf %435, %442 : vector<2x28x128xf32>
    %444 = vector.extract_strided_slice %428 {offsets = [0, 64, 0], sizes = [2, 28, 96], strides = [1, 1, 1]} : vector<2x96x96xf32> to vector<2x28x96xf32>
    %445 = arith.truncf %444 : vector<2x28x96xf32> to vector<2x28x96xbf16>
    %c2_214 = arith.constant 2 : index
    %c0_215 = arith.constant 0 : index
    %c0_216 = arith.constant 0 : index
    %446 = vector.load %arg37[%c2_214, %c0_215, %c0_216] : memref<3x96x128xbf16, #tpu.memory_space<vmem>>, vector<1x96x128xbf16>
    %447 = vector.shape_cast %446 : vector<1x96x128xbf16> to vector<96x128xbf16>
    %448 = vector.shape_cast %447 : vector<96x128xbf16> to vector<1x96x128xbf16>
    %449 = vector.broadcast %448 : vector<1x96x128xbf16> to vector<2x96x128xbf16>
    %cst_217 = arith.constant dense<0.000000e+00> : vector<2x28x128xf32>
    %450 = tpu.matmul %445, %449, %cst_217 {dimension_numbers = #tpu.dot_dimension_numbers<[2], [1], [1], [2], [0, 0, 0, 1, 1, 2], [0], [0]>} : vector<2x28x96xbf16>, vector<2x96x128xbf16>, vector<2x28x128xf32> -> vector<2x28x128xf32>
    %451 = arith.addf %443, %450 : vector<2x28x128xf32>
    %c0_218 = arith.constant 0 : index
    %c0_219 = arith.constant 0 : index
    %452 = vector.load %arg38[%c0_218, %c0_219] : memref<1x128xf32, #tpu.memory_space<vmem>>, vector<1x128xf32>
    %453 = vector.shape_cast %452 : vector<1x128xf32> to vector<1x1x128xf32>
    %454 = vector.broadcast %453 : vector<1x1x128xf32> to vector<2x28x128xf32>
    %455 = arith.addf %451, %454 : vector<2x28x128xf32>
    %cst_220 = arith.constant 5.000000e-01 : f32
    %456 = vector.broadcast %cst_220 : f32 to vector<2x28x128xf32>
    %457 = arith.mulf %456, %455 : vector<2x28x128xf32>
    %458 = math.tanh %457 : vector<2x28x128xf32>
    %cst_221 = arith.constant 1.000000e+00 : f32
    %459 = vector.broadcast %cst_221 : f32 to vector<2x28x128xf32>
    %460 = arith.addf %458, %459 : vector<2x28x128xf32>
    %cst_222 = arith.constant 5.000000e-01 : f32
    %461 = vector.broadcast %cst_222 : f32 to vector<2x28x128xf32>
    %462 = arith.mulf %461, %460 : vector<2x28x128xf32>
    %c0_223 = arith.constant 0 : index
    %c0_224 = arith.constant 0 : index
    %c0_225 = arith.constant 0 : index
    %463 = vector.load %arg39[%c0_223, %c0_224, %c0_225] : memref<2x28x128xf32, #tpu.memory_space<vmem>>, vector<2x28x128xf32>
    tpu.vector_store %arg39[%c0_223, %c0_224, %c0_225], %462 {strides = array<i32>} : memref<2x28x128xf32, #tpu.memory_space<vmem>>, vector<2x28x128xf32>,
    return
  }
}

</mosaic_0001>

<bundles_post_ra>
// kernel: vqvae_forward.1
= control target key start
LH: loop header
LB: loop body
LE: loop exit
PB: predicated region body
PF: predicated region fallthrough
CT: control target
= control target key end

     0   :  { %s12695_s6 = smov 1   ;;  %s12696_s10 = smov 2   ;;  %s15319_s0 = inlined_call_operand.smem [shape: u32[41], index: -1, kind: input, shape index: {}] }
   0x1   :  { %s12751_s5 = sld [smem:[%s15319_s0]]   ;;  %s12697_s14 = smov 3  }
   0x2   :  { %s12756_s9 = sld [smem:[%s15319_s0 + %s12695_s6]]   ;;  %s12698_s18 = smov 4  }
   0x3   :  { %s12761_s13 = sld [smem:[%s15319_s0 + %s12696_s10]]   ;;  %s12699_s22 = smov 5  }
   0x4   :  { %s12766_s17 = sld [smem:[%s15319_s0 + %s12697_s14]]   ;;  %s12700_s26 = smov 6  }
   0x5   :  { %s12771_s21 = sld [smem:[%s15319_s0 + %s12698_s18]]   ;;  %s12701_s30 = smov 7  }
   0x6   :  { %s12776_s25 = sld [smem:[%s15319_s0 + %s12699_s22]]   ;;  %s12702_s4 = smov 8  }
   0x7   :  { %s12781_s29 = sld [smem:[%s15319_s0 + %s12700_s26]]   ;;  %s12703_s10 = smov 9  }
   0x8   :  { %s12786_s3 = sld [smem:[%s15319_s0 + %s12701_s30]]   ;;  %s12704_s15 = smov 10  }
   0x9   :  { %s12791_s8 = sld [smem:[%s15319_s0 + %s12702_s4]]   ;;  %s12705_s20 = smov 11  }
   0xa   :  { %s12796_s14 = sld [smem:[%s15319_s0 + %s12703_s10]]   ;;  %s12706_s26 = smov 12  }
   0xb   :  { %s12801_s19 = sld [smem:[%s15319_s0 + %s12704_s15]]   ;;  %s12707_s1 = smov 13  }
   0xc   :  { %s12806_s24 = sld [smem:[%s15319_s0 + %s12705_s20]]   ;;  %s12708_s7 = smov 14  }
   0xd   :  { %s12811_s30 = sld [smem:[%s15319_s0 + %s12706_s26]]   ;;  %s12709_s15 = smov 15  }
   0xe   :  { %s12816_s6 = sld [smem:[%s15319_s0 + %s12707_s1]]   ;;  %s12710_s22 = smov 16  }
   0xf   :  { %s12821_s12 = sld [smem:[%s15319_s0 + %s12708_s7]]   ;;  %s12711_s28 = smov 17  }
  0x10   :  { %s12826_s20 = sld [smem:[%s15319_s0 + %s12709_s15]]   ;;  %s12712_s7 = smov 18  }
  0x11   :  { %s12831_s27 = sld [smem:[%s15319_s0 + %s12710_s22]]   ;;  %s12713_s15 = smov 19  }
  0x12   :  { %s12836_s4 = sld [smem:[%s15319_s0 + %s12711_s28]]   ;;  %s12714_s22 = smov 20  }
  0x13   :  { %s12715_s28 = smov 21  }
  0x15   :  { %15420 = sst [smem:[#allocation5_spill]] %s12821_s12 }
  0x16   :  { %15421 = sst [smem:[#allocation6_spill]] %s12826_s20 }
  0x17   :  { %15422 = sst [smem:[#allocation7_spill]] %s12831_s27 }
  0x18   :  { %15423 = sst [smem:[#allocation8_spill]] %s12836_s4 }
  0x19   :  { %s12841_s12 = sld [smem:[%s15319_s0 + %s12712_s7]]   ;;  %s12716_s7 = smov 22  }
  0x1a   :  { %s12846_s20 = sld [smem:[%s15319_s0 + %s12713_s15]]   ;;  %s12717_s15 = smov 23  }
  0x1b   :  { %s12851_s27 = sld [smem:[%s15319_s0 + %s12714_s22]]   ;;  %s12718_s22 = smov 24  }
  0x1c   :  { %s12856_s4 = sld [smem:[%s15319_s0 + %s12715_s28]]   ;;  %s12719_s28 = smov 25  }
  0x1f   :  { %15424 = sst [smem:[#allocation9_spill]] %s12841_s12 }
  0x20   :  { %15425 = sst [smem:[#allocation10_spill]] %s12846_s20 }
  0x21   :  { %15426 = sst [smem:[#allocation11_spill]] %s12851_s27 }
  0x22   :  { %15427 = sst [smem:[#allocation12_spill]] %s12856_s4 }
  0x23   :  { %s12861_s12 = sld [smem:[%s15319_s0 + %s12716_s7]]   ;;  %s12720_s7 = smov 26  }
  0x24   :  { %s12866_s20 = sld [smem:[%s15319_s0 + %s12717_s15]]   ;;  %s12721_s15 = smov 27  }
  0x25   :  { %s12871_s27 = sld [smem:[%s15319_s0 + %s12718_s22]]   ;;  %s12722_s22 = smov 28  }
  0x26   :  { %s12876_s4 = sld [smem:[%s15319_s0 + %s12719_s28]]   ;;  %s12723_s28 = smov 29  }
  0x29   :  { %15428 = sst [smem:[#allocation13_spill]] %s12861_s12 }
  0x2a   :  { %15429 = sst [smem:[#allocation14_spill]] %s12866_s20 }
  0x2b   :  { %15430 = sst [smem:[#allocation15_spill]] %s12871_s27 }
  0x2c   :  { %15431 = sst [smem:[#allocation16_spill]] %s12876_s4 }
  0x2d   :  { %s12881_s12 = sld [smem:[%s15319_s0 + %s12720_s7]]   ;;  %s12724_s7 = smov 30  }
  0x2e   :  { %s12886_s20 = sld [smem:[%s15319_s0 + %s12721_s15]]   ;;  %s12725_s15 = smov 31  }
  0x2f   :  { %s12891_s27 = sld [smem:[%s15319_s0 + %s12722_s22]]   ;;  %s12726_s22 = smov 32  }
  0x30   :  { %s12896_s4 = sld [smem:[%s15319_s0 + %s12723_s28]]   ;;  %s12727_s28 = smov 33  }
  0x33   :  { %15432 = sst [smem:[#allocation17_spill]] %s12881_s12 }
  0x34   :  { %15433 = sst [smem:[#allocation18_spill]] %s12886_s20 }
  0x35   :  { %15434 = sst [smem:[#allocation19_spill]] %s12891_s27 }
  0x36   :  { %15435 = sst [smem:[#allocation20_spill]] %s12896_s4 }
  0x37   :  { %s12901_s12 = sld [smem:[%s15319_s0 + %s12724_s7]]   ;;  %s12728_s7 = smov 34  }
  0x38   :  { %s12906_s20 = sld [smem:[%s15319_s0 + %s12725_s15]]   ;;  %s12729_s15 = smov 35  }
  0x39   :  { %s12911_s27 = sld [smem:[%s15319_s0 + %s12726_s22]]   ;;  %s12730_s22 = smov 36  }
  0x3a   :  { %s12916_s4 = sld [smem:[%s15319_s0 + %s12727_s28]]   ;;  %s12731_s28 = smov 37  }
  0x3d   :  { %15436 = sst [smem:[#allocation21_spill]] %s12901_s12 }
  0x3e   :  { %15437 = sst [smem:[#allocation22_spill]] %s12906_s20 }
  0x3f   :  { %15438 = sst [smem:[#allocation23_spill]] %s12911_s27 }
  0x40   :  { %15439 = sst [smem:[#allocation24_spill]] %s12916_s4 }
  0x41   :  { %s12921_s12 = sld [smem:[%s15319_s0 + %s12728_s7]]   ;;  %s12732_s7 = smov 38  }
  0x42   :  { %s12926_s20 = sld [smem:[%s15319_s0 + %s12729_s15]]   ;;  %s12733_s15 = smov 39  }
  0x43   :  { %s12931_s27 = sld [smem:[%s15319_s0 + %s12730_s22]]   ;;  %s12734_s22 = smov 40  }
  0x44   :  { %s12936_s4 = sld [smem:[%s15319_s0 + %s12731_s28]]  }
  0x47   :  { %15440 = sst [smem:[#allocation25_spill]] %s12921_s12 }
  0x48   :  { %15441 = sst [smem:[#allocation26_spill]] %s12926_s20 }
  0x49   :  { %15442 = sst [smem:[#allocation27_spill]] %s12931_s27 }
  0x4a   :  { %s12941_s12 = sld [smem:[%s15319_s0 + %s12732_s7]]  }
  0x4b   :  { %s12946_s20 = sld [smem:[%s15319_s0 + %s12733_s15]]  }
  0x4c   :  { %s12951_s27 = sld [smem:[%s15319_s0 + %s12734_s22]]  }
  0x4d   :  { %v167_v0 = vld [vmem:[%s12751_s5] sm:$0xff]  ;;  %v168_v1 = vld [vmem:[%s12751_s5 + $0x8] sm:$0xff]  ;;  %v15338_v3 = vmov 0.0   ;;  %v169_v6 = vld [vmem:[%s12751_s5 + $0x10] sm:$0xff]  ;;  %vm210_vm0 = vcmask 1045504   ;;  %vm12736_vm1 = vmmov 0  }
  0x4e   :  { %v171_v2 = vld [vmem:[%s12751_s5 + $0x20] sm:$0xff]  ;;  %11204 = vmatprep.subr.bf16.mxu0 %v15338_v3  ;;  %11220 = vmatprep.subr.bf16.mxu1 %v15338_v3  ;;  %v181_v4 = vpack.c.bf16 %v168_v1, %v167_v0  ;;  %v172_v5 = vld [vmem:[%s12751_s5 + $0x28] sm:$0xff]  ;;  %v170_v7 = vld [vmem:[%s12751_s5 + $0x18] sm:$0xf]  ;;  %vm200_vm2 = vcmask 228352   ;;  %v12737_v23 = vmov 0  }
  0x4f   :  { %v183_v8 = vpack.c.bf16 %v172_v5, %v171_v2  ;;  %v182_v9 = vpack.c.bf16 %v170_v7, %v169_v6  ;;  %v173_v10 = vld [vmem:[%s12751_s5 + $0x30] sm:$0xff]  ;;  %v174_v11 = vld [vmem:[%s12751_s5 + $0x38] sm:$0xf]  ;;  %11208 = vmatprep.mubr.msk.bf16.mxu0 %vm12736_vm1, %v15338_v3  ;;  %11224 = vmatprep.mubr.msk.bf16.mxu1 %vm12736_vm1, %v15338_v3  ;;  %v12321_v15 = vld [vmem:[%s12756_s9] sm:$0xff]  }
  0x50   :  { %11205 = vmatpush3.bf16.msra.mxu0 %v181_v4  ;;  %v184_v12 = vpack.c.bf16 %v174_v11, %v173_v10  ;;  %v12324_v16 = vld [vmem:[%s12761_s13 + $0x20] ss:$8 sps:$4 sm:$0xff]   ;;  %v12326_v17 = vld [vmem:[%s12761_s13 + $0x24] ss:$8 sps:$4 sm:$0xff]   ;;  %v12323_v19 = vld [vmem:[%s12756_s9 + $0x10] sm:$0xff]  }
  0x51   :  { %11221 = vmatpush3.bf16.msra.mxu1 %v183_v8  ;;  %11206 = vmatprep.subr.bf16.mxu0 %v15338_v3  ;;  %v212_v13 = vsel %vm210_vm0, %v182_v9, 0  ;;  %v12322_v18 = vld [vmem:[%s12756_s9 + $0x8] sm:$0xff]   ;;  %v12327_v20 = vld [vmem:[%s12761_s13 + $0x34] ss:$8 sps:$4 sm:$0x3f]  }
  0x52   :  { %11222 = vmatprep.subr.bf16.mxu1 %v15338_v3  ;;  %v272_v14 = vsel %vm210_vm0, %v184_v12, 0  ;;  %v12329_v21 = vld [vmem:[%s12761_s13 + $0x30] ss:$8 sps:$4 sm:$0x3f]   ;;  %v12332_v24 = vld [vmem:[%s12761_s13 + $0x4] ss:$8 sps:$4 sm:$0xff]  }
  0x53   :  { %v366_v22 = vsel %vm210_vm0, %v12329_v21, 0 }
  0x54   :  { %11207 = vmatpush3.bf16.msra.mxu0 %v212_v13 }
  0x55   :  { %11223 = vmatpush3.bf16.msra.mxu1 %v272_v14  ;;  %371 = vmatprep.subr.bf16.mxu0 %v12326_v17 }
  0x56   :  { %417 = vmatprep.subr.bf16.mxu1 %v12326_v17 }
  0x57   :  { %11209 = vmatmul.mubr.msk.bf16.vlgmr.msra.gmra.mrb[0].mxu0 %vm200_vm2, %v12321_v15 }
  0x58   :  { %11225 = vmatmul.mubr.msk.bf16.vlgmr.msra.gmra.mrb[0].mxu1 %vm200_vm2, %v12321_v15  ;;  %11212 = vmatprep.mubr.msk.bf16.mxu0 %vm12736_vm1, %v15338_v3 }
  0x59   :  { %11228 = vmatprep.mubr.msk.bf16.mxu1 %vm12736_vm1, %v15338_v3  ;;  %372 = vmatpush1.bf16.msra.mxu0 %v12324_v16 }
  0x5a   :  { %418 = vmatpush1.bf16.msra.mxu1 %v12324_v16  ;;  %9742 = vmatprep.subr.msk.bf16.mxu0 %vm210_vm0, %v12327_v20 }
  0x5b   :  { %9744 = vmatprep.subr.msk.bf16.mxu1 %vm210_vm0, %v12327_v20 }
  0x5d   :  { %374 = vmatpush1.bf16.msra.mxu0 %v366_v22 }
  0x5e   :  { %420 = vmatpush1.bf16.msra.mxu1 %v366_v22  ;;  %487 = vmatprep.subr.bf16.mxu0 %v12332_v24 }
  0x5f   :  { %11213 = vmatmul.mubr.msk.bf16.gmra.mrb[4].mxu0 %vm200_vm2, %v12322_v18  ;;  %533 = vmatprep.subr.bf16.mxu1 %v12332_v24 }
  0x60   :  { %11229 = vmatmul.mubr.msk.bf16.gmra.mrb[4].mxu1 %vm200_vm2, %v12322_v18  ;;  %11216 = vmatprep.mubr.msk.bf16.mxu0 %vm12736_vm1, %v15338_v3 }
  0x61   :  { %11232 = vmatprep.mubr.msk.bf16.mxu1 %vm12736_vm1, %v15338_v3 }
  0x67   :  { %11217 = vmatmul.mubr.msk.bf16.gmra.mrb[8].mxu0 %vm200_vm2, %v12323_v19 }
  0x68   :  { %11233 = vmatmul.mubr.msk.bf16.gmra.mrb[8].mxu1 %vm200_vm2, %v12323_v19  ;;  %403 = vmatprep.mubr.bf16.mxu0 %v12737_v23 }
  0x69   :  { %449 = vmatprep.mubr.bf16.mxu1 %v12737_v23 }
 0x12a   :  { %v248_v25 = vpop.f32.mrb[0].mxu0 }
 0x12b   :  { %v308_v26 = vpop.f32.mrb[0].mxu1  ;;  %v11210_v27 = vpop.f32.mrb[1].mxu0 }
 0x12c   :  { %v11226_v28 = vpop.f32.mrb[1].mxu1  ;;  %v251_v29 = vpop.f32.mrb[2].mxu0 }
 0x12d   :  { %v331_v30 = vpack.c.bf16 %v251_v29, %v248_v25  ;;  %v311_v31 = vpop.f32.mrb[2].mxu1  ;;  %v11211_v32 = vpop.f32.mrb[3].mxu0 }
 0x12e   :  { %v332_v33 = vpack.c.bf16 %v311_v31, %v308_v26  ;;  %v11227_v34 = vpop.f32.mrb[3].mxu1 }
 0x132   :  { %v256_v35 = vpop.f32.mrb[4].mxu0 }
 0x133   :  { %87 = vsyncpa [#allocation3], 0  ;;  %v316_v36 = vpop.f32.mrb[4].mxu1  ;;  %v11214_v37 = vpop.f32.mrb[5].mxu0  ;;  %v12330_v38 = vld [vmem:[%s12761_s13] ss:$8 sps:$4 sm:$0xff]  }
 0x134   :  { %v11230_v39 = vpop.f32.mrb[5].mxu1  ;;  %v259_v40 = vpop.f32.mrb[6].mxu0  ;;  %v12333_v41 = vld [vmem:[%s12761_s13 + $0x14] ss:$8 sps:$4 sm:$0x3f]   ;;  %v775_v63 = vld [vmem:[%s12766_s17 + $0x8] sm:$0xff] }
 0x135   :  { %v337_v42 = vpack.c.bf16 %v259_v40, %v256_v35  ;;  %v319_v43 = vpop.f32.mrb[6].mxu1  ;;  %v11215_v44 = vpop.f32.mrb[7].mxu0  ;;  %v12335_v45 = vld [vmem:[%s12761_s13 + $0x10] ss:$8 sps:$4 sm:$0x3f]   ;;  %v774_v4 = vld [vmem:[%s12766_s17] sm:$0xff] }
 0x136   :  { %v338_v46 = vpack.c.bf16 %v319_v43, %v316_v36  ;;  %v11231_v47 = vpop.f32.mrb[7].mxu1  ;;  %v482_v48 = vsel %vm210_vm0, %v12335_v45, 0  ;;  %v12338_v49 = vld [vmem:[%s12761_s13 + $0x44] ss:$8 sps:$4 sm:$0xff]   ;;  %v12336_v60 = vld [vmem:[%s12761_s13 + $0x40] ss:$8 sps:$4 sm:$0xff]  }
 0x137   :  { %9743 = vmatmul.mubr.msk.bf16.vlgmr.msra.gmra.mrb[12].mxu0 %vm200_vm2, %v337_v42  ;;  %v12339_v61 = vld [vmem:[%s12761_s13 + $0x54] ss:$8 sps:$4 sm:$0x3f]   ;;  %v12341_v62 = vld [vmem:[%s12761_s13 + $0x50] ss:$8 sps:$4 sm:$0x3f]  }
 0x138   :  { %9745 = vmatmul.mubr.msk.bf16.vlgmr.msra.gmra.mrb[12].mxu1 %vm200_vm2, %v338_v46  ;;  %488 = vmatpush1.bf16.msra.mxu0 %v12330_v38  ;;  %v777_v0 = vld [vmem:[%s12766_s17 + $0x18] sm:$0xff]  ;;  %v605_v1 = vsel %vm210_vm0, %v12341_v62, 0  ;;  %v776_v5 = vld [vmem:[%s12766_s17 + $0x10] sm:$0xff]  ;;  %v779_v6 = vld [vmem:[%s12766_s17 + $0x28] sm:$0xff]  ;;  %vm15335_vm3 = vcmask 785408   ;;  %vm715_vm4 = vcmask 783360  }
 0x139   :  { %534 = vmatpush1.bf16.msra.mxu1 %v12330_v38  ;;  %9750 = vmatprep.subr.msk.bf16.mxu0 %vm210_vm0, %v12333_v41  ;;  %v12021_v2 = vpack.c.bf16 %v777_v0, %v775_v63  ;;  %v781_v7 = vld [vmem:[%s12766_s17 + $0x38] sm:$0xff]  ;;  %v12023_v8 = vpack.c.bf16 %v776_v5, %v774_v4  ;;  %v778_v10 = vld [vmem:[%s12766_s17 + $0x20] sm:$0xff]  ;;  %v780_v11 = vld [vmem:[%s12766_s17 + $0x30] sm:$0xff]  ;;  %vm771_vm5 = vcmask 1040384   ;;  %vm1025_vm6 = vcmask 1046528   ;;  %s15443_s0 = sld [smem:[#allocation7_spill]] }
 0x13a   :  { %9752 = vmatprep.subr.msk.bf16.mxu1 %vm210_vm0, %v12333_v41  ;;  %519 = vmatprep.mubr.bf16.mxu0 %v12737_v23  ;;  %v264_v50 = vpop.f32.mrb[8].mxu0  ;;  %v12025_v9 = vpack.c.bf16 %v781_v7, %v779_v6  ;;  %v783_v12 = vld [vmem:[%s12766_s17 + $0x48] sm:$0xff]  ;;  %v785_v13 = vld [vmem:[%s12766_s17 + $0x58] sm:$0xff]  ;;  %v12027_v14 = vpack.c.bf16 %v780_v11, %v778_v10  ;;  %v782_v16 = vld [vmem:[%s12766_s17 + $0x40] sm:$0xff]  ;;  %vm1018_vm7 = vcmask 113664   ;;  %vm1750_vm8 = vcmask 915456  }
 0x13b   :  { %565 = vmatprep.mubr.bf16.mxu1 %v12737_v23  ;;  %v324_v51 = vpop.f32.mrb[8].mxu1  ;;  %v11218_v52 = vpop.f32.mrb[9].mxu0  ;;  %v12029_v15 = vpack.c.bf16 %v785_v13, %v783_v12  ;;  %v784_v17 = vld [vmem:[%s12766_s17 + $0x50] sm:$0xff]  ;;  %v787_v18 = vld [vmem:[%s12766_s17 + $0x68] sm:$0xff]  ;;  %v789_v19 = vld [vmem:[%s12766_s17 + $0x78] sm:$0xff]  ;;  %vm1788_vm9 = vcmask 916480  }
 0x13c   :  { %490 = vmatpush1.bf16.msra.mxu0 %v482_v48  ;;  %v11234_v53 = vpop.f32.mrb[9].mxu1  ;;  %v267_v54 = vpop.f32.mrb[10].mxu0  ;;  %v12031_v20 = vpack.c.bf16 %v784_v17, %v782_v16  ;;  %v12033_v21 = vpack.c.bf16 %v789_v19, %v787_v18  ;;  %v786_v22 = vld [vmem:[%s12766_s17 + $0x60] sm:$0xff]  ;;  %v788_v24 = vld [vmem:[%s12766_s17 + $0x70] sm:$0xff]  ;;  %v791_v25 = vld [vmem:[%s12766_s17 + $0x88] sm:$0xff]  ;;  %vm1912_vm10 = vcmask 56320  }
 0x13d   :  { %536 = vmatpush1.bf16.msra.mxu1 %v482_v48  ;;  %610 = vmatprep.subr.bf16.mxu0 %v12338_v49  ;;  %v576_v55 = vpack.c.bf16 %v267_v54, %v264_v50  ;;  %v327_v56 = vpop.f32.mrb[10].mxu1  ;;  %v11219_v57 = vpop.f32.mrb[11].mxu0  ;;  %v793_v26 = vld [vmem:[%s12766_s17 + $0x98] sm:$0xff]  ;;  %v12035_v27 = vpack.c.bf16 %v788_v24, %v786_v22  ;;  %v790_v29 = vld [vmem:[%s12766_s17 + $0x80] sm:$0xff]  ;;  %v795_v31 = vld [vmem:[%s12766_s17 + $0xa8] sm:$0xff]  ;;  %vm1919_vm11 = vcmask 1042432  }
 0x13e   :  { %656 = vmatprep.subr.bf16.mxu1 %v12338_v49  ;;  %v577_v58 = vpack.c.bf16 %v327_v56, %v324_v51  ;;  %v11235_v59 = vpop.f32.mrb[11].mxu1  ;;  %v12037_v28 = vpack.c.bf16 %v793_v26, %v791_v25  ;;  %v797_v32 = vld [vmem:[%s12766_s17 + $0xb8] sm:$0xff]  ;;  %v794_v35 = vld [vmem:[%s12766_s17 + $0xa0] sm:$0xff]  ;;  %v796_v36 = vld [vmem:[%s12766_s17 + $0xb0] sm:$0xff]  ;;  %vm15337_vm12 = vcmask 1043456   ;;  %vm2461_vm13 = vcmask 257024  }
 0x13f   :  { %v12041_v34 = vpack.c.bf16 %v797_v32, %v795_v31  ;;  %v799_v37 = vld [vmem:[%s12766_s17 + $0xc8] sm:$0xff]  ;;  %v801_v38 = vld [vmem:[%s12766_s17 + $0xd8] sm:$0xff]  ;;  %v12043_v39 = vpack.c.bf16 %v796_v36, %v794_v35  ;;  %v798_v41 = vld [vmem:[%s12766_s17 + $0xc0] sm:$0xff]  ;;  %s15444_s5 = sld [smem:[#allocation5_spill]]  ;;  %vm15336_vm14 = vcmask 261120   ;;  %s15445_s9 = sld [smem:[#allocation6_spill]] }
 0x140   :  { %v12045_v40 = vpack.c.bf16 %v801_v38, %v799_v37  ;;  %v800_v42 = vld [vmem:[%s12766_s17 + $0xd0] sm:$0xff]  ;;  %v803_v43 = vld [vmem:[%s12766_s17 + $0xe8] sm:$0xff]  ;;  %v805_v44 = vld [vmem:[%s12766_s17 + $0xf8] sm:$0xff]  ;;  %vm2613_vm15 = vcmask 31744   ;;  %s15446_s13 = sld [smem:[#allocation8_spill]]  ;;  %s15616_s28 = sld [smem:[#allocation20_spill]] }
 0x141   :  { %v12047_v45 = vpack.c.bf16 %v800_v42, %v798_v41  ;;  %v12049_v46 = vpack.c.bf16 %v805_v44, %v803_v43  ;;  %v802_v47 = vld [vmem:[%s12766_s17 + $0xe0] sm:$0xff]  ;;  %v804_v48 = vld [vmem:[%s12766_s17 + $0xf0] sm:$0xff]  ;;  %v807_v50 = vld [vmem:[%s12766_s17 + $0x108] sm:$0xff]  ;;  %s15617_s1 = sld [smem:[#allocation21_spill]]  ;;  %s15618_s2 = sld [smem:[#allocation22_spill]] }
 0x142   :  { %v12051_v49 = vpack.c.bf16 %v804_v48, %v802_v47  ;;  %v809_v51 = vld [vmem:[%s12766_s17 + $0x118] sm:$0xff]  ;;  %v806_v53 = vld [vmem:[%s12766_s17 + $0x100] sm:$0xff]  ;;  %v808_v54 = vld [vmem:[%s12766_s17 + $0x110] sm:$0xff]  ;;  %s15621_s7 = sld [smem:[#allocation24_spill]]  ;;  %s15622_s10 = sld [smem:[#allocation23_spill]] }
 0x143   :  { %9751 = vmatmul.mubr.msk.bf16.vlgmr.msra.gmra.mrb[12].mxu0 %vm200_vm2, %v331_v30  ;;  %v792_v30 = vld [vmem:[%s12766_s17 + $0x90] sm:$0xff]  ;;  %v12053_v52 = vpack.c.bf16 %v809_v51, %v807_v50  ;;  %v811_v56 = vld [vmem:[%s12766_s17 + $0x128] sm:$0xff]  ;;  %v813_v57 = vld [vmem:[%s12766_s17 + $0x138] sm:$0xff]  ;;  %s15623_s11 = sld [smem:[#allocation25_spill]]  ;;  %s15624_s15 = sld [smem:[#allocation27_spill]] }
 0x144   :  { %9753 = vmatmul.mubr.msk.bf16.vlgmr.msra.gmra.mrb[12].mxu1 %vm200_vm2, %v332_v33  ;;  %611 = vmatpush1.bf16.msra.mxu0 %v12336_v60  ;;  %v12039_v33 = vpack.c.bf16 %v792_v30, %v790_v29  ;;  %v810_v59 = vld [vmem:[%s12766_s17 + $0x120] sm:$0xff]  ;;  %v815_v62 = vld [vmem:[%s12766_s17 + $0x148] sm:$0xff]  ;;  %v817_v63 = vld [vmem:[%s12766_s17 + $0x158] sm:$0xff]  ;;  %s15626_s16 = sld [smem:[#allocation26_spill]] }
 0x145   :  { %657 = vmatpush1.bf16.msra.mxu1 %v12336_v60  ;;  %9762 = vmatprep.subr.msk.bf16.mxu0 %vm210_vm0, %v12339_v61  ;;  %v812_v60 = vld [vmem:[%s12766_s17 + $0x130] sm:$0xff]  ;;  %v12061_v0 = vpack.c.bf16 %v817_v63, %v815_v62  ;;  %v819_v5 = vld [vmem:[%s12766_s17 + $0x168] sm:$0xff]  ;;  %v821_v6 = vld [vmem:[%s12766_s17 + $0x178] sm:$0xff] }
 0x146   :  { %9764 = vmatprep.subr.msk.bf16.mxu1 %vm210_vm0, %v12339_v61  ;;  %642 = vmatprep.mubr.bf16.mxu0 %v12737_v23  ;;  %v12059_v61 = vpack.c.bf16 %v812_v60, %v810_v59  ;;  %v12065_v7 = vpack.c.bf16 %v821_v6, %v819_v5  ;;  %v823_v11 = vld [vmem:[%s12766_s17 + $0x188] sm:$0xff]  ;;  %v825_v12 = vld [vmem:[%s12766_s17 + $0x198] sm:$0xff]  ;;  %v822_v13 = vld [vmem:[%s12766_s17 + $0x180] sm:$0xff] }
 0x147   :  { %688 = vmatprep.mubr.bf16.mxu1 %v12737_v23  ;;  %v827_v16 = vld [vmem:[%s12766_s17 + $0x1a8] sm:$0xff]  ;;  %v829_v17 = vld [vmem:[%s12766_s17 + $0x1b8] sm:$0xff] }
 0x148   :  { %613 = vmatpush1.bf16.msra.mxu0 %v605_v1  ;;  %v12073_v19 = vpack.c.bf16 %v829_v17, %v827_v16 }
 0x149   :  { %659 = vmatpush1.bf16.msra.mxu1 %v605_v1  ;;  %12022 = vmatprep.subr.bf16.mxu0 %v12021_v2  ;;  %v814_v1 = vld [vmem:[%s12766_s17 + $0x140] sm:$0xff]  ;;  %v816_v2 = vld [vmem:[%s12766_s17 + $0x150] sm:$0xff] }
 0x14a   :  { %v12063_v4 = vpack.c.bf16 %v816_v2, %v814_v1 }
 0x14f   :  { %9763 = vmatmul.mubr.msk.bf16.vlgmr.msra.gmra.mrb[12].mxu0 %vm200_vm2, %v576_v55  ;;  %v12055_v55 = vpack.c.bf16 %v808_v54, %v806_v53 }
 0x150   :  { %9765 = vmatmul.mubr.msk.bf16.vlgmr.msra.gmra.mrb[12].mxu1 %vm200_vm2, %v577_v58  ;;  %12024 = vmatpush1.bf16.msra.mxu0 %v12023_v8  ;;  %v12057_v58 = vpack.c.bf16 %v813_v57, %v811_v56  ;;  %v818_v8 = vld [vmem:[%s12766_s17 + $0x160] sm:$0xff]  ;;  %vm3039_vm2 = vcmask 123904  }
 0x151   :  { %12026 = vmatprep.subr.bf16.mxu0 %v12025_v9  ;;  %1064 = vmatprep.mubr.bf16.mxu1 %v12737_v23  ;;  %v820_v9 = vld [vmem:[%s12766_s17 + $0x170] sm:$0xff] }
 0x152   :  { %v12067_v10 = vpack.c.bf16 %v820_v9, %v818_v8 }
 0x154   :  { %12028 = vmatpush1.bf16.msra.mxu0 %v12027_v14  ;;  %v12069_v14 = vpack.c.bf16 %v825_v12, %v823_v11 }
 0x155   :  { %12030 = vmatprep.subr.bf16.mxu0 %v12029_v15  ;;  %v824_v15 = vld [vmem:[%s12766_s17 + $0x190] sm:$0xff] }
 0x156   :  { %v12071_v18 = vpack.c.bf16 %v824_v15, %v822_v13 }
 0x158   :  { %12032 = vmatpush1.bf16.msra.mxu0 %v12031_v20  ;;  %v826_v20 = vld [vmem:[%s12766_s17 + $0x1a0] sm:$0xff] }
 0x159   :  { %12034 = vmatprep.subr.bf16.mxu0 %v12033_v21  ;;  %v828_v21 = vld [vmem:[%s12766_s17 + $0x1b0] sm:$0xff]  ;;  %s15447_s17 = sld [smem:[#allocation9_spill]] }
 0x15a   :  { %v12075_v22 = vpack.c.bf16 %v828_v21, %v826_v20 }
 0x15c   :  { %12036 = vmatpush1.bf16.msra.mxu0 %v12035_v27 }
 0x15d   :  { %12038 = vmatprep.subr.bf16.mxu0 %v12037_v28 }
 0x160   :  { %12040 = vmatpush1.bf16.msra.mxu0 %v12039_v33 }
 0x161   :  { %12042 = vmatprep.subr.bf16.mxu0 %v12041_v34 }
 0x164   :  { %12044 = vmatpush1.bf16.msra.mxu0 %v12043_v39 }
 0x165   :  { %12046 = vmatprep.subr.bf16.mxu0 %v12045_v40 }
 0x168   :  { %12048 = vmatpush1.bf16.msra.mxu0 %v12047_v45 }
 0x169   :  { %12050 = vmatprep.subr.bf16.mxu0 %v12049_v46 }
 0x16c   :  { %12052 = vmatpush1.bf16.msra.mxu0 %v12051_v49 }
 0x16d   :  { %12054 = vmatprep.subr.bf16.mxu0 %v12053_v52 }
 0x170   :  { %12056 = vmatpush1.bf16.msra.mxu0 %v12055_v55 }
 0x171   :  { %12058 = vmatprep.subr.bf16.mxu0 %v12057_v58 }
 0x174   :  { %12060 = vmatpush1.bf16.msra.mxu0 %v12059_v61 }
 0x175   :  { %12062 = vmatprep.subr.bf16.mxu0 %v12061_v0 }
 0x178   :  { %12064 = vmatpush1.bf16.msra.mxu0 %v12063_v4 }
 0x179   :  { %12066 = vmatprep.subr.bf16.mxu0 %v12065_v7 }
 0x17c   :  { %12068 = vmatpush1.bf16.msra.mxu0 %v12067_v10 }
 0x17d   :  { %12070 = vmatprep.subr.bf16.mxu0 %v12069_v14 }
 0x180   :  { %12072 = vmatpush1.bf16.msra.mxu0 %v12071_v18 }
 0x181   :  { %12074 = vmatprep.subr.bf16.mxu0 %v12073_v19 }
 0x184   :  { %12076 = vmatpush1.bf16.msra.mxu0 %v12075_v22 }
 0x185   :  { %1335 = vmatprep.subr.bf16.mxu0 %v12737_v23 }
 0x222   :  { %v13079_v24 = vpop.f32.mrb[12].mxu0 }
 0x223   :  { %v736_v25 = vmul.f32 %v13079_v24, %v13079_v24  ;;  %v13083_v26 = vpop.f32.mrb[12].mxu1  ;;  %v13085_v27 = vpop.f32.mrb[13].mxu0 }
 0x224   :  { %v707_v28 = vadd.f32 %v13083_v26, %v13079_v24  ;;  %v740_v29 = vmul.f32 %v13083_v26, %v13083_v26  ;;  %v709_v30 = vsel %vm15335_vm3, %v13085_v27, 0.0  ;;  %v737_v31 = vmul.f32 %v13085_v27, %v13085_v27  ;;  %v13095_v32 = vpop.f32.mrb[13].mxu1  ;;  %v13097_v33 = vpop.f32.mrb[14].mxu0 }
 0x225   :  { %v710_v34 = vsel %vm15335_vm3, %v13095_v32, 0.0  ;;  %v741_v35 = vmul.f32 %v13095_v32, %v13095_v32  ;;  %v712_v36 = vsel %vm210_vm0, %v13097_v33, 0.0  ;;  %v738_v37 = vmul.f32 %v13097_v33, %v13097_v33  ;;  %v13107_v38 = vpop.f32.mrb[14].mxu1  ;;  %v13109_v39 = vpop.f32.mrb[15].mxu0 }
 0x226   :  { %v744_v40 = vadd.f32 %v740_v29, %v736_v25  ;;  %v745_v41 = vsel %vm15335_vm3, %v737_v31, 0.0  ;;  %v711_v42 = vadd.f32 %v710_v34, %v709_v30  ;;  %v713_v43 = vsel %vm210_vm0, %v13107_v38, 0.0  ;;  %v13114_v44 = vpop.f32.mrb[15].mxu1 }
 0x227   :  { %v746_v45 = vsel %vm15335_vm3, %v741_v35, 0.0  ;;  %v748_v46 = vsel %vm210_vm0, %v738_v37, 0.0  ;;  %v714_v47 = vadd.f32 %v713_v43, %v712_v36  ;;  %v742_v48 = vmul.f32 %v13107_v38, %v13107_v38  ;;  %v13151_v43 = vld [vmem:[%s12786_s3 + $0x80] sm:$0xff]  }
 0x228   :  { %v747_v49 = vadd.f32 %v746_v45, %v745_v41  ;;  %v716_v50 = vsel %vm715_vm4, %v13109_v39, 0.0  ;;  %v739_v51 = vmul.f32 %v13109_v39, %v13109_v39  ;;  %v717_v54 = vsel %vm715_vm4, %v13114_v44, 0.0  ;;  %v13141_v41 = vld [vmem:[%s12786_s3 + $0x70] sm:$0xff]   ;;  %v13156_v45 = vld [vmem:[%s12786_s3 + $0x88] sm:$0xff]  }
 0x229   :  { %v719_v52 = vsel %vm210_vm0, %v714_v47, 0.0  ;;  %v749_v53 = vsel %vm210_vm0, %v742_v48, 0.0  ;;  %v743_v55 = vmul.f32 %v13114_v44, %v13114_v44  ;;  %v718_v59 = vadd.f32 %v717_v54, %v716_v50  ;;  %v13166_v47 = vld [vmem:[%s12786_s3 + $0x98] sm:$0xff]   ;;  %v13171_v48 = vld [vmem:[%s12786_s3 + $0xa0] sm:$0xff]   ;;  %v13181_v50 = vld [vmem:[%s12786_s3 + $0xb0] sm:$0xff]  }
 0x22a   :  { %v720_v56 = vadd.f32 %v719_v52, %v707_v28  ;;  %v750_v57 = vadd.f32 %v749_v53, %v748_v46  ;;  %v751_v58 = vsel %vm715_vm4, %v739_v51, 0.0  ;;  %v727_v0 = vsel %vm15335_vm3, %v711_v42, 0.0  ;;  %v13146_v42 = vld [vmem:[%s12786_s3 + $0x78] sm:$0xff]   ;;  %v13161_v46 = vld [vmem:[%s12786_s3 + $0x90] sm:$0xff]   ;;  %v13191_v52 = vld [vmem:[%s12786_s3 + $0xc0] sm:$0xff]  }
 0x22b   :  { %v752_v60 = vsel %vm715_vm4, %v743_v55, 0.0  ;;  %v728_v2 = vsel %vm715_vm4, %v718_v59, 0.0  ;;  %v762_v4 = vsel %vm15335_vm3, %v747_v49, 0.0  ;;  %v13176_v49 = vld [vmem:[%s12786_s3 + $0xa8] sm:$0xff]   ;;  %v13186_v51 = vld [vmem:[%s12786_s3 + $0xb8] sm:$0xff]   ;;  %v13201_v54 = vld [vmem:[%s12786_s3 + $0xd0] sm:$0xff]  }
 0x22c   :  { %v721_v61 = vrot.slane %v720_v56, 4  ;;  %v754_v62 = vsel %vm210_vm0, %v750_v57, 0.0  ;;  %v753_v63 = vadd.f32 %v752_v60, %v751_v58  ;;  %v729_v6 = vadd.f32 %v728_v2, %v727_v0  ;;  %v13196_v53 = vld [vmem:[%s12786_s3 + $0xc8] sm:$0xff]  }
 0x22d   :  { %v755_v1 = vadd.f32 %v754_v62, %v744_v40  ;;  %v920_v60 = vlaneseq  ;;  %vm2620_vm0 = vcmask 1041408  }
 0x22e   :  { %v722_v5 = vadd.f32 %v721_v61, %v720_v56  ;;  %v763_v7 = vsel %vm715_vm4, %v753_v63, 0.0  ;;  %v730_v11 = vrot.slane %v729_v6, 4  ;;  %vm3065_vm4 = vcmask 130048  }
 0x22f   :  { %v756_v8 = vrot.slane %v755_v1, 4  ;;  %v764_v9 = vadd.f32 %v763_v7, %v762_v4  ;;  %v12738_v7 = vmov 1966171168  }
 0x230   :  { %v723_v10 = vrot.slane %v722_v5, 2  ;;  %v731_v14 = vadd.f32 %v730_v11, %v729_v6 }
 0x231   :  { %v757_v12 = vadd.f32 %v756_v8, %v755_v1  ;;  %v765_v13 = vrot.slane %v764_v9, 4  ;;  %v13206_v1 = vshrl.u32 %v920_v60, 7  ;;  %v945_v8 = vunpack.c.l.s4 %v12738_v7 }
 0x232   :  { %v724_v15 = vadd.f32 %v723_v10, %v722_v5  ;;  %v732_v18 = vrot.slane %v731_v14, 2  ;;  %v918_v5 = vld [vmem:[%s12771_s21] sm:$0x3]  ;;  %s15448_s21 = sld [smem:[#allocation12_spill]] }
 0x233   :  { %v766_v16 = vadd.f32 %v765_v13, %v764_v9  ;;  %v758_v17 = vrot.slane %v757_v12, 2  ;;  %v13209_v4 = vsub.s32 0, %v13206_v1  ;;  %v13213_v6 = vsub.s32 1, %v13206_v1 }
 0x234   :  { %v725_v20 = vrot.slane %v724_v15, 1  ;;  %v733_v22 = vadd.f32 %v732_v18, %v731_v14 }
 0x235   :  { %v767_v19 = vrot.slane %v766_v16, 2  ;;  %v759_v21 = vadd.f32 %v758_v17, %v757_v12  ;;  %v923_v9 = vrot.slane %v918_v5, %v13209_v4  ;;  %v927_v10 = vrot.slane %v918_v5, %v13213_v6 }
 0x236   :  { %v734_v29 = vrot.slane %v733_v22, 1  ;;  %v726_v31 = vadd.f32 %v725_v20, %v724_v15  ;;  %v946_v12 = vunpack.c.0.s8 %v945_v8 }
 0x237   :  { %v768_v25 = vadd.f32 %v767_v19, %v766_v16  ;;  %v760_v28 = vrot.slane %v759_v21, 1 }
 0x238   :  { %v735_v35 = vadd.f32 %v734_v29, %v733_v22  ;;  %v949_v19 = vsub.s32 %v946_v12, %v13206_v1 }
 0x239   :  { %v769_v30 = vrot.slane %v768_v25, 1  ;;  %v761_v34 = vadd.f32 %v760_v28, %v759_v21 }
 0x23b   :  { %v770_v36 = vadd.f32 %v769_v30, %v768_v25  ;;  %v772_v37 = vsel %vm771_vm5, %v726_v31, %v761_v34 }
 0x23d   :  { %v773_v40 = vsel %vm771_vm5, %v735_v35, %v770_v36 }
 0x23e   :  { %9766 = vmatprep.mubr.msk.f32.mxu0 %vm15335_vm3, %v773_v40 }
 0x23f   :  { %898 = vmatmul.mubr.f32.vlgmr.msra.gmra.mrb[16].mxu0 %v772_v37 }
 0x240   :  { %1336 = vmatpush1.bf16.msra.mxu0 %v13141_v41 }
 0x241   :  { %1337 = vmatprep.subr.bf16.mxu0 %v12737_v23 }
 0x244   :  { %1338 = vmatpush1.bf16.msra.mxu0 %v13146_v42 }
 0x245   :  { %1339 = vmatprep.subr.bf16.mxu0 %v12737_v23 }
 0x248   :  { %1340 = vmatpush1.bf16.msra.mxu0 %v13151_v43 }
 0x249   :  { %1341 = vmatprep.subr.bf16.mxu0 %v12737_v23 }
 0x24c   :  { %1342 = vmatpush1.bf16.msra.mxu0 %v13156_v45 }
 0x24d   :  { %1343 = vmatprep.subr.bf16.mxu0 %v12737_v23 }
 0x250   :  { %1344 = vmatpush1.bf16.msra.mxu0 %v13161_v46 }
 0x251   :  { %1345 = vmatprep.subr.bf16.mxu0 %v12737_v23 }
 0x254   :  { %1346 = vmatpush1.bf16.msra.mxu0 %v13166_v47 }
 0x255   :  { %1347 = vmatprep.subr.bf16.mxu0 %v12737_v23 }
 0x258   :  { %1348 = vmatpush1.bf16.msra.mxu0 %v13171_v48 }
 0x259   :  { %1349 = vmatprep.subr.bf16.mxu0 %v12737_v23 }
 0x25c   :  { %1350 = vmatpush1.bf16.msra.mxu0 %v13176_v49 }
 0x25d   :  { %1351 = vmatprep.subr.bf16.mxu0 %v12737_v23 }
 0x260   :  { %1352 = vmatpush1.bf16.msra.mxu0 %v13181_v50 }
 0x261   :  { %1353 = vmatprep.subr.bf16.mxu0 %v12737_v23 }
 0x264   :  { %1354 = vmatpush1.bf16.msra.mxu0 %v13186_v51 }
 0x265   :  { %1355 = vmatprep.subr.bf16.mxu0 %v12737_v23 }
 0x268   :  { %1356 = vmatpush1.bf16.msra.mxu0 %v13191_v52 }
 0x269   :  { %1357 = vmatprep.subr.bf16.mxu0 %v12737_v23 }
 0x26c   :  { %1358 = vmatpush1.bf16.msra.mxu0 %v13196_v53 }
 0x26d   :  { %1359 = vmatprep.subr.bf16.mxu0 %v12737_v23 }
 0x270   :  { %1360 = vmatpush1.bf16.msra.mxu0 %v13201_v54 }
 0x271   :  { %1361 = vmatprep.subr.bf16.mxu0 %v12737_v23 }
 0x312   :  { %v899_v55 = vpop.f32.mrb[16].mxu0 }
 0x313   :  { %v904_v56 = vmul.f32 %v899_v55, %v899_v55  ;;  %v901_v57 = vpop.f32.mrb[17].mxu0 }
 0x314   :  { %v905_v58 = vmul.f32 %v901_v57, %v901_v57 }
 0x315   :  { %v908_v59 = vrot.slane %v904_v56, 7 }
 0x316   :  { %v909_v61 = vrot.slane %v905_v58, 7 }
 0x317   :  { %v912_v62 = vsub.f32 %v899_v55, %v908_v59 }
 0x318   :  { %v913_v63 = vsub.f32 %v901_v57, %v909_v61 }
 0x319   :  { %v914_v0 = vadd.f32 1e-05, %v912_v62 }
 0x31a   :  { %v915_v2 = vadd.f32 1e-05, %v913_v63 }
 0x31b   :  { %12645 = vrsqrt.f32 %v914_v0 }
 0x31c   :  { %12647 = vrsqrt.f32 %v915_v2 }
 0x325   :  { %v12646_v11 = vpop.eup %12645 }
 0x326   :  { %v12648_v13 = vpop.eup %12647  ;;  %v930_v14 = vmul.f32 %v12646_v11, %v923_v9 }
 0x327   :  { %v931_v15 = vmul.f32 %v12648_v13, %v927_v10 }
 0x328   :  { %v935_v16 = vrot.slane %v930_v14, 1  ;;  %v963_v17 = vrot.slane %v930_v14, %v13213_v6  ;;  %v12342_v14 = vld [vmem:[%s12781_s29] sm:$0xff]  }
 0x329   :  { %v936_v18 = vrot.slane %v931_v15, 1  ;;  %v967_v20 = vrot.slane %v931_v15, %v13213_v6 }
 0x32a   :  { %v939_v21 = vmul.f32 %v935_v16, %v899_v55  ;;  %v968_v22 = vmul.f32 %v963_v17, %v13079_v24  ;;  %v970_v25 = vmul.f32 %v963_v17, %v13097_v33  ;;  %v972_v28 = vmul.f32 %v963_v17, %v13083_v26  ;;  %v932_v55 = vld [vmem:[%s12776_s25] sm:$0x3]  ;;  %v12343_v16 = vld [vmem:[%s12781_s29 + $0x8] ss:$0 sps:$4 sm:$0xff]   ;;  %s15449_s25 = sld [smem:[#allocation10_spill]]  ;;  %s15450_s29 = sld [smem:[#allocation11_spill]] }
 0x32b   :  { %v940_v29 = vmul.f32 %v936_v18, %v901_v57  ;;  %v969_v30 = vmul.f32 %v967_v20, %v13085_v27  ;;  %v971_v31 = vmul.f32 %v967_v20, %v13109_v39  ;;  %v973_v34 = vmul.f32 %v967_v20, %v13095_v32  ;;  %v12360_v18 = vld [vmem:[%s12786_s3 + $0x10] sm:$0xff]  }
 0x32c   :  { %v975_v35 = vmul.f32 %v967_v20, %v13114_v44  ;;  %v974_v36 = vmul.f32 %v963_v17, %v13107_v38  ;;  %v12361_v20 = vld [vmem:[%s12786_s3 + $0x18] sm:$0xff]  }
 0x32d   :  { %v943_v37 = vcombine.low %v939_v21, %v940_v29  ;;  %v12362_v29 = vld [vmem:[%s12786_s3 + $0x20] sm:$0xff]  }
 0x32f   :  { %v950_v40 = vrot.slane %v943_v37, %v949_v19 }
 0x331   :  { %v957_v56 = vrot.slane %v950_v40, %v949_v19 }
 0x333   :  { %v959_v24 = vsub.f32 %v932_v55, %v957_v56  ;;  %v12364_v55 = vld [vmem:[%s12786_s3 + $0x30] sm:$0xff]   ;;  %v12365_v56 = vld [vmem:[%s12786_s3 + $0x38] sm:$0xff]  }
 0x335   :  { %v980_v33 = vrot.slane %v959_v24, %v13209_v4  ;;  %v984_v26 = vrot.slane %v959_v24, %v13213_v6  ;;  %v12366_v24 = vld [vmem:[%s12786_s3 + $0x40] sm:$0xff]  }
 0x337   :  { %v988_v57 = vadd.f32 %v984_v26, %v969_v30  ;;  %v990_v27 = vadd.f32 %v984_v26, %v971_v31  ;;  %v987_v58 = vadd.f32 %v980_v33, %v968_v22  ;;  %v989_v39 = vadd.f32 %v980_v33, %v970_v25 }
 0x338   :  { %v992_v59 = vadd.f32 %v984_v26, %v973_v34  ;;  %v994_v32 = vadd.f32 %v984_v26, %v975_v35  ;;  %v991_v61 = vadd.f32 %v980_v33, %v972_v28  ;;  %v993_v44 = vadd.f32 %v980_v33, %v974_v36  ;;  %v12363_v34 = vld [vmem:[%s12786_s3 + $0x28] sm:$0xff]   ;;  %v12368_v26 = vld [vmem:[%s12786_s3 + $0x50] sm:$0xff]  }
 0x339   :  { %v996_v38 = vmax.f32 %v988_v57, 0.0  ;;  %v998_v62 = vmax.f32 %v990_v27, 0.0  ;;  %v995_v63 = vmax.f32 %v987_v58, 0.0  ;;  %v997_v0 = vmax.f32 %v989_v39, 0.0  ;;  %v12367_v33 = vld [vmem:[%s12786_s3 + $0x48] sm:$0xff]   ;;  %v12369_v57 = vld [vmem:[%s12786_s3 + $0x58] sm:$0xff]  }
 0x33a   :  { %v1000_v2 = vmax.f32 %v992_v59, 0.0  ;;  %v1002_v5 = vmax.f32 %v994_v32, 0.0  ;;  %v999_v7 = vmax.f32 %v991_v61, 0.0  ;;  %v1001_v8 = vmax.f32 %v993_v44, 0.0  ;;  %v12370_v27 = vld [vmem:[%s12786_s3 + $0x60] sm:$0xff]   ;;  %v12371_v58 = vld [vmem:[%s12786_s3 + $0x68] sm:$0xff]  }
 0x33b   :  { %v1007_v9 = vpack.c.bf16 %v998_v62, %v996_v38  ;;  %v1006_v10 = vpack.c.bf16 %v997_v0, %v995_v63  ;;  %v12372_v39 = vld [vmem:[%s12786_s3 + $0xe0] sm:$0xff]   ;;  %v12373_v61 = vld [vmem:[%s12786_s3 + $0xe8] sm:$0xff]   ;;  %v12374_v44 = vld [vmem:[%s12786_s3 + $0xf0] sm:$0xff]  }
 0x33c   :  { %v1009_v11 = vpack.c.bf16 %v1002_v5, %v1000_v2  ;;  %v1008_v12 = vpack.c.bf16 %v1001_v8, %v999_v7  ;;  %v12375_v38 = vld [vmem:[%s12786_s3 + $0xf8] sm:$0xff]   ;;  %v12376_v62 = vld [vmem:[%s12786_s3 + $0x100] sm:$0xff]   ;;  %v12377_v2 = vld [vmem:[%s12786_s3 + $0x108] sm:$0xff]  }
 0x33d   :  { %9769 = vmatprep.subr.msk.bf16.mxu1 %vm1025_vm6, %v1007_v9  ;;  %v1027_v13 = vsel %vm1025_vm6, %v1006_v10, 0  ;;  %v12378_v5 = vld [vmem:[%s12786_s3 + $0x110] sm:$0xff]   ;;  %v12379_v7 = vld [vmem:[%s12786_s3 + $0x118] sm:$0xff]   ;;  %v12380_v8 = vld [vmem:[%s12786_s3 + $0x120] sm:$0xff]  }
 0x33e   :  { %1033 = vmatpush1.bf16.msra.mxu1 %v1027_v13  ;;  %v1084_v15 = vsel %vm1025_vm6, %v1008_v12, 0  ;;  %v12381_v9 = vld [vmem:[%s12786_s3 + $0x128] sm:$0xff]   ;;  %v12382_v10 = vld [vmem:[%s12786_s3 + $0x130] sm:$0xff]   ;;  %v12384_v12 = vld [vmem:[%s12786_s3 + $0x140] sm:$0xff]  }
 0x33f   :  { %9772 = vmatprep.subr.msk.bf16.mxu1 %vm1025_vm6, %v1009_v11  ;;  %v12383_v11 = vld [vmem:[%s12786_s3 + $0x138] sm:$0xff]   ;;  %v12385_v13 = vld [vmem:[%s12786_s3 + $0x148] sm:$0xff]  }
 0x341   :  { %9770 = vmatmul.mubr.msk.bf16.vlgmr.msra.gmra.mrb[16].mxu1 %vm1018_vm7, %v12342_v14 }
 0x342   :  { %1090 = vmatpush1.bf16.msra.mxu1 %v1084_v15  ;;  %1074 = vmatprep.mubr.bf16.mxu1 %v12737_v23 }
 0x343   :  { %1292 = vmatprep.subr.bf16.mxu1 %v12737_v23 }
 0x349   :  { %9771 = vmatmul.mubr.msk.bf16.gmra.mrb[20].mxu1 %vm1018_vm7, %v12343_v16 }
 0x34a   :  { %1121 = vmatprep.mubr.bf16.mxu1 %v12737_v23 }
 0x351   :  { %9773 = vmatmul.mubr.msk.bf16.vlgmr.msra.gmra.mrb[24].mxu1 %vm1018_vm7, %v12342_v14 }
 0x352   :  { %1131 = vmatprep.mubr.bf16.mxu1 %v12737_v23  ;;  %1293 = vmatpush1.bf16.msra.mxu1 %v13141_v41  ;;  %v12357_v41 = vld [vmem:[%s12786_s3 + $0xd8] sm:$0xff]  }
 0x353   :  { %1294 = vmatprep.subr.bf16.mxu1 %v12737_v23  ;;  %1362 = vmatpush1.bf16.msra.mxu0 %v12357_v41 }
 0x354   :  { %1505 = vmatprep.subr.bf16.mxu0 %v12737_v23 }
 0x356   :  { %1295 = vmatpush1.bf16.msra.mxu1 %v13146_v42 }
 0x357   :  { %1296 = vmatprep.subr.bf16.mxu1 %v12737_v23 }
 0x359   :  { %9774 = vmatmul.mubr.msk.bf16.gmra.mrb[28].mxu1 %vm1018_vm7, %v12343_v16  ;;  %v1774_v16 = vld [vmem:[%s12791_s8] sm:$0xff] }
 0x35a   :  { %1297 = vmatpush1.bf16.msra.mxu1 %v13151_v43 }
 0x35b   :  { %1298 = vmatprep.subr.bf16.mxu1 %v12737_v23 }
 0x35e   :  { %1299 = vmatpush1.bf16.msra.mxu1 %v13156_v45 }
 0x35f   :  { %1300 = vmatprep.subr.bf16.mxu1 %v12737_v23 }
 0x362   :  { %1301 = vmatpush1.bf16.msra.mxu1 %v13161_v46 }
 0x363   :  { %1302 = vmatprep.subr.bf16.mxu1 %v12737_v23 }
 0x366   :  { %1303 = vmatpush1.bf16.msra.mxu1 %v13166_v47 }
 0x367   :  { %1304 = vmatprep.subr.bf16.mxu1 %v12737_v23 }
 0x36a   :  { %1305 = vmatpush1.bf16.msra.mxu1 %v13171_v48  ;;  %v12358_v48 = vld [vmem:[%s12786_s3] sm:$0xff]  }
 0x36b   :  { %1306 = vmatprep.subr.bf16.mxu1 %v12737_v23 }
 0x36e   :  { %1307 = vmatpush1.bf16.msra.mxu1 %v13176_v49 }
 0x36f   :  { %1308 = vmatprep.subr.bf16.mxu1 %v12737_v23 }
 0x372   :  { %1309 = vmatpush1.bf16.msra.mxu1 %v13181_v50 }
 0x373   :  { %1310 = vmatprep.subr.bf16.mxu1 %v12737_v23 }
 0x376   :  { %1311 = vmatpush1.bf16.msra.mxu1 %v13186_v51 }
 0x377   :  { %1312 = vmatprep.subr.bf16.mxu1 %v12737_v23 }
 0x37a   :  { %1313 = vmatpush1.bf16.msra.mxu1 %v13191_v52  ;;  %v12359_v52 = vld [vmem:[%s12786_s3 + $0x8] sm:$0xff]   ;;  %s15453_s3 = sld [smem:[#allocation13_spill]] }
 0x37b   :  { %1314 = vmatprep.subr.bf16.mxu1 %v12737_v23 }
 0x37e   :  { %1315 = vmatpush1.bf16.msra.mxu1 %v13196_v53 }
 0x37f   :  { %1316 = vmatprep.subr.bf16.mxu1 %v12737_v23 }
 0x382   :  { %1317 = vmatpush1.bf16.msra.mxu1 %v13201_v54 }
 0x383   :  { %1318 = vmatprep.subr.bf16.mxu1 %v12737_v23 }
 0x386   :  { %1319 = vmatpush1.bf16.msra.mxu1 %v12357_v41  ;;  %v1775_v41 = vld [vmem:[%s12791_s8 + $0x8] sm:$0xff] }
 0x387   :  { %1462 = vmatprep.subr.bf16.mxu1 %v12737_v23 }
 0x414   :  { %v13274_v42 = vpop.f32.mrb[16].mxu1 }
 0x415   :  { %v1068_v43 = vpop.f32.mrb[17].mxu1  ;;  %v1140_v59 = vpack.c.bf16 %v13274_v42, %v13274_v42  ;;  %v1776_v42 = vld [vmem:[%s12791_s8 + $0x10] sm:$0xff] }
 0x416   :  { %v1070_v45 = vpop.f32.mrb[18].mxu1  ;;  %v1141_v50 = vpack.c.bf16 %v1068_v43, %v1068_v43  ;;  %v12739_v43 = vmov 0.0|0.0  }
 0x417   :  { %v1072_v46 = vpop.f32.mrb[19].mxu1  ;;  %v1172_v49 = vpack.c.bf16 %v1070_v45, %v1070_v45  ;;  %v12078_v45 = vpack.c.bf16 %v1775_v41, %v1774_v16  ;;  %v9880_v41 = vld [vmem:[%s12796_s14] ss:$0 sm:$0xff]  ;;  %s15606_s14 = sld [smem:[#allocation15_spill]] }
 0x418   :  { %v1173_v47 = vpack.c.bf16 %v1072_v46, %v1072_v46  ;;  %v1777_v46 = vld [vmem:[%s12791_s8 + $0x18] sm:$0xff] }
 0x41a   :  { %9817 = vmatprep.mubr.msk.bf16.mxu1 %vm15335_vm3, %v1173_v47  ;;  %v1778_v47 = vld [vmem:[%s12791_s8 + $0x20] sm:$0xff] }
 0x41b   :  { %1325 = vmatmul.mubr.bf16.vlgmr.msra.gmra.mrb[32].mxu1 %v1172_v49 }
 0x41c   :  { %1463 = vmatpush1.bf16.msra.mxu1 %v12358_v48  ;;  %v13278_v51 = vpop.f32.mrb[20].mxu1  ;;  %9833 = vmatprep.mubr.msk.bf16.mxu1 %vm15335_vm3, %v1141_v50  ;;  %v1780_v50 = vld [vmem:[%s12791_s8 + $0x30] sm:$0xff] }
 0x41d   :  { %v13282_v53 = vpop.f32.mrb[21].mxu1  ;;  %1464 = vmatprep.subr.bf16.mxu1 %v12737_v23  ;;  %v1545_v14 = vpack.c.bf16 %v13278_v51, %v13278_v51  ;;  %v1781_v51 = vld [vmem:[%s12791_s8 + $0x38] sm:$0xff] }
 0x41e   :  { %v1080_v54 = vpop.f32.mrb[22].mxu1  ;;  %v1546_v32 = vpack.c.bf16 %v13282_v53, %v13282_v53  ;;  %v1782_v53 = vld [vmem:[%s12791_s8 + $0x40] sm:$0xff] }
 0x41f   :  { %v1081_v17 = vpop.f32.mrb[23].mxu1  ;;  %v1783_v54 = vld [vmem:[%s12791_s8 + $0x48] sm:$0xff] }
 0x420   :  { %1465 = vmatpush1.bf16.msra.mxu1 %v12359_v52  ;;  %v12090_v17 = vpack.c.bf16 %v1783_v54, %v1782_v53  ;;  %v12740_v54 = vmov 65535  }
 0x421   :  { %1466 = vmatprep.subr.bf16.mxu1 %v12737_v23 }
 0x424   :  { %1467 = vmatpush1.bf16.msra.mxu1 %v12360_v18  ;;  %v13287_v19 = vpop.f32.mrb[24].mxu1 }
 0x425   :  { %v1125_v21 = vpop.f32.mrb[25].mxu1  ;;  %1468 = vmatprep.subr.bf16.mxu1 %v12737_v23  ;;  %v1142_v63 = vpack.c.bf16 %v13287_v19, %v13287_v19  ;;  %v1785_v19 = vld [vmem:[%s12791_s8 + $0x58] sm:$0xff] }
 0x426   :  { %v1127_v22 = vpop.f32.mrb[26].mxu1  ;;  %v1143_v31 = vpack.c.bf16 %v1125_v21, %v1125_v21  ;;  %v1786_v21 = vld [vmem:[%s12791_s8 + $0x60] sm:$0xff] }
 0x427   :  { %v1129_v25 = vpop.f32.mrb[27].mxu1  ;;  %v1174_v30 = vpack.c.bf16 %v1127_v22, %v1127_v22  ;;  %v1787_v22 = vld [vmem:[%s12791_s8 + $0x68] sm:$0xff] }
 0x428   :  { %v1175_v28 = vpack.c.bf16 %v1129_v25, %v1129_v25  ;;  %1469 = vmatpush1.bf16.msra.mxu1 %v12361_v20  ;;  %v12096_v25 = vpack.c.bf16 %v1787_v22, %v1786_v21 }
 0x429   :  { %1470 = vmatprep.subr.bf16.mxu1 %v12737_v23 }
 0x42a   :  { %9818 = vmatprep.mubr.msk.bf16.mxu0 %vm15335_vm3, %v1175_v28 }
 0x42b   :  { %1368 = vmatmul.mubr.bf16.vlgmr.msra.gmra.mrb[20].mxu0 %v1174_v30 }
 0x42c   :  { %1471 = vmatpush1.bf16.msra.mxu1 %v12362_v29  ;;  %1506 = vmatpush1.bf16.msra.mxu0 %v12358_v48  ;;  %v13295_v35 = vpop.f32.mrb[28].mxu1  ;;  %v1779_v48 = vld [vmem:[%s12791_s8 + $0x28] sm:$0xff] }
 0x42d   :  { %9834 = vmatprep.mubr.msk.bf16.mxu0 %vm15335_vm3, %v1143_v31  ;;  %1472 = vmatprep.subr.bf16.mxu1 %v12737_v23  ;;  %v13299_v36 = vpop.f32.mrb[29].mxu1  ;;  %v1547_v15 = vpack.c.bf16 %v13295_v35, %v13295_v35  ;;  %v12084_v49 = vpack.c.bf16 %v1779_v48, %v1778_v47  ;;  %v1877_v47 = vld [vmem:[%s12801_s19] sm:$0x1]  ;;  %s15610_s19 = sld [smem:[#allocation16_spill]] }
 0x42e   :  { %1507 = vmatprep.subr.bf16.mxu0 %v12737_v23  ;;  %v1137_v37 = vpop.f32.mrb[30].mxu1  ;;  %v1548_v0 = vpack.c.bf16 %v13299_v36, %v13299_v36 }
 0x42f   :  { %v1138_v40 = vpop.f32.mrb[31].mxu1 }
 0x430   :  { %1473 = vmatpush1.bf16.msra.mxu1 %v12363_v34  ;;  %1508 = vmatpush1.bf16.msra.mxu0 %v12359_v52  ;;  %v12087_v52 = vpack.c.bf16 %v1781_v51, %v1780_v50 }
 0x431   :  { %1474 = vmatprep.subr.bf16.mxu1 %v12737_v23  ;;  %1509 = vmatprep.subr.bf16.mxu0 %v12737_v23 }
 0x434   :  { %1475 = vmatpush1.bf16.msra.mxu1 %v12364_v55  ;;  %1510 = vmatpush1.bf16.msra.mxu0 %v12360_v18  ;;  %v1784_v18 = vld [vmem:[%s12791_s8 + $0x50] sm:$0xff]  ;;  %s15454_s8 = sld [smem:[#allocation14_spill]] }
 0x435   :  { %1476 = vmatprep.subr.bf16.mxu1 %v12737_v23  ;;  %1511 = vmatprep.subr.bf16.mxu0 %v12737_v23 }
 0x438   :  { %1477 = vmatpush1.bf16.msra.mxu1 %v12365_v56  ;;  %1512 = vmatpush1.bf16.msra.mxu0 %v12361_v20  ;;  %v12093_v20 = vpack.c.bf16 %v1785_v19, %v1784_v18 }
 0x439   :  { %1478 = vmatprep.subr.bf16.mxu1 %v12737_v23  ;;  %1513 = vmatprep.subr.bf16.mxu0 %v12737_v23 }
 0x43c   :  { %1479 = vmatpush1.bf16.msra.mxu1 %v12366_v24  ;;  %1514 = vmatpush1.bf16.msra.mxu0 %v12362_v29 }
 0x43d   :  { %1480 = vmatprep.subr.bf16.mxu1 %v12737_v23  ;;  %1515 = vmatprep.subr.bf16.mxu0 %v12737_v23 }
 0x440   :  { %1481 = vmatpush1.bf16.msra.mxu1 %v12367_v33  ;;  %1516 = vmatpush1.bf16.msra.mxu0 %v12363_v34 }
 0x441   :  { %1482 = vmatprep.subr.bf16.mxu1 %v12737_v23  ;;  %1517 = vmatprep.subr.bf16.mxu0 %v12737_v23 }
 0x444   :  { %1483 = vmatpush1.bf16.msra.mxu1 %v12368_v26  ;;  %1518 = vmatpush1.bf16.msra.mxu0 %v12364_v55 }
 0x445   :  { %1484 = vmatprep.subr.bf16.mxu1 %v12737_v23  ;;  %1519 = vmatprep.subr.bf16.mxu0 %v12737_v23 }
 0x448   :  { %1485 = vmatpush1.bf16.msra.mxu1 %v12369_v57  ;;  %1520 = vmatpush1.bf16.msra.mxu0 %v12365_v56 }
 0x449   :  { %1486 = vmatprep.subr.bf16.mxu1 %v12737_v23  ;;  %1521 = vmatprep.subr.bf16.mxu0 %v12737_v23 }
 0x44c   :  { %1487 = vmatpush1.bf16.msra.mxu1 %v12370_v27  ;;  %1522 = vmatpush1.bf16.msra.mxu0 %v12366_v24 }
 0x44d   :  { %1488 = vmatprep.subr.bf16.mxu1 %v12737_v23  ;;  %1523 = vmatprep.subr.bf16.mxu0 %v12737_v23 }
 0x450   :  { %1489 = vmatpush1.bf16.msra.mxu1 %v12371_v58  ;;  %1524 = vmatpush1.bf16.msra.mxu0 %v12367_v33 }
 0x451   :  { %1525 = vmatprep.subr.bf16.mxu0 %v12737_v23  ;;  %1665 = vmatprep.subr.bf16.mxu1 %v12737_v23 }
 0x453   :  { %1495 = vmatmul.mubr.bf16.vlgmr.msra.gmra.mrb[32].mxu1 %v1140_v59 }
 0x454   :  { %1526 = vmatpush1.bf16.msra.mxu0 %v12368_v26  ;;  %1666 = vmatpush1.bf16.msra.mxu1 %v12372_v39 }
 0x455   :  { %9877 = vmatprep.mubr.msk.bf16.mxu1 %vm15335_vm3, %v1546_v32  ;;  %1527 = vmatprep.subr.bf16.mxu0 %v12737_v23 }
 0x456   :  { %1667 = vmatprep.subr.bf16.mxu1 %v12737_v23 }
 0x458   :  { %1528 = vmatpush1.bf16.msra.mxu0 %v12369_v57  ;;  %1668 = vmatpush1.bf16.msra.mxu1 %v12373_v61 }
 0x459   :  { %1529 = vmatprep.subr.bf16.mxu0 %v12737_v23  ;;  %1669 = vmatprep.subr.bf16.mxu1 %v12737_v23 }
 0x45c   :  { %1530 = vmatpush1.bf16.msra.mxu0 %v12370_v27  ;;  %1670 = vmatpush1.bf16.msra.mxu1 %v12374_v44 }
 0x45d   :  { %1531 = vmatprep.subr.bf16.mxu0 %v12737_v23  ;;  %1671 = vmatprep.subr.bf16.mxu1 %v12737_v23 }
 0x460   :  { %1532 = vmatpush1.bf16.msra.mxu0 %v12371_v58  ;;  %1672 = vmatpush1.bf16.msra.mxu1 %v12375_v38 }
 0x461   :  { %1673 = vmatprep.subr.bf16.mxu1 %v12737_v23  ;;  %1708 = vmatprep.subr.bf16.mxu0 %v12737_v23 }
 0x463   :  { %1538 = vmatmul.mubr.bf16.vlgmr.msra.gmra.mrb[20].mxu0 %v1142_v63 }
 0x464   :  { %1674 = vmatpush1.bf16.msra.mxu1 %v12376_v62  ;;  %1709 = vmatpush1.bf16.msra.mxu0 %v12372_v39 }
 0x465   :  { %1675 = vmatprep.subr.bf16.mxu1 %v12737_v23  ;;  %1710 = vmatprep.subr.bf16.mxu0 %v12737_v23 }
 0x466   :  { %9878 = vmatprep.mubr.msk.bf16.mxu0 %vm15335_vm3, %v1548_v0 }
 0x468   :  { %1676 = vmatpush1.bf16.msra.mxu1 %v12377_v2  ;;  %1711 = vmatpush1.bf16.msra.mxu0 %v12373_v61 }
 0x469   :  { %1677 = vmatprep.subr.bf16.mxu1 %v12737_v23  ;;  %1712 = vmatprep.subr.bf16.mxu0 %v12737_v23 }
 0x46c   :  { %1678 = vmatpush1.bf16.msra.mxu1 %v12378_v5  ;;  %1713 = vmatpush1.bf16.msra.mxu0 %v12374_v44 }
 0x46d   :  { %1679 = vmatprep.subr.bf16.mxu1 %v12737_v23  ;;  %1714 = vmatprep.subr.bf16.mxu0 %v12737_v23 }
 0x470   :  { %1680 = vmatpush1.bf16.msra.mxu1 %v12379_v7  ;;  %1715 = vmatpush1.bf16.msra.mxu0 %v12375_v38 }
 0x471   :  { %1681 = vmatprep.subr.bf16.mxu1 %v12737_v23  ;;  %1716 = vmatprep.subr.bf16.mxu0 %v12737_v23 }
 0x474   :  { %1682 = vmatpush1.bf16.msra.mxu1 %v12380_v8  ;;  %1717 = vmatpush1.bf16.msra.mxu0 %v12376_v62 }
 0x475   :  { %1683 = vmatprep.subr.bf16.mxu1 %v12737_v23  ;;  %1718 = vmatprep.subr.bf16.mxu0 %v12737_v23 }
 0x478   :  { %1684 = vmatpush1.bf16.msra.mxu1 %v12381_v9  ;;  %1719 = vmatpush1.bf16.msra.mxu0 %v12377_v2 }
 0x479   :  { %1685 = vmatprep.subr.bf16.mxu1 %v12737_v23  ;;  %1720 = vmatprep.subr.bf16.mxu0 %v12737_v23 }
 0x47c   :  { %1686 = vmatpush1.bf16.msra.mxu1 %v12382_v10  ;;  %1721 = vmatpush1.bf16.msra.mxu0 %v12378_v5 }
 0x47d   :  { %1687 = vmatprep.subr.bf16.mxu1 %v12737_v23  ;;  %1722 = vmatprep.subr.bf16.mxu0 %v12737_v23 }
 0x480   :  { %1688 = vmatpush1.bf16.msra.mxu1 %v12383_v11  ;;  %1723 = vmatpush1.bf16.msra.mxu0 %v12379_v7 }
 0x481   :  { %1689 = vmatprep.subr.bf16.mxu1 %v12737_v23  ;;  %1724 = vmatprep.subr.bf16.mxu0 %v12737_v23 }
 0x484   :  { %1690 = vmatpush1.bf16.msra.mxu1 %v12384_v12  ;;  %1725 = vmatpush1.bf16.msra.mxu0 %v12380_v8 }
 0x485   :  { %1691 = vmatprep.subr.bf16.mxu1 %v12737_v23  ;;  %1726 = vmatprep.subr.bf16.mxu0 %v12737_v23 }
 0x488   :  { %1692 = vmatpush1.bf16.msra.mxu1 %v12385_v13  ;;  %1727 = vmatpush1.bf16.msra.mxu0 %v12381_v9 }
 0x489   :  { %1728 = vmatprep.subr.bf16.mxu0 %v12737_v23  ;;  %12077 = vmatprep.subr.bf16.mxu1 %v12739_v43 }
 0x48b   :  { %1698 = vmatmul.mubr.bf16.vlgmr.msra.gmra.mrb[32].mxu1 %v1545_v14 }
 0x48c   :  { %1729 = vmatpush1.bf16.msra.mxu0 %v12382_v10  ;;  %11264 = vmatprep.mubr.msk.f32.mxu1 %vm12736_vm1, %v15338_v3  ;;  %v12386_v10 = vld [vmem:[%s12806_s24] sm:$0xff]  }
 0x48d   :  { %1730 = vmatprep.subr.bf16.mxu0 %v12737_v23  ;;  %12079 = vmatpush3.bf16.msra.mxu1 %v12078_v45 }
 0x48e   :  { %12080 = vmatprep.subr.bf16.mxu1 %v12739_v43 }
 0x490   :  { %1731 = vmatpush1.bf16.msra.mxu0 %v12383_v11 }
 0x491   :  { %1732 = vmatprep.subr.bf16.mxu0 %v12737_v23 }
 0x494   :  { %1733 = vmatpush1.bf16.msra.mxu0 %v12384_v12 }
 0x495   :  { %1734 = vmatprep.subr.bf16.mxu0 %v12737_v23  ;;  %v12081_v23 = vpack.c.bf16 %v1777_v46, %v1776_v42 }
 0x497   :  { %12082 = vmatpush3.bf16.msra.mxu1 %v12081_v23 }
 0x498   :  { %1735 = vmatpush1.bf16.msra.mxu0 %v12385_v13  ;;  %12083 = vmatprep.subr.bf16.mxu1 %v12739_v43 }
 0x49b   :  { %1741 = vmatmul.mubr.bf16.vlgmr.msra.gmra.mrb[20].mxu0 %v1547_v15  ;;  %12085 = vmatpush3.bf16.msra.mxu1 %v12084_v49 }
 0x49c   :  { %12086 = vmatprep.subr.bf16.mxu1 %v12739_v43  ;;  %11275 = vmatprep.mubr.msk.bf16.mxu0 %vm1912_vm10, %v12386_v10 }
 0x49f   :  { %12088 = vmatpush3.bf16.msra.mxu1 %v12087_v52 }
 0x4a0   :  { %12089 = vmatprep.subr.bf16.mxu1 %v12739_v43 }
 0x4a3   :  { %12091 = vmatpush3.bf16.msra.mxu1 %v12090_v17  ;;  %v1921_v17 = vsel %vm1919_vm11, 4294967295, %v12740_v54 }
 0x4a4   :  { %12092 = vmatprep.subr.bf16.mxu1 %v12739_v43  ;;  %v1922_v21 = vsel %vm15337_vm12, %v1921_v17, 0 }
 0x4a7   :  { %12094 = vmatpush3.bf16.msra.mxu1 %v12093_v20 }
 0x4a8   :  { %12095 = vmatprep.subr.bf16.mxu1 %v12739_v43 }
 0x4ab   :  { %12097 = vmatpush3.bf16.msra.mxu1 %v12096_v25 }
 0x55e   :  { %v1699_v28 = vpop.f32.mrb[32].mxu1 }
 0x55f   :  { %v1701_v29 = vpop.f32.mrb[33].mxu1  ;;  %v1761_v34 = vmul.f32 %v1699_v28, %v1699_v28  ;;  %v1751_v36 = vsel %vm1750_vm8, %v1699_v28, 0.0 }
 0x560   :  { %v1702_v30 = vpop.f32.mrb[34].mxu1 }
 0x561   :  { %v1703_v31 = vpop.f32.mrb[35].mxu1  ;;  %v1763_v33 = vsel %vm1750_vm8, %v1761_v34, 0.0  ;;  %v12387_v30 = vld [vmem:[%s12806_s24 + $0x8] ss:$0 sps:$4 sm:$0xff]   ;;  %v12389_v34 = vld [vmem:[%s12811_s30 + $0x40] sm:$0xff]   ;;  %s15613_s24 = sld [smem:[#allocation18_spill]] }
 0x562   :  { %v12388_v31 = vld [vmem:[%s12811_s30 + $0x38] sm:$0xff]  }
 0x56e   :  { %v1742_v35 = vpop.f32.mrb[20].mxu0 }
 0x56f   :  { %v1752_v37 = vsel %vm1750_vm8, %v1742_v35, 0.0  ;;  %v1762_v40 = vmul.f32 %v1742_v35, %v1742_v35  ;;  %v1744_v55 = vpop.f32.mrb[21].mxu0 }
 0x570   :  { %v1753_v56 = vadd.f32 %v1752_v37, %v1751_v36  ;;  %v1745_v24 = vpop.f32.mrb[22].mxu0  ;;  %v12391_v36 = vld [vmem:[%s12811_s30 + $0x50] sm:$0xff]   ;;  %v12392_v37 = vld [vmem:[%s12811_s30 + $0x58] sm:$0xff]   ;;  %v12394_v55 = vld [vmem:[%s12811_s30 + $0x68] sm:$0xff]  }
 0x571   :  { %v1764_v26 = vsel %vm1750_vm8, %v1762_v40, 0.0  ;;  %v1746_v57 = vpop.f32.mrb[23].mxu0  ;;  %v12393_v40 = vld [vmem:[%s12811_s30 + $0x60] sm:$0xff]  }
 0x572   :  { %v1754_v27 = vsel %vm1750_vm8, %v1753_v56, 0.0  ;;  %v1765_v58 = vadd.f32 %v1764_v26, %v1763_v33 }
 0x573   :  { %v1755_v39 = vrot.slane %v1754_v27, 4 }
 0x574   :  { %v1766_v59 = vsel %vm1750_vm8, %v1765_v58, 0.0 }
 0x575   :  { %v1756_v32 = vadd.f32 %v1755_v39, %v1754_v27  ;;  %v1767_v61 = vrot.slane %v1766_v59, 4 }
 0x577   :  { %v1757_v44 = vrot.slane %v1756_v32, 2  ;;  %v1768_v38 = vadd.f32 %v1767_v61, %v1766_v59  ;;  %v12395_v59 = vld [vmem:[%s12811_s30] sm:$0xff]  }
 0x579   :  { %v1758_v62 = vadd.f32 %v1757_v44, %v1756_v32  ;;  %v1769_v63 = vrot.slane %v1768_v38, 2  ;;  %v12396_v44 = vld [vmem:[%s12811_s30 + $0x8] sm:$0xff]  }
 0x57b   :  { %v1759_v0 = vrot.slane %v1758_v62, 1  ;;  %v1770_v2 = vadd.f32 %v1769_v63, %v1768_v38  ;;  %v12397_v38 = vld [vmem:[%s12811_s30 + $0x10] sm:$0xff]   ;;  %v12399_v63 = vld [vmem:[%s12811_s30 + $0x20] sm:$0xff]  }
 0x57d   :  { %v1771_v5 = vrot.slane %v1770_v2, 1  ;;  %v1760_v7 = vadd.f32 %v1759_v0, %v1758_v62  ;;  %v12398_v62 = vld [vmem:[%s12811_s30 + $0x18] sm:$0xff]   ;;  %v12400_v0 = vld [vmem:[%s12811_s30 + $0x28] sm:$0xff]  }
 0x57f   :  { %v1772_v8 = vadd.f32 %v1771_v5, %v1770_v2  ;;  %v12401_v2 = vld [vmem:[%s12811_s30 + $0x30] sm:$0xff]  }
 0x580   :  { %v12402_v5 = vld [vmem:[%s12811_s30 + $0x70] sm:$0xff]  }
 0x581   :  { %v1773_v9 = vsel %vm771_vm5, %v1760_v7, %v1772_v8 }
 0x582   :  { %11265 = vmatmul.mubr.msk.f32.vlgmr.msra.gmra.mrb[36].mxu1 %vm1788_vm9, %v1773_v9  ;;  %v12403_v9 = vld [vmem:[%s12811_s30 + $0x78] sm:$0xff]  }
 0x583   :  { %11269 = vmatprep.mubr.msk.bf16.mxu1 %vm1912_vm10, %v12386_v10  ;;  %v12404_v10 = vld [vmem:[%s12811_s30 + $0x80] sm:$0xff]  }
 0x655   :  { %v1858_v11 = vpop.f32.mrb[36].mxu1 }
 0x656   :  { %v1862_v12 = vmul.f32 %v1858_v11, %v1858_v11  ;;  %v11266_v13 = vpop.f32.mrb[37].mxu1 }
 0x657   :  { %v12407_v13 = vld [vmem:[%s12811_s30 + $0x98] sm:$0xff]  }
 0x658   :  { %v1864_v14 = vrot.slane %v1862_v12, 7  ;;  %v12406_v12 = vld [vmem:[%s12811_s30 + $0x90] sm:$0xff]  }
 0x65a   :  { %v1866_v15 = vsub.f32 %v1858_v11, %v1864_v14  ;;  %v12408_v14 = vld [vmem:[%s12811_s30 + $0xa0] sm:$0xff]  }
 0x65c   :  { %v1867_v16 = vadd.f32 1e-05, %v1866_v15 }
 0x65e   :  { %12649 = vrsqrt.f32 %v1867_v16 }
 0x668   :  { %v12650_v42 = vpop.eup %12649 }
 0x669   :  { %v1876_v45 = vmul.f32 %v12650_v42, %v9880_v41  ;;  %v2485_v41 = vld [vmem:[%s12816_s6] sm:$0xff]  ;;  %v2486_v42 = vld [vmem:[%s12816_s6 + $0x8] sm:$0xff] }
 0x66b   :  { %v1879_v46 = vrot.slane %v1876_v45, 1  ;;  %v1886_v23 = vrot.slane %v1876_v45, %v13213_v6  ;;  %v12099_v45 = vpack.c.bf16 %v2486_v42, %v2485_v41 }
 0x66d   :  { %v1881_v48 = vmul.f32 %v1879_v46, %v1858_v11  ;;  %v1887_v49 = vmul.f32 %v1886_v23, %v1699_v28  ;;  %v1888_v50 = vmul.f32 %v1886_v23, %v1742_v35  ;;  %v12390_v35 = vld [vmem:[%s12811_s30 + $0x48] sm:$0xff]   ;;  %v2487_v46 = vld [vmem:[%s12816_s6 + $0x10] sm:$0xff]  ;;  %v2488_v23 = vld [vmem:[%s12816_s6 + $0x18] sm:$0xff]  ;;  %s15615_s6 = sld [smem:[#allocation19_spill]] }
 0x66e   :  { %v12405_v11 = vld [vmem:[%s12811_s30 + $0x88] sm:$0xff]   ;;  %s15614_s30 = sld [smem:[#allocation17_spill]] }
 0x66f   :  { %v1882_v51 = vsub.f32 %v1877_v47, %v1881_v48  ;;  %v12102_v47 = vpack.c.bf16 %v2488_v23, %v2487_v46 }
 0x671   :  { %v1893_v52 = vrot.slane %v1882_v51, %v13209_v4 }
 0x673   :  { %v1895_v53 = vadd.f32 %v1893_v52, %v1887_v49  ;;  %v1896_v18 = vadd.f32 %v1893_v52, %v1888_v50 }
 0x675   :  { %v1897_v19 = vmax.f32 %v1895_v53, 0.0  ;;  %v1898_v20 = vmax.f32 %v1896_v18, 0.0 }
 0x677   :  { %v1902_v22 = vpack.c.bf16 %v1897_v19, %v1897_v19  ;;  %v1903_v25 = vpack.c.bf16 %v1898_v20, %v1898_v20 }
 0x679   :  { %v1924_v28 = vand.u32 %v1922_v21, %v1902_v22  ;;  %v1975_v29 = vand.u32 %v1922_v21, %v1903_v25 }
 0x67b   :  { %11267 = vmatprep.subr.bf16.mxu1 %v1924_v28  ;;  %11273 = vmatprep.subr.bf16.mxu0 %v1975_v29 }
 0x67c   :  { %11268 = vmatpush3.bf16.msra.mxu1 %v1924_v28  ;;  %11274 = vmatpush3.bf16.msra.mxu0 %v1975_v29 }
 0x67d   :  { %11279 = vmatprep.subr.bf16.mxu1 %v15338_v3  ;;  %11297 = vmatprep.subr.bf16.mxu0 %v15338_v3 }
 0x67f   :  { %11270 = vmatmul.mubr.msk.bf16.vlgmr.msra.gmra.mrb[40].mxu1 %vm1912_vm10, %v12387_v30  ;;  %11276 = vmatmul.mubr.msk.bf16.vlgmr.msra.gmra.mrb[24].mxu0 %vm1912_vm10, %v12387_v30 }
 0x680   :  { %11280 = vmatpush3.bf16.msra.mxu1 %v12388_v31  ;;  %11298 = vmatpush3.bf16.msra.mxu0 %v12388_v31 }
 0x681   :  { %11281 = vmatprep.subr.bf16.mxu1 %v15338_v3  ;;  %11299 = vmatprep.subr.bf16.mxu0 %v15338_v3 }
 0x682   :  { %11293 = vmatprep.mubr.msk.bf16.mxu1 %vm12736_vm1, %v15338_v3  ;;  %11311 = vmatprep.mubr.msk.bf16.mxu0 %vm12736_vm1, %v15338_v3 }
 0x684   :  { %11282 = vmatpush3.bf16.msra.mxu1 %v12389_v34  ;;  %11300 = vmatpush3.bf16.msra.mxu0 %v12389_v34 }
 0x685   :  { %11283 = vmatprep.subr.bf16.mxu1 %v15338_v3  ;;  %11301 = vmatprep.subr.bf16.mxu0 %v15338_v3 }
 0x688   :  { %11284 = vmatpush3.bf16.msra.mxu1 %v12390_v35  ;;  %11302 = vmatpush3.bf16.msra.mxu0 %v12390_v35 }
 0x689   :  { %11285 = vmatprep.subr.bf16.mxu1 %v15338_v3  ;;  %11303 = vmatprep.subr.bf16.mxu0 %v15338_v3 }
 0x68c   :  { %11286 = vmatpush3.bf16.msra.mxu1 %v12391_v36  ;;  %11304 = vmatpush3.bf16.msra.mxu0 %v12391_v36 }
 0x68d   :  { %11287 = vmatprep.subr.bf16.mxu1 %v15338_v3  ;;  %11305 = vmatprep.subr.bf16.mxu0 %v15338_v3 }
 0x690   :  { %11288 = vmatpush3.bf16.msra.mxu1 %v12392_v37  ;;  %11306 = vmatpush3.bf16.msra.mxu0 %v12392_v37 }
 0x691   :  { %11289 = vmatprep.subr.bf16.mxu1 %v15338_v3  ;;  %11307 = vmatprep.subr.bf16.mxu0 %v15338_v3 }
 0x694   :  { %11290 = vmatpush3.bf16.msra.mxu1 %v12393_v40  ;;  %11308 = vmatpush3.bf16.msra.mxu0 %v12393_v40 }
 0x695   :  { %11291 = vmatprep.subr.bf16.mxu1 %v15338_v3  ;;  %11309 = vmatprep.subr.bf16.mxu0 %v15338_v3 }
 0x698   :  { %11292 = vmatpush3.bf16.msra.mxu1 %v12394_v55  ;;  %11310 = vmatpush3.bf16.msra.mxu0 %v12394_v55 }
 0x699   :  { %11315 = vmatprep.subr.bf16.mxu1 %v15338_v3  ;;  %11333 = vmatprep.subr.bf16.mxu0 %v15338_v3 }
 0x752   :  { %v13449_v56 = vpop.f32.mrb[40].mxu1  ;;  %v13451_v24 = vpop.f32.mrb[24].mxu0 }
 0x753   :  { %v1960_v33 = vpop.f32.mrb[41].mxu1  ;;  %v2011_v26 = vpop.f32.mrb[25].mxu0  ;;  %v2314_v15 = vpack.c.bf16 %v13449_v56, %v13449_v56  ;;  %v2315_v16 = vpack.c.bf16 %v13451_v24, %v13451_v24 }
 0x754   :  { %v11272_v57 = vpop.f32.mrb[42].mxu1  ;;  %v11278_v27 = vpop.f32.mrb[26].mxu0  ;;  %v2025_v7 = vpack.c.bf16 %v1960_v33, %v1960_v33  ;;  %v2026_v8 = vpack.c.bf16 %v2011_v26, %v2011_v26 }
 0x755   :  { %v1963_v58 = vpop.f32.mrb[43].mxu1  ;;  %v2014_v39 = vpop.f32.mrb[27].mxu0 }
 0x756   :  { %v2041_v32 = vpack.c.bf16 %v1963_v58, %v1963_v58  ;;  %v2042_v61 = vpack.c.bf16 %v2014_v39, %v2014_v39  ;;  %v12409_v39 = vld [vmem:[%s15443_s0] sm:$0xff]  }
 0x758   :  { %11294 = vmatmul.mubr.msk.bf16.vlgmr.msra.gmra.mrb[44].mxu1 %vm1788_vm9, %v2041_v32  ;;  %11312 = vmatmul.mubr.msk.bf16.vlgmr.msra.gmra.mrb[28].mxu0 %vm1788_vm9, %v2042_v61 }
 0x759   :  { %11316 = vmatpush3.bf16.msra.mxu1 %v12395_v59  ;;  %11334 = vmatpush3.bf16.msra.mxu0 %v12395_v59 }
 0x75a   :  { %11317 = vmatprep.subr.bf16.mxu1 %v15338_v3  ;;  %11335 = vmatprep.subr.bf16.mxu0 %v15338_v3 }
 0x75b   :  { %11329 = vmatprep.mubr.msk.bf16.mxu1 %vm12736_vm1, %v15338_v3  ;;  %11347 = vmatprep.mubr.msk.bf16.mxu0 %vm12736_vm1, %v15338_v3 }
 0x75d   :  { %11318 = vmatpush3.bf16.msra.mxu1 %v12396_v44  ;;  %11336 = vmatpush3.bf16.msra.mxu0 %v12396_v44 }
 0x75e   :  { %11319 = vmatprep.subr.bf16.mxu1 %v15338_v3  ;;  %11337 = vmatprep.subr.bf16.mxu0 %v15338_v3 }
 0x761   :  { %11320 = vmatpush3.bf16.msra.mxu1 %v12397_v38  ;;  %11338 = vmatpush3.bf16.msra.mxu0 %v12397_v38 }
 0x762   :  { %11321 = vmatprep.subr.bf16.mxu1 %v15338_v3  ;;  %11339 = vmatprep.subr.bf16.mxu0 %v15338_v3 }
 0x765   :  { %11322 = vmatpush3.bf16.msra.mxu1 %v12398_v62  ;;  %11340 = vmatpush3.bf16.msra.mxu0 %v12398_v62 }
 0x766   :  { %11323 = vmatprep.subr.bf16.mxu1 %v15338_v3  ;;  %11341 = vmatprep.subr.bf16.mxu0 %v15338_v3 }
 0x769   :  { %11324 = vmatpush3.bf16.msra.mxu1 %v12399_v63  ;;  %11342 = vmatpush3.bf16.msra.mxu0 %v12399_v63  ;;  %v9943_v63 = vld [vmem:[%s15444_s5] ss:$0 sm:$0xff] }
 0x76a   :  { %11325 = vmatprep.subr.bf16.mxu1 %v15338_v3  ;;  %11343 = vmatprep.subr.bf16.mxu0 %v15338_v3 }
 0x76d   :  { %11326 = vmatpush3.bf16.msra.mxu1 %v12400_v0  ;;  %11344 = vmatpush3.bf16.msra.mxu0 %v12400_v0 }
 0x76e   :  { %11327 = vmatprep.subr.bf16.mxu1 %v15338_v3  ;;  %11345 = vmatprep.subr.bf16.mxu0 %v15338_v3 }
 0x771   :  { %11328 = vmatpush3.bf16.msra.mxu1 %v12401_v2  ;;  %11346 = vmatpush3.bf16.msra.mxu0 %v12401_v2 }
 0x772   :  { %11351 = vmatprep.subr.bf16.mxu1 %v15338_v3  ;;  %11369 = vmatprep.subr.bf16.mxu0 %v15338_v3 }
 0x774   :  { %11330 = vmatmul.mubr.msk.bf16.vlgmr.msra.gmra.mrb[44].mxu1 %vm1788_vm9, %v2025_v7  ;;  %11348 = vmatmul.mubr.msk.bf16.vlgmr.msra.gmra.mrb[28].mxu0 %vm1788_vm9, %v2026_v8  ;;  %v2578_v8 = vld [vmem:[%s15445_s9] sm:$0x1] }
 0x775   :  { %11352 = vmatpush3.bf16.msra.mxu1 %v12402_v5  ;;  %11370 = vmatpush3.bf16.msra.mxu0 %v12402_v5 }
 0x776   :  { %11353 = vmatprep.subr.bf16.mxu1 %v15338_v3  ;;  %11371 = vmatprep.subr.bf16.mxu0 %v15338_v3 }
 0x777   :  { %11365 = vmatprep.mubr.msk.bf16.mxu1 %vm12736_vm1, %v15338_v3  ;;  %11383 = vmatprep.mubr.msk.bf16.mxu0 %vm12736_vm1, %v15338_v3 }
 0x779   :  { %11354 = vmatpush3.bf16.msra.mxu1 %v12403_v9  ;;  %11372 = vmatpush3.bf16.msra.mxu0 %v12403_v9 }
 0x77a   :  { %11355 = vmatprep.subr.bf16.mxu1 %v15338_v3  ;;  %11373 = vmatprep.subr.bf16.mxu0 %v15338_v3 }
 0x77d   :  { %11356 = vmatpush3.bf16.msra.mxu1 %v12404_v10  ;;  %11374 = vmatpush3.bf16.msra.mxu0 %v12404_v10 }
 0x77e   :  { %11357 = vmatprep.subr.bf16.mxu1 %v15338_v3  ;;  %11375 = vmatprep.subr.bf16.mxu0 %v15338_v3 }
 0x781   :  { %11358 = vmatpush3.bf16.msra.mxu1 %v12405_v11  ;;  %11376 = vmatpush3.bf16.msra.mxu0 %v12405_v11 }
 0x782   :  { %11359 = vmatprep.subr.bf16.mxu1 %v15338_v3  ;;  %11377 = vmatprep.subr.bf16.mxu0 %v15338_v3 }
 0x785   :  { %11360 = vmatpush3.bf16.msra.mxu1 %v12406_v12  ;;  %11378 = vmatpush3.bf16.msra.mxu0 %v12406_v12 }
 0x786   :  { %11361 = vmatprep.subr.bf16.mxu1 %v15338_v3  ;;  %11379 = vmatprep.subr.bf16.mxu0 %v15338_v3 }
 0x789   :  { %11362 = vmatpush3.bf16.msra.mxu1 %v12407_v13  ;;  %11380 = vmatpush3.bf16.msra.mxu0 %v12407_v13 }
 0x78a   :  { %11363 = vmatprep.subr.bf16.mxu1 %v15338_v3  ;;  %11381 = vmatprep.subr.bf16.mxu0 %v15338_v3 }
 0x78d   :  { %11364 = vmatpush3.bf16.msra.mxu1 %v12408_v14  ;;  %11382 = vmatpush3.bf16.msra.mxu0 %v12408_v14 }
 0x78e   :  { %12098 = vmatprep.subr.bf16.mxu1 %v12739_v43 }
 0x790   :  { %11366 = vmatmul.mubr.msk.bf16.vlgmr.msra.gmra.mrb[44].mxu1 %vm1788_vm9, %v2314_v15  ;;  %11384 = vmatmul.mubr.msk.bf16.vlgmr.msra.gmra.mrb[28].mxu0 %vm1788_vm9, %v2315_v16 }
 0x791   :  { %11395 = vmatprep.mubr.msk.f32.mxu1 %vm12736_vm1, %v15338_v3  ;;  %12100 = vmatpush3.bf16.msra.mxu1 %v12099_v45 }
 0x792   :  { %12101 = vmatprep.subr.bf16.mxu1 %v12739_v43  ;;  %11406 = vmatprep.mubr.msk.bf16.mxu0 %vm2613_vm15, %v12409_v39 }
 0x795   :  { %12103 = vmatpush3.bf16.msra.mxu1 %v12102_v47  ;;  %v12410_v47 = vld [vmem:[%s15443_s0 + $0x8] ss:$0 sps:$4 sm:$0xff]  }
 0x863   :  { %v2410_v48 = vpop.f32.mrb[44].mxu1  ;;  %v2453_v49 = vpop.f32.mrb[28].mxu0 }
 0x864   :  { %v2462_v50 = vsel %vm2461_vm13, %v2410_v48, 0.0  ;;  %v2472_v51 = vmul.f32 %v2410_v48, %v2410_v48  ;;  %v2463_v52 = vsel %vm2461_vm13, %v2453_v49, 0.0  ;;  %v2473_v53 = vmul.f32 %v2453_v49, %v2453_v49  ;;  %v11367_v54 = vpop.f32.mrb[45].mxu1  ;;  %v11385_v17 = vpop.f32.mrb[29].mxu0 }
 0x865   :  { %v2464_v18 = vadd.f32 %v2463_v52, %v2462_v50  ;;  %v2413_v19 = vpop.f32.mrb[46].mxu1  ;;  %v2456_v20 = vpop.f32.mrb[30].mxu0 }
 0x866   :  { %v2474_v21 = vsel %vm2461_vm13, %v2472_v51, 0.0  ;;  %v2475_v22 = vsel %vm2461_vm13, %v2473_v53, 0.0  ;;  %v11368_v25 = vpop.f32.mrb[47].mxu1  ;;  %v11386_v28 = vpop.f32.mrb[31].mxu0  ;;  %v12413_v20 = vld [vmem:[%s15446_s13] sm:$0xff]  }
 0x867   :  { %v2465_v29 = vsel %vm2461_vm13, %v2464_v18, 0.0  ;;  %v2476_v30 = vadd.f32 %v2475_v22, %v2474_v21  ;;  %v12414_v25 = vld [vmem:[%s15446_s13 + $0x8] sm:$0xff]   ;;  %v12415_v28 = vld [vmem:[%s15446_s13 + $0x20] sm:$0xff]  }
 0x868   :  { %v2466_v31 = vrot.slane %v2465_v29, 4 }
 0x869   :  { %v2477_v34 = vsel %vm2461_vm13, %v2476_v30, 0.0 }
 0x86a   :  { %v2467_v35 = vadd.f32 %v2466_v31, %v2465_v29  ;;  %v2478_v36 = vrot.slane %v2477_v34, 4  ;;  %v12416_v31 = vld [vmem:[%s15446_s13 + $0x28] sm:$0xff]  }
 0x86c   :  { %v2468_v37 = vrot.slane %v2467_v35, 2  ;;  %v2479_v40 = vadd.f32 %v2478_v36, %v2477_v34  ;;  %v3063_v36 = vld [vmem:[%s15447_s17] sm:$0xff] }
 0x86e   :  { %v2469_v55 = vadd.f32 %v2468_v37, %v2467_v35  ;;  %v2480_v56 = vrot.slane %v2479_v40, 2  ;;  %v3064_v37 = vld [vmem:[%s15447_s17 + $0x8] sm:$0xff] }
 0x870   :  { %v2470_v24 = vrot.slane %v2469_v55, 1  ;;  %v2481_v33 = vadd.f32 %v2480_v56, %v2479_v40  ;;  %v12105_v40 = vpack.c.bf16 %v3064_v37, %v3063_v36 }
 0x872   :  { %v2482_v26 = vrot.slane %v2481_v33, 1  ;;  %v2471_v57 = vadd.f32 %v2470_v24, %v2469_v55 }
 0x874   :  { %v2483_v27 = vadd.f32 %v2482_v26, %v2481_v33 }
 0x876   :  { %v2484_v58 = vsel %vm771_vm5, %v2471_v57, %v2483_v27 }
 0x877   :  { %11396 = vmatmul.mubr.msk.f32.vlgmr.msra.gmra.mrb[38].mxu1 %vm15336_vm14, %v2484_v58 }
 0x878   :  { %11400 = vmatprep.mubr.msk.bf16.mxu1 %vm2613_vm15, %v12409_v39 }
 0x94a   :  { %v2559_v59 = vpop.f32.mrb[38].mxu1 }
 0x94b   :  { %v2563_v32 = vmul.f32 %v2559_v59, %v2559_v59  ;;  %v11397_v61 = vpop.f32.mrb[39].mxu1 }
 0x94d   :  { %v2565_v44 = vrot.slane %v2563_v32, 7 }
 0x94f   :  { %v2567_v38 = vsub.f32 %v2559_v59, %v2565_v44 }
 0x951   :  { %v2568_v62 = vadd.f32 1e-05, %v2567_v38 }
 0x953   :  { %12651 = vrsqrt.f32 %v2568_v62 }
 0x95d   :  { %v12652_v0 = vpop.eup %12651 }
 0x95e   :  { %v2577_v2 = vmul.f32 %v12652_v0, %v9943_v63 }
 0x960   :  { %v2580_v5 = vrot.slane %v2577_v2, 1  ;;  %v2587_v7 = vrot.slane %v2577_v2, %v13213_v6 }
 0x962   :  { %v2582_v9 = vmul.f32 %v2580_v5, %v2559_v59  ;;  %v2588_v10 = vmul.f32 %v2587_v7, %v2410_v48  ;;  %v2589_v11 = vmul.f32 %v2587_v7, %v2453_v49  ;;  %v12411_v48 = vld [vmem:[%s15446_s13 + $0x10] sm:$0xff]   ;;  %v12412_v49 = vld [vmem:[%s15446_s13 + $0x18] sm:$0xff]  }
 0x964   :  { %v2583_v12 = vsub.f32 %v2578_v8, %v2582_v9 }
 0x966   :  { %v2594_v13 = vrot.slane %v2583_v12, %v13209_v4 }
 0x968   :  { %v2596_v14 = vadd.f32 %v2594_v13, %v2588_v10  ;;  %v2597_v15 = vadd.f32 %v2594_v13, %v2589_v11 }
 0x96a   :  { %v2598_v16 = vmax.f32 %v2596_v14, 0.0  ;;  %v2599_v41 = vmax.f32 %v2597_v15, 0.0 }
 0x96c   :  { %v2603_v42 = vpack.c.bf16 %v2598_v16, %v2598_v16  ;;  %v2604_v45 = vpack.c.bf16 %v2599_v41, %v2599_v41 }
 0x96e   :  { %12267 = vmatprep.subr.msk.bf16.mxu1 %vm2620_vm0, %v2603_v42  ;;  %12268 = vmatprep.subr.msk.bf16.mxu0 %vm2620_vm0, %v2604_v45  ;;  %v2622_v46 = vsel %vm2620_vm0, %v2603_v42, 0  ;;  %v2673_v23 = vsel %vm2620_vm0, %v2604_v45, 0  ;;  %v3177_v42 = vld [vmem:[%s15448_s21 + $0x8] sm:$0xff] }
 0x96f   :  { %11399 = vmatpush3.bf16.msra.mxu1 %v2622_v46  ;;  %11405 = vmatpush3.bf16.msra.mxu0 %v2673_v23  ;;  %v3193_v45 = vld [vmem:[%s15448_s21 + $0x88] sm:$0xff]  ;;  %v3179_v46 = vld [vmem:[%s15448_s21 + $0x18] sm:$0xff] }
 0x970   :  { %11410 = vmatprep.subr.bf16.mxu1 %v15338_v3  ;;  %11418 = vmatprep.subr.bf16.mxu0 %v15338_v3  ;;  %v13605_v23 = vpack.c.bf16 %v3193_v45, %v3177_v42  ;;  %v3188_v45 = vld [vmem:[%s15448_s21 + $0x60] sm:$0xff] }
 0x972   :  { %11401 = vmatmul.mubr.msk.bf16.vlgmr.msra.gmra.mrb[48].mxu1 %vm2613_vm15, %v12410_v47  ;;  %11407 = vmatmul.mubr.msk.bf16.vlgmr.msra.gmra.mrb[32].mxu0 %vm2613_vm15, %v12410_v47  ;;  %v3195_v47 = vld [vmem:[%s15448_s21 + $0x98] sm:$0xff] }
 0x973   :  { %11411 = vmatpush3.bf16.msra.mxu1 %v12411_v48  ;;  %11419 = vmatpush3.bf16.msra.mxu0 %v12411_v48  ;;  %v3176_v48 = vld [vmem:[%s15448_s21] sm:$0xff] }
 0x974   :  { %11412 = vmatprep.subr.bf16.mxu1 %v15338_v3  ;;  %11420 = vmatprep.subr.bf16.mxu0 %v15338_v3 }
 0x975   :  { %11414 = vmatprep.mubr.msk.bf16.mxu1 %vm12736_vm1, %v15338_v3  ;;  %11422 = vmatprep.mubr.msk.bf16.mxu0 %vm12736_vm1, %v15338_v3 }
 0x977   :  { %11413 = vmatpush3.bf16.msra.mxu1 %v12412_v49  ;;  %11421 = vmatpush3.bf16.msra.mxu0 %v12412_v49  ;;  %v3192_v49 = vld [vmem:[%s15448_s21 + $0x80] sm:$0xff] }
 0x978   :  { %11426 = vmatprep.subr.bf16.mxu1 %v15338_v3  ;;  %11434 = vmatprep.subr.bf16.mxu0 %v15338_v3 }
 0xa45   :  { %v11402_v50 = vpop.f32.mrb[48].mxu1  ;;  %v11408_v51 = vpop.f32.mrb[32].mxu0 }
 0xa46   :  { %v2658_v52 = vpop.f32.mrb[49].mxu1  ;;  %v2709_v53 = vpop.f32.mrb[33].mxu0  ;;  %v2932_v34 = vpack.c.bf16 %v11402_v50, %v11402_v50  ;;  %v2933_v35 = vpack.c.bf16 %v11408_v51, %v11408_v51  ;;  %v13610_v50 = vpack.c.bf16 %v3195_v47, %v3179_v46  ;;  %v13612_v51 = vpack.c.bf16 %v3192_v49, %v3176_v48  ;;  %v3204_v46 = vld [vmem:[%s15448_s21 + $0xe0] sm:$0xff]  ;;  %v3190_v47 = vld [vmem:[%s15448_s21 + $0x70] sm:$0xff] }
 0xa47   :  { %v11403_v54 = vpop.f32.mrb[50].mxu1  ;;  %v11409_v17 = vpop.f32.mrb[34].mxu0  ;;  %v2723_v29 = vpack.c.bf16 %v2658_v52, %v2658_v52  ;;  %v2724_v30 = vpack.c.bf16 %v2709_v53, %v2709_v53  ;;  %v3178_v52 = vld [vmem:[%s15448_s21 + $0x10] sm:$0xff] }
 0xa48   :  { %v2661_v18 = vpop.f32.mrb[51].mxu1  ;;  %v2712_v19 = vpop.f32.mrb[35].mxu0  ;;  %v3194_v53 = vld [vmem:[%s15448_s21 + $0x90] sm:$0xff]  ;;  %v3181_v17 = vld [vmem:[%s15448_s21 + $0x28] sm:$0xff] }
 0xa49   :  { %v2729_v21 = vpack.c.bf16 %v2661_v18, %v2661_v18  ;;  %v2730_v22 = vpack.c.bf16 %v2712_v19, %v2712_v19  ;;  %v13617_v54 = vpack.c.bf16 %v3194_v53, %v3178_v52  ;;  %v3197_v18 = vld [vmem:[%s15448_s21 + $0xa8] sm:$0xff]  ;;  %v3183_v19 = vld [vmem:[%s15448_s21 + $0x38] sm:$0xff]  ;;  %v3206_v48 = vld [vmem:[%s15448_s21 + $0xf0] sm:$0xff]  ;;  %v12133_v53 = vpack.c.bf16 %v3204_v46, %v3188_v45 }
 0xa4b   :  { %11415 = vmatmul.mubr.msk.bf16.vlgmr.msra.gmra.mrb[52].mxu1 %vm15336_vm14, %v2729_v21  ;;  %11423 = vmatmul.mubr.msk.bf16.vlgmr.msra.gmra.mrb[36].mxu0 %vm15336_vm14, %v2730_v22  ;;  %v3199_v21 = vld [vmem:[%s15448_s21 + $0xb8] sm:$0xff] }
 0xa4c   :  { %11427 = vmatpush3.bf16.msra.mxu1 %v12413_v20  ;;  %11435 = vmatpush3.bf16.msra.mxu0 %v12413_v20  ;;  %v13625_v20 = vpack.c.bf16 %v3197_v18, %v3181_v17  ;;  %v13628_v22 = vpack.c.bf16 %v3199_v21, %v3183_v19  ;;  %v12137_v17 = vpack.c.bf16 %v3206_v48, %v3190_v47  ;;  %v4412_v19 = vsub.s32 6, %v13206_v1 }
 0xa4d   :  { %11428 = vmatprep.subr.bf16.mxu1 %v15338_v3  ;;  %11436 = vmatprep.subr.bf16.mxu0 %v15338_v3 }
 0xa4e   :  { %11430 = vmatprep.mubr.msk.bf16.mxu1 %vm12736_vm1, %v15338_v3  ;;  %11438 = vmatprep.mubr.msk.bf16.mxu0 %vm12736_vm1, %v15338_v3 }
 0xa50   :  { %11429 = vmatpush3.bf16.msra.mxu1 %v12414_v25  ;;  %11437 = vmatpush3.bf16.msra.mxu0 %v12414_v25 }
 0xa51   :  { %11442 = vmatprep.subr.bf16.mxu1 %v15338_v3  ;;  %11450 = vmatprep.subr.bf16.mxu0 %v15338_v3 }
 0xa57   :  { %11431 = vmatmul.mubr.msk.bf16.vlgmr.msra.gmra.mrb[52].mxu1 %vm15336_vm14, %v2723_v29  ;;  %11439 = vmatmul.mubr.msk.bf16.vlgmr.msra.gmra.mrb[36].mxu0 %vm15336_vm14, %v2724_v30 }
 0xa58   :  { %11443 = vmatpush3.bf16.msra.mxu1 %v12415_v28  ;;  %11451 = vmatpush3.bf16.msra.mxu0 %v12415_v28 }
 0xa59   :  { %11444 = vmatprep.subr.bf16.mxu1 %v15338_v3  ;;  %11452 = vmatprep.subr.bf16.mxu0 %v15338_v3 }
 0xa5a   :  { %11446 = vmatprep.mubr.msk.bf16.mxu1 %vm12736_vm1, %v15338_v3  ;;  %11454 = vmatprep.mubr.msk.bf16.mxu0 %vm12736_vm1, %v15338_v3 }
 0xa5c   :  { %11445 = vmatpush3.bf16.msra.mxu1 %v12416_v31  ;;  %11453 = vmatpush3.bf16.msra.mxu0 %v12416_v31 }
 0xa5d   :  { %12104 = vmatprep.subr.bf16.mxu1 %v12739_v43  ;;  %12108 = vmatprep.subr.bf16.mxu0 %v13605_v23 }
 0xa63   :  { %11447 = vmatmul.mubr.msk.bf16.vlgmr.msra.gmra.mrb[52].mxu1 %vm15336_vm14, %v2932_v34  ;;  %11455 = vmatmul.mubr.msk.bf16.vlgmr.msra.gmra.mrb[36].mxu0 %vm15336_vm14, %v2933_v35  ;;  %v9971_v35 = vld [vmem:[%s15449_s25] ss:$0 sm:$0xff] }
 0xa64   :  { %11462 = vmatprep.mubr.msk.f32.mxu1 %vm12736_vm1, %v15338_v3  ;;  %3275 = vmatprep.mubr.f32.mxu0 %v15338_v3 }
 0xa65   :  { %12106 = vmatpush3.bf16.msra.mxu1 %v12105_v40  ;;  %12110 = vmatpush1.bf16.msra.mxu0 %v13612_v51 }
 0xa66   :  { %12112 = vmatprep.subr.bf16.mxu1 %v13610_v50  ;;  %12116 = vmatprep.subr.bf16.mxu0 %v13625_v20 }
 0xb36   :  { %v13583_v55 = vpop.f32.mrb[52].mxu1  ;;  %v13585_v56 = vpop.f32.mrb[36].mxu0 }
 0xb37   :  { %v3040_v43 = vsel %vm3039_vm2, %v13583_v55, 0.0  ;;  %v3050_v24 = vmul.f32 %v13583_v55, %v13583_v55  ;;  %v3041_v33 = vsel %vm3039_vm2, %v13585_v56, 0.0  ;;  %v3051_v26 = vmul.f32 %v13585_v56, %v13585_v56  ;;  %v11448_v57 = vpop.f32.mrb[53].mxu1  ;;  %v11456_v27 = vpop.f32.mrb[37].mxu0 }
 0xb38   :  { %v3042_v58 = vadd.f32 %v3041_v33, %v3040_v43  ;;  %v2991_v39 = vpop.f32.mrb[54].mxu1  ;;  %v3034_v59 = vpop.f32.mrb[38].mxu0 }
 0xb39   :  { %v3052_v32 = vsel %vm3039_vm2, %v3050_v24, 0.0  ;;  %v3053_v61 = vsel %vm3039_vm2, %v3051_v26, 0.0  ;;  %v11449_v44 = vpop.f32.mrb[55].mxu1  ;;  %v11457_v38 = vpop.f32.mrb[39].mxu0  ;;  %v3154_v24 = vld [vmem:[%s15450_s29] sm:$0x1] }
 0xb3a   :  { %v3043_v62 = vsel %vm3039_vm2, %v3042_v58, 0.0  ;;  %v3054_v63 = vadd.f32 %v3053_v61, %v3052_v32  ;;  %v3180_v58 = vld [vmem:[%s15448_s21 + $0x20] sm:$0xff]  ;;  %v3182_v32 = vld [vmem:[%s15448_s21 + $0x30] sm:$0xff]  ;;  %v3185_v44 = vld [vmem:[%s15448_s21 + $0x48] sm:$0xff] }
 0xb3b   :  { %v3044_v0 = vrot.slane %v3043_v62, 4  ;;  %v3196_v59 = vld [vmem:[%s15448_s21 + $0xa0] sm:$0xff]  ;;  %v3198_v61 = vld [vmem:[%s15448_s21 + $0xb0] sm:$0xff] }
 0xb3c   :  { %v3055_v2 = vsel %vm3039_vm2, %v3054_v63, 0.0  ;;  %v3201_v63 = vld [vmem:[%s15448_s21 + $0xc8] sm:$0xff] }
 0xb3d   :  { %v3045_v5 = vadd.f32 %v3044_v0, %v3043_v62  ;;  %v3056_v7 = vrot.slane %v3055_v2, 4  ;;  %v12117_v0 = vpack.c.bf16 %v3196_v59, %v3180_v58 }
 0xb3f   :  { %v3046_v8 = vrot.slane %v3045_v5, 2  ;;  %v3057_v9 = vadd.f32 %v3056_v7, %v3055_v2  ;;  %v12121_v2 = vpack.c.bf16 %v3198_v61, %v3182_v32 }
 0xb41   :  { %v3047_v10 = vadd.f32 %v3046_v8, %v3045_v5  ;;  %v3058_v11 = vrot.slane %v3057_v9, 2  ;;  %v3184_v5 = vld [vmem:[%s15448_s21 + $0x40] sm:$0xff] }
 0xb42   :  { %v3200_v8 = vld [vmem:[%s15448_s21 + $0xc0] sm:$0xff] }
 0xb43   :  { %v3048_v12 = vrot.slane %v3047_v10, 1  ;;  %v3059_v13 = vadd.f32 %v3058_v11, %v3057_v9  ;;  %v3186_v9 = vld [vmem:[%s15448_s21 + $0x50] sm:$0xff]  ;;  %v12123_v11 = vpack.c.bf16 %v3201_v63, %v3185_v44 }
 0xb45   :  { %v3060_v14 = vrot.slane %v3059_v13, 1  ;;  %v3049_v15 = vadd.f32 %v3048_v12, %v3047_v10  ;;  %v3202_v10 = vld [vmem:[%s15448_s21 + $0xd0] sm:$0xff] }
 0xb46   :  { %v12129_v42 = vpack.c.bf16 %v3202_v10, %v3186_v9 }
 0xb47   :  { %v3061_v16 = vadd.f32 %v3060_v14, %v3059_v13  ;;  %v3189_v13 = vld [vmem:[%s15448_s21 + $0x68] sm:$0xff] }
 0xb48   :  { %v3205_v14 = vld [vmem:[%s15448_s21 + $0xe8] sm:$0xff] }
 0xb49   :  { %v3062_v41 = vsel %vm771_vm5, %v3049_v15, %v3061_v16  ;;  %v3191_v15 = vld [vmem:[%s15448_s21 + $0x78] sm:$0xff]  ;;  %v12131_v49 = vpack.c.bf16 %v3205_v14, %v3189_v13 }
 0xb4a   :  { %11463 = vmatmul.mubr.msk.f32.vlgmr.msra.gmra.mrb[56].mxu1 %vm3065_vm4, %v3062_v41  ;;  %v3207_v16 = vld [vmem:[%s15448_s21 + $0xf8] sm:$0xff]  ;;  %v12125_v41 = vpack.c.bf16 %v3200_v8, %v3184_v5 }
 0xb4b   :  { %3346 = vmatprep.mubr.f32.mxu1 %v15338_v3  ;;  %12114 = vmatpush1.bf16.msra.mxu1 %v13617_v54  ;;  %v12135_v52 = vpack.c.bf16 %v3207_v16, %v3191_v15 }
 0xb4c   :  { %12120 = vmatprep.subr.bf16.mxu1 %v13628_v22 }
 0xc1d   :  { %v3135_v25 = vpop.f32.mrb[56].mxu1 }
 0xc1e   :  { %v3139_v28 = vmul.f32 %v3135_v25, %v3135_v25  ;;  %v11464_v29 = vpop.f32.mrb[57].mxu1 }
 0xc20   :  { %v3141_v30 = vrot.slane %v3139_v28, 7 }
 0xc22   :  { %v3143_v31 = vsub.f32 %v3135_v25, %v3141_v30 }
 0xc24   :  { %v3144_v34 = vadd.f32 1e-05, %v3143_v31 }
 0xc26   :  { %12653 = vrsqrt.f32 %v3144_v34 }
 0xc30   :  { %v12654_v36 = vpop.eup %12653 }
 0xc31   :  { %v3153_v37 = vmul.f32 %v12654_v36, %v9971_v35 }
 0xc33   :  { %v3156_v40 = vrot.slane %v3153_v37, 1  ;;  %v3163_v43 = vrot.slane %v3153_v37, %v13213_v6 }
 0xc35   :  { %v3158_v33 = vmul.f32 %v3156_v40, %v3135_v25  ;;  %v3164_v26 = vmul.f32 %v3163_v43, %v13583_v55  ;;  %v3165_v57 = vmul.f32 %v3163_v43, %v13585_v56  ;;  %v3187_v55 = vld [vmem:[%s15448_s21 + $0x58] sm:$0xff]  ;;  %v4416_v25 = vsub.s32 7, %v13206_v1  ;;  %v13732_v40 = vld [vmem:[%s15453_s3 + $0x8] sm:$0xff] }
 0xc36   :  { %v3203_v56 = vld [vmem:[%s15448_s21 + $0xd8] sm:$0xff]  ;;  %v13773_v10 = vrot.slane %v13732_v40, %v13213_v6  ;;  %v13791_v45 = vrot.slane %v13732_v40, %v4412_v19 }
 0xc37   :  { %v3159_v27 = vsub.f32 %v3154_v24, %v3158_v33  ;;  %v12127_v12 = vpack.c.bf16 %v3203_v56, %v3187_v55 }
 0xc39   :  { %v3170_v39 = vrot.slane %v3159_v27, %v13209_v4 }
 0xc3b   :  { %v3172_v38 = vadd.f32 %v3170_v39, %v3164_v26  ;;  %v3173_v62 = vadd.f32 %v3170_v39, %v3165_v57 }
 0xc3d   :  { %v13647_v7 = vmax.f32 %v3172_v38, 0.0  ;;  %v13686_v18 = vmax.f32 %v3173_v62, 0.0  ;;  %v13758_v38 = vrot.slane %v13732_v40, %v13209_v4 }
 0xc3f   :  { %15451 = vst [vmem:[#allocation28_spill] sm:$0xff] %v13647_v7  ;;  %9972 = vmatmul.mubr.msk.f32.vlgmr.msra.gmra.mrb[18].mxu0 %vm3065_vm4, %v13647_v7  ;;  %9973 = vmatmul.mubr.msk.f32.vlgmr.msra.gmra.mrb[58].mxu1 %vm3065_vm4, %v13647_v7  ;;  %15452 = vst [vmem:[#allocation29_spill] sm:$0xff] %v13686_v18 }
 0xc40   :  { %12118 = vmatpush1.bf16.msra.mxu0 %v12117_v0  ;;  %12122 = vmatpush1.bf16.msra.mxu1 %v12121_v2 }
 0xc41   :  { %3417 = vmatprep.mubr.f32.mxu0 %v15338_v3  ;;  %3488 = vmatprep.mubr.f32.mxu1 %v15338_v3 }
 0xc42   :  { %12124 = vmatprep.subr.bf16.mxu0 %v12123_v11  ;;  %12128 = vmatprep.subr.bf16.mxu1 %v12127_v12 }
 0xc43   :  { %9974 = vmatmul.mubr.msk.f32.vlgmr.msra.gmra.mrb[40].mxu0 %vm3065_vm4, %v13647_v7  ;;  %9975 = vmatmul.mubr.msk.f32.vlgmr.msra.gmra.mrb[60].mxu1 %vm3065_vm4, %v13647_v7 }
 0xc44   :  { %12126 = vmatpush1.bf16.msra.mxu0 %v12125_v41  ;;  %12130 = vmatpush1.bf16.msra.mxu1 %v12129_v42 }
 0xc45   :  { %3559 = vmatprep.mubr.f32.mxu0 %v15338_v3  ;;  %3630 = vmatprep.mubr.f32.mxu1 %v15338_v3 }
 0xc46   :  { %12132 = vmatprep.subr.bf16.mxu0 %v12131_v49  ;;  %12136 = vmatprep.subr.bf16.mxu1 %v12135_v52 }
 0xc47   :  { %9976 = vmatmul.mubr.msk.f32.vlgmr.msra.gmra.mrb[42].mxu0 %vm3065_vm4, %v13647_v7  ;;  %9977 = vmatmul.mubr.msk.f32.vlgmr.msra.gmra.mrb[62].mxu1 %vm3065_vm4, %v13647_v7 }
 0xc48   :  { %12134 = vmatpush1.bf16.msra.mxu0 %v12133_v53  ;;  %12138 = vmatpush1.bf16.msra.mxu1 %v12137_v17 }
 0xc49   :  { %3701 = vmatprep.mubr.f32.mxu0 %v15338_v3  ;;  %3772 = vmatprep.mubr.f32.mxu1 %v15338_v3 }
 0xc4a   :  { %12140 = vmatprep.subr.bf16.mxu0 %v13605_v23  ;;  %12144 = vmatprep.subr.bf16.mxu1 %v13610_v50  ;;  %v4396_v23 = vsub.s32 2, %v13206_v1  ;;  %v4350_v50 = vld [vmem:[%s15453_s3] sm:$0xff] }
 0xc4b   :  { %9978 = vmatmul.mubr.msk.f32.vlgmr.msra.gmra.mrb[44].mxu0 %vm3065_vm4, %v13647_v7  ;;  %9979 = vmatmul.mubr.msk.f32.vlgmr.msra.gmra.mrb[64].mxu1 %vm3065_vm4, %v13647_v7  ;;  %v13727_v30 = vrot.slane %v4350_v50, %v13213_v6  ;;  %v13736_v26 = vrot.slane %v4350_v50, %v4412_v19  ;;  %v13748_v39 = vrot.slane %v4350_v50, %v4416_v25 }
 0xc4c   :  { %12142 = vmatpush1.bf16.msra.mxu0 %v13612_v51  ;;  %12146 = vmatpush1.bf16.msra.mxu1 %v13617_v54  ;;  %v4400_v51 = vsub.s32 3, %v13206_v1  ;;  %v4404_v54 = vsub.s32 4, %v13206_v1  ;;  %v13722_v21 = vrot.slane %v4350_v50, %v4396_v23  ;;  %v13761_v62 = vrot.slane %v13732_v40, %v4396_v23 }
 0xc4d   :  { %3846 = vmatprep.mubr.f32.mxu0 %v15338_v3  ;;  %3917 = vmatprep.mubr.f32.mxu1 %v15338_v3 }
 0xc4e   :  { %12148 = vmatprep.subr.bf16.mxu0 %v13625_v20  ;;  %12152 = vmatprep.subr.bf16.mxu1 %v13628_v22  ;;  %v13720_v20 = vrot.slane %v4350_v50, %v13209_v4  ;;  %v4408_v22 = vsub.s32 5, %v13206_v1  ;;  %v13729_v31 = vrot.slane %v4350_v50, %v4400_v51  ;;  %v13734_v33 = vrot.slane %v4350_v50, %v4404_v54 }
 0xc4f   :  { %9980 = vmatmul.mubr.msk.f32.vlgmr.msra.gmra.mrb[46].mxu0 %vm3065_vm4, %v13686_v18  ;;  %9981 = vmatmul.mubr.msk.f32.vlgmr.msra.gmra.mrb[66].mxu1 %vm3065_vm4, %v13686_v18  ;;  %v13779_v13 = vrot.slane %v13732_v40, %v4400_v51  ;;  %v13782_v14 = vrot.slane %v13732_v40, %v4404_v54 }
 0xc50   :  { %12150 = vmatpush1.bf16.msra.mxu0 %v12117_v0  ;;  %12154 = vmatpush1.bf16.msra.mxu1 %v12121_v2  ;;  %v13744_v58 = vrot.slane %v4350_v50, %v4408_v22 }
 0xc51   :  { %3988 = vmatprep.mubr.f32.mxu0 %v15338_v3  ;;  %4059 = vmatprep.mubr.f32.mxu1 %v15338_v3 }
 0xc52   :  { %12156 = vmatprep.subr.bf16.mxu0 %v12123_v11  ;;  %12160 = vmatprep.subr.bf16.mxu1 %v12127_v12 }
 0xc53   :  { %9982 = vmatmul.mubr.msk.f32.vlgmr.msra.gmra.mrb[48].mxu0 %vm3065_vm4, %v13686_v18  ;;  %9983 = vmatmul.mubr.msk.f32.vlgmr.msra.gmra.mrb[68].mxu1 %vm3065_vm4, %v13686_v18 }
 0xc54   :  { %12158 = vmatpush1.bf16.msra.mxu0 %v12125_v41  ;;  %12162 = vmatpush1.bf16.msra.mxu1 %v12129_v42 }
 0xc55   :  { %4130 = vmatprep.mubr.f32.mxu0 %v15338_v3  ;;  %4201 = vmatprep.mubr.f32.mxu1 %v15338_v3 }
 0xc56   :  { %12164 = vmatprep.subr.bf16.mxu0 %v12131_v49  ;;  %12168 = vmatprep.subr.bf16.mxu1 %v12135_v52 }
 0xc57   :  { %9984 = vmatmul.mubr.msk.f32.vlgmr.msra.gmra.mrb[50].mxu0 %vm3065_vm4, %v13686_v18  ;;  %9985 = vmatmul.mubr.msk.f32.vlgmr.msra.gmra.mrb[70].mxu1 %vm3065_vm4, %v13686_v18 }
 0xc58   :  { %12166 = vmatpush1.bf16.msra.mxu0 %v12133_v53  ;;  %12170 = vmatpush1.bf16.msra.mxu1 %v12137_v17 }
 0xc59   :  { %4272 = vmatprep.mubr.f32.mxu0 %v15338_v3  ;;  %4343 = vmatprep.mubr.f32.mxu1 %v15338_v3 }
 0xc5b   :  { %9986 = vmatmul.mubr.msk.f32.vlgmr.msra.gmra.mrb[52].mxu0 %vm3065_vm4, %v13686_v18  ;;  %9987 = vmatmul.mubr.msk.f32.vlgmr.msra.gmra.mrb[72].mxu1 %vm3065_vm4, %v13686_v18 }
 0xd12   :  { %v3277_v28 = vpop.f32.mrb[18].mxu0  ;;  %v3348_v29 = vpop.f32.mrb[58].mxu1 }
 0xd13   :  { %v4352_v34 = vmul.f32 2.0, %v3277_v28  ;;  %v4354_v35 = vmul.f32 2.0, %v3348_v29  ;;  %v3279_v36 = vpop.f32.mrb[19].mxu0  ;;  %v3350_v37 = vpop.f32.mrb[59].mxu1  ;;  %v13807_v29 = vrot.slane %v13732_v40, %v4408_v22 }
 0xd14   :  { %v4353_v43 = vmul.f32 2.0, %v3279_v36  ;;  %v4355_v24 = vmul.f32 2.0, %v3350_v37 }
 0xd15   :  { %v13739_v57 = vsub.f32 %v13720_v20, %v4352_v34  ;;  %v13742_v27 = vsub.f32 %v13722_v21, %v4354_v35 }
 0xd16   :  { %v13751_v59 = vsub.f32 %v13727_v30, %v4353_v43  ;;  %v13754_v32 = vsub.f32 %v13729_v31, %v4355_v24  ;;  %v3419_v61 = vpop.f32.mrb[40].mxu0  ;;  %v3490_v44 = vpop.f32.mrb[60].mxu1 }
 0xd17   :  { %v4498_v63 = vsel %vm2620_vm0, %v13739_v57, inf  ;;  %v4500_v55 = vsel %vm2620_vm0, %v13742_v27, inf  ;;  %v4356_v56 = vmul.f32 2.0, %v3419_v61  ;;  %v4358_v0 = vmul.f32 2.0, %v3490_v44  ;;  %v3421_v2 = vpop.f32.mrb[41].mxu0  ;;  %v3492_v5 = vpop.f32.mrb[61].mxu1 }
 0xd18   :  { %v4499_v8 = vsel %vm2620_vm0, %v13751_v59, inf  ;;  %v4502_v4 = vsel %vm2620_vm0, %v13754_v32, inf  ;;  %v4357_v9 = vmul.f32 2.0, %v3421_v2  ;;  %v4359_v12 = vmul.f32 2.0, %v3492_v5 }
 0xd19   :  { %v13776_v11 = vsub.f32 %v13734_v33, %v4356_v56  ;;  %v4501_v15 = vmin.f32 %v4498_v63, %v4500_v55  ;;  %v13785_v16 = vsub.f32 %v13736_v26, %v4358_v0  ;;  %v4503_v46 = vmin.f32 %v4499_v8, %v4502_v4 }
 0xd1a   :  { %v13788_v41 = vsub.f32 %v13744_v58, %v4357_v9  ;;  %v3561_v42 = vpop.f32.mrb[42].mxu0  ;;  %v3632_v6 = vpop.f32.mrb[62].mxu1  ;;  %v13798_v54 = vsub.f32 %v13748_v39, %v4359_v12  ;;  %v13831_v12 = vrot.slane %v13732_v40, %v4416_v25 }
 0xd1b   :  { %v4504_v47 = vsel %vm2620_vm0, %v13776_v11, inf  ;;  %v4360_v48 = vmul.f32 2.0, %v3561_v42  ;;  %v4362_v49 = vmul.f32 2.0, %v3632_v6  ;;  %v3563_v52 = vpop.f32.mrb[43].mxu0  ;;  %v3634_v53 = vpop.f32.mrb[63].mxu1  ;;  %v4508_v24 = vsel %vm2620_vm0, %v13785_v16, inf }
 0xd1c   :  { %v4506_v17 = vsel %vm2620_vm0, %v13788_v41, inf  ;;  %v4361_v23 = vmul.f32 2.0, %v3563_v52  ;;  %v4363_v50 = vmul.f32 2.0, %v3634_v53  ;;  %v4505_v51 = vmin.f32 %v4501_v15, %v4504_v47 }
 0xd1d   :  { %v13801_v19 = vsub.f32 %v13758_v38, %v4360_v48  ;;  %v13804_v28 = vsub.f32 %v13761_v62, %v4362_v49  ;;  %v4507_v43 = vmin.f32 %v4503_v46, %v4506_v17  ;;  %v4510_v15 = vsel %vm2620_vm0, %v13798_v54, inf }
 0xd1e   :  { %v13810_v34 = vsub.f32 %v13773_v10, %v4361_v23  ;;  %v13813_v35 = vsub.f32 %v13779_v13, %v4363_v50  ;;  %v3703_v36 = vpop.f32.mrb[44].mxu0  ;;  %v3774_v37 = vpop.f32.mrb[64].mxu1  ;;  %v4509_v8 = vmin.f32 %v4505_v51, %v4508_v24 }
 0xd1f   :  { %v4709_v61 = vsel %vm2620_vm0, %v13801_v19, inf  ;;  %v4711_v44 = vsel %vm2620_vm0, %v13804_v28, inf  ;;  %v4364_v22 = vmul.f32 2.0, %v3703_v36  ;;  %v4366_v63 = vmul.f32 2.0, %v3774_v37  ;;  %v3705_v55 = vpop.f32.mrb[45].mxu0  ;;  %v3776_v56 = vpop.f32.mrb[65].mxu1 }
 0xd20   :  { %v4710_v0 = vsel %vm2620_vm0, %v13810_v34, inf  ;;  %v4713_v2 = vsel %vm2620_vm0, %v13813_v35, inf  ;;  %v4365_v5 = vmul.f32 2.0, %v3705_v55  ;;  %v4367_v9 = vmul.f32 2.0, %v3776_v56 }
 0xd21   :  { %v13826_v4 = vsub.f32 %v13782_v14, %v4364_v22  ;;  %v4712_v42 = vmin.f32 %v4709_v61, %v4711_v44  ;;  %v4714_v6 = vmin.f32 %v4710_v0, %v4713_v2  ;;  %v4511_v49 = vmin.f32 %v4507_v43, %v4510_v15 }
 0xd22   :  { %v13836_v46 = vsub.f32 %v13807_v29, %v4365_v5  ;;  %v3848_v47 = vpop.f32.mrb[46].mxu0  ;;  %v3919_v48 = vpop.f32.mrb[66].mxu1  ;;  %v13841_v53 = vsub.f32 %v13791_v45, %v4366_v63  ;;  %v13846_v37 = vsub.f32 %v13831_v12, %v4367_v9 }
 0xd23   :  { %v4715_v52 = vsel %vm2620_vm0, %v13826_v4, inf  ;;  %v4368_v1 = vmul.f32 2.0, %v3848_v47  ;;  %v4370_v25 = vmul.f32 2.0, %v3919_v48  ;;  %v3850_v40 = vpop.f32.mrb[47].mxu0  ;;  %v3921_v17 = vpop.f32.mrb[67].mxu1  ;;  %v4512_v51 = vmin.f32 %v4509_v8, %v4511_v49 }
 0xd24   :  { %v4717_v23 = vsel %vm2620_vm0, %v13836_v46, inf  ;;  %v4369_v50 = vmul.f32 2.0, %v3850_v40  ;;  %v4371_v36 = vmul.f32 2.0, %v3921_v17  ;;  %v4716_v55 = vmin.f32 %v4712_v42, %v4715_v52 }
 0xd25   :  { %v13849_v43 = vsub.f32 %v13720_v20, %v4368_v1  ;;  %v13852_v24 = vsub.f32 %v13722_v21, %v4370_v25  ;;  %4513 = vmin.xlane.f32.xlu0 %v4512_v51  ;;  %v4718_v56 = vmin.f32 %v4714_v6, %v4717_v23  ;;  %v4719_v21 = vsel %vm2620_vm0, %v13841_v53, inf }
 0xd26   :  { %v13855_v61 = vsub.f32 %v13727_v30, %v4369_v50  ;;  %v13858_v44 = vsub.f32 %v13729_v31, %v4371_v36  ;;  %v3990_v22 = vpop.f32.mrb[48].mxu0  ;;  %v4061_v63 = vpop.f32.mrb[68].mxu1  ;;  %v4721_v15 = vsel %vm2620_vm0, %v13846_v37, inf  ;;  %v4720_v48 = vmin.f32 %v4716_v55, %v4719_v21 }
 0xd27   :  { %v4372_v0 = vmul.f32 2.0, %v3990_v22  ;;  %v4374_v2 = vmul.f32 2.0, %v4061_v63  ;;  %v3992_v5 = vpop.f32.mrb[49].mxu0  ;;  %v4063_v8 = vpop.f32.mrb[69].mxu1  ;;  %v4722_v49 = vmin.f32 %v4718_v56, %v4721_v15  ;;  %v13909_v21 = vand.u32 127, %v920_v60 }
 0xd28   :  { %v4373_v20 = vmul.f32 2.0, %v3992_v5  ;;  %v4375_v31 = vmul.f32 2.0, %v4063_v8  ;;  %v4515_v8 = vsel %vm2620_vm0, %v13849_v43, inf }
 0xd29   :  { %v13863_v9 = vsub.f32 %v13734_v33, %v4372_v0  ;;  %v13866_v30 = vsub.f32 %v13736_v26, %v4374_v2  ;;  %v4723_v17 = vmin.f32 %v4720_v48, %v4722_v49 }
 0xd2a   :  { %v13871_v42 = vsub.f32 %v13744_v58, %v4373_v20  ;;  %v4132_v6 = vpop.f32.mrb[50].mxu0  ;;  %v4203_v47 = vpop.f32.mrb[70].mxu1  ;;  %v13874_v52 = vsub.f32 %v13748_v39, %v4375_v31  ;;  %v4517_v20 = vsel %vm2620_vm0, %v13852_v24, inf }
 0xd2b   :  { %v4376_v1 = vmul.f32 2.0, %v4132_v6  ;;  %v4378_v33 = vmul.f32 2.0, %v4203_v47  ;;  %v4134_v25 = vpop.f32.mrb[51].mxu0  ;;  %v4205_v40 = vpop.f32.mrb[71].mxu1  ;;  %4724 = vmin.xlane.f32.xlu0 %v4723_v17  ;;  %v13923_v48 = vsel %vm2620_vm0, %v13866_v30, inf  ;;  %v13946_v17 = vadd.s32 640, %v13909_v21 }
 0xd2c   :  { %v4377_v26 = vmul.f32 2.0, %v4134_v25  ;;  %v4379_v23 = vmul.f32 2.0, %v4205_v40  ;;  %v4523_v15 = vsel %vm2620_vm0, %v13871_v42, inf  ;;  %v13927_v60 = vsel %vm2620_vm0, %v13874_v52, inf }
 0xd2d   :  { %v13877_v50 = vsub.f32 %v13758_v38, %v4376_v1  ;;  %v13880_v58 = vsub.f32 %v13761_v62, %v4378_v33  ;;  %v13934_v1 = vadd.s32 128, %v13909_v21  ;;  %v13937_v33 = vadd.s32 256, %v13909_v21 }
 0xd2e   :  { %v13883_v51 = vsub.f32 %v13773_v10, %v4377_v26  ;;  %v13886_v39 = vsub.f32 %v13779_v13, %v4379_v23  ;;  %v4274_v36 = vpop.f32.mrb[52].mxu0  ;;  %v4345_v22 = vpop.f32.mrb[72].mxu1  ;;  %v13940_v25 = vadd.s32 384, %v13909_v21  ;;  %v13943_v26 = vadd.s32 512, %v13909_v21 }
 0xd2f   :  { %v4380_v63 = vmul.f32 2.0, %v4274_v36  ;;  %v4382_v55 = vmul.f32 2.0, %v4345_v22  ;;  %v4276_v56 = vpop.f32.mrb[53].mxu0  ;;  %v4347_v0 = vpop.f32.mrb[73].mxu1  ;;  %v13917_v6 = vsel %vm2620_vm0, %v13877_v50, inf  ;;  %v13931_v49 = vsel %vm2620_vm0, %v13880_v58, inf }
 0xd30   :  { %v4381_v2 = vmul.f32 2.0, %v4276_v56  ;;  %v4383_v5 = vmul.f32 2.0, %v4347_v0  ;;  %v13949_v23 = vadd.s32 768, %v13909_v21  ;;  %v13952_v36 = vadd.s32 896, %v13909_v21 }
 0xd31   :  { %v13889_v38 = vsub.f32 %v13782_v14, %v4380_v63  ;;  %v13892_v62 = vsub.f32 %v13791_v45, %v4382_v55  ;;  %v4516_v14 = vsel %vm2620_vm0, %v13855_v61, inf  ;;  %v4519_v45 = vsel %vm2620_vm0, %v13858_v44, inf }
 0xd32   :  { %v13895_v10 = vsub.f32 %v13807_v29, %v4381_v2  ;;  %v13898_v13 = vsub.f32 %v13831_v12, %v4383_v5  ;;  %v4521_v29 = vsel %vm2620_vm0, %v13863_v9, inf  ;;  %v4518_v12 = vmin.f32 %v4515_v8, %v4517_v20 }
 0xd33   :  { %v4520_v31 = vmin.f32 %v4516_v14, %v4519_v45  ;;  %v4729_v0 = vmin.f32 %v13917_v6, %v13931_v49  ;;  %v13979_v2 = vsel %vm2620_vm0, %v13883_v51, inf }
 0xd34   :  { %v13919_v47 = vmin.f32 %v4518_v12, %v4521_v29 }
 0xd35   :  { %v13973_v56 = vmin.f32 %v4520_v31, %v4523_v15 }
 0xdb2   :  { %v4514_v40 = vpop.xlane.xlu0 %4513 }
 0xdb3   :  { %vm4541_vm6 = vcmp.eq.f32.partialorder %v13739_v57, %v4514_v40  ;;  %vm4542_vm7 = vcmp.eq.f32.partialorder %v13751_v59, %v4514_v40  ;;  %vm4543_vm8 = vcmp.eq.f32.partialorder %v13742_v27, %v4514_v40  ;;  %vm4544_vm9 = vcmp.eq.f32.partialorder %v13754_v32, %v4514_v40 }
 0xdb4   :  { %vm4545_vm10 = vcmp.eq.f32.partialorder %v13776_v11, %v4514_v40  ;;  %vm4546_vm11 = vcmp.eq.f32.partialorder %v13788_v41, %v4514_v40  ;;  %vm4547_vm13 = vcmp.eq.f32.partialorder %v13785_v16, %v4514_v40  ;;  %vm4548_vm3 = vcmp.eq.f32.partialorder %v13798_v54, %v4514_v40 }
 0xdb5   :  { %v4557_v22 = vsel %vm4541_vm6, %v13909_v21, 1024  ;;  %v4558_v63 = vsel %vm4542_vm7, %v13934_v1, 1024  ;;  %v4559_v57 = vsel %vm4543_vm8, %v13937_v33, 1024  ;;  %v4560_v59 = vsel %vm4544_vm9, %v13940_v25, 1024 }
 0xdb6   :  { %v4561_v27 = vsel %vm4545_vm10, %v13943_v26, 1024  ;;  %v4562_v32 = vsel %vm4546_vm11, %v13946_v17, 1024  ;;  %v4563_v11 = vsel %vm4547_vm13, %v13949_v23, 1024  ;;  %v4564_v41 = vsel %vm4548_vm3, %v13952_v36, 1024 }
 0xdb7   :  { %v4573_v16 = vsel %vm2620_vm0, %v4557_v22, 2147483647  ;;  %v4574_v54 = vsel %vm2620_vm0, %v4558_v63, 2147483647  ;;  %v4575_v55 = vsel %vm2620_vm0, %v4559_v57, 2147483647 }
 0xdb8   :  { %vm4576_vm6 = vcmp.lt.s32.totalorder %v4573_v16, %v4575_v55  ;;  %v4578_v5 = vsel %vm2620_vm0, %v4560_v59, 2147483647  ;;  %v4581_v20 = vsel %vm2620_vm0, %v4561_v27, 2147483647  ;;  %v4584_v14 = vsel %vm2620_vm0, %v4562_v32, 2147483647  ;;  %v4725_v45 = vpop.xlane.xlu0 %4724 }
 0xdb9   :  { %v4577_v8 = vsel %vm4576_vm6, %v4573_v16, %v4575_v55  ;;  %vm4579_vm3 = vcmp.lt.s32.totalorder %v4574_v54, %v4578_v5  ;;  %v4587_v12 = vsel %vm2620_vm0, %v4563_v11, 2147483647  ;;  %v4590_v31 = vsel %vm2620_vm0, %v4564_v41, 2147483647 }
 0xdba   :  { %v4580_v29 = vsel %vm4579_vm3, %v4574_v54, %v4578_v5  ;;  %vm4582_vm7 = vcmp.lt.s32.totalorder %v4577_v8, %v4581_v20  ;;  %vm4743_vm9 = vcmp.eq.f32.partialorder %v13801_v19, %v4725_v45  ;;  %vm4744_vm10 = vcmp.eq.f32.partialorder %v13810_v34, %v4725_v45 }
 0xdbb   :  { %v4583_v15 = vsel %vm4582_vm7, %v4577_v8, %v4581_v20  ;;  %vm4585_vm8 = vcmp.lt.s32.totalorder %v4580_v29, %v4584_v14  ;;  %vm4745_vm13 = vcmp.eq.f32.partialorder %v13804_v28, %v4725_v45  ;;  %vm4746_vm6 = vcmp.eq.f32.partialorder %v13813_v35, %v4725_v45 }
 0xdbc   :  { %v4586_v40 = vsel %vm4585_vm8, %v4580_v29, %v4584_v14  ;;  %vm4588_vm11 = vcmp.lt.s32.totalorder %v4583_v15, %v4587_v12  ;;  %v4730_v22 = vsel %vm2620_vm0, %v13886_v39, inf  ;;  %vm4747_vm14 = vcmp.eq.f32.partialorder %v13826_v4, %v4725_v45 }
 0xdbd   :  { %v4589_v63 = vsel %vm4588_vm11, %v4583_v15, %v4587_v12  ;;  %vm4591_vm3 = vcmp.lt.s32.totalorder %v4586_v40, %v4590_v31  ;;  %vm4748_vm7 = vcmp.eq.f32.partialorder %v13836_v46, %v4725_v45  ;;  %vm4749_vm12 = vcmp.eq.f32.partialorder %v13841_v53, %v4725_v45 }
 0xdbe   :  { %v4592_v57 = vsel %vm4591_vm3, %v4586_v40, %v4590_v31  ;;  %v4759_v19 = vsel %vm4743_vm9, %v13909_v21, 1024  ;;  %v4760_v34 = vsel %vm4744_vm10, %v13934_v1, 1024  ;;  %v4761_v28 = vsel %vm4745_vm13, %v13937_v33, 1024 }
 0xdbf   :  { %vm4593_vm8 = vcmp.lt.s32.totalorder %v4589_v63, %v4592_v57  ;;  %v4762_v35 = vsel %vm4746_vm6, %v13940_v25, 1024  ;;  %v4526_v27 = vmin.f32 %v13919_v47, %v13923_v48  ;;  %vm4750_vm11 = vcmp.eq.f32.partialorder %v13846_v37, %v4725_v45 }
 0xdc0   :  { %v13999_v59 = vsel %vm4593_vm8, %v4589_v63, %v4592_v57  ;;  %v4763_v4 = vsel %vm4747_vm14, %v13943_v26, 1024  ;;  %v4764_v53 = vsel %vm4748_vm7, %v13946_v17, 1024  ;;  %v4775_v32 = vsel %vm2620_vm0, %v4759_v19, 2147483647 }
 0xdc1   :  { %v4596_v46 = vshra.s32 %v13999_v59, 16  ;;  %v4776_v11 = vsel %vm2620_vm0, %v4760_v34, 2147483647  ;;  %v4528_v41 = vmin.f32 %v13973_v56, %v13927_v60  ;;  %v4765_v16 = vsel %vm4749_vm12, %v13949_v23, 1024 }
 0xdc2   :  { %v4777_v54 = vsel %vm2620_vm0, %v4761_v28, 2147483647  ;;  %v4780_v47 = vsel %vm2620_vm0, %v4762_v35, 2147483647  ;;  %v4766_v48 = vsel %vm4750_vm11, %v13952_v36, 1024  ;;  %v4732_v60 = vsel %vm2620_vm0, %v13889_v38, inf }
 0xdc3   :  { %v14014_v37 = vcvt.s32.f32 %v4596_v46  ;;  %vm4778_vm14 = vcmp.lt.s32.totalorder %v4775_v32, %v4777_v54  ;;  %vm4781_vm9 = vcmp.lt.s32.totalorder %v4776_v11, %v4780_v47  ;;  %v4783_v8 = vsel %vm2620_vm0, %v4763_v4, 2147483647  ;;  %v14044_v4 = vld [vmem:[%s15454_s8 + $0xc0] sm:$0xff]  }
 0xdc4   :  { %v4779_v55 = vsel %vm4778_vm14, %v4775_v32, %v4777_v54  ;;  %v4782_v5 = vsel %vm4781_vm9, %v4776_v11, %v4780_v47  ;;  %v4786_v20 = vsel %vm2620_vm0, %v4764_v53, 2147483647  ;;  %v4734_v56 = vsel %vm2620_vm0, %v13895_v10, inf  ;;  %v14047_v46 = vld [vmem:[%s15454_s8] sm:$0xff]   ;;  %v14053_v32 = vld [vmem:[%s15454_s8 + $0x48] sm:$0xff]   ;;  %10620 = vmatprep.subr.bf16.mxu1 %v14044_v4  ;;  %v14071_v54 = vld [vmem:[%s15454_s8 + $0x50] sm:$0xff]  }
 0xdc5   :  { %4599 = vmin.xlane.f32.xlu1 %v14014_v37  ;;  %vm4784_vm12 = vcmp.lt.s32.totalorder %v4779_v55, %v4783_v8  ;;  %vm4787_vm10 = vcmp.lt.s32.totalorder %v4782_v5, %v4786_v20  ;;  %v4789_v29 = vsel %vm2620_vm0, %v4765_v16, 2147483647  ;;  %v4792_v12 = vsel %vm2620_vm0, %v4766_v48, 2147483647  ;;  %v14050_v53 = vld [vmem:[%s15454_s8 + $0x80] sm:$0xff]   ;;  %v14056_v11 = vld [vmem:[%s15454_s8 + $0xc8] sm:$0xff]  }
 0xdc6   :  { %v4785_v14 = vsel %vm4784_vm12, %v4779_v55, %v4783_v8  ;;  %v4788_v45 = vsel %vm4787_vm10, %v4782_v5, %v4786_v20  ;;  %v4731_v31 = vmin.f32 %v13979_v2, %v4730_v22  ;;  %v4529_v15 = vmin.f32 %v4526_v27, %v4528_v41  ;;  %10621 = vmatpush3.bf16.msra.mxu1 %v14050_v53  ;;  %v14063_v41 = vld [vmem:[%s15454_s8 + $0x8] sm:$0xff]   ;;  %v14074_v47 = vld [vmem:[%s15454_s8 + $0xd0] sm:$0xff]   ;;  %v14087_v5 = vld [vmem:[%s15454_s8 + $0x58] sm:$0xff]  }
 0xdc7   :  { %vm4790_vm13 = vcmp.lt.s32.totalorder %v4785_v14, %v4789_v29  ;;  %vm4793_vm6 = vcmp.lt.s32.totalorder %v4788_v45, %v4792_v12  ;;  %v4733_v57 = vmin.f32 %v4729_v0, %v4732_v60  ;;  %v4736_v22 = vsel %vm2620_vm0, %v13892_v62, inf  ;;  %v14041_v0 = vld [vmem:[%s15454_s8 + $0x40] sm:$0xff]   ;;  %v14066_v16 = vld [vmem:[%s15454_s8 + $0x88] sm:$0xff]   ;;  %10622 = vmatprep.subr.bf16.mxu1 %v14056_v11  ;;  %v14079_v48 = vld [vmem:[%s15454_s8 + $0x10] sm:$0xff]  }
 0xdc8   :  { %v4791_v40 = vsel %vm4790_vm13, %v4785_v14, %v4789_v29  ;;  %v4794_v63 = vsel %vm4793_vm6, %v4788_v45, %v4792_v12  ;;  %v4735_v19 = vmin.f32 %v4731_v31, %v4734_v56  ;;  %v4738_v28 = vsel %vm2620_vm0, %v13898_v13, inf  ;;  %10598 = vmatprep.subr.bf16.mxu0 %v14041_v0  ;;  %v14082_v55 = vld [vmem:[%s15454_s8 + $0x90] sm:$0xff]   ;;  %v14090_v8 = vld [vmem:[%s15454_s8 + $0xd8] sm:$0xff]   ;;  %v14103_v56 = vld [vmem:[%s15454_s8 + $0x60] sm:$0xff]  }
 0xdc9   :  { %4530 = vmin.xlane.f32.xlu1 %v4529_v15  ;;  %vm4795_vm3 = vcmp.lt.s32.totalorder %v4791_v40, %v4794_v63  ;;  %v4737_v27 = vmin.f32 %v4733_v57, %v4736_v22  ;;  %10599 = vmatpush3.bf16.msra.mxu0 %v14047_v46  ;;  %v14095_v20 = vld [vmem:[%s15454_s8 + $0x18] sm:$0xff]   ;;  %v14106_v14 = vld [vmem:[%s15454_s8 + $0xe0] sm:$0xff]   ;;  %v14119_v12 = vld [vmem:[%s15454_s8 + $0x68] sm:$0xff]   ;;  %v4595_v22 = vand.u32 65535, %v13999_v59 }
 0xdca   :  { %v14030_v34 = vsel %vm4795_vm3, %v4791_v40, %v4794_v63  ;;  %v4739_v6 = vmin.f32 %v4735_v19, %v4738_v28  ;;  %10600 = vmatprep.subr.bf16.mxu0 %v14053_v32  ;;  %10623 = vmatpush3.bf16.msra.mxu1 %v14066_v16  ;;  %v14098_v60 = vld [vmem:[%s15454_s8 + $0x98] sm:$0xff]   ;;  %v14111_v45 = vld [vmem:[%s15454_s8 + $0x20] sm:$0xff]   ;;  %v14122_v31 = vld [vmem:[%s15454_s8 + $0xe8] sm:$0xff]  }
 0xdcb   :  { %v4798_v2 = vshra.s32 %v14030_v34, 16  ;;  %10624 = vmatprep.subr.bf16.mxu1 %v14074_v47  ;;  %v14114_v29 = vld [vmem:[%s15454_s8 + $0xa0] sm:$0xff]   ;;  %v14127_v15 = vld [vmem:[%s15454_s8 + $0x28] sm:$0xff]   ;;  %v14135_v63 = vld [vmem:[%s15454_s8 + $0x70] sm:$0xff]   ;;  %v4797_v3 = vand.u32 65535, %v14030_v34 }
 0xdcc   :  { %v4740_v49 = vmin.f32 %v4737_v27, %v4739_v6  ;;  %v14130_v40 = vld [vmem:[%s15454_s8 + $0xa8] sm:$0xff]   ;;  %v14138_v57 = vld [vmem:[%s15454_s8 + $0xf0] sm:$0xff]   ;;  %v4597_v27 = vcvt.s32.f32 %v4595_v22 }
 0xdcd   :  { %v14037_v35 = vcvt.s32.f32 %v4798_v2  ;;  %10601 = vmatpush3.bf16.msra.mxu0 %v14063_v41  ;;  %v14143_v19 = vld [vmem:[%s15454_s8 + $0x30] sm:$0xff]   ;;  %v4799_v34 = vcvt.s32.f32 %v4797_v3 }
 0xdce   :  { %10602 = vmatprep.subr.bf16.mxu0 %v14071_v54  ;;  %10625 = vmatpush3.bf16.msra.mxu1 %v14082_v55  ;;  %15455 = vst [vmem:[#allocation30_spill] sm:$0xff] %v14143_v19  ;;  %v14146_v2 = vld [vmem:[%s15454_s8 + $0xb0] sm:$0xff]  }
 0xdcf   :  { %4801 = vmin.xlane.f32.xlu0 %v14037_v35  ;;  %10626 = vmatprep.subr.bf16.mxu1 %v14090_v8  ;;  %15456 = vst [vmem:[#allocation31_spill] sm:$0xff] %v14146_v2 }
 0xdd1   :  { %10603 = vmatpush3.bf16.msra.mxu0 %v14079_v48 }
 0xdd2   :  { %10604 = vmatprep.subr.bf16.mxu0 %v14087_v5  ;;  %10627 = vmatpush3.bf16.msra.mxu1 %v14098_v60 }
 0xdd3   :  { %4741 = vmin.xlane.f32.xlu0 %v4740_v49  ;;  %10628 = vmatprep.subr.bf16.mxu1 %v14106_v14 }
 0xdd5   :  { %10605 = vmatpush3.bf16.msra.mxu0 %v14095_v20 }
 0xdd6   :  { %10606 = vmatprep.subr.bf16.mxu0 %v14103_v56  ;;  %10629 = vmatpush3.bf16.msra.mxu1 %v14114_v29 }
 0xdd7   :  { %10630 = vmatprep.subr.bf16.mxu1 %v14122_v31 }
 0xdd9   :  { %10607 = vmatpush3.bf16.msra.mxu0 %v14111_v45 }
 0xdda   :  { %10608 = vmatprep.subr.bf16.mxu0 %v14119_v12  ;;  %10631 = vmatpush3.bf16.msra.mxu1 %v14130_v40 }
 0xddb   :  { %10632 = vmatprep.subr.bf16.mxu1 %v14138_v57 }
 0xddd   :  { %10609 = vmatpush3.bf16.msra.mxu0 %v14127_v15 }
 0xdde   :  { %10610 = vmatprep.subr.bf16.mxu0 %v14135_v63  ;;  %10633 = vmatpush3.bf16.msra.mxu1 %v14146_v2 }
 0xde1   :  { %10611 = vmatpush3.bf16.msra.mxu0 %v14143_v19 }
 0xe52   :  { %v14153_v28 = vpop.xlane.xlu1 %4599 }
 0xe53   :  { %vm4601_vm7 = vcmp.eq.f32.partialorder %v14014_v37, %v14153_v28 }
 0xe54   :  { %v4602_v6 = vsel %vm4601_vm7, %v4597_v27, inf }
 0xe55   :  { %4603 = vmin.xlane.f32.xlu1 %v4602_v6 }
 0xe56   :  { %v4531_v49 = vpop.xlane.xlu1 %4530 }
 0xe57   :  { %vm4549_vm8 = vcmp.eq.f32.partialorder %v13849_v43, %v4531_v49  ;;  %vm4550_vm11 = vcmp.eq.f32.partialorder %v13855_v61, %v4531_v49  ;;  %vm4551_vm14 = vcmp.eq.f32.partialorder %v13852_v24, %v4531_v49  ;;  %vm4552_vm9 = vcmp.eq.f32.partialorder %v13858_v44, %v4531_v49 }
 0xe58   :  { %vm4553_vm12 = vcmp.eq.f32.partialorder %v13863_v9, %v4531_v49  ;;  %vm4554_vm10 = vcmp.eq.f32.partialorder %v13871_v42, %v4531_v49  ;;  %vm4555_vm13 = vcmp.eq.f32.partialorder %v13866_v30, %v4531_v49  ;;  %vm4556_vm6 = vcmp.eq.f32.partialorder %v13874_v52, %v4531_v49 }
 0xe59   :  { %v4565_v59 = vsel %vm4549_vm8, %v13909_v21, 1024  ;;  %v4566_v37 = vsel %vm4550_vm11, %v13934_v1, 1024  ;;  %v4567_v43 = vsel %vm4551_vm14, %v13937_v33, 1024  ;;  %v4568_v61 = vsel %vm4552_vm9, %v13940_v25, 1024 }
 0xe5a   :  { %v4569_v24 = vsel %vm4553_vm12, %v13943_v26, 1024  ;;  %v4570_v44 = vsel %vm4554_vm10, %v13946_v17, 1024  ;;  %v4609_v9 = vsel %vm2620_vm0, %v4565_v59, 2147483647  ;;  %v4610_v42 = vsel %vm2620_vm0, %v4566_v37, 2147483647 }
 0xe5b   :  { %v4611_v30 = vsel %vm2620_vm0, %v4567_v43, 2147483647  ;;  %v4571_v22 = vsel %vm4555_vm13, %v13949_v23, 1024  ;;  %v4572_v27 = vsel %vm4556_vm6, %v13952_v36, 1024  ;;  %v4614_v6 = vsel %vm2620_vm0, %v4568_v61, 2147483647 }
 0xe5c   :  { %v14175_v52 = vpop.xlane.xlu0 %4801  ;;  %vm4612_vm3 = vcmp.lt.s32.totalorder %v4609_v9, %v4611_v30  ;;  %vm4615_vm8 = vcmp.lt.s32.totalorder %v4610_v42, %v4614_v6  ;;  %v4617_v3 = vsel %vm2620_vm0, %v4569_v24, 2147483647  ;;  %v4620_v43 = vsel %vm2620_vm0, %v4570_v44, 2147483647 }
 0xe5d   :  { %vm4803_vm7 = vcmp.eq.f32.partialorder %v14037_v35, %v14175_v52  ;;  %v4613_v49 = vsel %vm4612_vm3, %v4609_v9, %v4611_v30  ;;  %v4616_v37 = vsel %vm4615_vm8, %v4610_v42, %v4614_v6  ;;  %v4623_v7 = vsel %vm2620_vm0, %v4571_v22, 2147483647  ;;  %v14220_v22 = vld [vmem:[%s15454_s8 + $0x38] sm:$0xff]  }
 0xe5e   :  { %v4804_v59 = vsel %vm4803_vm7, %v4799_v34, inf  ;;  %vm4618_vm11 = vcmp.lt.s32.totalorder %v4613_v49, %v4617_v3  ;;  %vm4621_vm14 = vcmp.lt.s32.totalorder %v4616_v37, %v4620_v43  ;;  %v4626_v61 = vsel %vm2620_vm0, %v4572_v27, 2147483647  ;;  %v14223_v27 = vld [vmem:[%s15454_s8 + $0xb8] sm:$0xff]  }
 0xe5f   :  { %4805 = vmin.xlane.f32.xlu0 %v4804_v59  ;;  %v4619_v18 = vsel %vm4618_vm11, %v4613_v49, %v4617_v3  ;;  %v4622_v19 = vsel %vm4621_vm14, %v4616_v37, %v4620_v43  ;;  %v14231_v37 = vld [vmem:[%s15454_s8 + $0x140] sm:$0xff]  }
 0xe60   :  { %v4742_v2 = vpop.xlane.xlu0 %4741  ;;  %vm4624_vm9 = vcmp.lt.s32.totalorder %v4619_v18, %v4623_v7  ;;  %vm4627_vm12 = vcmp.lt.s32.totalorder %v4622_v19, %v4626_v61  ;;  %v14234_v43 = vld [vmem:[%s15454_s8 + $0x1c0] sm:$0xff]  }
 0xe61   :  { %v4625_v35 = vsel %vm4624_vm9, %v4619_v18, %v4623_v7  ;;  %vm4751_vm10 = vcmp.eq.f32.partialorder %v13877_v50, %v4742_v2  ;;  %vm4752_vm13 = vcmp.eq.f32.partialorder %v13883_v51, %v4742_v2  ;;  %v4628_v24 = vsel %vm4627_vm12, %v4622_v19, %v4626_v61 }
 0xe62   :  { %vm4753_vm6 = vcmp.eq.f32.partialorder %v13880_v58, %v4742_v2  ;;  %vm4754_vm3 = vcmp.eq.f32.partialorder %v13886_v39, %v4742_v2  ;;  %vm4629_vm7 = vcmp.lt.s32.totalorder %v4625_v35, %v4628_v24  ;;  %vm4755_vm8 = vcmp.eq.f32.partialorder %v13889_v38, %v4742_v2  ;;  %v14202_v39 = vld [vmem:[%s15454_s8 + $0x78] sm:$0xff]  }
 0xe63   :  { %vm4756_vm11 = vcmp.eq.f32.partialorder %v13895_v10, %v4742_v2  ;;  %v14192_v44 = vsel %vm4629_vm7, %v4625_v35, %v4628_v24  ;;  %v4767_v7 = vsel %vm4751_vm10, %v13909_v21, 1024  ;;  %v4768_v18 = vsel %vm4752_vm13, %v13934_v1, 1024  ;;  %v14205_v38 = vld [vmem:[%s15454_s8 + $0xf8] sm:$0xff]   ;;  %10612 = vmatprep.subr.bf16.mxu0 %v14202_v39 }
 0xe64   :  { %v4769_v50 = vsel %vm4753_vm6, %v13937_v33, 1024  ;;  %v4632_v51 = vshra.s32 %v14192_v44, 16  ;;  %vm4757_vm14 = vcmp.eq.f32.partialorder %v13892_v62, %v4742_v2  ;;  %vm4758_vm9 = vcmp.eq.f32.partialorder %v13898_v13, %v4742_v2  ;;  %10634 = vmatprep.subr.bf16.mxu1 %v14205_v38  ;;  %10613 = vmatpush3.bf16.msra.mxu0 %v14220_v22 }
 0xe65   :  { %v4770_v58 = vsel %vm4754_vm3, %v13940_v25, 1024  ;;  %v4771_v10 = vsel %vm4755_vm8, %v13943_v26, 1024  ;;  %v4772_v19 = vsel %vm4756_vm11, %v13946_v17, 1024  ;;  %v4811_v34 = vsel %vm2620_vm0, %v4767_v7, 2147483647  ;;  %10635 = vmatpush3.bf16.msra.mxu1 %v14223_v27  ;;  %10642 = vmatprep.subr.bf16.mxu0 %v14231_v37 }
 0xe66   :  { %v4812_v9 = vsel %vm2620_vm0, %v4768_v18, 2147483647  ;;  %v14211_v42 = vcvt.s32.f32 %v4632_v51  ;;  %v4813_v62 = vsel %vm2620_vm0, %v4769_v50, 2147483647  ;;  %v4816_v13 = vsel %vm2620_vm0, %v4770_v58, 2147483647  ;;  %10664 = vmatprep.subr.bf16.mxu1 %v14234_v43 }
 0xe67   :  { %v4773_v2 = vsel %vm4757_vm14, %v13949_v23, 1024  ;;  %v4774_v30 = vsel %vm4758_vm9, %v13952_v36, 1024  ;;  %vm4814_vm12 = vcmp.lt.s32.totalorder %v4811_v34, %v4813_v62  ;;  %vm4817_vm10 = vcmp.lt.s32.totalorder %v4812_v9, %v4816_v13 }
 0xe68   :  { %4635 = vmin.xlane.f32.xlu1 %v14211_v42  ;;  %v4815_v6 = vsel %vm4814_vm12, %v4811_v34, %v4813_v62  ;;  %v4818_v49 = vsel %vm4817_vm10, %v4812_v9, %v4816_v13  ;;  %v4819_v3 = vsel %vm2620_vm0, %v4771_v10, 2147483647  ;;  %v4822_v59 = vsel %vm2620_vm0, %v4772_v19, 2147483647 }
 0xe69   :  { %vm4820_vm13 = vcmp.lt.s32.totalorder %v4815_v6, %v4819_v3  ;;  %vm4823_vm6 = vcmp.lt.s32.totalorder %v4818_v49, %v4822_v59  ;;  %v4825_v24 = vsel %vm2620_vm0, %v4773_v2, 2147483647  ;;  %v4828_v7 = vsel %vm2620_vm0, %v4774_v30, 2147483647  ;;  %v14262_v30 = vld [vmem:[%s15454_s8 + $0x180] sm:$0xff]  }
 0xe6a   :  { %v4821_v61 = vsel %vm4820_vm13, %v4815_v6, %v4819_v3  ;;  %v4824_v35 = vsel %vm4823_vm6, %v4818_v49, %v4822_v59  ;;  %v4606_v19 = vcvt.f32.s32 %v14153_v28  ;;  %v14258_v28 = vld [vmem:[%s15454_s8 + $0x100] sm:$0xff]   ;;  %v15344_v2 = vmov 1.0|1.0   ;;  %v14270_v6 = vld [vmem:[%s15454_s8 + $0x148] sm:$0xff]  }
 0xe6b   :  { %vm4826_vm3 = vcmp.lt.s32.totalorder %v4821_v61, %v4825_v24  ;;  %vm4829_vm7 = vcmp.lt.s32.totalorder %v4824_v35, %v4828_v7  ;;  %v14274_v49 = vld [vmem:[%s15454_s8 + $0x1c8] sm:$0xff]  }
 0xe6c   :  { %v4827_v18 = vsel %vm4826_vm3, %v4821_v61, %v4825_v24  ;;  %v4830_v50 = vsel %vm4829_vm7, %v4824_v35, %v4828_v7  ;;  %v4607_v9 = vshll.u32 %v4606_v19, 16  ;;  %v14279_v3 = vld [vmem:[%s15454_s8 + $0x108] sm:$0xff]   ;;  %v14287_v61 = vld [vmem:[%s15454_s8 + $0x150] sm:$0xff]   ;;  %v14314_v19 = vld [vmem:[%s15454_s8 + $0x118] sm:$0xff]  }
 0xe6d   :  { %vm4831_vm8 = vcmp.lt.s32.totalorder %v4827_v18, %v4830_v50  ;;  %v14284_v59 = vld [vmem:[%s15454_s8 + $0x188] sm:$0xff]   ;;  %v14292_v35 = vld [vmem:[%s15454_s8 + $0x1d0] sm:$0xff]   ;;  %15462 = vst [vmem:[#allocation37_spill] sm:$0xff] %v14314_v19 }
 0xe6e   :  { %v14240_v51 = vsel %vm4831_vm8, %v4827_v18, %v4830_v50  ;;  %15457 = vst [vmem:[#allocation32_spill] sm:$0xff] %v14292_v35  ;;  %v14297_v24 = vld [vmem:[%s15454_s8 + $0x110] sm:$0xff]   ;;  %v14305_v18 = vld [vmem:[%s15454_s8 + $0x158] sm:$0xff]  }
 0xe6f   :  { %v4834_v58 = vshra.s32 %v14240_v51, 16  ;;  %15458 = vst [vmem:[#allocation33_spill] sm:$0xff] %v14297_v24  ;;  %v14302_v7 = vld [vmem:[%s15454_s8 + $0x190] sm:$0xff]   ;;  %15460 = vst [vmem:[#allocation35_spill] sm:$0xff] %v14305_v18  ;;  %v14309_v50 = vld [vmem:[%s15454_s8 + $0x1d8] sm:$0xff]  }
 0xe70   :  { %15459 = vst [vmem:[#allocation34_spill] sm:$0xff] %v14302_v7  ;;  %15461 = vst [vmem:[#allocation36_spill] sm:$0xff] %v14309_v50 }
 0xe71   :  { %v14243_v10 = vcvt.s32.f32 %v4834_v58  ;;  %v4631_v58 = vand.u32 65535, %v14192_v44  ;;  %v14325_v44 = vld [vmem:[%s15454_s8 + $0x160] sm:$0xff]  }
 0xe72   :  { %15464 = vst [vmem:[#allocation39_spill] sm:$0xff] %v14325_v44 }
 0xe73   :  { %4837 = vmin.xlane.f32.xlu1 %v14243_v10 }
 0xee2   :  { %v4604_v34 = vpop.xlane.xlu1 %4603 }
 0xee3   :  { %v4605_v62 = vcvt.f32.s32 %v4604_v34  ;;  %v14319_v34 = vld [vmem:[%s15454_s8 + $0x198] sm:$0xff]  }
 0xee4   :  { %15463 = vst [vmem:[#allocation38_spill] sm:$0xff] %v14319_v34 }
 0xee5   :  { %v14247_v13 = vadd.s32 %v4607_v9, %v4605_v62  ;;  %v4633_v62 = vcvt.s32.f32 %v4631_v58  ;;  %v14341_v58 = vld [vmem:[%s15454_s8 + $0x168] sm:$0xff]  }
 0xee6   :  { %15468 = vst [vmem:[#allocation43_spill] sm:$0xff] %v14341_v58 }
 0xee7   :  { %vm4646_vm11 = vcmp.eq.s32.totalorder %v13934_v1, %v14247_v13  ;;  %vm4648_vm14 = vcmp.eq.s32.totalorder %v13940_v25, %v14247_v13  ;;  %vm4645_vm9 = vcmp.eq.s32.totalorder %v13909_v21, %v14247_v13  ;;  %vm4647_vm10 = vcmp.eq.s32.totalorder %v13937_v33, %v14247_v13 }
 0xee8   :  { %vm10148_vm12 = vmpackc.low %vm4646_vm11, %vm4646_vm11  ;;  %vm4650_vm6 = vcmp.eq.s32.totalorder %v13946_v17, %v14247_v13  ;;  %vm4652_vm7 = vcmp.eq.s32.totalorder %v13952_v36, %v14247_v13 }
 0xee9   :  { %10149 = vmatprep.mubr.msk.bf16.mxu0 %vm10148_vm12, %v15344_v2  ;;  %vm10152_vm13 = vmpackc.low %vm4648_vm14, %vm4648_vm14 }
 0xeea   :  { %10153 = vmatprep.mubr.msk.bf16.mxu1 %vm10152_vm13, %v15344_v2  ;;  %vm10150_vm3 = vmpackc.low %vm4645_vm9, %vm4645_vm9  ;;  %vm4651_vm13 = vcmp.eq.s32.totalorder %v13949_v23, %v14247_v13 }
 0xeeb   :  { %10151 = vmatmul.mubr.msk.bf16.vlgmr.msra.gmra.mrb[56].mxu0 %vm10150_vm3, %v15344_v2  ;;  %vm10154_vm8 = vmpackc.low %vm4647_vm10, %vm4647_vm10  ;;  %vm4649_vm10 = vcmp.eq.s32.totalorder %v13943_v26, %v14247_v13  ;;  %v14423_v13 = vld [vmem:[%s15454_s8 + $0x248] sm:$0xff]  }
 0xeec   :  { %10155 = vmatmul.mubr.msk.bf16.vlgmr.msra.gmra.mrb[76].mxu1 %vm10154_vm8, %v15344_v2  ;;  %10643 = vmatpush3.bf16.msra.mxu0 %v14258_v28  ;;  %vm10156_vm11 = vmpackc.low %vm4650_vm6, %vm4650_vm6  ;;  %15480 = vst [vmem:[#allocation55_spill] sm:$0xff] %v14423_v13 }
 0xeed   :  { %10665 = vmatpush3.bf16.msra.mxu1 %v14262_v30  ;;  %10157 = vmatprep.mubr.msk.bf16.mxu0 %vm10156_vm11, %v15344_v2  ;;  %vm10160_vm14 = vmpackc.low %vm4652_vm7, %vm4652_vm7 }
 0xeee   :  { %10161 = vmatprep.mubr.msk.bf16.mxu1 %vm10160_vm14, %v15344_v2  ;;  %10644 = vmatprep.subr.bf16.mxu0 %v14270_v6  ;;  %v14328_v2 = vld [vmem:[%s15454_s8 + $0x1e0] sm:$0xff]   ;;  %vm10158_vm3 = vmpackc.low %vm4649_vm10, %vm4649_vm10 }
 0xeef   :  { %10666 = vmatprep.subr.bf16.mxu1 %v14274_v49  ;;  %15465 = vst [vmem:[#allocation40_spill] sm:$0xff] %v14328_v2  ;;  %vm10162_vm8 = vmpackc.low %vm4651_vm13, %vm4651_vm13 }
 0xef0   :  { %10645 = vmatpush3.bf16.msra.mxu0 %v14279_v3 }
 0xef1   :  { %10667 = vmatpush3.bf16.msra.mxu1 %v14284_v59  ;;  %10646 = vmatprep.subr.bf16.mxu0 %v14287_v61 }
 0xef2   :  { %10668 = vmatprep.subr.bf16.mxu1 %v14292_v35  ;;  %v14378_v35 = vld [vmem:[%s15454_s8 + $0x178] sm:$0xff]  }
 0xef4   :  { %10647 = vmatpush3.bf16.msra.mxu0 %v14297_v24 }
 0xef5   :  { %10669 = vmatpush3.bf16.msra.mxu1 %v14302_v7  ;;  %10648 = vmatprep.subr.bf16.mxu0 %v14305_v18  ;;  %v14321_v9 = vpop.xlane.xlu1 %4635  ;;  %v14334_v7 = vld [vmem:[%s15454_s8 + $0x120] sm:$0xff]  }
 0xef6   :  { %10670 = vmatprep.subr.bf16.mxu1 %v14309_v50  ;;  %vm4637_vm9 = vcmp.eq.f32.partialorder %v14211_v42, %v14321_v9  ;;  %15466 = vst [vmem:[#allocation41_spill] sm:$0xff] %v14334_v7  ;;  %v14338_v50 = vld [vmem:[%s15454_s8 + $0x1a0] sm:$0xff]   ;;  %v14346_v42 = vld [vmem:[%s15454_s8 + $0x1e8] sm:$0xff]  }
 0xef7   :  { %v4638_v18 = vsel %vm4637_vm9, %v4633_v62, inf  ;;  %15467 = vst [vmem:[#allocation42_spill] sm:$0xff] %v14338_v50  ;;  %15469 = vst [vmem:[#allocation44_spill] sm:$0xff] %v14346_v42  ;;  %v14350_v62 = vld [vmem:[%s15454_s8 + $0x128] sm:$0xff]  }
 0xef8   :  { %10649 = vmatpush3.bf16.msra.mxu0 %v14314_v19  ;;  %4639 = vmin.xlane.f32.xlu0 %v4638_v18  ;;  %v14355_v18 = vld [vmem:[%s15454_s8 + $0x1a8] sm:$0xff]   ;;  %v14359_v19 = vld [vmem:[%s15454_s8 + $0x170] sm:$0xff]  }
 0xef9   :  { %10671 = vmatpush3.bf16.msra.mxu1 %v14319_v34  ;;  %10650 = vmatprep.subr.bf16.mxu0 %v14325_v44  ;;  %15470 = vst [vmem:[#allocation45_spill] sm:$0xff] %v14355_v18  ;;  %v4833_v34 = vand.u32 65535, %v14240_v51  ;;  %15471 = vst [vmem:[#allocation46_spill] sm:$0xff] %v14359_v19  ;;  %v14363_v44 = vld [vmem:[%s15454_s8 + $0x1f0] sm:$0xff]  }
 0xefa   :  { %10672 = vmatprep.subr.bf16.mxu1 %v14328_v2  ;;  %v4806_v2 = vpop.xlane.xlu0 %4805  ;;  %15472 = vst [vmem:[#allocation47_spill] sm:$0xff] %v14363_v44 }
 0xefb   :  { %v4835_v51 = vcvt.s32.f32 %v4833_v34  ;;  %v14388_v34 = vld [vmem:[%s15454_s8 + $0x138] sm:$0xff]  }
 0xefc   :  { %10651 = vmatpush3.bf16.msra.mxu0 %v14334_v7  ;;  %v4808_v7 = vcvt.f32.s32 %v14175_v52  ;;  %v14384_v52 = vld [vmem:[%s15454_s8 + $0x1f8] sm:$0xff]   ;;  %15474 = vst [vmem:[#allocation49_spill] sm:$0xff] %v14388_v34 }
 0xefd   :  { %10673 = vmatpush3.bf16.msra.mxu1 %v14338_v50  ;;  %10652 = vmatprep.subr.bf16.mxu0 %v14341_v58  ;;  %v14368_v50 = vld [vmem:[%s15454_s8 + $0x130] sm:$0xff]   ;;  %v4807_v58 = vcvt.f32.s32 %v4806_v2  ;;  %15473 = vst [vmem:[#allocation48_spill] sm:$0xff] %v14384_v52 }
 0xefe   :  { %10674 = vmatprep.subr.bf16.mxu1 %v14346_v42  ;;  %v14375_v42 = vld [vmem:[%s15454_s8 + $0x1b0] sm:$0xff]   ;;  %v4809_v2 = vshll.u32 %v4808_v7, 16  ;;  %v14402_v7 = vld [vmem:[%s15454_s8 + $0x2c0] sm:$0xff]  }
 0xeff   :  { %15477 = vst [vmem:[#allocation52_spill] sm:$0xff] %v14402_v7 }
 0xf00   :  { %10653 = vmatpush3.bf16.msra.mxu0 %v14350_v62  ;;  %v14370_v24 = vpop.xlane.xlu1 %4837 }
 0xf01   :  { %10675 = vmatpush3.bf16.msra.mxu1 %v14355_v18  ;;  %10654 = vmatprep.subr.bf16.mxu0 %v14359_v19  ;;  %vm4839_vm12 = vcmp.eq.f32.partialorder %v14243_v10, %v14370_v24  ;;  %v14390_v19 = vadd.s32 %v4809_v2, %v4807_v58  ;;  %v14395_v10 = vld [vmem:[%s15454_s8 + $0x1b8] sm:$0xff]   ;;  %v14410_v58 = vld [vmem:[%s15454_s8 + $0x200] sm:$0xff]   ;;  %v14427_v2 = vld [vmem:[%s15454_s8 + $0x2c8] sm:$0xff]  }
 0xf02   :  { %10676 = vmatprep.subr.bf16.mxu1 %v14363_v44  ;;  %v4840_v18 = vsel %vm4839_vm12, %v4835_v51, inf  ;;  %15475 = vst [vmem:[#allocation50_spill] sm:$0xff] %v14395_v10  ;;  %v14398_v44 = vld [vmem:[%s15454_s8 + $0x240] sm:$0xff]   ;;  %15478 = vst [vmem:[#allocation53_spill] sm:$0xff] %v14410_v58  ;;  %v15481_v51 = vmov 1.0|1.0  }
 0xf03   :  { %4841 = vmin.xlane.f32.xlu1 %v4840_v18  ;;  %15476 = vst [vmem:[#allocation51_spill] sm:$0xff] %v14398_v44  ;;  %vm4848_vm6 = vcmp.eq.s32.totalorder %v13934_v1, %v14390_v19  ;;  %v14417_v18 = vld [vmem:[%s15454_s8 + $0x280] sm:$0xff]   ;;  %vm4850_vm7 = vcmp.eq.s32.totalorder %v13940_v25, %v14390_v19  ;;  %15482 = vst [vmem:[#allocation56_spill] sm:$0xff] %v14427_v2  ;;  %vm4847_vm9 = vcmp.eq.s32.totalorder %v13909_v21, %v14390_v19 }
 0xf04   :  { %10655 = vmatpush3.bf16.msra.mxu0 %v14368_v50  ;;  %15479 = vst [vmem:[#allocation54_spill] sm:$0xff] %v14417_v18  ;;  %vm10164_vm11 = vmpackc.low %vm4848_vm6, %vm4848_vm6  ;;  %vm4849_vm12 = vcmp.eq.s32.totalorder %v13937_v33, %v14390_v19  ;;  %vm4852_vm10 = vcmp.eq.s32.totalorder %v13946_v17, %v14390_v19  ;;  %vm4854_vm6 = vcmp.eq.s32.totalorder %v13952_v36, %v14390_v19 }
 0xf05   :  { %10677 = vmatpush3.bf16.msra.mxu1 %v14375_v42  ;;  %10656 = vmatprep.subr.bf16.mxu0 %v14378_v35  ;;  %vm10168_vm14 = vmpackc.low %vm4850_vm7, %vm4850_vm7 }
 0xf06   :  { %10678 = vmatprep.subr.bf16.mxu1 %v14384_v52  ;;  %v14458_v52 = vld [vmem:[%s15454_s8 + $0x258] sm:$0xff]   ;;  %vm10166_vm13 = vmpackc.low %vm4847_vm9, %vm4847_vm9 }
 0xf07   :  { %15489 = vst [vmem:[#allocation63_spill] sm:$0xff] %v14458_v52  ;;  %vm10172_vm7 = vmpackc.low %vm4852_vm10, %vm4852_vm10 }
 0xf08   :  { %10657 = vmatpush3.bf16.msra.mxu0 %v14388_v34  ;;  %v14455_v34 = vld [vmem:[%s15454_s8 + $0x290] sm:$0xff]  }
 0xf09   :  { %10679 = vmatpush3.bf16.msra.mxu1 %v14395_v10  ;;  %10686 = vmatprep.subr.bf16.mxu0 %v14398_v44  ;;  %v14437_v44 = vld [vmem:[%s15454_s8 + $0x288] sm:$0xff]   ;;  %v14440_v10 = vld [vmem:[%s15454_s8 + $0x250] sm:$0xff]   ;;  %15488 = vst [vmem:[#allocation62_spill] sm:$0xff] %v14455_v34 }
 0xf0a   :  { %10708 = vmatprep.subr.bf16.mxu1 %v14402_v7  ;;  %v14432_v7 = vld [vmem:[%s15454_s8 + $0x208] sm:$0xff]   ;;  %15484 = vst [vmem:[#allocation58_spill] sm:$0xff] %v14437_v44  ;;  %15485 = vst [vmem:[#allocation59_spill] sm:$0xff] %v14440_v10 }
 0xf0b   :  { %10159 = vmatmul.mubr.msk.bf16.vlgmr.msra.gmra.mrb[60].mxu0 %vm10158_vm3, %v15481_v51  ;;  %15483 = vst [vmem:[#allocation57_spill] sm:$0xff] %v14432_v7  ;;  %vm10170_vm3 = vmpackc.low %vm4849_vm12, %vm4849_vm12 }
 0xf0c   :  { %10163 = vmatmul.mubr.msk.bf16.vlgmr.msra.gmra.mrb[80].mxu1 %vm10162_vm8, %v15481_v51  ;;  %10687 = vmatpush3.bf16.msra.mxu0 %v14410_v58  ;;  %v14445_v58 = vld [vmem:[%s15454_s8 + $0x2d0] sm:$0xff]   ;;  %vm10176_vm8 = vmpackc.low %vm4854_vm6, %vm4854_vm6 }
 0xf0d   :  { %10165 = vmatprep.mubr.msk.bf16.mxu0 %vm10164_vm11, %v15481_v51  ;;  %10709 = vmatpush3.bf16.msra.mxu1 %v14417_v18  ;;  %15486 = vst [vmem:[#allocation60_spill] sm:$0xff] %v14445_v58  ;;  %v14450_v18 = vld [vmem:[%s15454_s8 + $0x210] sm:$0xff]   ;;  %vm4851_vm11 = vcmp.eq.s32.totalorder %v13943_v26, %v14390_v19 }
 0xf0e   :  { %10169 = vmatprep.mubr.msk.bf16.mxu1 %vm10168_vm14, %v15481_v51  ;;  %10688 = vmatprep.subr.bf16.mxu0 %v14423_v13  ;;  %15487 = vst [vmem:[#allocation61_spill] sm:$0xff] %v14450_v18  ;;  %v14462_v13 = vld [vmem:[%s15454_s8 + $0x2d8] sm:$0xff]   ;;  %vm4853_vm14 = vcmp.eq.s32.totalorder %v13949_v23, %v14390_v19  ;;  %vm10174_vm9 = vmpackc.low %vm4851_vm11, %vm4851_vm11 }
 0xf0f   :  { %10710 = vmatprep.subr.bf16.mxu1 %v14427_v2  ;;  %15490 = vst [vmem:[#allocation64_spill] sm:$0xff] %v14462_v13  ;;  %v14526_v2 = vld [vmem:[%s15454_s8 + $0x2f8] sm:$0xff]   ;;  %vm10178_vm12 = vmpackc.low %vm4853_vm14, %vm4853_vm14 }
 0xf10   :  { %10689 = vmatpush3.bf16.msra.mxu0 %v14432_v7  ;;  %v14466_v7 = vld [vmem:[%s15454_s8 + $0x218] sm:$0xff]   ;;  %15506 = vst [vmem:[#allocation80_spill] sm:$0xff] %v14526_v2 }
 0xf11   :  { %10711 = vmatpush3.bf16.msra.mxu1 %v14437_v44  ;;  %10690 = vmatprep.subr.bf16.mxu0 %v14440_v10  ;;  %15491 = vst [vmem:[#allocation65_spill] sm:$0xff] %v14466_v7  ;;  %v14471_v10 = vld [vmem:[%s15454_s8 + $0x298] sm:$0xff]   ;;  %v14474_v44 = vld [vmem:[%s15454_s8 + $0x260] sm:$0xff]  }
 0xf12   :  { %10712 = vmatprep.subr.bf16.mxu1 %v14445_v58  ;;  %15492 = vst [vmem:[#allocation66_spill] sm:$0xff] %v14471_v10  ;;  %15493 = vst [vmem:[#allocation67_spill] sm:$0xff] %v14474_v44  ;;  %v14478_v58 = vld [vmem:[%s15454_s8 + $0x2e0] sm:$0xff]  }
 0xf13   :  { %15494 = vst [vmem:[#allocation68_spill] sm:$0xff] %v14478_v58 }
 0xf14   :  { %10691 = vmatpush3.bf16.msra.mxu0 %v14450_v18  ;;  %v14482_v18 = vld [vmem:[%s15454_s8 + $0x220] sm:$0xff]  }
 0xf15   :  { %10713 = vmatpush3.bf16.msra.mxu1 %v14455_v34  ;;  %10692 = vmatprep.subr.bf16.mxu0 %v14458_v52  ;;  %15495 = vst [vmem:[#allocation69_spill] sm:$0xff] %v14482_v18  ;;  %v14487_v52 = vld [vmem:[%s15454_s8 + $0x2a0] sm:$0xff]   ;;  %v14490_v34 = vld [vmem:[%s15454_s8 + $0x268] sm:$0xff]  }
 0xf16   :  { %10714 = vmatprep.subr.bf16.mxu1 %v14462_v13  ;;  %15496 = vst [vmem:[#allocation70_spill] sm:$0xff] %v14487_v52  ;;  %15497 = vst [vmem:[#allocation71_spill] sm:$0xff] %v14490_v34  ;;  %v14494_v13 = vld [vmem:[%s15454_s8 + $0x2e8] sm:$0xff]  }
 0xf17   :  { %15498 = vst [vmem:[#allocation72_spill] sm:$0xff] %v14494_v13  ;;  %v15566_v19 = vld [vmem:[#allocation64_spill] sm:$0xff] }
 0xf18   :  { %10693 = vmatpush3.bf16.msra.mxu0 %v14466_v7  ;;  %v14498_v7 = vld [vmem:[%s15454_s8 + $0x228] sm:$0xff]  }
 0xf19   :  { %10715 = vmatpush3.bf16.msra.mxu1 %v14471_v10  ;;  %10694 = vmatprep.subr.bf16.mxu0 %v14474_v44  ;;  %15499 = vst [vmem:[#allocation73_spill] sm:$0xff] %v14498_v7  ;;  %v14503_v44 = vld [vmem:[%s15454_s8 + $0x2a8] sm:$0xff]   ;;  %v14506_v10 = vld [vmem:[%s15454_s8 + $0x270] sm:$0xff]  }
 0xf1a   :  { %10716 = vmatprep.subr.bf16.mxu1 %v14478_v58  ;;  %15500 = vst [vmem:[#allocation74_spill] sm:$0xff] %v14503_v44  ;;  %15501 = vst [vmem:[#allocation75_spill] sm:$0xff] %v14506_v10  ;;  %v14510_v58 = vld [vmem:[%s15454_s8 + $0x2f0] sm:$0xff]  }
 0xf1b   :  { %15502 = vst [vmem:[#allocation76_spill] sm:$0xff] %v14510_v58 }
 0xf1c   :  { %10695 = vmatpush3.bf16.msra.mxu0 %v14482_v18  ;;  %v14514_v18 = vld [vmem:[%s15454_s8 + $0x230] sm:$0xff]  }
 0xf1d   :  { %10717 = vmatpush3.bf16.msra.mxu1 %v14487_v52  ;;  %10696 = vmatprep.subr.bf16.mxu0 %v14490_v34  ;;  %15503 = vst [vmem:[#allocation77_spill] sm:$0xff] %v14514_v18  ;;  %v14519_v34 = vld [vmem:[%s15454_s8 + $0x2b0] sm:$0xff]   ;;  %v14522_v52 = vld [vmem:[%s15454_s8 + $0x278] sm:$0xff]  }
 0xf1e   :  { %10718 = vmatprep.subr.bf16.mxu1 %v14494_v13  ;;  %15504 = vst [vmem:[#allocation78_spill] sm:$0xff] %v14519_v34  ;;  %15505 = vst [vmem:[#allocation79_spill] sm:$0xff] %v14522_v52  ;;  %v14530_v13 = vld [vmem:[%s15454_s8 + $0x238] sm:$0xff]  }
 0xf1f   :  { %15507 = vst [vmem:[#allocation81_spill] sm:$0xff] %v14530_v13 }
 0xf20   :  { %10697 = vmatpush3.bf16.msra.mxu0 %v14498_v7  ;;  %v14598_v7 = vld [vmem:[%s15454_s8 + $0x358] sm:$0xff]  }
 0xf21   :  { %10719 = vmatpush3.bf16.msra.mxu1 %v14503_v44  ;;  %10698 = vmatprep.subr.bf16.mxu0 %v14506_v10  ;;  %v14535_v10 = vld [vmem:[%s15454_s8 + $0x2b8] sm:$0xff]   ;;  %v14538_v44 = vld [vmem:[%s15454_s8 + $0x340] sm:$0xff]   ;;  %15521 = vst [vmem:[#allocation95_spill] sm:$0xff] %v14598_v7 }
 0xf22   :  { %10720 = vmatprep.subr.bf16.mxu1 %v14510_v58  ;;  %15508 = vst [vmem:[#allocation82_spill] sm:$0xff] %v14535_v10  ;;  %15509 = vst [vmem:[#allocation83_spill] sm:$0xff] %v14538_v44  ;;  %v14542_v58 = vld [vmem:[%s15454_s8 + $0x3c0] sm:$0xff]  }
 0xf23   :  { %15510 = vst [vmem:[#allocation84_spill] sm:$0xff] %v14542_v58 }
 0xf24   :  { %10699 = vmatpush3.bf16.msra.mxu0 %v14514_v18  ;;  %v14595_v18 = vld [vmem:[%s15454_s8 + $0x390] sm:$0xff]  }
 0xf25   :  { %10721 = vmatpush3.bf16.msra.mxu1 %v14519_v34  ;;  %10700 = vmatprep.subr.bf16.mxu0 %v14522_v52  ;;  %v14550_v52 = vld [vmem:[%s15454_s8 + $0x300] sm:$0xff]   ;;  %v14580_v34 = vld [vmem:[%s15454_s8 + $0x350] sm:$0xff]   ;;  %15520 = vst [vmem:[#allocation94_spill] sm:$0xff] %v14595_v18 }
 0xf26   :  { %10722 = vmatprep.subr.bf16.mxu1 %v14526_v2  ;;  %15511 = vst [vmem:[#allocation85_spill] sm:$0xff] %v14550_v52  ;;  %v14557_v2 = vld [vmem:[%s15454_s8 + $0x380] sm:$0xff]   ;;  %15517 = vst [vmem:[#allocation91_spill] sm:$0xff] %v14580_v34 }
 0xf27   :  { %15512 = vst [vmem:[#allocation86_spill] sm:$0xff] %v14557_v2 }
 0xf28   :  { %10701 = vmatpush3.bf16.msra.mxu0 %v14530_v13  ;;  %v14563_v13 = vld [vmem:[%s15454_s8 + $0x348] sm:$0xff]  }
 0xf29   :  { %10723 = vmatpush3.bf16.msra.mxu1 %v14535_v10  ;;  %10730 = vmatprep.subr.bf16.mxu0 %v14538_v44  ;;  %15513 = vst [vmem:[#allocation87_spill] sm:$0xff] %v14563_v13  ;;  %v14567_v44 = vld [vmem:[%s15454_s8 + $0x3c8] sm:$0xff]  }
 0xf2a   :  { %10752 = vmatprep.subr.bf16.mxu1 %v14542_v58  ;;  %15514 = vst [vmem:[#allocation88_spill] sm:$0xff] %v14567_v44  ;;  %v14572_v58 = vld [vmem:[%s15454_s8 + $0x308] sm:$0xff]  }
 0xf2b   :  { %10167 = vmatmul.mubr.msk.bf16.vlgmr.msra.gmra.mrb[64].mxu0 %vm10166_vm13, %v15481_v51  ;;  %15515 = vst [vmem:[#allocation89_spill] sm:$0xff] %v14572_v58  ;;  %v14577_v10 = vld [vmem:[%s15454_s8 + $0x388] sm:$0xff]  }
 0xf2c   :  { %10171 = vmatmul.mubr.msk.bf16.vlgmr.msra.gmra.mrb[84].mxu1 %vm10170_vm3, %v15481_v51  ;;  %10731 = vmatpush3.bf16.msra.mxu0 %v14550_v52  ;;  %15516 = vst [vmem:[#allocation90_spill] sm:$0xff] %v14577_v10  ;;  %v14585_v52 = vld [vmem:[%s15454_s8 + $0x3d0] sm:$0xff]  }
 0xf2d   :  { %10173 = vmatprep.mubr.msk.bf16.mxu0 %vm10172_vm7, %v15481_v51  ;;  %10753 = vmatpush3.bf16.msra.mxu1 %v14557_v2  ;;  %15518 = vst [vmem:[#allocation92_spill] sm:$0xff] %v14585_v52  ;;  %v14590_v2 = vld [vmem:[%s15454_s8 + $0x310] sm:$0xff]  }
 0xf2e   :  { %10177 = vmatprep.mubr.msk.bf16.mxu1 %vm10176_vm8, %v15481_v51  ;;  %10732 = vmatprep.subr.bf16.mxu0 %v14563_v13  ;;  %15519 = vst [vmem:[#allocation93_spill] sm:$0xff] %v14590_v2  ;;  %v14602_v13 = vld [vmem:[%s15454_s8 + $0x3d8] sm:$0xff]  }
 0xf2f   :  { %10754 = vmatprep.subr.bf16.mxu1 %v14567_v44  ;;  %15522 = vst [vmem:[#allocation96_spill] sm:$0xff] %v14602_v13  ;;  %v14654_v44 = vld [vmem:[%s15454_s8 + $0x330] sm:$0xff]  }
 0xf30   :  { %10733 = vmatpush3.bf16.msra.mxu0 %v14572_v58  ;;  %v14606_v58 = vld [vmem:[%s15454_s8 + $0x318] sm:$0xff]  }
 0xf31   :  { %10755 = vmatpush3.bf16.msra.mxu1 %v14577_v10  ;;  %10734 = vmatprep.subr.bf16.mxu0 %v14580_v34  ;;  %15523 = vst [vmem:[#allocation97_spill] sm:$0xff] %v14606_v58  ;;  %v14611_v34 = vld [vmem:[%s15454_s8 + $0x398] sm:$0xff]   ;;  %v14614_v10 = vld [vmem:[%s15454_s8 + $0x360] sm:$0xff]  }
 0xf32   :  { %10756 = vmatprep.subr.bf16.mxu1 %v14585_v52  ;;  %15524 = vst [vmem:[#allocation98_spill] sm:$0xff] %v14611_v34  ;;  %15525 = vst [vmem:[#allocation99_spill] sm:$0xff] %v14614_v10  ;;  %v14618_v52 = vld [vmem:[%s15454_s8 + $0x3e0] sm:$0xff]  }
 0xf33   :  { %15526 = vst [vmem:[#allocation100_spill] sm:$0xff] %v14618_v52 }
 0xf34   :  { %10735 = vmatpush3.bf16.msra.mxu0 %v14590_v2  ;;  %v14622_v2 = vld [vmem:[%s15454_s8 + $0x320] sm:$0xff]  }
 0xf35   :  { %10757 = vmatpush3.bf16.msra.mxu1 %v14595_v18  ;;  %10736 = vmatprep.subr.bf16.mxu0 %v14598_v7  ;;  %15527 = vst [vmem:[#allocation101_spill] sm:$0xff] %v14622_v2  ;;  %v14627_v7 = vld [vmem:[%s15454_s8 + $0x3a0] sm:$0xff]   ;;  %v14630_v18 = vld [vmem:[%s15454_s8 + $0x368] sm:$0xff]  }
 0xf36   :  { %10758 = vmatprep.subr.bf16.mxu1 %v14602_v13  ;;  %15528 = vst [vmem:[#allocation102_spill] sm:$0xff] %v14627_v7  ;;  %15529 = vst [vmem:[#allocation103_spill] sm:$0xff] %v14630_v18  ;;  %v14634_v13 = vld [vmem:[%s15454_s8 + $0x3e8] sm:$0xff]  }
 0xf37   :  { %15530 = vst [vmem:[#allocation104_spill] sm:$0xff] %v14634_v13 }
 0xf38   :  { %10737 = vmatpush3.bf16.msra.mxu0 %v14606_v58  ;;  %v14638_v58 = vld [vmem:[%s15454_s8 + $0x328] sm:$0xff]  }
 0xf39   :  { %10759 = vmatpush3.bf16.msra.mxu1 %v14611_v34  ;;  %10738 = vmatprep.subr.bf16.mxu0 %v14614_v10  ;;  %15531 = vst [vmem:[#allocation105_spill] sm:$0xff] %v14638_v58  ;;  %v14643_v10 = vld [vmem:[%s15454_s8 + $0x3a8] sm:$0xff]   ;;  %v14646_v34 = vld [vmem:[%s15454_s8 + $0x370] sm:$0xff]  }
 0xf3a   :  { %10760 = vmatprep.subr.bf16.mxu1 %v14618_v52  ;;  %v14650_v52 = vld [vmem:[%s15454_s8 + $0x3f0] sm:$0xff]  }
 0xf3c   :  { %10739 = vmatpush3.bf16.msra.mxu0 %v14622_v2  ;;  %v14666_v2 = vld [vmem:[%s15454_s8 + $0x3f8] sm:$0xff]  }
 0xf3d   :  { %10761 = vmatpush3.bf16.msra.mxu1 %v14627_v7  ;;  %10740 = vmatprep.subr.bf16.mxu0 %v14630_v18  ;;  %v14659_v7 = vld [vmem:[%s15454_s8 + $0x3b0] sm:$0xff]   ;;  %v14662_v18 = vld [vmem:[%s15454_s8 + $0x378] sm:$0xff]  }
 0xf3e   :  { %10762 = vmatprep.subr.bf16.mxu1 %v14634_v13  ;;  %v14670_v13 = vld [vmem:[%s15454_s8 + $0x338] sm:$0xff]  }
 0xf40   :  { %10741 = vmatpush3.bf16.msra.mxu0 %v14638_v58  ;;  %v14675_v58 = vld [vmem:[%s15454_s8 + $0x3b8] sm:$0xff]  }
 0xf41   :  { %10763 = vmatpush3.bf16.msra.mxu1 %v14643_v10  ;;  %10742 = vmatprep.subr.bf16.mxu0 %v14646_v34 }
 0xf42   :  { %10764 = vmatprep.subr.bf16.mxu1 %v14650_v52 }
 0xf44   :  { %10743 = vmatpush3.bf16.msra.mxu0 %v14654_v44 }
 0xf45   :  { %10765 = vmatpush3.bf16.msra.mxu1 %v14659_v7  ;;  %10744 = vmatprep.subr.bf16.mxu0 %v14662_v18 }
 0xf46   :  { %10766 = vmatprep.subr.bf16.mxu1 %v14666_v2 }
 0xf48   :  { %10745 = vmatpush3.bf16.msra.mxu0 %v14670_v13 }
 0xf49   :  { %10767 = vmatpush3.bf16.msra.mxu1 %v14675_v58  ;;  %10774 = vmatprep.subr.bf16.mxu0 %v14041_v0  ;;  %v15532_v0 = vld [vmem:[#allocation30_spill] sm:$0xff] }
 0xf4a   :  { %10796 = vmatprep.subr.bf16.mxu1 %v14044_v4  ;;  %v15533_v4 = vld [vmem:[#allocation31_spill] sm:$0xff] }
 0xf4b   :  { %10175 = vmatmul.mubr.msk.bf16.vlgmr.msra.gmra.mrb[68].mxu0 %vm10174_vm9, %v15481_v51 }
 0xf4c   :  { %10179 = vmatmul.mubr.msk.bf16.vlgmr.msra.gmra.mrb[88].mxu1 %vm10178_vm12, %v15481_v51  ;;  %10775 = vmatpush3.bf16.msra.mxu0 %v14047_v46  ;;  %v4642_v46 = vcvt.f32.s32 %v14321_v9  ;;  %v15567_v9 = vld [vmem:[#allocation65_spill] sm:$0xff] }
 0xf4d   :  { %10797 = vmatpush3.bf16.msra.mxu1 %v14050_v53  ;;  %10776 = vmatprep.subr.bf16.mxu0 %v14053_v32 }
 0xf4e   :  { %10798 = vmatprep.subr.bf16.mxu1 %v14056_v11  ;;  %v4643_v32 = vshll.u32 %v4642_v46, 16 }
 0xf50   :  { %10777 = vmatpush3.bf16.msra.mxu0 %v14063_v41 }
 0xf51   :  { %10799 = vmatpush3.bf16.msra.mxu1 %v14066_v16  ;;  %10778 = vmatprep.subr.bf16.mxu0 %v14071_v54  ;;  %v15534_v16 = vld [vmem:[#allocation32_spill] sm:$0xff]  ;;  %v15535_v54 = vld [vmem:[#allocation33_spill] sm:$0xff] }
 0xf52   :  { %10800 = vmatprep.subr.bf16.mxu1 %v14074_v47  ;;  %v15536_v47 = vld [vmem:[#allocation34_spill] sm:$0xff] }
 0xf54   :  { %10779 = vmatpush3.bf16.msra.mxu0 %v14079_v48  ;;  %v15537_v48 = vld [vmem:[#allocation35_spill] sm:$0xff] }
 0xf55   :  { %10801 = vmatpush3.bf16.msra.mxu1 %v14082_v55  ;;  %10780 = vmatprep.subr.bf16.mxu0 %v14087_v5  ;;  %v15538_v55 = vld [vmem:[#allocation36_spill] sm:$0xff]  ;;  %v15539_v5 = vld [vmem:[#allocation37_spill] sm:$0xff] }
 0xf56   :  { %10802 = vmatprep.subr.bf16.mxu1 %v14090_v8  ;;  %v15540_v8 = vld [vmem:[#allocation38_spill] sm:$0xff] }
 0xf58   :  { %10781 = vmatpush3.bf16.msra.mxu0 %v14095_v20  ;;  %v15541_v20 = vld [vmem:[#allocation39_spill] sm:$0xff] }
 0xf59   :  { %10803 = vmatpush3.bf16.msra.mxu1 %v14098_v60  ;;  %10782 = vmatprep.subr.bf16.mxu0 %v14103_v56  ;;  %v15542_v60 = vld [vmem:[#allocation40_spill] sm:$0xff]  ;;  %v15543_v56 = vld [vmem:[#allocation41_spill] sm:$0xff] }
 0xf5a   :  { %10804 = vmatprep.subr.bf16.mxu1 %v14106_v14  ;;  %v15544_v14 = vld [vmem:[#allocation42_spill] sm:$0xff] }
 0xf5c   :  { %10783 = vmatpush3.bf16.msra.mxu0 %v14111_v45  ;;  %v15545_v45 = vld [vmem:[#allocation43_spill] sm:$0xff] }
 0xf5d   :  { %10805 = vmatpush3.bf16.msra.mxu1 %v14114_v29  ;;  %10784 = vmatprep.subr.bf16.mxu0 %v14119_v12  ;;  %v15546_v12 = vld [vmem:[#allocation44_spill] sm:$0xff] }
 0xf5e   :  { %10806 = vmatprep.subr.bf16.mxu1 %v14122_v31  ;;  %v4844_v31 = vcvt.f32.s32 %v14370_v24  ;;  %v15564_v24 = vld [vmem:[#allocation62_spill] sm:$0xff] }
 0xf60   :  { %10785 = vmatpush3.bf16.msra.mxu0 %v14127_v15 }
 0xf61   :  { %10807 = vmatpush3.bf16.msra.mxu1 %v14130_v40  ;;  %10786 = vmatprep.subr.bf16.mxu0 %v14135_v63  ;;  %v15547_v40 = vld [vmem:[#allocation45_spill] sm:$0xff]  ;;  %v15548_v63 = vld [vmem:[#allocation46_spill] sm:$0xff] }
 0xf62   :  { %10808 = vmatprep.subr.bf16.mxu1 %v14138_v57  ;;  %v15549_v57 = vld [vmem:[#allocation47_spill] sm:$0xff] }
 0xf64   :  { %10787 = vmatpush3.bf16.msra.mxu0 %v15532_v0  ;;  %v15570_v0 = vld [vmem:[#allocation68_spill] sm:$0xff] }
 0xf65   :  { %10809 = vmatpush3.bf16.msra.mxu1 %v15533_v4  ;;  %10788 = vmatprep.subr.bf16.mxu0 %v14202_v39  ;;  %v4845_v39 = vshll.u32 %v4844_v31, 16  ;;  %v15580_v31 = vld [vmem:[#allocation78_spill] sm:$0xff] }
 0xf66   :  { %10810 = vmatprep.subr.bf16.mxu1 %v14205_v38 }
 0xf68   :  { %10789 = vmatpush3.bf16.msra.mxu0 %v14220_v22  ;;  %v15550_v22 = vld [vmem:[#allocation48_spill] sm:$0xff] }
 0xf69   :  { %10811 = vmatpush3.bf16.msra.mxu1 %v14223_v27  ;;  %10818 = vmatprep.subr.bf16.mxu0 %v14231_v37  ;;  %v15551_v27 = vld [vmem:[#allocation49_spill] sm:$0xff]  ;;  %v15552_v37 = vld [vmem:[#allocation50_spill] sm:$0xff] }
 0xf6a   :  { %10840 = vmatprep.subr.bf16.mxu1 %v14234_v43  ;;  %v15553_v43 = vld [vmem:[#allocation51_spill] sm:$0xff] }
 0xf85   :  { %v4640_v53 = vpop.xlane.xlu0 %4639 }
 0xf86   :  { %v4641_v11 = vcvt.f32.s32 %v4640_v53 }
 0xf88   :  { %v4644_v41 = vadd.s32 %v4643_v32, %v4641_v11  ;;  %v15571_v32 = vld [vmem:[#allocation69_spill] sm:$0xff] }
 0xf8a   :  { %vm4654_vm10 = vcmp.eq.s32.totalorder %v13934_v1, %v4644_v41  ;;  %vm4656_vm13 = vcmp.eq.s32.totalorder %v13940_v25, %v4644_v41  ;;  %vm4653_vm6 = vcmp.eq.s32.totalorder %v13909_v21, %v4644_v41  ;;  %vm4655_vm7 = vcmp.eq.s32.totalorder %v13937_v33, %v4644_v41 }
 0xf8b   :  { %vm10180_vm3 = vmpackc.low %vm4654_vm10, %vm4654_vm10  ;;  %vm4658_vm11 = vcmp.eq.s32.totalorder %v13946_v17, %v4644_v41  ;;  %vm4660_vm9 = vcmp.eq.s32.totalorder %v13952_v36, %v4644_v41 }
 0xf8c   :  { %10181 = vmatprep.mubr.msk.bf16.mxu0 %vm10180_vm3, %v15481_v51  ;;  %vm10184_vm8 = vmpackc.low %vm4656_vm13, %vm4656_vm13  ;;  %vm4659_vm3 = vcmp.eq.s32.totalorder %v13949_v23, %v4644_v41 }
 0xf8d   :  { %10185 = vmatprep.mubr.msk.bf16.mxu1 %vm10184_vm8, %v15481_v51  ;;  %vm10182_vm14 = vmpackc.low %vm4653_vm6, %vm4653_vm6  ;;  %vm4657_vm6 = vcmp.eq.s32.totalorder %v13943_v26, %v4644_v41 }
 0xf8e   :  { %10183 = vmatmul.mubr.msk.bf16.vlgmr.msra.gmra.mrb[72].mxu0 %vm10182_vm14, %v15481_v51  ;;  %vm10186_vm12 = vmpackc.low %vm4655_vm7, %vm4655_vm7 }
 0xf8f   :  { %10187 = vmatmul.mubr.msk.bf16.vlgmr.msra.gmra.mrb[92].mxu1 %vm10186_vm12, %v15481_v51  ;;  %10819 = vmatpush3.bf16.msra.mxu0 %v14258_v28  ;;  %vm10188_vm10 = vmpackc.low %vm4658_vm11, %vm4658_vm11  ;;  %v15554_v28 = vld [vmem:[#allocation52_spill] sm:$0xff] }
 0xf90   :  { %10841 = vmatpush3.bf16.msra.mxu1 %v14262_v30  ;;  %10189 = vmatprep.mubr.msk.bf16.mxu0 %vm10188_vm10, %v15481_v51  ;;  %vm10192_vm13 = vmpackc.low %vm4660_vm9, %vm4660_vm9  ;;  %v4842_v29 = vpop.xlane.xlu1 %4841  ;;  %v15555_v30 = vld [vmem:[#allocation53_spill] sm:$0xff] }
 0xf91   :  { %10193 = vmatprep.mubr.msk.bf16.mxu1 %vm10192_vm13, %v15481_v51  ;;  %10820 = vmatprep.subr.bf16.mxu0 %v14270_v6  ;;  %v4843_v15 = vcvt.f32.s32 %v4842_v29  ;;  %vm10190_vm8 = vmpackc.low %vm4657_vm6, %vm4657_vm6  ;;  %v15556_v6 = vld [vmem:[#allocation54_spill] sm:$0xff]  ;;  %v15578_v29 = vld [vmem:[#allocation76_spill] sm:$0xff] }
 0xf92   :  { %10842 = vmatprep.subr.bf16.mxu1 %v14274_v49  ;;  %vm10194_vm14 = vmpackc.low %vm4659_vm3, %vm4659_vm3  ;;  %v15558_v49 = vld [vmem:[#allocation56_spill] sm:$0xff] }
 0xf93   :  { %10821 = vmatpush3.bf16.msra.mxu0 %v14279_v3  ;;  %v14759_v38 = vadd.s32 %v4845_v39, %v4843_v15  ;;  %v15560_v3 = vld [vmem:[#allocation58_spill] sm:$0xff]  ;;  %v15581_v15 = vld [vmem:[#allocation79_spill] sm:$0xff] }
 0xf94   :  { %10843 = vmatpush3.bf16.msra.mxu1 %v14284_v59  ;;  %10822 = vmatprep.subr.bf16.mxu0 %v14287_v61  ;;  %v15561_v59 = vld [vmem:[#allocation59_spill] sm:$0xff]  ;;  %v15562_v61 = vld [vmem:[#allocation60_spill] sm:$0xff] }
 0xf95   :  { %10844 = vmatprep.subr.bf16.mxu1 %v15534_v16  ;;  %vm4856_vm7 = vcmp.eq.s32.totalorder %v13934_v1, %v14759_v38  ;;  %vm4858_vm11 = vcmp.eq.s32.totalorder %v13940_v25, %v14759_v38  ;;  %v15557_v1 = vld [vmem:[#allocation55_spill] sm:$0xff]  ;;  %v15559_v25 = vld [vmem:[#allocation57_spill] sm:$0xff]  ;;  %vm4855_vm10 = vcmp.eq.s32.totalorder %v13909_v21, %v14759_v38  ;;  %vm4857_vm13 = vcmp.eq.s32.totalorder %v13937_v33, %v14759_v38  ;;  %v15588_v33 = vld [vmem:[#allocation86_spill] sm:$0xff] }
 0xf96   :  { %vm10196_vm9 = vmpackc.low %vm4856_vm7, %vm4856_vm7  ;;  %v15585_v39 = vld [vmem:[#allocation83_spill] sm:$0xff]  ;;  %vm4860_vm6 = vcmp.eq.s32.totalorder %v13946_v17, %v14759_v38  ;;  %vm4862_vm7 = vcmp.eq.s32.totalorder %v13952_v36, %v14759_v38  ;;  %v15587_v21 = vld [vmem:[#allocation85_spill] sm:$0xff] }
 0xf97   :  { %10823 = vmatpush3.bf16.msra.mxu0 %v15535_v54  ;;  %vm10200_vm12 = vmpackc.low %vm4858_vm11, %vm4858_vm11  ;;  %v15572_v54 = vld [vmem:[#allocation70_spill] sm:$0xff]  ;;  %v15589_v17 = vld [vmem:[#allocation87_spill] sm:$0xff] }
 0xf98   :  { %10845 = vmatpush3.bf16.msra.mxu1 %v15536_v47  ;;  %10824 = vmatprep.subr.bf16.mxu0 %v15537_v48  ;;  %v15573_v48 = vld [vmem:[#allocation71_spill] sm:$0xff]  ;;  %vm10198_vm3 = vmpackc.low %vm4855_vm10, %vm4855_vm10  ;;  %v15591_v36 = vld [vmem:[#allocation89_spill] sm:$0xff]  ;;  %vm6608_vm10 = vcmask 15360  }
 0xf99   :  { %10846 = vmatprep.subr.bf16.mxu1 %v15538_v55  ;;  %vm10204_vm11 = vmpackc.low %vm4860_vm6, %vm4860_vm6 }
 0xf9b   :  { %10825 = vmatpush3.bf16.msra.mxu0 %v15539_v5 }
 0xf9c   :  { %10847 = vmatpush3.bf16.msra.mxu1 %v15540_v8  ;;  %10826 = vmatprep.subr.bf16.mxu0 %v15541_v20  ;;  %v15574_v8 = vld [vmem:[#allocation72_spill] sm:$0xff] }
 0xf9d   :  { %10848 = vmatprep.subr.bf16.mxu1 %v15542_v60 }
 0xf9f   :  { %10827 = vmatpush3.bf16.msra.mxu0 %v15543_v56  ;;  %v15575_v56 = vld [vmem:[#allocation73_spill] sm:$0xff] }
 0xfa0   :  { %10849 = vmatpush3.bf16.msra.mxu1 %v15544_v14  ;;  %10828 = vmatprep.subr.bf16.mxu0 %v15545_v45  ;;  %v15576_v14 = vld [vmem:[#allocation74_spill] sm:$0xff]  ;;  %v15577_v45 = vld [vmem:[#allocation75_spill] sm:$0xff] }
 0xfa1   :  { %10850 = vmatprep.subr.bf16.mxu1 %v15546_v12  ;;  %v15579_v12 = vld [vmem:[#allocation77_spill] sm:$0xff] }
 0xfa3   :  { %10829 = vmatpush3.bf16.msra.mxu0 %v14350_v62  ;;  %v15569_v62 = vld [vmem:[#allocation67_spill] sm:$0xff] }
 0xfa4   :  { %10851 = vmatpush3.bf16.msra.mxu1 %v15547_v40  ;;  %10830 = vmatprep.subr.bf16.mxu0 %v15548_v63  ;;  %v15582_v40 = vld [vmem:[#allocation80_spill] sm:$0xff]  ;;  %v15583_v63 = vld [vmem:[#allocation81_spill] sm:$0xff] }
 0xfa5   :  { %10852 = vmatprep.subr.bf16.mxu1 %v15549_v57  ;;  %v15584_v57 = vld [vmem:[#allocation82_spill] sm:$0xff] }
 0xfa7   :  { %10831 = vmatpush3.bf16.msra.mxu0 %v14368_v50  ;;  %v15565_v50 = vld [vmem:[#allocation63_spill] sm:$0xff] }
 0xfa8   :  { %10853 = vmatpush3.bf16.msra.mxu1 %v14375_v42  ;;  %10832 = vmatprep.subr.bf16.mxu0 %v14378_v35  ;;  %v15563_v35 = vld [vmem:[#allocation61_spill] sm:$0xff]  ;;  %v15568_v42 = vld [vmem:[#allocation66_spill] sm:$0xff] }
 0xfa9   :  { %10854 = vmatprep.subr.bf16.mxu1 %v15550_v22  ;;  %v15586_v22 = vld [vmem:[#allocation84_spill] sm:$0xff] }
 0xfab   :  { %10833 = vmatpush3.bf16.msra.mxu0 %v15551_v27  ;;  %v15590_v27 = vld [vmem:[#allocation88_spill] sm:$0xff] }
 0xfac   :  { %10855 = vmatpush3.bf16.msra.mxu1 %v15552_v37  ;;  %10862 = vmatprep.subr.bf16.mxu0 %v15553_v43  ;;  %v15592_v37 = vld [vmem:[#allocation90_spill] sm:$0xff]  ;;  %v15593_v43 = vld [vmem:[#allocation91_spill] sm:$0xff] }
 0xfad   :  { %10884 = vmatprep.subr.bf16.mxu1 %v15554_v28  ;;  %v15594_v28 = vld [vmem:[#allocation92_spill] sm:$0xff] }
 0xfae   :  { %10191 = vmatmul.mubr.msk.bf16.vlgmr.msra.gmra.mrb[76].mxu0 %vm10190_vm8, %v15481_v51  ;;  %vm10202_vm8 = vmpackc.low %vm4857_vm13, %vm4857_vm13 }
 0xfaf   :  { %10195 = vmatmul.mubr.msk.bf16.vlgmr.msra.gmra.mrb[96].mxu1 %vm10194_vm14, %v15481_v51  ;;  %10863 = vmatpush3.bf16.msra.mxu0 %v15555_v30  ;;  %vm10208_vm14 = vmpackc.low %vm4862_vm7, %vm4862_vm7  ;;  %v15595_v30 = vld [vmem:[#allocation93_spill] sm:$0xff] }
 0xfb0   :  { %10197 = vmatprep.mubr.msk.bf16.mxu0 %vm10196_vm9, %v15481_v51  ;;  %10885 = vmatpush3.bf16.msra.mxu1 %v15556_v6  ;;  %v15596_v6 = vld [vmem:[#allocation94_spill] sm:$0xff]  ;;  %vm4859_vm9 = vcmp.eq.s32.totalorder %v13943_v26, %v14759_v38 }
 0xfb1   :  { %10201 = vmatprep.mubr.msk.bf16.mxu1 %vm10200_vm12, %v15481_v51  ;;  %10864 = vmatprep.subr.bf16.mxu0 %v15557_v1  ;;  %v15597_v1 = vld [vmem:[#allocation95_spill] sm:$0xff]  ;;  %vm4861_vm12 = vcmp.eq.s32.totalorder %v13949_v23, %v14759_v38  ;;  %vm10206_vm13 = vmpackc.low %vm4859_vm9, %vm4859_vm9 }
 0xfb2   :  { %10886 = vmatprep.subr.bf16.mxu1 %v15558_v49  ;;  %v15598_v49 = vld [vmem:[#allocation96_spill] sm:$0xff]  ;;  %vm10210_vm6 = vmpackc.low %vm4861_vm12, %vm4861_vm12 }
 0xfb3   :  { %10865 = vmatpush3.bf16.msra.mxu0 %v15559_v25  ;;  %v15599_v25 = vld [vmem:[#allocation97_spill] sm:$0xff] }
 0xfb4   :  { %10887 = vmatpush3.bf16.msra.mxu1 %v15560_v3  ;;  %10866 = vmatprep.subr.bf16.mxu0 %v15561_v59  ;;  %v15600_v3 = vld [vmem:[#allocation98_spill] sm:$0xff]  ;;  %v15601_v59 = vld [vmem:[#allocation99_spill] sm:$0xff] }
 0xfb5   :  { %10888 = vmatprep.subr.bf16.mxu1 %v15562_v61  ;;  %v15602_v61 = vld [vmem:[#allocation100_spill] sm:$0xff] }
 0xfb7   :  { %10867 = vmatpush3.bf16.msra.mxu0 %v15563_v35 }
 0xfb8   :  { %10889 = vmatpush3.bf16.msra.mxu1 %v15564_v24  ;;  %10868 = vmatprep.subr.bf16.mxu0 %v15565_v50 }
 0xfb9   :  { %10890 = vmatprep.subr.bf16.mxu1 %v15566_v19  ;;  %v15603_v19 = vld [vmem:[#allocation101_spill] sm:$0xff] }
 0xfbb   :  { %10869 = vmatpush3.bf16.msra.mxu0 %v15567_v9 }
 0xfbc   :  { %10891 = vmatpush3.bf16.msra.mxu1 %v15568_v42  ;;  %10870 = vmatprep.subr.bf16.mxu0 %v15569_v62 }
 0xfbd   :  { %10892 = vmatprep.subr.bf16.mxu1 %v15570_v0  ;;  %v15604_v0 = vld [vmem:[#allocation102_spill] sm:$0xff] }
 0xfbe   :  { %v10614_v4 = vpop.f32.mrb[56].mxu0 }
 0xfbf   :  { %v10636_v46 = vpop.f32.mrb[76].mxu1  ;;  %v10615_v53 = vpop.f32.mrb[57].mxu0  ;;  %10871 = vmatpush3.bf16.msra.mxu0 %v15571_v32 }
 0xfc0   :  { %v10616_v11 = vadd.f32 %v10615_v53, %v10614_v4  ;;  %v10637_v41 = vpop.f32.mrb[77].mxu1  ;;  %v10617_v16 = vpop.f32.mrb[58].mxu0  ;;  %10893 = vmatpush3.bf16.msra.mxu1 %v15572_v54  ;;  %10872 = vmatprep.subr.bf16.mxu0 %v15573_v48  ;;  %v15605_v53 = vld [vmem:[#allocation103_spill] sm:$0xff] }
 0xfc1   :  { %v10638_v47 = vadd.f32 %v10637_v41, %v10636_v46  ;;  %v10639_v55 = vpop.f32.mrb[78].mxu1  ;;  %v10618_v5 = vpop.f32.mrb[59].mxu0  ;;  %10894 = vmatprep.subr.bf16.mxu1 %v15574_v8  ;;  %v15607_v41 = vld [vmem:[#allocation104_spill] sm:$0xff] }
 0xfc2   :  { %v10640_v20 = vpop.f32.mrb[79].mxu1 }
 0xfc3   :  { %v6010_v60 = vadd.f32 %v10638_v47, %v10616_v11  ;;  %10873 = vmatpush3.bf16.msra.mxu0 %v15575_v56  ;;  %v15608_v47 = vld [vmem:[#allocation105_spill] sm:$0xff] }
 0xfc4   :  { %10895 = vmatpush3.bf16.msra.mxu1 %v15576_v14  ;;  %10874 = vmatprep.subr.bf16.mxu0 %v15577_v45 }
 0xfc5   :  { %10896 = vmatprep.subr.bf16.mxu1 %v15578_v29 }
 0xfc7   :  { %10875 = vmatpush3.bf16.msra.mxu0 %v15579_v12 }
 0xfc8   :  { %10897 = vmatpush3.bf16.msra.mxu1 %v15580_v31  ;;  %10876 = vmatprep.subr.bf16.mxu0 %v15581_v15 }
 0xfc9   :  { %10898 = vmatprep.subr.bf16.mxu1 %v15582_v40 }
 0xfcb   :  { %10877 = vmatpush3.bf16.msra.mxu0 %v15583_v63  ;;  %v14864_v63 = vld [vmem:[%s15606_s14 + $0x8] ss:$0 sps:$4 sm:$0xff]  }
 0xfcc   :  { %10899 = vmatpush3.bf16.msra.mxu1 %v15584_v57  ;;  %10906 = vmatprep.subr.bf16.mxu0 %v15585_v39  ;;  %v15609_v57 = vmov 0.0  }
 0xfcd   :  { %10928 = vmatprep.subr.bf16.mxu1 %v15586_v22 }
 0xfce   :  { %10199 = vmatmul.mubr.msk.bf16.vlgmr.msra.gmra.mrb[80].mxu0 %vm10198_vm3, %v15481_v51 }
 0xfcf   :  { %10203 = vmatmul.mubr.msk.bf16.vlgmr.msra.gmra.mrb[100].mxu1 %vm10202_vm8, %v15481_v51  ;;  %10907 = vmatpush3.bf16.msra.mxu0 %v15587_v21 }
 0xfd0   :  { %10205 = vmatprep.mubr.msk.bf16.mxu0 %vm10204_vm11, %v15481_v51  ;;  %10929 = vmatpush3.bf16.msra.mxu1 %v15588_v33 }
 0xfd1   :  { %10209 = vmatprep.mubr.msk.bf16.mxu1 %vm10208_vm14, %v15481_v51  ;;  %10908 = vmatprep.subr.bf16.mxu0 %v15589_v17 }
 0xfd2   :  { %10930 = vmatprep.subr.bf16.mxu1 %v15590_v27 }
 0xfd3   :  { %10909 = vmatpush3.bf16.msra.mxu0 %v15591_v36 }
 0xfd4   :  { %10931 = vmatpush3.bf16.msra.mxu1 %v15592_v37  ;;  %10910 = vmatprep.subr.bf16.mxu0 %v15593_v43 }
 0xfd5   :  { %10932 = vmatprep.subr.bf16.mxu1 %v15594_v28 }
 0xfd7   :  { %10911 = vmatpush3.bf16.msra.mxu0 %v15595_v30 }
 0xfd8   :  { %10933 = vmatpush3.bf16.msra.mxu1 %v15596_v6  ;;  %10912 = vmatprep.subr.bf16.mxu0 %v15597_v1 }
 0xfd9   :  { %10934 = vmatprep.subr.bf16.mxu1 %v15598_v49 }
 0xfdb   :  { %10913 = vmatpush3.bf16.msra.mxu0 %v15599_v25  ;;  %v12547_v25 = vld [vmem:[%s15610_s19 + $0x8] sm:$0xff]  }
 0xfdc   :  { %10935 = vmatpush3.bf16.msra.mxu1 %v15600_v3  ;;  %10914 = vmatprep.subr.bf16.mxu0 %v15601_v59 }
 0xfdd   :  { %10936 = vmatprep.subr.bf16.mxu1 %v15602_v61 }
 0xfde   :  { %v10658_v35 = vpop.f32.mrb[60].mxu0 }
 0xfdf   :  { %v10680_v24 = vpop.f32.mrb[80].mxu1  ;;  %v10659_v50 = vpop.f32.mrb[61].mxu0  ;;  %10915 = vmatpush3.bf16.msra.mxu0 %v15603_v19 }
 0xfe0   :  { %v10660_v9 = vadd.f32 %v10659_v50, %v10658_v35  ;;  %v10681_v42 = vpop.f32.mrb[81].mxu1  ;;  %v10661_v62 = vpop.f32.mrb[62].mxu0  ;;  %10937 = vmatpush3.bf16.msra.mxu1 %v15604_v0  ;;  %10916 = vmatprep.subr.bf16.mxu0 %v15605_v53 }
 0xfe1   :  { %v10682_v4 = vadd.f32 %v10681_v42, %v10680_v24  ;;  %v10683_v46 = vpop.f32.mrb[82].mxu1  ;;  %v10662_v32 = vpop.f32.mrb[63].mxu0  ;;  %10938 = vmatprep.subr.bf16.mxu1 %v15607_v41 }
 0xfe2   :  { %v6050_v11 = vadd.f32 %v10660_v9, %v6010_v60  ;;  %v10684_v16 = vpop.f32.mrb[83].mxu1 }
 0xfe3   :  { %10917 = vmatpush3.bf16.msra.mxu0 %v15608_v47 }
 0xfe4   :  { %v6090_v54 = vadd.f32 %v10682_v4, %v6050_v11  ;;  %10939 = vmatpush3.bf16.msra.mxu1 %v14643_v10  ;;  %10918 = vmatprep.subr.bf16.mxu0 %v14646_v34  ;;  %v12545_v10 = vld [vmem:[%s15606_s14] sm:$0xff]  }
 0xfe5   :  { %10940 = vmatprep.subr.bf16.mxu1 %v14650_v52 }
 0xfe7   :  { %10919 = vmatpush3.bf16.msra.mxu0 %v14654_v44 }
 0xfe8   :  { %10941 = vmatpush3.bf16.msra.mxu1 %v14659_v7  ;;  %10920 = vmatprep.subr.bf16.mxu0 %v14662_v18 }
 0xfe9   :  { %10942 = vmatprep.subr.bf16.mxu1 %v14666_v2 }
 0xfeb   :  { %10921 = vmatpush3.bf16.msra.mxu0 %v14670_v13 }
 0xfec   :  { %10943 = vmatpush3.bf16.msra.mxu1 %v14675_v58 }
 0xfee   :  { %10207 = vmatmul.mubr.msk.bf16.vlgmr.msra.gmra.mrb[84].mxu0 %vm10206_vm13, %v15481_v51 }
 0xfef   :  { %10211 = vmatmul.mubr.msk.bf16.vlgmr.msra.gmra.mrb[104].mxu1 %vm10210_vm6, %v15481_v51  ;;  %11467 = vmatprep.mubr.msk.bf16.mxu0 %vm6608_vm10, %v12545_v10 }
 0xff0   :  { %11473 = vmatprep.mubr.msk.bf16.mxu1 %vm6608_vm10, %v12545_v10 }
 0xffe   :  { %v10702_v26 = vpop.f32.mrb[64].mxu0 }
 0xfff   :  { %v10724_v44 = vpop.f32.mrb[84].mxu1  ;;  %v10703_v52 = vpop.f32.mrb[65].mxu0 }
0x1000   :  { %v10704_v34 = vadd.f32 %v10703_v52, %v10702_v26  ;;  %v10725_v7 = vpop.f32.mrb[85].mxu1  ;;  %v10705_v23 = vpop.f32.mrb[66].mxu0 }
0x1001   :  { %v10726_v18 = vadd.f32 %v10725_v7, %v10724_v44  ;;  %v10727_v13 = vpop.f32.mrb[86].mxu1  ;;  %v10706_v58 = vpop.f32.mrb[67].mxu0 }
0x1002   :  { %v6130_v2 = vadd.f32 %v10704_v34, %v6090_v54  ;;  %v10728_v38 = vpop.f32.mrb[87].mxu1 }
0x1004   :  { %v6170_v48 = vadd.f32 %v10726_v18, %v6130_v2  ;;  %v15611_v2 = vld [vmem:[#allocation28_spill] sm:$0xff] }
0x101e   :  { %v10746_v55 = vpop.f32.mrb[68].mxu0 }
0x101f   :  { %v10768_v5 = vpop.f32.mrb[88].mxu1  ;;  %v10747_v51 = vpop.f32.mrb[69].mxu0 }
0x1020   :  { %v10748_v8 = vadd.f32 %v10747_v51, %v10746_v55  ;;  %v10769_v20 = vpop.f32.mrb[89].mxu1  ;;  %v10749_v60 = vpop.f32.mrb[70].mxu0 }
0x1021   :  { %v10770_v56 = vadd.f32 %v10769_v20, %v10768_v5  ;;  %v10771_v14 = vpop.f32.mrb[90].mxu1  ;;  %v10750_v45 = vpop.f32.mrb[71].mxu0 }
0x1022   :  { %v6210_v29 = vadd.f32 %v10748_v8, %v6170_v48  ;;  %v10772_v12 = vpop.f32.mrb[91].mxu1  ;;  %v15612_v8 = vld [vmem:[#allocation29_spill] sm:$0xff] }
0x1024   :  { %v6250_v31 = vadd.f32 %v10770_v56, %v6210_v29 }
0x1026   :  { %v6598_v15 = vpack.c.bf16 %v6250_v31, %v6250_v31  ;;  %v6575_v38 = vsub.f32 %v6250_v31, %v15611_v2  ;;  %v12554_v2 = vld [vmem:[%s15615_s6 + $0x30] sm:$0xff]  }
0x1028   :  { %12269 = vmatprep.subr.msk.bf16.mxu0 %vm771_vm5, %v6598_v15  ;;  %v6616_v40 = vsel %vm771_vm5, %v6598_v15, 0  ;;  %v6577_v51 = vmul.f32 %v6575_v38, %v6575_v38  ;;  %v12555_v38 = vld [vmem:[%s15615_s6 + $0x38] sm:$0xff]  }
0x1029   :  { %11466 = vmatpush3.bf16.msra.mxu0 %v6616_v40 }
0x102a   :  { %11477 = vmatprep.subr.bf16.mxu0 %v15609_v57  ;;  %v6579_v45 = vsel %vm3039_vm2, %v6577_v51, 0.0 }
0x102c   :  { %11468 = vmatmul.mubr.msk.bf16.vlgmr.msra.gmra.mrb[88].mxu0 %vm6608_vm10, %v14864_v63 }
0x102d   :  { %11479 = vmatprep.mubr.msk.bf16.mxu0 %vm12736_vm1, %v15609_v57  ;;  %11478 = vmatpush3.bf16.msra.mxu0 %v12547_v25 }
0x102e   :  { %11489 = vmatprep.subr.bf16.mxu0 %v15609_v57 }
0x1061   :  { %v10790_v39 = vpop.f32.mrb[72].mxu0 }
0x1062   :  { %v10812_v22 = vpop.f32.mrb[92].mxu1  ;;  %v10791_v21 = vpop.f32.mrb[73].mxu0 }
0x1063   :  { %v10792_v33 = vadd.f32 %v10791_v21, %v10790_v39  ;;  %v10813_v17 = vpop.f32.mrb[93].mxu1  ;;  %v10793_v27 = vpop.f32.mrb[74].mxu0 }
0x1064   :  { %v10814_v36 = vadd.f32 %v10813_v17, %v10812_v22  ;;  %v10815_v37 = vpop.f32.mrb[94].mxu1  ;;  %v10794_v43 = vpop.f32.mrb[75].mxu0 }
0x1065   :  { %v10816_v28 = vpop.f32.mrb[95].mxu1  ;;  %v12548_v43 = vld [vmem:[%s15610_s19] sm:$0xff]  }
0x1066   :  { %v6330_v30 = vadd.f32 %v10814_v36, %v10792_v33 }
0x1081   :  { %v10834_v6 = vpop.f32.mrb[76].mxu0 }
0x1082   :  { %v10856_v1 = vpop.f32.mrb[96].mxu1  ;;  %v10835_v49 = vpop.f32.mrb[77].mxu0 }
0x1083   :  { %v10836_v3 = vadd.f32 %v10835_v49, %v10834_v6  ;;  %v10857_v59 = vpop.f32.mrb[97].mxu1  ;;  %v10837_v61 = vpop.f32.mrb[78].mxu0  ;;  %v12549_v6 = vld [vmem:[%s15610_s19 + $0x10] sm:$0xff]  }
0x1084   :  { %v10858_v35 = vadd.f32 %v10857_v59, %v10856_v1  ;;  %v10859_v24 = vpop.f32.mrb[98].mxu1  ;;  %v10838_v50 = vpop.f32.mrb[79].mxu0 }
0x1085   :  { %v6370_v19 = vadd.f32 %v10836_v3, %v6330_v30  ;;  %v10860_v9 = vpop.f32.mrb[99].mxu1  ;;  %v12550_v3 = vld [vmem:[%s15613_s24] sm:$0xff]  }
0x1087   :  { %v6410_v42 = vadd.f32 %v10858_v35, %v6370_v19 }
0x10a1   :  { %v10878_v62 = vpop.f32.mrb[80].mxu0 }
0x10a2   :  { %v10900_v0 = vpop.f32.mrb[100].mxu1  ;;  %v10879_v4 = vpop.f32.mrb[81].mxu0 }
0x10a3   :  { %v10880_v46 = vadd.f32 %v10879_v4, %v10878_v62  ;;  %v10901_v53 = vpop.f32.mrb[101].mxu1  ;;  %v10881_v32 = vpop.f32.mrb[82].mxu0 }
0x10a4   :  { %v10902_v11 = vadd.f32 %v10901_v53, %v10900_v0  ;;  %v10903_v41 = vpop.f32.mrb[102].mxu1  ;;  %v10882_v16 = vpop.f32.mrb[83].mxu0 }
0x10a5   :  { %v6450_v54 = vadd.f32 %v10880_v46, %v6410_v42  ;;  %v10904_v47 = vpop.f32.mrb[103].mxu1 }
0x10a7   :  { %v6490_v10 = vadd.f32 %v10902_v11, %v6450_v54  ;;  %v10231_v54 = vld [vmem:[%s15614_s30] ss:$0 sm:$0xff] }
0x10c1   :  { %v10922_v26 = vpop.f32.mrb[84].mxu0 }
0x10c2   :  { %v10944_v44 = vpop.f32.mrb[104].mxu1  ;;  %v10923_v52 = vpop.f32.mrb[85].mxu0 }
0x10c3   :  { %v10924_v34 = vadd.f32 %v10923_v52, %v10922_v26  ;;  %v10945_v7 = vpop.f32.mrb[105].mxu1  ;;  %v10925_v23 = vpop.f32.mrb[86].mxu0 }
0x10c4   :  { %v10946_v18 = vadd.f32 %v10945_v7, %v10944_v44  ;;  %v10947_v13 = vpop.f32.mrb[106].mxu1  ;;  %v10926_v58 = vpop.f32.mrb[87].mxu0 }
0x10c5   :  { %v6530_v48 = vadd.f32 %v10924_v34, %v6490_v10  ;;  %v10948_v55 = vpop.f32.mrb[107].mxu1  ;;  %v12552_v13 = vld [vmem:[%s15615_s6 + $0x20] sm:$0xff]   ;;  %v12553_v58 = vld [vmem:[%s15615_s6 + $0x28] sm:$0xff]  }
0x10c7   :  { %v6570_v5 = vadd.f32 %v10946_v18, %v6530_v48  ;;  %v12551_v18 = vld [vmem:[%s15613_s24 + $0x8] ss:$0 sps:$4 sm:$0xff]  }
0x10c9   :  { %v6576_v20 = vsub.f32 %v6570_v5, %v15612_v8  ;;  %v6599_v60 = vpack.c.bf16 %v6570_v5, %v6570_v5 }
0x10cb   :  { %v6578_v56 = vmul.f32 %v6576_v20, %v6576_v20  ;;  %12270 = vmatprep.subr.msk.bf16.mxu1 %vm771_vm5, %v6599_v60  ;;  %v6667_v14 = vsel %vm771_vm5, %v6599_v60, 0  ;;  %vm6593_vm5 = vcmask 0  }
0x10cc   :  { %11472 = vmatpush3.bf16.msra.mxu1 %v6667_v14 }
0x10cd   :  { %v6580_v29 = vsel %vm3039_vm2, %v6578_v56, 0.0  ;;  %11483 = vmatprep.subr.bf16.mxu1 %v15609_v57 }
0x10ce   :  { %v6581_v12 = vadd.f32 %v6580_v29, %v6579_v45 }
0x10cf   :  { %11474 = vmatmul.mubr.msk.bf16.vlgmr.msra.gmra.mrb[108].mxu1 %vm6608_vm10, %v14864_v63 }
0x10d0   :  { %v6582_v31 = vsel %vm3039_vm2, %v6581_v12, 0.0  ;;  %11484 = vmatpush3.bf16.msra.mxu1 %v12547_v25  ;;  %11485 = vmatprep.mubr.msk.bf16.mxu1 %vm12736_vm1, %v15609_v57  ;;  %vm7540_vm2 = vcmask 64512  }
0x10d1   :  { %v6583_v15 = vrot.slane %v6582_v31, 4  ;;  %11495 = vmatprep.subr.bf16.mxu1 %v15609_v57 }
0x10d3   :  { %v6584_v40 = vadd.f32 %v6583_v15, %v6582_v31 }
0x10d5   :  { %v6585_v39 = vrot.slane %v6584_v40, 2 }
0x10d7   :  { %v6586_v22 = vadd.f32 %v6585_v39, %v6584_v40 }
0x10d9   :  { %v6587_v21 = vrot.slane %v6586_v22, 1 }
0x10db   :  { %v6588_v33 = vadd.f32 %v6587_v21, %v6586_v22 }
0x10dd   :  { %v6589_v17 = vsel %vm3065_vm4, %v6588_v33, 0.0 }
0x10de   :  { %6590 = vadd.xlane.f32.xlu0 %v6589_v17 }
0x10ff   :  { %v11469_v63 = vpop.f32.mrb[88].mxu0 }
0x1100   :  { %v6652_v27 = vpop.f32.mrb[89].mxu0  ;;  %v6910_v1 = vpack.c.bf16 %v11469_v63, %v11469_v63 }
0x1101   :  { %v11470_v36 = vpop.f32.mrb[90].mxu0  ;;  %v6717_v30 = vpack.c.bf16 %v6652_v27, %v6652_v27 }
0x1102   :  { %v6655_v37 = vpop.f32.mrb[91].mxu0  ;;  %v12556_v36 = vld [vmem:[%s15615_s6] sm:$0xff]  }
0x1103   :  { %v6721_v28 = vpack.c.bf16 %v6655_v37, %v6655_v37 }
0x1105   :  { %11480 = vmatmul.mubr.msk.bf16.vlgmr.msra.gmra.mrb[92].mxu0 %vm3065_vm4, %v6721_v28  ;;  %v12558_v28 = vld [vmem:[%s15615_s6 + $0x10] sm:$0xff]  }
0x1106   :  { %11490 = vmatpush3.bf16.msra.mxu0 %v12548_v43  ;;  %11491 = vmatprep.mubr.msk.bf16.mxu0 %vm12736_vm1, %v15609_v57 }
0x1107   :  { %11501 = vmatprep.subr.bf16.mxu0 %v15609_v57 }
0x110d   :  { %11492 = vmatmul.mubr.msk.bf16.vlgmr.msra.gmra.mrb[96].mxu0 %vm3065_vm4, %v6717_v30  ;;  %v12559_v30 = vld [vmem:[%s15615_s6 + $0x18] sm:$0xff]  }
0x110e   :  { %11502 = vmatpush3.bf16.msra.mxu0 %v12549_v6  ;;  %11503 = vmatprep.mubr.msk.bf16.mxu0 %vm12736_vm1, %v15609_v57 }
0x1115   :  { %11504 = vmatmul.mubr.msk.bf16.vlgmr.msra.gmra.mrb[100].mxu0 %vm3065_vm4, %v6910_v1  ;;  %v12560_v1 = vld [vmem:[%s15615_s6 + $0x40] sm:$0xff]  }
0x1116   :  { %11515 = vmatprep.mubr.msk.bf16.mxu0 %vm2613_vm15, %v12550_v3 }
0x116b   :  { %v6591_v49 = vpop.xlane.xlu0 %6590 }
0x116c   :  { %v6592_v25 = vmul.f32 0.01953125, %v6591_v49  ;;  %v12561_v49 = vld [vmem:[%s15615_s6 + $0x48] sm:$0xff]  }
0x116e   :  { %6594 = vst.msk [vmem:[#allocation2] sm:$0x1] %vm6593_vm5, %v6592_v25  ;;  %v12562_v25 = vld [vmem:[%s15615_s6 + $0x50] sm:$0xff]  }
0x11a2   :  { %v11475_v59 = vpop.f32.mrb[108].mxu1 }
0x11a3   :  { %v6703_v61 = vpop.f32.mrb[109].mxu1  ;;  %v6911_v9 = vpack.c.bf16 %v11475_v59, %v11475_v59 }
0x11a4   :  { %v11476_v35 = vpop.f32.mrb[110].mxu1  ;;  %v6718_v19 = vpack.c.bf16 %v6703_v61, %v6703_v61 }
0x11a5   :  { %v6706_v24 = vpop.f32.mrb[111].mxu1 }
0x11a6   :  { %v6722_v50 = vpack.c.bf16 %v6706_v24, %v6706_v24 }
0x11a8   :  { %11486 = vmatmul.mubr.msk.bf16.vlgmr.msra.gmra.mrb[112].mxu1 %vm3065_vm4, %v6722_v50 }
0x11a9   :  { %11496 = vmatpush3.bf16.msra.mxu1 %v12548_v43  ;;  %11497 = vmatprep.mubr.msk.bf16.mxu1 %vm12736_vm1, %v15609_v57  ;;  %v12557_v43 = vld [vmem:[%s15615_s6 + $0x8] sm:$0xff]  }
0x11aa   :  { %11507 = vmatprep.subr.bf16.mxu1 %v15609_v57 }
0x11b0   :  { %11498 = vmatmul.mubr.msk.bf16.vlgmr.msra.gmra.mrb[116].mxu1 %vm3065_vm4, %v6718_v19 }
0x11b1   :  { %11508 = vmatpush3.bf16.msra.mxu1 %v12549_v6  ;;  %11509 = vmatprep.mubr.msk.bf16.mxu1 %vm12736_vm1, %v15609_v57 }
0x11b8   :  { %11510 = vmatmul.mubr.msk.bf16.vlgmr.msra.gmra.mrb[120].mxu1 %vm3065_vm4, %v6911_v9 }
0x11b9   :  { %11521 = vmatprep.mubr.msk.bf16.mxu1 %vm2613_vm15, %v12550_v3  ;;  %v12563_v3 = vld [vmem:[%s15615_s6 + $0x58] sm:$0xff]  }
0x11d8   :  { %v6769_v42 = vpop.f32.mrb[92].mxu0 }
0x11d9   :  { %v11481_v62 = vpop.f32.mrb[93].mxu0 }
0x11da   :  { %v6772_v0 = vpop.f32.mrb[94].mxu0 }
0x11db   :  { %v11482_v4 = vpop.f32.mrb[95].mxu0 }
0x11e0   :  { %v6861_v46 = vpop.f32.mrb[96].mxu0 }
0x11e1   :  { %v6862_v53 = vadd.f32 %v6861_v46, %v6769_v42  ;;  %v11493_v32 = vpop.f32.mrb[97].mxu0 }
0x11e2   :  { %v6864_v11 = vpop.f32.mrb[98].mxu0 }
0x11e3   :  { %v11494_v41 = vpop.f32.mrb[99].mxu0 }
0x11e8   :  { %v6958_v16 = vpop.f32.mrb[100].mxu0 }
0x11e9   :  { %v7007_v47 = vadd.f32 %v6958_v16, %v6862_v53  ;;  %v11505_v10 = vpop.f32.mrb[101].mxu0 }
0x11ea   :  { %v6961_v26 = vpop.f32.mrb[102].mxu0 }
0x11eb   :  { %v7016_v44 = vadd.f32 %v10231_v54, %v7007_v47  ;;  %v11506_v52 = vpop.f32.mrb[103].mxu0  ;;  %v10272_v47 = vld [vmem:[%s15616_s28] ss:$0 sm:$0xff] }
0x11ed   :  { %v7018_v34 = vmax.f32 %v7016_v44, 0.0 }
0x11ef   :  { %v7023_v7 = vpack.c.bf16 %v7018_v34, %v7018_v34 }
0x11f1   :  { %12271 = vmatprep.subr.msk.bf16.mxu0 %vm2620_vm0, %v7023_v7  ;;  %v7040_v23 = vsel %vm2620_vm0, %v7023_v7, 0 }
0x11f2   :  { %11514 = vmatpush3.bf16.msra.mxu0 %v7040_v23 }
0x11f3   :  { %11525 = vmatprep.subr.bf16.mxu0 %v15609_v57 }
0x11f5   :  { %11516 = vmatmul.mubr.msk.bf16.vlgmr.msra.gmra.mrb[104].mxu0 %vm2613_vm15, %v12551_v18 }
0x11f6   :  { %11533 = vmatprep.mubr.msk.bf16.mxu0 %vm12736_vm1, %v15609_v57  ;;  %11526 = vmatpush3.bf16.msra.mxu0 %v12552_v13 }
0x11f7   :  { %11527 = vmatprep.subr.bf16.mxu0 %v15609_v57 }
0x11fa   :  { %11528 = vmatpush3.bf16.msra.mxu0 %v12553_v58 }
0x11fb   :  { %11529 = vmatprep.subr.bf16.mxu0 %v15609_v57 }
0x11fe   :  { %11530 = vmatpush3.bf16.msra.mxu0 %v12554_v2 }
0x11ff   :  { %11531 = vmatprep.subr.bf16.mxu0 %v15609_v57 }
0x1202   :  { %11532 = vmatpush3.bf16.msra.mxu0 %v12555_v38 }
0x1203   :  { %11549 = vmatprep.subr.bf16.mxu0 %v15609_v57 }
0x127b   :  { %v6812_v48 = vpop.f32.mrb[112].mxu1 }
0x127c   :  { %v11487_v55 = vpop.f32.mrb[113].mxu1 }
0x127d   :  { %v6815_v5 = vpop.f32.mrb[114].mxu1  ;;  %v12569_v55 = vld [vmem:[%s15618_s2 + $0x50] sm:$0xff]  }
0x127e   :  { %v11488_v51 = vpop.f32.mrb[115].mxu1  ;;  %v12570_v5 = vld [vmem:[%s15618_s2 + $0x58] sm:$0xff]  }
0x127f   :  { %v12571_v51 = vld [vmem:[%s15618_s2 + $0x60] sm:$0xff]  }
0x1283   :  { %v6904_v8 = vpop.f32.mrb[116].mxu1 }
0x1284   :  { %v6905_v20 = vadd.f32 %v6904_v8, %v6812_v48  ;;  %v11499_v60 = vpop.f32.mrb[117].mxu1  ;;  %v12568_v48 = vld [vmem:[%s15618_s2 + $0x48] sm:$0xff]  }
0x1285   :  { %v6907_v56 = vpop.f32.mrb[118].mxu1  ;;  %v12572_v8 = vld [vmem:[%s15618_s2 + $0x68] sm:$0xff]   ;;  %v12574_v60 = vld [vmem:[%s15618_s2 + $0x78] sm:$0xff]  }
0x1286   :  { %v11500_v14 = vpop.f32.mrb[119].mxu1 }
0x128b   :  { %v7001_v45 = vpop.f32.mrb[120].mxu1 }
0x128c   :  { %v7008_v29 = vadd.f32 %v7001_v45, %v6905_v20  ;;  %v11511_v12 = vpop.f32.mrb[121].mxu1  ;;  %v12573_v20 = vld [vmem:[%s15618_s2 + $0x70] sm:$0xff]  }
0x128d   :  { %v7004_v31 = vpop.f32.mrb[122].mxu1 }
0x128e   :  { %v7017_v15 = vadd.f32 %v10231_v54, %v7008_v29  ;;  %v11512_v40 = vpop.f32.mrb[123].mxu1 }
0x1290   :  { %v7019_v39 = vmax.f32 %v7017_v15, 0.0 }
0x1292   :  { %v7024_v22 = vpack.c.bf16 %v7019_v39, %v7019_v39 }
0x1294   :  { %12272 = vmatprep.subr.msk.bf16.mxu1 %vm2620_vm0, %v7024_v22  ;;  %v7091_v21 = vsel %vm2620_vm0, %v7024_v22, 0  ;;  %vm15619_vm0 = vcmask 1043456  }
0x1295   :  { %11520 = vmatpush3.bf16.msra.mxu1 %v7091_v21  ;;  %vm15620_vm3 = vmmov %vm15619_vm0 }
0x1296   :  { %11537 = vmatprep.subr.bf16.mxu1 %v15609_v57 }
0x1298   :  { %11522 = vmatmul.mubr.msk.bf16.vlgmr.msra.gmra.mrb[124].mxu1 %vm2613_vm15, %v12551_v18  ;;  %vm7186_vm15 = vcmask 523264  }
0x1299   :  { %11538 = vmatpush3.bf16.msra.mxu1 %v12552_v13  ;;  %11545 = vmatprep.mubr.msk.bf16.mxu1 %vm12736_vm1, %v15609_v57  ;;  %v12564_v13 = vld [vmem:[%s15617_s1] sm:$0xff]  }
0x129a   :  { %11539 = vmatprep.subr.bf16.mxu1 %v15609_v57 }
0x129d   :  { %11540 = vmatpush3.bf16.msra.mxu1 %v12553_v58  ;;  %v12565_v58 = vld [vmem:[%s15617_s1 + $0x8] sm:$0xff]  }
0x129e   :  { %11541 = vmatprep.subr.bf16.mxu1 %v15609_v57 }
0x12a1   :  { %11542 = vmatpush3.bf16.msra.mxu1 %v12554_v2  ;;  %v12566_v2 = vld [vmem:[%s15617_s1 + $0x10] sm:$0xff]  }
0x12a2   :  { %11543 = vmatprep.subr.bf16.mxu1 %v15609_v57 }
0x12a5   :  { %11544 = vmatpush3.bf16.msra.mxu1 %v12555_v38  ;;  %v12567_v38 = vld [vmem:[%s15618_s2 + $0x40] sm:$0xff]  }
0x12a6   :  { %11561 = vmatprep.subr.bf16.mxu1 %v15609_v57 }
0x12c8   :  { %v11517_v33 = vpop.f32.mrb[104].mxu0 }
0x12c9   :  { %v7076_v17 = vpop.f32.mrb[105].mxu0  ;;  %v7383_v59 = vpack.c.bf16 %v11517_v33, %v11517_v33 }
0x12ca   :  { %v11518_v63 = vpop.f32.mrb[106].mxu0  ;;  %v7141_v6 = vpack.c.bf16 %v7076_v17, %v7076_v17 }
0x12cb   :  { %v7079_v27 = vpop.f32.mrb[107].mxu0 }
0x12cc   :  { %v7151_v37 = vpack.c.bf16 %v7079_v27, %v7079_v27 }
0x12ce   :  { %11534 = vmatmul.mubr.msk.bf16.vlgmr.msra.gmra.mrb[108].mxu0 %vm7186_vm15, %v7151_v37 }
0x12cf   :  { %11550 = vmatpush3.bf16.msra.mxu0 %v12556_v36  ;;  %11557 = vmatprep.mubr.msk.bf16.mxu0 %vm12736_vm1, %v15609_v57 }
0x12d0   :  { %11551 = vmatprep.subr.bf16.mxu0 %v15609_v57 }
0x12d3   :  { %11552 = vmatpush3.bf16.msra.mxu0 %v12557_v43 }
0x12d4   :  { %11553 = vmatprep.subr.bf16.mxu0 %v15609_v57 }
0x12d7   :  { %11554 = vmatpush3.bf16.msra.mxu0 %v12558_v28 }
0x12d8   :  { %11555 = vmatprep.subr.bf16.mxu0 %v15609_v57 }
0x12db   :  { %11556 = vmatpush3.bf16.msra.mxu0 %v12559_v30 }
0x12dc   :  { %11573 = vmatprep.subr.bf16.mxu0 %v15609_v57 }
0x12de   :  { %11558 = vmatmul.mubr.msk.bf16.vlgmr.msra.gmra.mrb[112].mxu0 %vm7186_vm15, %v7141_v6 }
0x12df   :  { %11574 = vmatpush3.bf16.msra.mxu0 %v12560_v1  ;;  %11581 = vmatprep.mubr.msk.bf16.mxu0 %vm12736_vm1, %v15609_v57 }
0x12e0   :  { %11575 = vmatprep.subr.bf16.mxu0 %v15609_v57 }
0x12e3   :  { %11576 = vmatpush3.bf16.msra.mxu0 %v12561_v49 }
0x12e4   :  { %11577 = vmatprep.subr.bf16.mxu0 %v15609_v57 }
0x12e7   :  { %11578 = vmatpush3.bf16.msra.mxu0 %v12562_v25 }
0x12e8   :  { %11579 = vmatprep.subr.bf16.mxu0 %v15609_v57 }
0x12eb   :  { %11580 = vmatpush3.bf16.msra.mxu0 %v12563_v3 }
0x12ec   :  { %11597 = vmatprep.subr.bf16.mxu0 %v15609_v57 }
0x12ee   :  { %11582 = vmatmul.mubr.msk.bf16.vlgmr.msra.gmra.mrb[116].mxu0 %vm7186_vm15, %v7383_v59 }
0x12ef   :  { %11599 = vmatprep.mubr.msk.bf16.mxu0 %vm12736_vm1, %v15609_v57 }
0x136b   :  { %v11523_v61 = vpop.f32.mrb[124].mxu1 }
0x136c   :  { %v7127_v35 = vpop.f32.mrb[125].mxu1  ;;  %v7384_v42 = vpack.c.bf16 %v11523_v61, %v11523_v61  ;;  %v15027_v61 = vld [vmem:[%s15618_s2] sm:$0xff]  }
0x136d   :  { %v11524_v24 = vpop.f32.mrb[126].mxu1  ;;  %v7142_v9 = vpack.c.bf16 %v7127_v35, %v7127_v35 }
0x136e   :  { %v7130_v50 = vpop.f32.mrb[127].mxu1 }
0x136f   :  { %v7152_v19 = vpack.c.bf16 %v7130_v50, %v7130_v50  ;;  %v15031_v50 = vld [vmem:[%s15618_s2 + $0x8] sm:$0xff]  }
0x1371   :  { %11546 = vmatmul.mubr.msk.bf16.vlgmr.msra.gmra.mrb[128].mxu1 %vm7186_vm15, %v7152_v19  ;;  %v15038_v19 = vld [vmem:[%s15618_s2 + $0x10] sm:$0xff]  }
0x1372   :  { %11562 = vmatpush3.bf16.msra.mxu1 %v12556_v36  ;;  %11569 = vmatprep.mubr.msk.bf16.mxu1 %vm12736_vm1, %v15609_v57 }
0x1373   :  { %11563 = vmatprep.subr.bf16.mxu1 %v15609_v57 }
0x1376   :  { %11564 = vmatpush3.bf16.msra.mxu1 %v12557_v43 }
0x1377   :  { %11565 = vmatprep.subr.bf16.mxu1 %v15609_v57 }
0x137a   :  { %11566 = vmatpush3.bf16.msra.mxu1 %v12558_v28 }
0x137b   :  { %11567 = vmatprep.subr.bf16.mxu1 %v15609_v57 }
0x137e   :  { %11568 = vmatpush3.bf16.msra.mxu1 %v12559_v30 }
0x137f   :  { %11585 = vmatprep.subr.bf16.mxu1 %v15609_v57 }
0x1381   :  { %11570 = vmatmul.mubr.msk.bf16.vlgmr.msra.gmra.mrb[132].mxu1 %vm7186_vm15, %v7142_v9  ;;  %v15043_v9 = vld [vmem:[%s15618_s2 + $0x18] sm:$0xff]  }
0x1382   :  { %11586 = vmatpush3.bf16.msra.mxu1 %v12560_v1  ;;  %11593 = vmatprep.mubr.msk.bf16.mxu1 %vm12736_vm1, %v15609_v57 }
0x1383   :  { %11587 = vmatprep.subr.bf16.mxu1 %v15609_v57 }
0x1386   :  { %11588 = vmatpush3.bf16.msra.mxu1 %v12561_v49 }
0x1387   :  { %11589 = vmatprep.subr.bf16.mxu1 %v15609_v57 }
0x138a   :  { %11590 = vmatpush3.bf16.msra.mxu1 %v12562_v25 }
0x138b   :  { %11591 = vmatprep.subr.bf16.mxu1 %v15609_v57 }
0x138e   :  { %11592 = vmatpush3.bf16.msra.mxu1 %v12563_v3 }
0x138f   :  { %11611 = vmatprep.subr.bf16.mxu1 %v15609_v57 }
0x1391   :  { %11594 = vmatmul.mubr.msk.bf16.vlgmr.msra.gmra.mrb[136].mxu1 %vm7186_vm15, %v7384_v42  ;;  %v15048_v42 = vld [vmem:[%s15618_s2 + $0x20] sm:$0xff]   ;;  %vm15638_vm15 = vcmask 785408  }
0x1392   :  { %11613 = vmatprep.mubr.msk.bf16.mxu1 %vm12736_vm1, %v15609_v57 }
0x13a1   :  { %v7224_v62 = vpop.f32.mrb[108].mxu0 }
0x13a2   :  { %v11535_v0 = vpop.f32.mrb[109].mxu0 }
0x13a3   :  { %v7227_v4 = vpop.f32.mrb[110].mxu0 }
0x13a4   :  { %v11536_v46 = vpop.f32.mrb[111].mxu0 }
0x13b1   :  { %v7334_v53 = vpop.f32.mrb[112].mxu0 }
0x13b2   :  { %v7335_v32 = vadd.f32 %v7334_v53, %v7224_v62  ;;  %v11559_v11 = vpop.f32.mrb[113].mxu0  ;;  %v15053_v62 = vld [vmem:[%s15618_s2 + $0x28] sm:$0xff]   ;;  %v15058_v53 = vld [vmem:[%s15618_s2 + $0x30] sm:$0xff]  }
0x13b3   :  { %v7337_v41 = vpop.f32.mrb[114].mxu0 }
0x13b4   :  { %v11560_v16 = vpop.f32.mrb[115].mxu0  ;;  %v12582_v41 = vld [vmem:[%s15618_s2 + $0x38] sm:$0xff]  }
0x13b5   :  { %v12583_v16 = vld [vmem:[%s15618_s2 + $0x80] sm:$0xff]  }
0x13c1   :  { %v7455_v54 = vpop.f32.mrb[116].mxu0 }
0x13c2   :  { %v7504_v10 = vadd.f32 %v7455_v54, %v7335_v32  ;;  %v11583_v26 = vpop.f32.mrb[117].mxu0  ;;  %v12584_v54 = vld [vmem:[%s15618_s2 + $0x88] sm:$0xff]  }
0x13c3   :  { %v7458_v44 = vpop.f32.mrb[118].mxu0  ;;  %v12587_v26 = vld [vmem:[%s15618_s2 + $0xa0] sm:$0xff]  }
0x13c4   :  { %v7513_v52 = vadd.f32 %v10272_v47, %v7504_v10  ;;  %v11584_v34 = vpop.f32.mrb[119].mxu0  ;;  %v12586_v10 = vld [vmem:[%s15618_s2 + $0x98] sm:$0xff]   ;;  %v12588_v44 = vld [vmem:[%s15618_s2 + $0xa8] sm:$0xff]  }
0x13c5   :  { %v12590_v34 = vld [vmem:[%s15618_s2 + $0xb8] sm:$0xff]  }
0x13c6   :  { %v7515_v7 = vmax.f32 %v7513_v52, 0.0  ;;  %v12589_v52 = vld [vmem:[%s15618_s2 + $0xb0] sm:$0xff]  }
0x13c8   :  { %v7523_v23 = vpack.c.bf16 %v7515_v7, %v7515_v7 }
0x13ca   :  { %v7551_v18 = vsel %vm15619_vm0, %v7523_v23, 0  ;;  %vm15639_vm0 = vmmov %vm15638_vm15 }
0x13cb   :  { %11598 = vmatpush3.bf16.msra.mxu0 %v7551_v18 }
0x13cc   :  { %11625 = vmatprep.subr.bf16.mxu0 %v15609_v57 }
0x13ce   :  { %11600 = vmatmul.mubr.msk.bf16.vlgmr.msra.gmra.mrb[120].mxu0 %vm7540_vm2, %v12564_v13 }
0x13cf   :  { %11603 = vmatprep.mubr.msk.bf16.mxu0 %vm12736_vm1, %v15609_v57  ;;  %11626 = vmatpush3.bf16.msra.mxu0 %v12567_v38 }
0x13d0   :  { %11627 = vmatprep.subr.bf16.mxu0 %v15609_v57 }
0x13d3   :  { %11628 = vmatpush3.bf16.msra.mxu0 %v12568_v48 }
0x13d4   :  { %11629 = vmatprep.subr.bf16.mxu0 %v15609_v57 }
0x13d6   :  { %11604 = vmatmul.mubr.msk.bf16.gmra.mrb[124].mxu0 %vm7540_vm2, %v12565_v58 }
0x13d7   :  { %11607 = vmatprep.mubr.msk.bf16.mxu0 %vm12736_vm1, %v15609_v57  ;;  %11630 = vmatpush3.bf16.msra.mxu0 %v12569_v55 }
0x13d8   :  { %11631 = vmatprep.subr.bf16.mxu0 %v15609_v57 }
0x13db   :  { %11632 = vmatpush3.bf16.msra.mxu0 %v12570_v5 }
0x13dc   :  { %11633 = vmatprep.subr.bf16.mxu0 %v15609_v57 }
0x13de   :  { %11608 = vmatmul.mubr.msk.bf16.gmra.mrb[128].mxu0 %vm7540_vm2, %v12566_v2 }
0x13df   :  { %11641 = vmatprep.mubr.msk.bf16.mxu0 %vm12736_vm1, %v15609_v57  ;;  %11634 = vmatpush3.bf16.msra.mxu0 %v12571_v51 }
0x13e0   :  { %11635 = vmatprep.subr.bf16.mxu0 %v15609_v57 }
0x13e3   :  { %11636 = vmatpush3.bf16.msra.mxu0 %v12572_v8 }
0x13e4   :  { %11637 = vmatprep.subr.bf16.mxu0 %v15609_v57 }
0x13e7   :  { %11638 = vmatpush3.bf16.msra.mxu0 %v12573_v20 }
0x13e8   :  { %11639 = vmatprep.subr.bf16.mxu0 %v15609_v57 }
0x13eb   :  { %11640 = vmatpush3.bf16.msra.mxu0 %v12574_v60 }
0x13ec   :  { %11665 = vmatprep.subr.bf16.mxu0 %v15609_v57 }
0x1444   :  { %v7267_v56 = vpop.f32.mrb[128].mxu1 }
0x1445   :  { %v11547_v14 = vpop.f32.mrb[129].mxu1 }
0x1446   :  { %v7270_v45 = vpop.f32.mrb[130].mxu1 }
0x1447   :  { %v11548_v29 = vpop.f32.mrb[131].mxu1 }
0x1454   :  { %v7377_v12 = vpop.f32.mrb[132].mxu1 }
0x1455   :  { %v7378_v31 = vadd.f32 %v7377_v12, %v7267_v56  ;;  %v11571_v15 = vpop.f32.mrb[133].mxu1 }
0x1456   :  { %v7380_v40 = vpop.f32.mrb[134].mxu1 }
0x1457   :  { %v11572_v39 = vpop.f32.mrb[135].mxu1 }
0x1464   :  { %v7498_v22 = vpop.f32.mrb[136].mxu1 }
0x1465   :  { %v7505_v21 = vadd.f32 %v7498_v22, %v7378_v31  ;;  %v11595_v33 = vpop.f32.mrb[137].mxu1 }
0x1466   :  { %v7501_v17 = vpop.f32.mrb[138].mxu1 }
0x1467   :  { %v7514_v63 = vadd.f32 %v10272_v47, %v7505_v21  ;;  %v11596_v27 = vpop.f32.mrb[139].mxu1  ;;  %v12585_v47 = vld [vmem:[%s15618_s2 + $0x90] sm:$0xff]  }
0x1469   :  { %v7516_v36 = vmax.f32 %v7514_v63, 0.0  ;;  %v15112_v63 = vld [vmem:[%s15622_s10] ss:$0 sm:$0xff] }
0x146b   :  { %v7524_v37 = vpack.c.bf16 %v7516_v36, %v7516_v36 }
0x146d   :  { %v7611_v43 = vsel %vm15620_vm3, %v7524_v37, 0  ;;  %vm15641_vm3 = vmmov %vm15639_vm0 }
0x146e   :  { %11612 = vmatpush3.bf16.msra.mxu1 %v7611_v43 }
0x146f   :  { %11645 = vmatprep.subr.bf16.mxu1 %v15609_v57 }
0x1471   :  { %11614 = vmatmul.mubr.msk.bf16.vlgmr.msra.gmra.mrb[140].mxu1 %vm7540_vm2, %v12564_v13 }
0x1472   :  { %11617 = vmatprep.mubr.msk.bf16.mxu1 %vm12736_vm1, %v15609_v57  ;;  %11646 = vmatpush3.bf16.msra.mxu1 %v12567_v38  ;;  %v12591_v38 = vld [vmem:[%s15621_s7] sm:$0xff]  }
0x1473   :  { %11647 = vmatprep.subr.bf16.mxu1 %v15609_v57 }
0x1476   :  { %11648 = vmatpush3.bf16.msra.mxu1 %v12568_v48 }
0x1477   :  { %11649 = vmatprep.subr.bf16.mxu1 %v15609_v57 }
0x1479   :  { %11618 = vmatmul.mubr.msk.bf16.gmra.mrb[144].mxu1 %vm7540_vm2, %v12565_v58 }
0x147a   :  { %11621 = vmatprep.mubr.msk.bf16.mxu1 %vm12736_vm1, %v15609_v57  ;;  %11650 = vmatpush3.bf16.msra.mxu1 %v12569_v55 }
0x147b   :  { %11651 = vmatprep.subr.bf16.mxu1 %v15609_v57 }
0x147e   :  { %11652 = vmatpush3.bf16.msra.mxu1 %v12570_v5 }
0x147f   :  { %11653 = vmatprep.subr.bf16.mxu1 %v15609_v57 }
0x1481   :  { %11622 = vmatmul.mubr.msk.bf16.gmra.mrb[148].mxu1 %vm7540_vm2, %v12566_v2  ;;  %vm15640_vm2 = vmmov %vm15639_vm0 }
0x1482   :  { %11654 = vmatpush3.bf16.msra.mxu1 %v12571_v51  ;;  %11661 = vmatprep.mubr.msk.bf16.mxu1 %vm12736_vm1, %v15609_v57 }
0x1483   :  { %11655 = vmatprep.subr.bf16.mxu1 %v15609_v57 }
0x1486   :  { %11656 = vmatpush3.bf16.msra.mxu1 %v12572_v8 }
0x1487   :  { %11657 = vmatprep.subr.bf16.mxu1 %v15609_v57 }
0x148a   :  { %11658 = vmatpush3.bf16.msra.mxu1 %v12573_v20 }
0x148b   :  { %11659 = vmatprep.subr.bf16.mxu1 %v15609_v57 }
0x148e   :  { %11660 = vmatpush3.bf16.msra.mxu1 %v12574_v60 }
0x148f   :  { %11685 = vmatprep.subr.bf16.mxu1 %v15609_v57 }
0x14a1   :  { %v7587_v28 = vpop.f32.mrb[120].mxu0 }
0x14a2   :  { %v11601_v30 = vpop.f32.mrb[121].mxu0 }
0x14a3   :  { %v7590_v6 = vpop.f32.mrb[122].mxu0 }
0x14a4   :  { %v7670_v1 = vpack.c.bf16 %v7590_v6, %v7587_v28  ;;  %v11602_v49 = vpop.f32.mrb[123].mxu0 }
0x14a9   :  { %v7595_v25 = vpop.f32.mrb[124].mxu0 }
0x14aa   :  { %v11605_v3 = vpop.f32.mrb[125].mxu0 }
0x14ab   :  { %v7598_v59 = vpop.f32.mrb[126].mxu0  ;;  %v12593_v3 = vld [vmem:[%s15621_s7 + $0x10] sm:$0xff]  }
0x14ac   :  { %v7688_v35 = vpack.c.bf16 %v7598_v59, %v7595_v25  ;;  %v11606_v24 = vpop.f32.mrb[127].mxu0  ;;  %v12592_v25 = vld [vmem:[%s15621_s7 + $0x8] sm:$0xff]   ;;  %v12594_v59 = vld [vmem:[%s15621_s7 + $0x18] sm:$0xff]  }
0x14ad   :  { %v12597_v24 = vld [vmem:[%s15623_s11 + $0x40] sm:$0xff]  }
0x14ae   :  { %11642 = vmatmul.mubr.bf16.vlgmr.msra.gmra.mrb[132].mxu0 %v7688_v35  ;;  %v15124_v35 = vld [vmem:[%s15621_s7 + $0x28] sm:$0xff]  }
0x14af   :  { %11666 = vmatpush3.bf16.msra.mxu0 %v15027_v61  ;;  %11681 = vmatprep.mubr.msk.bf16.mxu0 %vm12736_vm1, %v15609_v57 }
0x14b0   :  { %11667 = vmatprep.subr.bf16.mxu0 %v15609_v57 }
0x14b1   :  { %v7603_v0 = vpop.f32.mrb[128].mxu0 }
0x14b2   :  { %v11609_v4 = vpop.f32.mrb[129].mxu0 }
0x14b3   :  { %11668 = vmatpush3.bf16.msra.mxu0 %v15031_v50  ;;  %v7606_v46 = vpop.f32.mrb[130].mxu0 }
0x14b4   :  { %11669 = vmatprep.subr.bf16.mxu0 %v15609_v57  ;;  %v7967_v32 = vpack.c.bf16 %v7606_v46, %v7603_v0  ;;  %v11610_v11 = vpop.f32.mrb[131].mxu0  ;;  %v12603_v46 = vld [vmem:[%s15623_s11 + $0x70] sm:$0xff]  }
0x14b5   :  { %v12604_v11 = vld [vmem:[%s15623_s11 + $0x78] sm:$0xff]  }
0x14b7   :  { %11670 = vmatpush3.bf16.msra.mxu0 %v15038_v19 }
0x14b8   :  { %11671 = vmatprep.subr.bf16.mxu0 %v15609_v57 }
0x14bb   :  { %11672 = vmatpush3.bf16.msra.mxu0 %v15043_v9 }
0x14bc   :  { %11673 = vmatprep.subr.bf16.mxu0 %v15609_v57 }
0x14bf   :  { %11674 = vmatpush3.bf16.msra.mxu0 %v15048_v42 }
0x14c0   :  { %11675 = vmatprep.subr.bf16.mxu0 %v15609_v57 }
0x14c3   :  { %11676 = vmatpush3.bf16.msra.mxu0 %v15053_v62 }
0x14c4   :  { %11677 = vmatprep.subr.bf16.mxu0 %v15609_v57 }
0x14c7   :  { %11678 = vmatpush3.bf16.msra.mxu0 %v15058_v53 }
0x14c8   :  { %11679 = vmatprep.subr.bf16.mxu0 %v15609_v57 }
0x14cb   :  { %11680 = vmatpush3.bf16.msra.mxu0 %v12582_v41 }
0x14cc   :  { %11705 = vmatprep.subr.bf16.mxu0 %v15609_v57 }
0x14ce   :  { %11682 = vmatmul.mubr.bf16.vlgmr.msra.gmra.mrb[136].mxu0 %v7670_v1 }
0x14cf   :  { %11706 = vmatpush3.bf16.msra.mxu0 %v12583_v16  ;;  %11721 = vmatprep.mubr.msk.bf16.mxu0 %vm12736_vm1, %v15609_v57 }
0x14d0   :  { %11707 = vmatprep.subr.bf16.mxu0 %v15609_v57 }
0x14d3   :  { %11708 = vmatpush3.bf16.msra.mxu0 %v12584_v54 }
0x14d4   :  { %11709 = vmatprep.subr.bf16.mxu0 %v15609_v57 }
0x14d7   :  { %11710 = vmatpush3.bf16.msra.mxu0 %v12585_v47 }
0x14d8   :  { %11711 = vmatprep.subr.bf16.mxu0 %v15609_v57 }
0x14db   :  { %11712 = vmatpush3.bf16.msra.mxu0 %v12586_v10 }
0x14dc   :  { %11713 = vmatprep.subr.bf16.mxu0 %v15609_v57 }
0x14df   :  { %11714 = vmatpush3.bf16.msra.mxu0 %v12587_v26 }
0x14e0   :  { %11715 = vmatprep.subr.bf16.mxu0 %v15609_v57 }
0x14e3   :  { %11716 = vmatpush3.bf16.msra.mxu0 %v12588_v44 }
0x14e4   :  { %11717 = vmatprep.subr.bf16.mxu0 %v15609_v57 }
0x14e7   :  { %11718 = vmatpush3.bf16.msra.mxu0 %v12589_v52 }
0x14e8   :  { %11719 = vmatprep.subr.bf16.mxu0 %v15609_v57 }
0x14eb   :  { %11720 = vmatpush3.bf16.msra.mxu0 %v12590_v34 }
0x14ee   :  { %11722 = vmatmul.mubr.bf16.vlgmr.msra.gmra.mrb[140].mxu0 %v7967_v32 }
0x14ef   :  { %11747 = vmatprep.mubr.msk.bf16.mxu0 %vm3065_vm4, %v12591_v38 }
0x1544   :  { %v7647_v7 = vpop.f32.mrb[140].mxu1 }
0x1545   :  { %v11615_v23 = vpop.f32.mrb[141].mxu1 }
0x1546   :  { %v7650_v18 = vpop.f32.mrb[142].mxu1 }
0x1547   :  { %v7671_v13 = vpack.c.bf16 %v7650_v18, %v7647_v7  ;;  %v11616_v58 = vpop.f32.mrb[143].mxu1 }
0x154c   :  { %v7655_v2 = vpop.f32.mrb[144].mxu1 }
0x154d   :  { %v11619_v48 = vpop.f32.mrb[145].mxu1 }
0x154e   :  { %v7658_v55 = vpop.f32.mrb[146].mxu1 }
0x154f   :  { %v7689_v5 = vpack.c.bf16 %v7658_v55, %v7655_v2  ;;  %v11620_v51 = vpop.f32.mrb[147].mxu1 }
0x1551   :  { %11662 = vmatmul.mubr.bf16.vlgmr.msra.gmra.mrb[152].mxu1 %v7689_v5 }
0x1552   :  { %11686 = vmatpush3.bf16.msra.mxu1 %v15027_v61  ;;  %11701 = vmatprep.mubr.msk.bf16.mxu1 %vm12736_vm1, %v15609_v57  ;;  %v12595_v61 = vld [vmem:[%s15621_s7 + $0x20] sm:$0xff]  }
0x1553   :  { %11687 = vmatprep.subr.bf16.mxu1 %v15609_v57 }
0x1554   :  { %v7663_v8 = vpop.f32.mrb[148].mxu1 }
0x1555   :  { %v11623_v20 = vpop.f32.mrb[149].mxu1 }
0x1556   :  { %11688 = vmatpush3.bf16.msra.mxu1 %v15031_v50  ;;  %v7666_v60 = vpop.f32.mrb[150].mxu1  ;;  %v12598_v50 = vld [vmem:[%s15623_s11 + $0x48] sm:$0xff]  }
0x1557   :  { %11689 = vmatprep.subr.bf16.mxu1 %v15609_v57  ;;  %v7968_v56 = vpack.c.bf16 %v7666_v60, %v7663_v8  ;;  %v11624_v14 = vpop.f32.mrb[151].mxu1 }
0x155a   :  { %11690 = vmatpush3.bf16.msra.mxu1 %v15038_v19  ;;  %v12599_v19 = vld [vmem:[%s15623_s11 + $0x50] sm:$0xff]  }
0x155b   :  { %11691 = vmatprep.subr.bf16.mxu1 %v15609_v57 }
0x155e   :  { %11692 = vmatpush3.bf16.msra.mxu1 %v15043_v9  ;;  %v12600_v9 = vld [vmem:[%s15623_s11 + $0x58] sm:$0xff]  }
0x155f   :  { %11693 = vmatprep.subr.bf16.mxu1 %v15609_v57 }
0x1562   :  { %11694 = vmatpush3.bf16.msra.mxu1 %v15048_v42  ;;  %v12601_v42 = vld [vmem:[%s15623_s11 + $0x60] sm:$0xff]  }
0x1563   :  { %11695 = vmatprep.subr.bf16.mxu1 %v15609_v57 }
0x1566   :  { %11696 = vmatpush3.bf16.msra.mxu1 %v15053_v62  ;;  %v12602_v62 = vld [vmem:[%s15623_s11 + $0x68] sm:$0xff]  }
0x1567   :  { %11697 = vmatprep.subr.bf16.mxu1 %v15609_v57 }
0x156a   :  { %11698 = vmatpush3.bf16.msra.mxu1 %v15058_v53 }
0x156b   :  { %11699 = vmatprep.subr.bf16.mxu1 %v15609_v57 }
0x156e   :  { %11700 = vmatpush3.bf16.msra.mxu1 %v12582_v41  ;;  %v15138_v41 = vld [vmem:[%s15623_s11] sm:$0xff]  }
0x156f   :  { %11725 = vmatprep.subr.bf16.mxu1 %v15609_v57 }
0x1571   :  { %11702 = vmatmul.mubr.bf16.vlgmr.msra.gmra.mrb[156].mxu1 %v7671_v13 }
0x1572   :  { %11726 = vmatpush3.bf16.msra.mxu1 %v12583_v16  ;;  %11741 = vmatprep.mubr.msk.bf16.mxu1 %vm12736_vm1, %v15609_v57  ;;  %vm15625_vm1 = vcmask 261120  }
0x1573   :  { %11727 = vmatprep.subr.bf16.mxu1 %v15609_v57  ;;  %vm15628_vm7 = vmmov %vm15625_vm1 }
0x1574   :  { %vm15629_vm8 = vmmov %vm15625_vm1 }
0x1575   :  { %vm15630_vm11 = vmmov %vm15625_vm1 }
0x1576   :  { %11728 = vmatpush3.bf16.msra.mxu1 %v12584_v54  ;;  %vm15631_vm14 = vmmov %vm15625_vm1 }
0x1577   :  { %11729 = vmatprep.subr.bf16.mxu1 %v15609_v57  ;;  %vm15632_vm9 = vmmov %vm15625_vm1 }
0x1578   :  { %vm15633_vm12 = vmmov %vm15625_vm1 }
0x1579   :  { %vm15634_vm10 = vmmov %vm15625_vm1 }
0x157a   :  { %11730 = vmatpush3.bf16.msra.mxu1 %v12585_v47  ;;  %vm15635_vm13 = vmmov %vm15625_vm1 }
0x157b   :  { %11731 = vmatprep.subr.bf16.mxu1 %v15609_v57  ;;  %vm15636_vm6 = vmmov %vm15625_vm1 }
0x157c   :  { %vm15637_vm5 = vmmov %vm15625_vm1 }
0x157e   :  { %11732 = vmatpush3.bf16.msra.mxu1 %v12586_v10 }
0x157f   :  { %11733 = vmatprep.subr.bf16.mxu1 %v15609_v57 }
0x1581   :  { %v7789_v45 = vpop.f32.mrb[132].mxu0 }
0x1582   :  { %v11643_v29 = vpop.f32.mrb[133].mxu0  ;;  %11734 = vmatpush3.bf16.msra.mxu1 %v12587_v26 }
0x1583   :  { %v7792_v12 = vpop.f32.mrb[134].mxu0  ;;  %11735 = vmatprep.subr.bf16.mxu1 %v15609_v57 }
0x1584   :  { %v11644_v31 = vpop.f32.mrb[135].mxu0 }
0x1586   :  { %11736 = vmatpush3.bf16.msra.mxu1 %v12588_v44 }
0x1587   :  { %11737 = vmatprep.subr.bf16.mxu1 %v15609_v57 }
0x158a   :  { %11738 = vmatpush3.bf16.msra.mxu1 %v12589_v52 }
0x158b   :  { %11739 = vmatprep.subr.bf16.mxu1 %v15609_v57 }
0x158e   :  { %11740 = vmatpush3.bf16.msra.mxu1 %v12590_v34 }
0x1591   :  { %11742 = vmatmul.mubr.bf16.vlgmr.msra.gmra.mrb[160].mxu1 %v7968_v56 }
0x1592   :  { %11761 = vmatprep.mubr.msk.bf16.mxu1 %vm3065_vm4, %v12591_v38 }
0x15a1   :  { %v7919_v15 = vpop.f32.mrb[136].mxu0 }
0x15a2   :  { %v7920_v40 = vadd.f32 %v7919_v15, %v7789_v45  ;;  %v11683_v39 = vpop.f32.mrb[137].mxu0 }
0x15a3   :  { %v7922_v22 = vpop.f32.mrb[138].mxu0  ;;  %v15156_v39 = vld [vmem:[%s15623_s11 + $0x10] sm:$0xff]  }
0x15a4   :  { %v7923_v21 = vadd.f32 %v7922_v22, %v7792_v12  ;;  %v11684_v33 = vpop.f32.mrb[139].mxu0  ;;  %v15161_v22 = vld [vmem:[%s15623_s11 + $0x18] sm:$0xff]  }
0x15a5   :  { %v15171_v33 = vld [vmem:[%s15623_s11 + $0x28] sm:$0xff]  }
0x15c1   :  { %v8068_v17 = vpop.f32.mrb[140].mxu0 }
0x15c2   :  { %v8116_v27 = vadd.f32 %v8068_v17, %v7920_v40  ;;  %v11723_v36 = vpop.f32.mrb[141].mxu0  ;;  %v15151_v40 = vld [vmem:[%s15623_s11 + $0x8] sm:$0xff]  }
0x15c3   :  { %v8071_v37 = vpop.f32.mrb[142].mxu0  ;;  %v15176_v36 = vld [vmem:[%s15623_s11 + $0x30] sm:$0xff]  }
0x15c4   :  { %v8127_v57 = vadd.f32 %v15112_v63, %v8116_v27  ;;  %v8117_v43 = vadd.f32 %v8071_v37, %v7923_v21  ;;  %v11724_v28 = vpop.f32.mrb[143].mxu0  ;;  %v15166_v21 = vld [vmem:[%s15623_s11 + $0x20] sm:$0xff]  }
0x15c5   :  { %v15181_v28 = vld [vmem:[%s15623_s11 + $0x38] sm:$0xff]  }
0x15c6   :  { %v8131_v30 = vmax.f32 %v8127_v57, 0.0  ;;  %v8128_v6 = vadd.f32 %v15112_v63, %v8117_v43 }
0x15c8   :  { %v8132_v1 = vmax.f32 %v8128_v6, 0.0  ;;  %v15191_v6 = vld [vmem:[%s15623_s11 + $0x88] sm:$0xff]  }
0x15ca   :  { %v8147_v49 = vpack.c.bf16 %v8132_v1, %v8131_v30  ;;  %v15186_v30 = vld [vmem:[%s15623_s11 + $0x80] sm:$0xff]   ;;  %v15196_v1 = vld [vmem:[%s15623_s11 + $0x90] sm:$0xff]  }
0x15cc   :  { %11745 = vmatprep.subr.bf16.mxu0 %v8147_v49 }
0x15cd   :  { %11746 = vmatpush3.bf16.msra.mxu0 %v8147_v49  ;;  %v15201_v49 = vld [vmem:[%s15623_s11 + $0x98] sm:$0xff]  }
0x15ce   :  { %11773 = vmatprep.subr.bf16.mxu0 %v12597_v24 }
0x15d0   :  { %11748 = vmatmul.mubr.msk.bf16.vlgmr.msra.gmra.mrb[144].mxu0 %vm3065_vm4, %v12592_v25 }
0x15d1   :  { %11751 = vmatprep.mubr.msk.bf16.mxu0 %vm3065_vm4, %v12593_v3  ;;  %11774 = vmatpush3.bf16.msra.mxu0 %v12597_v24 }
0x15d2   :  { %11775 = vmatprep.subr.bf16.mxu0 %v12598_v50 }
0x15d5   :  { %11776 = vmatpush3.bf16.msra.mxu0 %v12598_v50 }
0x15d6   :  { %11777 = vmatprep.subr.bf16.mxu0 %v12599_v19 }
0x15d8   :  { %11752 = vmatmul.mubr.msk.bf16.gmra.mrb[148].mxu0 %vm3065_vm4, %v12594_v59 }
0x15d9   :  { %11755 = vmatprep.mubr.msk.bf16.mxu0 %vm3065_vm4, %v12595_v61  ;;  %11778 = vmatpush3.bf16.msra.mxu0 %v12599_v19 }
0x15da   :  { %11779 = vmatprep.subr.bf16.mxu0 %v12600_v9 }
0x15dd   :  { %11780 = vmatpush3.bf16.msra.mxu0 %v12600_v9 }
0x15de   :  { %11781 = vmatprep.subr.bf16.mxu0 %v12601_v42 }
0x15e0   :  { %11756 = vmatmul.mubr.msk.bf16.gmra.mrb[152].mxu0 %vm3065_vm4, %v15124_v35 }
0x15e1   :  { %11782 = vmatpush3.bf16.msra.mxu0 %v12601_v42 }
0x15e2   :  { %11783 = vmatprep.subr.bf16.mxu0 %v12602_v62 }
0x15e5   :  { %11784 = vmatpush3.bf16.msra.mxu0 %v12602_v62 }
0x15e6   :  { %11785 = vmatprep.subr.bf16.mxu0 %v12603_v46 }
0x15e9   :  { %11786 = vmatpush3.bf16.msra.mxu0 %v12603_v46 }
0x15ea   :  { %11787 = vmatprep.subr.bf16.mxu0 %v12604_v11 }
0x15ed   :  { %11788 = vmatpush3.bf16.msra.mxu0 %v12604_v11 }
0x15ee   :  { %11813 = vmatprep.subr.bf16.mxu0 %v15138_v41 }
0x1624   :  { %v7830_v0 = vpop.f32.mrb[152].mxu1 }
0x1625   :  { %v11663_v4 = vpop.f32.mrb[153].mxu1 }
0x1626   :  { %v7833_v53 = vpop.f32.mrb[154].mxu1 }
0x1627   :  { %v11664_v32 = vpop.f32.mrb[155].mxu1 }
0x1644   :  { %v7960_v16 = vpop.f32.mrb[156].mxu1 }
0x1645   :  { %v7961_v54 = vadd.f32 %v7960_v16, %v7830_v0  ;;  %v11703_v47 = vpop.f32.mrb[157].mxu1 }
0x1646   :  { %v7963_v10 = vpop.f32.mrb[158].mxu1 }
0x1647   :  { %v7964_v26 = vadd.f32 %v7963_v10, %v7833_v53  ;;  %v11704_v44 = vpop.f32.mrb[159].mxu1 }
0x1664   :  { %v8109_v52 = vpop.f32.mrb[160].mxu1 }
0x1665   :  { %v8118_v34 = vadd.f32 %v8109_v52, %v7961_v54  ;;  %v11743_v7 = vpop.f32.mrb[161].mxu1 }
0x1666   :  { %v8112_v23 = vpop.f32.mrb[162].mxu1 }
0x1667   :  { %v8129_v18 = vadd.f32 %v15112_v63, %v8118_v34  ;;  %v8119_v13 = vadd.f32 %v8112_v23, %v7964_v26  ;;  %v11744_v58 = vpop.f32.mrb[163].mxu1 }
0x1669   :  { %v8130_v2 = vadd.f32 %v15112_v63, %v8119_v13  ;;  %v8133_v38 = vmax.f32 %v8129_v18, 0.0 }
0x166b   :  { %v8134_v48 = vmax.f32 %v8130_v2, 0.0 }
0x166d   :  { %v8148_v55 = vpack.c.bf16 %v8134_v48, %v8133_v38 }
0x166f   :  { %11759 = vmatprep.subr.bf16.mxu1 %v8148_v55 }
0x1670   :  { %11760 = vmatpush3.bf16.msra.mxu1 %v8148_v55 }
0x1671   :  { %11793 = vmatprep.subr.bf16.mxu1 %v12597_v24 }
0x1673   :  { %11762 = vmatmul.mubr.msk.bf16.vlgmr.msra.gmra.mrb[164].mxu1 %vm3065_vm4, %v12592_v25  ;;  %v12617_v25 = vld [vmem:[%s15623_s11 + $0xa0] sm:$0xff]  }
0x1674   :  { %11765 = vmatprep.mubr.msk.bf16.mxu1 %vm3065_vm4, %v12593_v3  ;;  %11794 = vmatpush3.bf16.msra.mxu1 %v12597_v24  ;;  %v12618_v3 = vld [vmem:[%s15623_s11 + $0xa8] sm:$0xff]  }
0x1675   :  { %11795 = vmatprep.subr.bf16.mxu1 %v12598_v50 }
0x1678   :  { %11796 = vmatpush3.bf16.msra.mxu1 %v12598_v50 }
0x1679   :  { %11797 = vmatprep.subr.bf16.mxu1 %v12599_v19 }
0x167b   :  { %11766 = vmatmul.mubr.msk.bf16.gmra.mrb[168].mxu1 %vm3065_vm4, %v12594_v59  ;;  %v12619_v59 = vld [vmem:[%s15623_s11 + $0xb0] sm:$0xff]  }
0x167c   :  { %11769 = vmatprep.mubr.msk.bf16.mxu1 %vm3065_vm4, %v12595_v61  ;;  %11798 = vmatpush3.bf16.msra.mxu1 %v12599_v19  ;;  %v12620_v61 = vld [vmem:[%s15623_s11 + $0xb8] sm:$0xff]  }
0x167d   :  { %11799 = vmatprep.subr.bf16.mxu1 %v12600_v9 }
0x1680   :  { %11800 = vmatpush3.bf16.msra.mxu1 %v12600_v9 }
0x1681   :  { %11801 = vmatprep.subr.bf16.mxu1 %v12601_v42 }
0x1683   :  { %11770 = vmatmul.mubr.msk.bf16.gmra.mrb[172].mxu1 %vm3065_vm4, %v15124_v35  ;;  %vm15627_vm4 = vmmov %vm15625_vm1 }
0x1684   :  { %11802 = vmatpush3.bf16.msra.mxu1 %v12601_v42 }
0x1685   :  { %11803 = vmatprep.subr.bf16.mxu1 %v12602_v62 }
0x1688   :  { %11804 = vmatpush3.bf16.msra.mxu1 %v12602_v62 }
0x1689   :  { %11805 = vmatprep.subr.bf16.mxu1 %v12603_v46 }
0x168c   :  { %11806 = vmatpush3.bf16.msra.mxu1 %v12603_v46 }
0x168d   :  { %11807 = vmatprep.subr.bf16.mxu1 %v12604_v11 }
0x1690   :  { %11808 = vmatpush3.bf16.msra.mxu1 %v12604_v11  ;;  %v12621_v11 = vld [vmem:[%s15624_s15] sm:$0xff]  }
0x1691   :  { %11833 = vmatprep.subr.bf16.mxu1 %v15138_v41 }
0x16a3   :  { %v11749_v5 = vpop.f32.mrb[144].mxu0 }
0x16a4   :  { %v8231_v51 = vpop.f32.mrb[145].mxu0 }
0x16a5   :  { %v11750_v8 = vpop.f32.mrb[146].mxu0 }
0x16a6   :  { %v8360_v20 = vpack.c.bf16 %v11750_v8, %v11749_v5  ;;  %v8234_v60 = vpop.f32.mrb[147].mxu0 }
0x16a7   :  { %v8359_v56 = vpack.c.bf16 %v8234_v60, %v8231_v51  ;;  %v12623_v60 = vld [vmem:[%s15624_s15 + $0x10] sm:$0xff]  }
0x16ab   :  { %v11753_v14 = vpop.f32.mrb[148].mxu0 }
0x16ac   :  { %v8247_v45 = vpop.f32.mrb[149].mxu0 }
0x16ad   :  { %v11754_v29 = vpop.f32.mrb[150].mxu0 }
0x16ae   :  { %v8380_v12 = vpack.c.bf16 %v11754_v29, %v11753_v14  ;;  %v8250_v31 = vpop.f32.mrb[151].mxu0  ;;  %v12625_v14 = vld [vmem:[%s15624_s15 + $0x20] sm:$0xff]   ;;  %v12627_v29 = vld [vmem:[%s12936_s4 + $0x30] sm:$0xff]  }
0x16af   :  { %v8379_v15 = vpack.c.bf16 %v8250_v31, %v8247_v45  ;;  %v12626_v45 = vld [vmem:[%s15624_s15 + $0x28] sm:$0xff]   ;;  %v12629_v31 = vld [vmem:[%s12936_s4 + $0x40] sm:$0xff]  }
0x16b1   :  { %11789 = vmatprep.mubr.bf16.mxu0 %v8379_v15  ;;  %v12630_v15 = vld [vmem:[%s12936_s4 + $0x48] sm:$0xff]  }
0x16b2   :  { %11790 = vmatmul.mubr.bf16.vlgmr.msra.gmra.mrb[156].mxu0 %v8380_v12  ;;  %v12628_v12 = vld [vmem:[%s12936_s4 + $0x38] sm:$0xff]  }
0x16b3   :  { %11814 = vmatpush3.bf16.msra.mxu0 %v15138_v41  ;;  %11829 = vmatprep.mubr.bf16.mxu0 %v8359_v56  ;;  %v11757_v17 = vpop.f32.mrb[152].mxu0  ;;  %v12624_v56 = vld [vmem:[%s15624_s15 + $0x18] sm:$0xff]  }
0x16b4   :  { %11815 = vmatprep.subr.bf16.mxu0 %v15151_v40  ;;  %v8263_v63 = vpop.f32.mrb[153].mxu0 }
0x16b5   :  { %v11758_v27 = vpop.f32.mrb[154].mxu0 }
0x16b6   :  { %v8693_v37 = vpack.c.bf16 %v11758_v27, %v11757_v17  ;;  %v8266_v57 = vpop.f32.mrb[155].mxu0 }
0x16b7   :  { %11816 = vmatpush3.bf16.msra.mxu0 %v15151_v40  ;;  %v8692_v43 = vpack.c.bf16 %v8266_v57, %v8263_v63 }
0x16b8   :  { %11817 = vmatprep.subr.bf16.mxu0 %v15156_v39 }
0x16bb   :  { %11818 = vmatpush3.bf16.msra.mxu0 %v15156_v39 }
0x16bc   :  { %11819 = vmatprep.subr.bf16.mxu0 %v15161_v22 }
0x16bf   :  { %11820 = vmatpush3.bf16.msra.mxu0 %v15161_v22 }
0x16c0   :  { %11821 = vmatprep.subr.bf16.mxu0 %v15166_v21 }
0x16c3   :  { %11822 = vmatpush3.bf16.msra.mxu0 %v15166_v21 }
0x16c4   :  { %11823 = vmatprep.subr.bf16.mxu0 %v15171_v33 }
0x16c7   :  { %11824 = vmatpush3.bf16.msra.mxu0 %v15171_v33 }
0x16c8   :  { %11825 = vmatprep.subr.bf16.mxu0 %v15176_v36 }
0x16cb   :  { %11826 = vmatpush3.bf16.msra.mxu0 %v15176_v36 }
0x16cc   :  { %11827 = vmatprep.subr.bf16.mxu0 %v15181_v28 }
0x16cf   :  { %11828 = vmatpush3.bf16.msra.mxu0 %v15181_v28 }
0x16d0   :  { %11853 = vmatprep.subr.bf16.mxu0 %v15186_v30 }
0x16d2   :  { %11830 = vmatmul.mubr.bf16.vlgmr.msra.gmra.mrb[156].mxu0 %v8360_v20  ;;  %v12622_v20 = vld [vmem:[%s15624_s15 + $0x8] sm:$0xff]  }
0x16d3   :  { %11854 = vmatpush3.bf16.msra.mxu0 %v15186_v30  ;;  %11869 = vmatprep.mubr.bf16.mxu0 %v8692_v43 }
0x16d4   :  { %11855 = vmatprep.subr.bf16.mxu0 %v15191_v6 }
0x16d7   :  { %11856 = vmatpush3.bf16.msra.mxu0 %v15191_v6 }
0x16d8   :  { %11857 = vmatprep.subr.bf16.mxu0 %v15196_v1 }
0x16db   :  { %11858 = vmatpush3.bf16.msra.mxu0 %v15196_v1 }
0x16dc   :  { %11859 = vmatprep.subr.bf16.mxu0 %v15201_v49 }
0x16df   :  { %11860 = vmatpush3.bf16.msra.mxu0 %v15201_v49 }
0x16e0   :  { %11861 = vmatprep.subr.bf16.mxu0 %v12617_v25 }
0x16e3   :  { %11862 = vmatpush3.bf16.msra.mxu0 %v12617_v25 }
0x16e4   :  { %11863 = vmatprep.subr.bf16.mxu0 %v12618_v3 }
0x16e7   :  { %11864 = vmatpush3.bf16.msra.mxu0 %v12618_v3 }
0x16e8   :  { %11865 = vmatprep.subr.bf16.mxu0 %v12619_v59 }
0x16eb   :  { %11866 = vmatpush3.bf16.msra.mxu0 %v12619_v59 }
0x16ec   :  { %11867 = vmatprep.subr.bf16.mxu0 %v12620_v61 }
0x16ef   :  { %11868 = vmatpush3.bf16.msra.mxu0 %v12620_v61 }
0x16f2   :  { %11870 = vmatmul.mubr.bf16.vlgmr.msra.gmra.mrb[156].mxu0 %v8693_v37 }
0x16f3   :  { %11897 = vmatprep.mubr.msk.bf16.mxu0 %vm15625_vm1, %v12621_v11  ;;  %vm15642_vm1 = vmmov %vm15639_vm0 }
0x1746   :  { %v11763_v35 = vpop.f32.mrb[164].mxu1 }
0x1747   :  { %v8312_v24 = vpop.f32.mrb[165].mxu1 }
0x1748   :  { %v11764_v50 = vpop.f32.mrb[166].mxu1 }
0x1749   :  { %v8362_v19 = vpack.c.bf16 %v11764_v50, %v11763_v35  ;;  %v8315_v9 = vpop.f32.mrb[167].mxu1 }
0x174a   :  { %v8361_v42 = vpack.c.bf16 %v8315_v9, %v8312_v24 }
0x174e   :  { %v11767_v62 = vpop.f32.mrb[168].mxu1 }
0x174f   :  { %v8328_v0 = vpop.f32.mrb[169].mxu1 }
0x1750   :  { %v11768_v4 = vpop.f32.mrb[170].mxu1 }
0x1751   :  { %v8382_v46 = vpack.c.bf16 %v11768_v4, %v11767_v62  ;;  %v8331_v53 = vpop.f32.mrb[171].mxu1  ;;  %v15264_v4 = vld [vmem:[%s12936_s4 + $0x8] sm:$0xff]  }
0x1752   :  { %v8381_v32 = vpack.c.bf16 %v8331_v53, %v8328_v0  ;;  %v15277_v53 = vld [vmem:[%s12936_s4 + $0x18] sm:$0xff]  }
0x1754   :  { %11809 = vmatprep.mubr.bf16.mxu1 %v8381_v32  ;;  %v12637_v32 = vld [vmem:[%s12936_s4 + $0x20] sm:$0xff]  }
0x1755   :  { %11810 = vmatmul.mubr.bf16.vlgmr.msra.gmra.mrb[176].mxu1 %v8382_v46  ;;  %v15272_v46 = vld [vmem:[%s12936_s4 + $0x10] sm:$0xff]  }
0x1756   :  { %11834 = vmatpush3.bf16.msra.mxu1 %v15138_v41  ;;  %11849 = vmatprep.mubr.bf16.mxu1 %v8361_v42  ;;  %v11771_v16 = vpop.f32.mrb[172].mxu1  ;;  %v10413_v41 = vld [vmem:[%s15626_s16] ss:$0 sm:$0xff] }
0x1757   :  { %11835 = vmatprep.subr.bf16.mxu1 %v15151_v40  ;;  %v8344_v54 = vpop.f32.mrb[173].mxu1 }
0x1758   :  { %v11772_v47 = vpop.f32.mrb[174].mxu1 }
0x1759   :  { %v8695_v10 = vpack.c.bf16 %v11772_v47, %v11771_v16  ;;  %v8347_v26 = vpop.f32.mrb[175].mxu1  ;;  %v12639_v16 = vld [vmem:[%s12936_s4 + $0x60] sm:$0xff]  }
0x175a   :  { %11836 = vmatpush3.bf16.msra.mxu1 %v15151_v40  ;;  %v8694_v44 = vpack.c.bf16 %v8347_v26, %v8344_v54  ;;  %v12631_v40 = vld [vmem:[%s12936_s4 + $0x50] sm:$0xff]   ;;  %v12640_v26 = vld [vmem:[%s12936_s4 + $0x68] sm:$0xff]  }
0x175b   :  { %11837 = vmatprep.subr.bf16.mxu1 %v15156_v39 }
0x175e   :  { %11838 = vmatpush3.bf16.msra.mxu1 %v15156_v39  ;;  %v12632_v39 = vld [vmem:[%s12936_s4 + $0x58] sm:$0xff]  }
0x175f   :  { %11839 = vmatprep.subr.bf16.mxu1 %v15161_v22 }
0x1762   :  { %11840 = vmatpush3.bf16.msra.mxu1 %v15161_v22  ;;  %v15254_v22 = vld [vmem:[%s12936_s4] sm:$0xff]  }
0x1763   :  { %11841 = vmatprep.subr.bf16.mxu1 %v15166_v21 }
0x1766   :  { %11842 = vmatpush3.bf16.msra.mxu1 %v15166_v21 }
0x1767   :  { %11843 = vmatprep.subr.bf16.mxu1 %v15171_v33 }
0x176a   :  { %11844 = vmatpush3.bf16.msra.mxu1 %v15171_v33 }
0x176b   :  { %11845 = vmatprep.subr.bf16.mxu1 %v15176_v36 }
0x176e   :  { %11846 = vmatpush3.bf16.msra.mxu1 %v15176_v36 }
0x176f   :  { %11847 = vmatprep.subr.bf16.mxu1 %v15181_v28 }
0x1772   :  { %11848 = vmatpush3.bf16.msra.mxu1 %v15181_v28 }
0x1773   :  { %11873 = vmatprep.subr.bf16.mxu1 %v15186_v30 }
0x1775   :  { %11850 = vmatmul.mubr.bf16.vlgmr.msra.gmra.mrb[176].mxu1 %v8362_v19 }
0x1776   :  { %11874 = vmatpush3.bf16.msra.mxu1 %v15186_v30  ;;  %11889 = vmatprep.mubr.bf16.mxu1 %v8694_v44 }
0x1777   :  { %11875 = vmatprep.subr.bf16.mxu1 %v15191_v6 }
0x177a   :  { %11876 = vmatpush3.bf16.msra.mxu1 %v15191_v6 }
0x177b   :  { %11877 = vmatprep.subr.bf16.mxu1 %v15196_v1 }
0x177e   :  { %11878 = vmatpush3.bf16.msra.mxu1 %v15196_v1 }
0x177f   :  { %11879 = vmatprep.subr.bf16.mxu1 %v15201_v49 }
0x1782   :  { %11880 = vmatpush3.bf16.msra.mxu1 %v15201_v49 }
0x1783   :  { %11881 = vmatprep.subr.bf16.mxu1 %v12617_v25 }
0x1786   :  { %11882 = vmatpush3.bf16.msra.mxu1 %v12617_v25 }
0x1787   :  { %11883 = vmatprep.subr.bf16.mxu1 %v12618_v3 }
0x178a   :  { %11884 = vmatpush3.bf16.msra.mxu1 %v12618_v3 }
0x178b   :  { %11885 = vmatprep.subr.bf16.mxu1 %v12619_v59 }
0x178e   :  { %11886 = vmatpush3.bf16.msra.mxu1 %v12619_v59 }
0x178f   :  { %11887 = vmatprep.subr.bf16.mxu1 %v12620_v61 }
0x1792   :  { %11888 = vmatpush3.bf16.msra.mxu1 %v12620_v61 }
0x1795   :  { %11890 = vmatmul.mubr.bf16.vlgmr.msra.gmra.mrb[176].mxu1 %v8695_v10 }
0x1796   :  { %11913 = vmatprep.mubr.msk.bf16.mxu1 %vm15627_vm4, %v12621_v11  ;;  %v12638_v11 = vld [vmem:[%s12936_s4 + $0x28] sm:$0xff]   ;;  %vm15643_vm4 = vmmov %vm15639_vm0 }
0x17c5   :  { %v11871_v52 = vpop.f32.mrb[156].mxu0 }
0x17c6   :  { %v8876_v34 = vadd.f32 %v11871_v52, %v10413_v41  ;;  %v8795_v7 = vpop.f32.mrb[157].mxu0 }
0x17c7   :  { %v8874_v23 = vadd.f32 %v10413_v41, %v8795_v7  ;;  %v11872_v18 = vpop.f32.mrb[158].mxu0  ;;  %v12642_v7 = vld [vmem:[%s12936_s4 + $0x78] sm:$0xff]  }
0x17c8   :  { %v8884_v13 = vmax.f32 %v8876_v34, 0.0  ;;  %v8877_v58 = vadd.f32 %v11872_v18, %v10413_v41  ;;  %v8798_v2 = vpop.f32.mrb[159].mxu0  ;;  %v12641_v34 = vld [vmem:[%s12936_s4 + $0x70] sm:$0xff]   ;;  %v12644_v18 = vld [vmem:[%s12936_s4 + $0x88] sm:$0xff]  }
0x17c9   :  { %v8882_v38 = vmax.f32 %v8874_v23, 0.0  ;;  %v8875_v48 = vadd.f32 %v10413_v41, %v8798_v2  ;;  %v12643_v23 = vld [vmem:[%s12936_s4 + $0x80] sm:$0xff]  }
0x17ca   :  { %v8885_v55 = vmax.f32 %v8877_v58, 0.0 }
0x17cb   :  { %v8883_v5 = vmax.f32 %v8875_v48, 0.0 }
0x17cc   :  { %v8903_v51 = vpack.c.bf16 %v8885_v55, %v8884_v13 }
0x17cd   :  { %v8902_v8 = vpack.c.bf16 %v8883_v5, %v8882_v38 }
0x17cf   :  { %11893 = vmatprep.subr.bf16.mxu0 %v8902_v8 }
0x17d0   :  { %11894 = vmatpush3.bf16.msra.mxu0 %v8902_v8 }
0x17d1   :  { %11895 = vmatprep.subr.bf16.mxu0 %v8903_v51 }
0x17d4   :  { %11896 = vmatpush3.bf16.msra.mxu0 %v8903_v51 }
0x17d5   :  { %11925 = vmatprep.subr.bf16.mxu0 %v12627_v29 }
0x17d7   :  { %11898 = vmatmul.mubr.msk.bf16.vlgmr.msra.gmra.mrb[160].mxu0 %vm15628_vm7, %v12622_v20  ;;  %vm15644_vm7 = vmmov %vm15639_vm0 }
0x17d8   :  { %11901 = vmatprep.mubr.msk.bf16.mxu0 %vm15629_vm8, %v12623_v60  ;;  %11926 = vmatpush3.bf16.msra.mxu0 %v12627_v29  ;;  %vm15645_vm8 = vmmov %vm15639_vm0 }
0x17d9   :  { %11927 = vmatprep.subr.bf16.mxu0 %v12628_v12 }
0x17dc   :  { %11928 = vmatpush3.bf16.msra.mxu0 %v12628_v12 }
0x17dd   :  { %11929 = vmatprep.subr.bf16.mxu0 %v12629_v31 }
0x17df   :  { %11902 = vmatmul.mubr.msk.bf16.gmra.mrb[164].mxu0 %vm15630_vm11, %v12624_v56  ;;  %vm15646_vm11 = vmmov %vm15639_vm0 }
0x17e0   :  { %11905 = vmatprep.mubr.msk.bf16.mxu0 %vm15631_vm14, %v12625_v14  ;;  %11930 = vmatpush3.bf16.msra.mxu0 %v12629_v31  ;;  %vm15647_vm14 = vmmov %vm15639_vm0 }
0x17e1   :  { %11931 = vmatprep.subr.bf16.mxu0 %v12630_v15 }
0x17e4   :  { %11932 = vmatpush3.bf16.msra.mxu0 %v12630_v15 }
0x17e5   :  { %11933 = vmatprep.subr.bf16.mxu0 %v12631_v40 }
0x17e7   :  { %11906 = vmatmul.mubr.msk.bf16.gmra.mrb[168].mxu0 %vm15632_vm9, %v12626_v45  ;;  %vm15648_vm9 = vmmov %vm15639_vm0 }
0x17e8   :  { %11934 = vmatpush3.bf16.msra.mxu0 %v12631_v40 }
0x17e9   :  { %11935 = vmatprep.subr.bf16.mxu0 %v12632_v39 }
0x17ec   :  { %11936 = vmatpush3.bf16.msra.mxu0 %v12632_v39 }
0x17ed   :  { %11957 = vmatprep.subr.bf16.mxu0 %v15254_v22 }
0x1868   :  { %v11891_v21 = vpop.f32.mrb[176].mxu1 }
0x1869   :  { %v8880_v33 = vadd.f32 %v11891_v21, %v10413_v41  ;;  %v8844_v17 = vpop.f32.mrb[177].mxu1 }
0x186a   :  { %v8878_v63 = vadd.f32 %v10413_v41, %v8844_v17  ;;  %v11892_v27 = vpop.f32.mrb[178].mxu1 }
0x186b   :  { %v8881_v36 = vadd.f32 %v11892_v27, %v10413_v41  ;;  %v8847_v37 = vpop.f32.mrb[179].mxu1  ;;  %v8888_v43 = vmax.f32 %v8880_v33, 0.0 }
0x186c   :  { %v8879_v57 = vadd.f32 %v10413_v41, %v8847_v37  ;;  %v8886_v30 = vmax.f32 %v8878_v63, 0.0 }
0x186d   :  { %v8889_v28 = vmax.f32 %v8881_v36, 0.0 }
0x186e   :  { %v8887_v6 = vmax.f32 %v8879_v57, 0.0 }
0x186f   :  { %v8905_v1 = vpack.c.bf16 %v8889_v28, %v8888_v43 }
0x1870   :  { %v8904_v49 = vpack.c.bf16 %v8887_v6, %v8886_v30 }
0x1872   :  { %11909 = vmatprep.subr.bf16.mxu1 %v8904_v49 }
0x1873   :  { %11910 = vmatpush3.bf16.msra.mxu1 %v8904_v49 }
0x1874   :  { %11911 = vmatprep.subr.bf16.mxu1 %v8905_v1 }
0x1877   :  { %11912 = vmatpush3.bf16.msra.mxu1 %v8905_v1 }
0x1878   :  { %11941 = vmatprep.subr.bf16.mxu1 %v12627_v29 }
0x187a   :  { %11914 = vmatmul.mubr.msk.bf16.vlgmr.msra.gmra.mrb[180].mxu1 %vm15633_vm12, %v12622_v20  ;;  %vm15649_vm12 = vmmov %vm15639_vm0 }
0x187b   :  { %11917 = vmatprep.mubr.msk.bf16.mxu1 %vm15634_vm10, %v12623_v60  ;;  %11942 = vmatpush3.bf16.msra.mxu1 %v12627_v29 }
0x187c   :  { %11943 = vmatprep.subr.bf16.mxu1 %v12628_v12 }
0x187f   :  { %11944 = vmatpush3.bf16.msra.mxu1 %v12628_v12 }
0x1880   :  { %11945 = vmatprep.subr.bf16.mxu1 %v12629_v31 }
0x1882   :  { %11918 = vmatmul.mubr.msk.bf16.gmra.mrb[184].mxu1 %vm15635_vm13, %v12624_v56 }
0x1883   :  { %11921 = vmatprep.mubr.msk.bf16.mxu1 %vm15636_vm6, %v12625_v14  ;;  %11946 = vmatpush3.bf16.msra.mxu1 %v12629_v31 }
0x1884   :  { %11947 = vmatprep.subr.bf16.mxu1 %v12630_v15 }
0x1887   :  { %11948 = vmatpush3.bf16.msra.mxu1 %v12630_v15 }
0x1888   :  { %11949 = vmatprep.subr.bf16.mxu1 %v12631_v40 }
0x188a   :  { %11922 = vmatmul.mubr.msk.bf16.gmra.mrb[188].mxu1 %vm15637_vm5, %v12626_v45 }
0x188b   :  { %11950 = vmatpush3.bf16.msra.mxu1 %v12631_v40  ;;  %v10486_v40 = vld [vmem:[%s12941_s12] ss:$0 sm:$0xff]  ;;  %s12742_s12 = smov [#allocation2]  }
0x188c   :  { %11951 = vmatprep.subr.bf16.mxu1 %v12632_v39  ;;  %s9675_s4 = sshll.u32 %s12742_s12, 4  ;;  %s9676_s4 = int_to_ptr.vmem [resolvable:$true] %s9675_s4 }
0x188d   :  { %s12671_s18 = scalar_lea.vmem %s9676_s4, 16  ;;  %s12675_s22 = scalar_lea.vmem %s9676_s4, 32 }
0x188e   :  { %p12672_p0 = scmp.ne.s32.totalorder %s9676_s4, %s12671_s18  ;;  %p12676_p1 = scmp.lt.s32.totalorder %s9676_s4, %s9676_s4 }
0x188f   :  { %11952 = vmatpush3.bf16.msra.mxu1 %v12632_v39  ;;  %p12677_p2 = scmp.lt.s32.totalorder %s12675_s22, %s12671_s18 }
0x1890   :  { %11973 = vmatprep.subr.bf16.mxu1 %v15254_v22 }
0x1891   :  { %p12678_p3 = por %p12677_p2, %p12676_p1 }
0x1893   :  { %p12679_p4 = pnand %p12678_p3, %p12672_p0 }
0x18aa   :  { %v11899_v25 = vpop.f32.mrb[160].mxu0 }
0x18ab   :  { %v8988_v3 = vpop.f32.mrb[161].mxu0 }
0x18ac   :  { %v11900_v59 = vpop.f32.mrb[162].mxu0 }
0x18ad   :  { %v9117_v61 = vpack.c.bf16 %v11900_v59, %v11899_v25  ;;  %v8991_v35 = vpop.f32.mrb[163].mxu0 }
0x18ae   :  { %v9116_v24 = vpack.c.bf16 %v8991_v35, %v8988_v3 }
0x18b2   :  { %v11903_v50 = vpop.f32.mrb[164].mxu0 }
0x18b3   :  { %v9004_v19 = vpop.f32.mrb[165].mxu0 }
0x18b4   :  { %v11904_v9 = vpop.f32.mrb[166].mxu0 }
0x18b5   :  { %v9133_v42 = vpack.c.bf16 %v11904_v9, %v11903_v50  ;;  %v9007_v62 = vpop.f32.mrb[167].mxu0 }
0x18b6   :  { %v9132_v0 = vpack.c.bf16 %v9007_v62, %v9004_v19 }
0x18b8   :  { %11937 = vmatprep.mubr.msk.bf16.mxu0 %vm15638_vm15, %v9132_v0 }
0x18b9   :  { %11938 = vmatmul.mubr.msk.bf16.vlgmr.msra.gmra.mrb[172].mxu0 %vm15639_vm0, %v9133_v42 }
0x18ba   :  { %11958 = vmatpush3.bf16.msra.mxu0 %v15254_v22  ;;  %11969 = vmatprep.mubr.msk.bf16.mxu0 %vm15640_vm2, %v9116_v24  ;;  %v11907_v54 = vpop.f32.mrb[168].mxu0 }
0x18bb   :  { %11959 = vmatprep.subr.bf16.mxu0 %v15264_v4  ;;  %v9020_v47 = vpop.f32.mrb[169].mxu0 }
0x18bc   :  { %v11908_v10 = vpop.f32.mrb[170].mxu0 }
0x18bd   :  { %v9442_v44 = vpack.c.bf16 %v11908_v10, %v11907_v54  ;;  %v9023_v41 = vpop.f32.mrb[171].mxu0 }
0x18be   :  { %11960 = vmatpush3.bf16.msra.mxu0 %v15264_v4  ;;  %v9441_v52 = vpack.c.bf16 %v9023_v41, %v9020_v47 }
0x18bf   :  { %11961 = vmatprep.subr.bf16.mxu0 %v15272_v46 }
0x18c2   :  { %11962 = vmatpush3.bf16.msra.mxu0 %v15272_v46 }
0x18c3   :  { %11963 = vmatprep.subr.bf16.mxu0 %v15277_v53 }
0x18c6   :  { %11964 = vmatpush3.bf16.msra.mxu0 %v15277_v53 }
0x18c7   :  { %11965 = vmatprep.subr.bf16.mxu0 %v12637_v32 }
0x18ca   :  { %11966 = vmatpush3.bf16.msra.mxu0 %v12637_v32 }
0x18cb   :  { %11967 = vmatprep.subr.bf16.mxu0 %v12638_v11 }
0x18ce   :  { %11968 = vmatpush3.bf16.msra.mxu0 %v12638_v11 }
0x18cf   :  { %11989 = vmatprep.subr.bf16.mxu0 %v12639_v16 }
0x18d1   :  { %11970 = vmatmul.mubr.msk.bf16.vlgmr.msra.gmra.mrb[172].mxu0 %vm15641_vm3, %v9117_v61 }
0x18d2   :  { %11990 = vmatpush3.bf16.msra.mxu0 %v12639_v16  ;;  %12001 = vmatprep.mubr.msk.bf16.mxu0 %vm15642_vm1, %v9441_v52 }
0x18d3   :  { %11991 = vmatprep.subr.bf16.mxu0 %v12640_v26 }
0x18d6   :  { %11992 = vmatpush3.bf16.msra.mxu0 %v12640_v26 }
0x18d7   :  { %11993 = vmatprep.subr.bf16.mxu0 %v12641_v34 }
0x18da   :  { %11994 = vmatpush3.bf16.msra.mxu0 %v12641_v34 }
0x18db   :  { %11995 = vmatprep.subr.bf16.mxu0 %v12642_v7 }
0x18de   :  { %11996 = vmatpush3.bf16.msra.mxu0 %v12642_v7 }
0x18df   :  { %11997 = vmatprep.subr.bf16.mxu0 %v12643_v23 }
0x18e2   :  { %11998 = vmatpush3.bf16.msra.mxu0 %v12643_v23 }
0x18e3   :  { %11999 = vmatprep.subr.bf16.mxu0 %v12644_v18 }
0x18e6   :  { %12000 = vmatpush3.bf16.msra.mxu0 %v12644_v18 }
0x18e9   :  { %12002 = vmatmul.mubr.msk.bf16.vlgmr.msra.gmra.mrb[172].mxu0 %vm15643_vm4, %v9442_v44 }
0x194d   :  { %v11915_v13 = vpop.f32.mrb[180].mxu1 }
0x194e   :  { %v9069_v58 = vpop.f32.mrb[181].mxu1 }
0x194f   :  { %v11916_v2 = vpop.f32.mrb[182].mxu1 }
0x1950   :  { %v9119_v38 = vpack.c.bf16 %v11916_v2, %v11915_v13  ;;  %v9072_v48 = vpop.f32.mrb[183].mxu1 }
0x1951   :  { %v9118_v55 = vpack.c.bf16 %v9072_v48, %v9069_v58 }
0x1955   :  { %v11919_v5 = vpop.f32.mrb[184].mxu1 }
0x1956   :  { %v9085_v51 = vpop.f32.mrb[185].mxu1 }
0x1957   :  { %v11920_v8 = vpop.f32.mrb[186].mxu1 }
0x1958   :  { %v9135_v20 = vpack.c.bf16 %v11920_v8, %v11919_v5  ;;  %v9088_v60 = vpop.f32.mrb[187].mxu1 }
0x1959   :  { %v9134_v56 = vpack.c.bf16 %v9088_v60, %v9085_v51 }
0x195b   :  { %11953 = vmatprep.mubr.msk.bf16.mxu1 %vm15644_vm7, %v9134_v56 }
0x195c   :  { %11954 = vmatmul.mubr.msk.bf16.vlgmr.msra.gmra.mrb[192].mxu1 %vm15645_vm8, %v9135_v20 }
0x195d   :  { %11974 = vmatpush3.bf16.msra.mxu1 %v15254_v22  ;;  %11985 = vmatprep.mubr.msk.bf16.mxu1 %vm15646_vm11, %v9118_v55  ;;  %v11923_v14 = vpop.f32.mrb[188].mxu1 }
0x195e   :  { %11975 = vmatprep.subr.bf16.mxu1 %v15264_v4  ;;  %v9101_v45 = vpop.f32.mrb[189].mxu1 }
0x195f   :  { %v11924_v29 = vpop.f32.mrb[190].mxu1 }
0x1960   :  { %v9444_v12 = vpack.c.bf16 %v11924_v29, %v11923_v14  ;;  %v9104_v31 = vpop.f32.mrb[191].mxu1 }
0x1961   :  { %11976 = vmatpush3.bf16.msra.mxu1 %v15264_v4  ;;  %v9443_v15 = vpack.c.bf16 %v9104_v31, %v9101_v45 }
0x1962   :  { %11977 = vmatprep.subr.bf16.mxu1 %v15272_v46 }
0x1965   :  { %11978 = vmatpush3.bf16.msra.mxu1 %v15272_v46 }
0x1966   :  { %11979 = vmatprep.subr.bf16.mxu1 %v15277_v53 }
0x1969   :  { %11980 = vmatpush3.bf16.msra.mxu1 %v15277_v53 }
0x196a   :  { %11981 = vmatprep.subr.bf16.mxu1 %v12637_v32 }
0x196d   :  { %11982 = vmatpush3.bf16.msra.mxu1 %v12637_v32 }
0x196e   :  { %11983 = vmatprep.subr.bf16.mxu1 %v12638_v11 }
0x1971   :  { %11984 = vmatpush3.bf16.msra.mxu1 %v12638_v11 }
0x1972   :  { %12005 = vmatprep.subr.bf16.mxu1 %v12639_v16 }
0x1974   :  { %11986 = vmatmul.mubr.msk.bf16.vlgmr.msra.gmra.mrb[192].mxu1 %vm15647_vm14, %v9119_v38 }
0x1975   :  { %12006 = vmatpush3.bf16.msra.mxu1 %v12639_v16  ;;  %12017 = vmatprep.mubr.msk.bf16.mxu1 %vm15648_vm9, %v9443_v15 }
0x1976   :  { %12007 = vmatprep.subr.bf16.mxu1 %v12640_v26 }
0x1979   :  { %12008 = vmatpush3.bf16.msra.mxu1 %v12640_v26 }
0x197a   :  { %12009 = vmatprep.subr.bf16.mxu1 %v12641_v34 }
0x197d   :  { %12010 = vmatpush3.bf16.msra.mxu1 %v12641_v34 }
0x197e   :  { %12011 = vmatprep.subr.bf16.mxu1 %v12642_v7 }
0x1981   :  { %12012 = vmatpush3.bf16.msra.mxu1 %v12642_v7 }
0x1982   :  { %12013 = vmatprep.subr.bf16.mxu1 %v12643_v23 }
0x1985   :  { %12014 = vmatpush3.bf16.msra.mxu1 %v12643_v23 }
0x1986   :  { %12015 = vmatprep.subr.bf16.mxu1 %v12644_v18 }
0x1989   :  { %12016 = vmatpush3.bf16.msra.mxu1 %v12644_v18 }
0x198c   :  { %12018 = vmatmul.mubr.msk.bf16.vlgmr.msra.gmra.mrb[192].mxu1 %vm15649_vm12, %v9444_v12 }
0x19bc   :  { %v12003_v39 = vpop.f32.mrb[172].mxu0 }
0x19bd   :  { %v9621_v22 = vadd.f32 %v12003_v39, %v10486_v40  ;;  %v9534_v21 = vpop.f32.mrb[173].mxu0 }
0x19be   :  { %v9619_v33 = vadd.f32 %v10486_v40, %v9534_v21  ;;  %v12004_v17 = vpop.f32.mrb[174].mxu0 }
0x19bf   :  { %v9629_v63 = vmul.f32 0.5, %v9621_v22  ;;  %v9622_v27 = vadd.f32 %v12004_v17, %v10486_v40  ;;  %v9537_v36 = vpop.f32.mrb[175].mxu0 }
0x19c0   :  { %v9627_v37 = vmul.f32 0.5, %v9619_v33  ;;  %v9620_v57 = vadd.f32 %v10486_v40, %v9537_v36 }
0x19c1   :  { %12655 = vtanh.f32 %v9629_v63  ;;  %v9630_v43 = vmul.f32 0.5, %v9622_v27 }
0x19c2   :  { %12657 = vtanh.f32 %v9627_v37  ;;  %v9628_v28 = vmul.f32 0.5, %v9620_v57 }
0x19c3   :  { %12659 = vtanh.f32 %v9630_v43 }
0x19c4   :  { %12661 = vtanh.f32 %v9628_v28 }
0x19cb   :  { %v12656_v30 = vpop.eup %12655 }
0x19cc   :  { %v12658_v6 = vpop.eup %12657  ;;  %v9645_v1 = vadd.f32 1.0, %v12656_v30 }
0x19cd   :  { %v12660_v49 = vpop.eup %12659  ;;  %v9643_v25 = vadd.f32 1.0, %v12658_v6 }
0x19ce   :  { %v12662_v3 = vpop.eup %12661  ;;  %v9653_v59 = vmul.f32 0.5, %v9645_v1  ;;  %v9646_v61 = vadd.f32 1.0, %v12660_v49 }
0x19cf   :  { %v9651_v35 = vmul.f32 0.5, %v9643_v25  ;;  %v9644_v24 = vadd.f32 1.0, %v12662_v3 }
0x19d0   :  { %9661 = vst [vmem:[%s12946_s20 + $0x10] sm:$0xff] %v9653_v59  ;;  %v9654_v50 = vmul.f32 0.5, %v9646_v61 }
0x19d1   :  { %9659 = vst [vmem:[%s12946_s20] sm:$0xff] %v9651_v35  ;;  %v9652_v19 = vmul.f32 0.5, %v9644_v24 }
0x19d2   :  { %9662 = vst [vmem:[%s12946_s20 + $0x18] sm:$0xf] %v9654_v50 }
0x19d3   :  { %9660 = vst [vmem:[%s12946_s20 + $0x8] sm:$0xff] %v9652_v19 }
0x19d4   :  { %12682 = shalt.err (!%p12679_p4)
}
0x19d5   :  { %s12683_s23 = scalar_lea.hbm %s12951_s27, 16 }
0x19d6   :  { %p12684_p5 = scmp.ne.s32.totalorder %s12951_s27, %s12683_s23  ;;  %p12687_p6 = scmp.lt.u32.totalorder %s12683_s23, %s12951_s27 }
0x19d8   :  { %p12689_p7 = pnand %p12687_p6, %p12684_p5 }
0x19da   :  { %12692 = shalt.err (!%p12689_p7)
}
0x19db   :  { %9678 = dma.vmem_to_hbm [thread:$0]  %s9676_s4, 16, %s12951_s27, [#allocation3]  }
0x1a5f   :  { %v12019_v9 = vpop.f32.mrb[192].mxu1 }
0x1a60   :  { %v9625_v42 = vadd.f32 %v12019_v9, %v10486_v40  ;;  %v9589_v62 = vpop.f32.mrb[193].mxu1 }
0x1a61   :  { %v9623_v0 = vadd.f32 %v10486_v40, %v9589_v62  ;;  %v12020_v4 = vpop.f32.mrb[194].mxu1 }
0x1a62   :  { %v9633_v46 = vmul.f32 0.5, %v9625_v42  ;;  %v9626_v53 = vadd.f32 %v12020_v4, %v10486_v40  ;;  %v9592_v32 = vpop.f32.mrb[195].mxu1 }
0x1a63   :  { %v9631_v11 = vmul.f32 0.5, %v9623_v0  ;;  %v9624_v16 = vadd.f32 %v10486_v40, %v9592_v32 }
0x1a64   :  { %12663 = vtanh.f32 %v9633_v46  ;;  %v9634_v54 = vmul.f32 0.5, %v9626_v53 }
0x1a65   :  { %12665 = vtanh.f32 %v9631_v11  ;;  %v9632_v47 = vmul.f32 0.5, %v9624_v16 }
0x1a66   :  { %12667 = vtanh.f32 %v9634_v54 }
0x1a67   :  { %12669 = vtanh.f32 %v9632_v47 }
0x1a6e   :  { %v12664_v10 = vpop.eup %12663 }
0x1a6f   :  { %v12666_v26 = vpop.eup %12665  ;;  %v9649_v44 = vadd.f32 1.0, %v12664_v10 }
0x1a70   :  { %v12668_v41 = vpop.eup %12667  ;;  %v9647_v52 = vadd.f32 1.0, %v12666_v26 }
0x1a71   :  { %v12670_v34 = vpop.eup %12669  ;;  %v9657_v7 = vmul.f32 0.5, %v9649_v44  ;;  %v9650_v23 = vadd.f32 1.0, %v12668_v41 }
0x1a72   :  { %v9655_v18 = vmul.f32 0.5, %v9647_v52  ;;  %v9648_v13 = vadd.f32 1.0, %v12670_v34 }
0x1a73   :  { %9665 = vst [vmem:[%s12946_s20 + $0x30] sm:$0xff] %v9657_v7  ;;  %v9658_v58 = vmul.f32 0.5, %v9650_v23 }
0x1a74   :  { %9663 = vst [vmem:[%s12946_s20 + $0x20] sm:$0xff] %v9655_v18  ;;  %v9656_v2 = vmul.f32 0.5, %v9648_v13 }
0x1a75   :  { %9666 = vst [vmem:[%s12946_s20 + $0x38] sm:$0xf] %v9658_v58 }
0x1a76   :  { %9664 = vst [vmem:[%s12946_s20 + $0x28] sm:$0xff] %v9656_v2 }
0x1a77   :  { %12693 = dma.done.wait [#allocation3], 16  }
0x1a78   :  { %12694 = vsyncadd [#allocation3], 4294967280 }
0x1a79   :  { %9684 = vsyncpa [#allocation3], 1 }

</bundles_post_ra>
